<compile_context>
chip_gen: v7x
topology: tpu7x:2x2x1
jax: 0.10.0
libtpu: 0.0.40
codegen_flags: <defaults>
</compile_context>

<pallas_src>
import jax
import jax.numpy as jnp
import numpy as np
from jax import lax
from jax.experimental import pallas as pl
from jax.experimental.pallas import tpu as pltpu

BN_EPS = 1e-5
BN_GAMMA = 1.0
BN_BETA = 1e-4
C_OUT = 256


def _pick_band_rows(h, w, target_bands=8):
    """Divisor of h giving roughly `target_bands` sublane-aligned row bands."""
    want = max(1, h // target_bands)
    divisors = [r for r in range(1, h + 1)
                if h % r == 0 and ((r * w) % 8 == 0 or r == h)]
    for r in divisors:
        if r >= want:
            return r
    return h


def _vmem_limit_bytes():
    """~80% of physical per-core VMEM (leaves slack for compiler scratch)."""
    cap = 0
    try:
        cap = int(pltpu.get_tpu_info().vmem_capacity_bytes)
    except Exception:
        cap = 0
    if cap <= 0:
        cap = 64 * 1024 * 1024
    return max(32 * 1024 * 1024, (cap * 4) // 5)


def _make_assp_kernel(h, w, cin, dilations, pad, band_rows):
    """Build the kernel body (spatial sizes / dilations / band size are static)."""
    band_hw = band_rows * w

    def kernel(x_ref, w1_ref, w2_ref, w3_ref, w4_ref, wproj_ref, r_ref,
               bias_ref, out_ref, xp_scr, slab_scr, yb_scr, acc_scr):
        # x_ref:    (1, H, W, Cin)          unpadded NHWC input (compute dtype)
        # w1_ref:   (Cin, 256)              1x1 branch weight (BN scale folded)
        # wK_ref:   (9, Cin, 256)           dilated 3x3 branch weights
        # wproj_ref:(4*256, 256)            projection rows for branches 1-4
        # r_ref:    (1, 1, 256)             pooled-branch rank-1 term (f32)
        # bias_ref: (5, 256)                BN biases: branches 1-4 + projection
        # out_ref:  (1, band_hw, 256)       this band's output rows
        # xp_scr:   (H+2P, W+2P, Cin)       zero-padded image (persists over bands)
        # slab_scr: (band_rows+2P, W, Cin)  column-shifted tap slab
        # yb_scr:   (band_hw, 256) f32      per-branch accumulator
        # acc_scr:  (band_hw, 256) f32      projection accumulator
        f32 = jnp.float32
        cdt = w1_ref.dtype                   # compute dtype (bf16 by default)
        t = pl.program_id(1)                 # band index

        # Build the zero-padded image once per batch element (band 0).  Full
        # zero + interior overwrite is VMEM-only traffic and is correct under
        # any megacore partitioning of the batch axis.
        @pl.when(t == 0)
        def _():
            xp_scr[...] = jnp.zeros_like(xp_scr)
            xp_scr[pad:pad + h, pad:pad + w, :] = x_ref[0]

        row_base = t * band_rows             # first output row of this band

        def load_slab(dil, kx, n_rows):
            # Stage one W-shifted, width-w column window into the slab scratch;
            # the per-ky taps below are then contiguous row slices of it.
            c0 = pad + (kx - 1) * dil
            r0 = row_base + pad - dil
            slab_scr[0:n_rows, :, :] = xp_scr[pl.ds(r0, n_rows), c0:c0 + w, :]

        # ---- Branch 1: 1x1 conv + BN + ReLU, folded straight into projection.
        load_slab(0, 1, band_rows)
        x1 = slab_scr[0:band_rows].reshape(band_hw, cin)
        y1 = jnp.dot(x1, w1_ref[...], preferred_element_type=f32) + bias_ref[0:1, :]
        y1 = jnp.maximum(y1, 0.0).astype(cdt)
        acc_scr[...] = jnp.dot(y1, wproj_ref[0:C_OUT, :], preferred_element_type=f32)

        # ---- Branches 2-4: dilated 3x3 conv = 9 shifted-tap matmuls (3 slab
        # stages per branch); each branch is folded into the projection
        # accumulator as soon as it is ready (no (HW, 1280) concat).
        for bi, w_ref in ((1, w2_ref), (2, w3_ref), (3, w4_ref)):
            dil = dilations[bi]
            n_rows = band_rows + 2 * dil
            first = True
            for kx in range(3):
                load_slab(dil, kx, n_rows)
                for ky in range(3):
                    tap = slab_scr[ky * dil:ky * dil + band_rows].reshape(band_hw, cin)
                    d = jnp.dot(tap, w_ref[ky * 3 + kx], preferred_element_type=f32)
                    if first:
                        yb_scr[...] = d
                        first = False
                    else:
                        yb_scr[...] += d
            yb = jnp.maximum(yb_scr[...] + bias_ref[bi:bi + 1, :], 0.0).astype(cdt)
            acc_scr[...] += jnp.dot(yb, wproj_ref[bi * C_OUT:(bi + 1) * C_OUT, :],
                                    preferred_element_type=f32)

        # ---- Pooled branch (rank-1, precomputed in the wrapper) + final BN+ReLU.
        # Dropout(0.5) is identity in eval mode.
        out = jnp.maximum(acc_scr[...] + r_ref[0] + bias_ref[4:5, :], 0.0)
        out_ref[0] = out.astype(out_ref.dtype)

    return kernel


def init_params(key, in_channels, aspp_stride=16):
    assert aspp_stride in (8, 16)
    dilations = [1, 6, 12, 18] if aspp_stride == 16 else [1, 12, 24, 36]
    ks = jax.random.split(key, 6)

    def kaiming(k, shape):  # OIHW, kaiming_normal fan_in, relu gain
        fan_in = shape[1] * shape[2] * shape[3]
        return jax.random.normal(k, shape, jnp.float32) * jnp.sqrt(2.0 / fan_in)

    return dict(
        dilations=dilations,
        w_aspp1=kaiming(ks[0], (C_OUT, in_channels, 1, 1)),
        w_aspp2=kaiming(ks[1], (C_OUT, in_channels, 3, 3)),
        w_aspp3=kaiming(ks[2], (C_OUT, in_channels, 3, 3)),
        w_aspp4=kaiming(ks[3], (C_OUT, in_channels, 3, 3)),
        w_pool=kaiming(ks[4], (C_OUT, in_channels, 1, 1)),
        w_proj=kaiming(ks[5], (C_OUT, C_OUT * 5, 1, 1)),
    )


def _assp_forward_impl(x_nchw, params, compute_dtype, out_dtype, band_rows,
                       output_nchw, single_buffer_weights):
    n, cin, h, w = x_nchw.shape
    hw = h * w
    d = tuple(params["dilations"])
    pad = max(d)                        # one halo covers all three dilations

    if band_rows is None:
        band_rows = _pick_band_rows(h, w)
    assert h % band_rows == 0, "band_rows must divide H"
    assert (band_rows * w) % 8 == 0 or band_rows == h, "band must be sublane-aligned"
    n_bands = h // band_rows
    band_hw = band_rows * w

    # Single unpadded NHWC image is the only activation stream into the kernel.
    x_nhwc = jnp.transpose(x_nchw, (0, 2, 3, 1)).astype(jnp.float32)
    x_in = x_nhwc.astype(compute_dtype)

    # Fold inference-mode BN (mean=0, var=1, gamma=1) into conv weights.
    scale = BN_GAMMA / np.sqrt(1.0 + BN_EPS)

    def oihw_to_kio(w_oihw):  # (O, I, kh, kw) -> (kh*kw, I, O)
        o, i, kh, kw = w_oihw.shape
        return (jnp.transpose(w_oihw, (2, 3, 1, 0)).reshape(kh * kw, i, o)
                * scale).astype(compute_dtype)

    w1 = (params["w_aspp1"][:, :, 0, 0].T * scale).astype(compute_dtype)
    w2 = oihw_to_kio(params["w_aspp2"])
    w3 = oihw_to_kio(params["w_aspp3"])
    w4 = oihw_to_kio(params["w_aspp4"])

    wproj_full = params["w_proj"][:, :, 0, 0].T * scale          # (1280, 256) f32
    wproj4 = wproj_full[:4 * C_OUT].astype(compute_dtype)        # branches 1-4
    wproj5 = wproj_full[4 * C_OUT:]                              # pooled branch, f32

    # Pooled branch (AdaptiveAvgPool -> 1x1 conv -> BN -> ReLU -> broadcast)
    # collapses to a single rank-1 row per image; compute it here in f32.
    wp_pool = params["w_pool"][:, :, 0, 0].T * scale             # (Cin, 256)
    mean = jnp.mean(x_nhwc, axis=(1, 2))                         # (N, Cin)
    y5 = jnp.maximum(mean @ wp_pool + BN_BETA, 0.0)              # (N, 256)
    r = (y5 @ wproj5).reshape(n, 1, C_OUT).astype(jnp.float32)   # (N, 1, 256)

    # Biases: branches 1-4 BN beta + final projection BN beta (per-channel rows).
    bias = jnp.full((5, C_OUT), BN_BETA, jnp.float32)

    def wspec(shape, imap):
        # Grid-invariant weights: DMA'd once; single-buffer to halve their VMEM.
        if single_buffer_weights:
            return pl.BlockSpec(shape, imap, pipeline_mode=pl.Buffered(1))
        return pl.BlockSpec(shape, imap)

    kernel = _make_assp_kernel(h, w, cin, d, pad, band_rows)

    out = pl.pallas_call(
        kernel,
        out_shape=jax.ShapeDtypeStruct((n, hw, C_OUT), out_dtype),
        grid_spec=pltpu.PrefetchScalarGridSpec(
            num_scalar_prefetch=0,
            grid=(n, n_bands),
            in_specs=[
                pl.BlockSpec((1, h, w, cin), lambda b, t: (b, 0, 0, 0)),
                wspec((cin, C_OUT), lambda b, t: (0, 0)),
                wspec((9, cin, C_OUT), lambda b, t: (0, 0, 0)),
                wspec((9, cin, C_OUT), lambda b, t: (0, 0, 0)),
                wspec((9, cin, C_OUT), lambda b, t: (0, 0, 0)),
                wspec((4 * C_OUT, C_OUT), lambda b, t: (0, 0)),
                pl.BlockSpec((1, 1, C_OUT), lambda b, t: (b, 0, 0)),
                wspec((5, C_OUT), lambda b, t: (0, 0)),
            ],
            out_specs=pl.BlockSpec((1, band_hw, C_OUT), lambda b, t: (b, t, 0)),
            scratch_shapes=[
                pltpu.VMEM((h + 2 * pad, w + 2 * pad, cin), compute_dtype),
                pltpu.VMEM((band_rows + 2 * pad, w, cin), compute_dtype),
                pltpu.VMEM((band_hw, C_OUT), jnp.float32),
                pltpu.VMEM((band_hw, C_OUT), jnp.float32),
            ]),
        compiler_params=pltpu.CompilerParams(
            dimension_semantics=("parallel", "arbitrary"),
            vmem_limit_bytes=_vmem_limit_bytes(),
        ),
    )(x_in, w1, w2, w3, w4, wproj4, r, bias)

    out_nhwc = out.reshape(n, h, w, C_OUT)
    if output_nchw:
        return jnp.transpose(out_nhwc, (0, 3, 1, 2))  # NCHW, matching PyTorch
    return out_nhwc


def assp_forward(x_nchw, params, compute_dtype=jnp.bfloat16,
                 out_dtype=jnp.float32, band_rows=None, output_nchw=True):
    try:
        return _assp_forward_impl(x_nchw, params, compute_dtype, out_dtype,
                                  band_rows, output_nchw,
                                  single_buffer_weights=True)
    except Exception:
        # pl.Buffered(1) unsupported by this JAX build: fall back to default
        # double-buffered (still grid-invariant, DMA'd once) weight pipeline.
        return _assp_forward_impl(x_nchw, params, compute_dtype, out_dtype,
                                  band_rows, output_nchw,
                                  single_buffer_weights=False)


def _ref_forward(x_nchw, params):
    """Pure-JAX (lax.conv) reference for numerical sanity checking."""
    scale = BN_GAMMA / np.sqrt(1.0 + BN_EPS)
    dn = ("NCHW", "OIHW", "NCHW")
    d = params["dilations"]

    def bn_relu(y):
        return jnp.maximum(y * scale + BN_BETA, 0.0)

    def conv(x, w_oihw, dil):
        k = w_oihw.shape[-1]
        p = 0 if k == 1 else dil
        return lax.conv_general_dilated(x, w_oihw, (1, 1), [(p, p), (p, p)],
                                        rhs_dilation=(dil, dil),
                                        dimension_numbers=dn)

    x1 = bn_relu(conv(x_nchw, params["w_aspp1"], d[0]))
    x2 = bn_relu(conv(x_nchw, params["w_aspp2"], d[1]))
    x3 = bn_relu(conv(x_nchw, params["w_aspp3"], d[2]))
    x4 = bn_relu(conv(x_nchw, params["w_aspp4"], d[3]))
    pooled = jnp.mean(x_nchw, axis=(2, 3), keepdims=True)
    x5 = bn_relu(conv(pooled, params["w_pool"], 1))
    x5 = jnp.broadcast_to(x5, x1.shape)
    cat = jnp.concatenate([x1, x2, x3, x4, x5], axis=1)
    return bn_relu(conv(cat, params["w_proj"], 1))


if __name__ == "__main__":
    key = jax.random.PRNGKey(0)
    kx, kp = jax.random.split(key)
    N, CIN, H, W = 2, 4, 16, 16                      # small shapes; aspp_stride=16
    x = jax.random.normal(kx, (N, CIN, H, W), jnp.float32)
    params = init_params(kp, CIN, aspp_stride=16)

    ref = _ref_forward(x, params)

    # Tight check of the kernel math with f32 compute (multi-band grid path).
    out_f32 = jax.block_until_ready(assp_forward(x, params, compute_dtype=jnp.float32))
    assert out_f32.shape == (N, C_OUT, H, W), out_f32.shape
    np.testing.assert_allclose(np.asarray(out_f32), np.asarray(ref),
                               atol=2e-3, rtol=2e-3)

    # Default fast path: bf16 operands, f32 accumulation (loose smoke check).
    out = jax.block_until_ready(assp_forward(x, params))
    assert out.shape == (N, C_OUT, H, W), out.shape
    np.testing.assert_allclose(np.asarray(out), np.asarray(ref),
                               atol=1e-1, rtol=1e-1)

    print("KERNEL_OK")
</pallas_src>

<mosaic_0001>
module attributes {stable_mosaic.version = 11 : i64} {
  func.func @kernel(%arg0: i32, %arg1: i32, %arg2: memref<1x16x16x4xf32, #tpu.memory_space<vmem>>, %arg3: memref<4x256xf32, #tpu.memory_space<vmem>>, %arg4: memref<9x4x256xf32, #tpu.memory_space<vmem>>, %arg5: memref<9x4x256xf32, #tpu.memory_space<vmem>>, %arg6: memref<9x4x256xf32, #tpu.memory_space<vmem>>, %arg7: memref<1024x256xf32, #tpu.memory_space<vmem>>, %arg8: memref<1x1x256xf32, #tpu.memory_space<vmem>>, %arg9: memref<5x256xf32, #tpu.memory_space<vmem>>, %arg10: memref<1x32x256xf32, #tpu.memory_space<vmem>>, %arg11: memref<52x52x4xf32, #tpu.memory_space<vmem>>, %arg12: memref<38x16x4xf32, #tpu.memory_space<vmem>>, %arg13: memref<32x256xf32, #tpu.memory_space<vmem>>, %arg14: memref<32x256xf32, #tpu.memory_space<vmem>>) attributes {dimension_semantics = [#tpu.dimension_semantics<parallel>, #tpu.dimension_semantics<arbitrary>], iteration_bounds = array<i64: 2, 8>, scalar_prefetch = 0 : i64, scratch_operands = 4 : i64, tpu.core_type = #tpu.core_type<tc>, window_params = [{transform_indices = @transform_0, window_bounds = array<i64: 1, 16, 16, 4>}, {pipeline_mode = #tpu.pipeline_mode<synchronous>, transform_indices = @transform_1, window_bounds = array<i64: 4, 256>}, {pipeline_mode = #tpu.pipeline_mode<synchronous>, transform_indices = @transform_2, window_bounds = array<i64: 9, 4, 256>}, {pipeline_mode = #tpu.pipeline_mode<synchronous>, transform_indices = @transform_3, window_bounds = array<i64: 9, 4, 256>}, {pipeline_mode = #tpu.pipeline_mode<synchronous>, transform_indices = @transform_4, window_bounds = array<i64: 9, 4, 256>}, {pipeline_mode = #tpu.pipeline_mode<synchronous>, transform_indices = @transform_5, window_bounds = array<i64: 1024, 256>}, {transform_indices = @transform_6, window_bounds = array<i64: 1, 1, 256>}, {pipeline_mode = #tpu.pipeline_mode<synchronous>, transform_indices = @transform_7, window_bounds = array<i64: 5, 256>}, {transform_indices = @transform_8, window_bounds = array<i64: 1, 32, 256>}]} {
    %c0_i32 = arith.constant 0 : i32
    %0 = arith.cmpi eq, %arg1, %c0_i32 : i32
    %1 = arith.extui %0 : i1 to i32
    %c0_i32_0 = arith.constant 0 : i32
    %2 = arith.cmpi ne, %1, %c0_i32_0 : i32
    scf.if %2 {
      %cst_402 = arith.constant 0.000000e+00 : f32
      %322 = vector.broadcast %cst_402 : f32 to vector<52x52x4xf32>
      %c0_403 = arith.constant 0 : index
      %c0_404 = arith.constant 0 : index
      %c0_405 = arith.constant 0 : index
      %323 = vector.load %arg11[%c0_403, %c0_404, %c0_405] : memref<52x52x4xf32, #tpu.memory_space<vmem>>, vector<52x52x4xf32>
      tpu.vector_store %arg11[%c0_403, %c0_404, %c0_405], %322 {strides = array<i32>} : memref<52x52x4xf32, #tpu.memory_space<vmem>>, vector<52x52x4xf32>,
      %c0_406 = arith.constant 0 : index
      %c0_407 = arith.constant 0 : index
      %c0_408 = arith.constant 0 : index
      %c0_409 = arith.constant 0 : index
      %324 = vector.load %arg2[%c0_406, %c0_407, %c0_408, %c0_409] : memref<1x16x16x4xf32, #tpu.memory_space<vmem>>, vector<1x16x16x4xf32>
      %325 = vector.shape_cast %324 : vector<1x16x16x4xf32> to vector<16x16x4xf32>
      %c18_410 = arith.constant 18 : index
      %c18_411 = arith.constant 18 : index
      %c0_412 = arith.constant 0 : index
      %326 = vector.load %arg11[%c18_410, %c18_411, %c0_412] : memref<52x52x4xf32, #tpu.memory_space<vmem>>, vector<16x16x4xf32>
      tpu.vector_store %arg11[%c18_410, %c18_411, %c0_412], %325 {strides = array<i32>} : memref<52x52x4xf32, #tpu.memory_space<vmem>>, vector<16x16x4xf32>,
    } else {
    }
    %c2_i32 = arith.constant 2 : i32
    %3 = arith.muli %arg1, %c2_i32 : i32
    %c18_i32 = arith.constant 18 : i32
    %4 = arith.addi %3, %c18_i32 : i32
    %c0_i32_1 = arith.constant 0 : i32
    %5 = arith.subi %4, %c0_i32_1 : i32
    %6 = arith.index_cast %5 : i32 to index
    %c18 = arith.constant 18 : index
    %c0 = arith.constant 0 : index
    %7 = vector.load %arg11[%6, %c18, %c0] : memref<52x52x4xf32, #tpu.memory_space<vmem>>, vector<2x16x4xf32>
    %c0_2 = arith.constant 0 : index
    %c0_3 = arith.constant 0 : index
    %c0_4 = arith.constant 0 : index
    %8 = vector.load %arg12[%c0_2, %c0_3, %c0_4] : memref<38x16x4xf32, #tpu.memory_space<vmem>>, vector<2x16x4xf32>
    tpu.vector_store %arg12[%c0_2, %c0_3, %c0_4], %7 {strides = array<i32>} : memref<38x16x4xf32, #tpu.memory_space<vmem>>, vector<2x16x4xf32>,
    %c0_5 = arith.constant 0 : index
    %c0_6 = arith.constant 0 : index
    %c0_7 = arith.constant 0 : index
    %9 = vector.load %arg12[%c0_5, %c0_6, %c0_7] : memref<38x16x4xf32, #tpu.memory_space<vmem>>, vector<2x16x4xf32>
    %10 = vector.shape_cast %9 : vector<2x16x4xf32> to vector<32x4xf32>
    %c0_8 = arith.constant 0 : index
    %c0_9 = arith.constant 0 : index
    %11 = vector.load %arg3[%c0_8, %c0_9] : memref<4x256xf32, #tpu.memory_space<vmem>>, vector<4x256xf32>
    %cst = arith.constant dense<0.000000e+00> : vector<32x256xf32>
    %12 = tpu.matmul %10, %11, %cst {dimension_numbers = #tpu.dot_dimension_numbers<[1], [0], [0], [1], [0, 0, 1, 1], [], []>} : vector<32x4xf32>, vector<4x256xf32>, vector<32x256xf32> -> vector<32x256xf32>
    %c0_10 = arith.constant 0 : index
    %c0_11 = arith.constant 0 : index
    %13 = vector.load %arg9[%c0_10, %c0_11] : memref<5x256xf32, #tpu.memory_space<vmem>>, vector<1x256xf32>
    %14 = vector.broadcast %13 : vector<1x256xf32> to vector<32x256xf32>
    %15 = arith.addf %12, %14 : vector<32x256xf32>
    %cst_12 = arith.constant 0.000000e+00 : f32
    %16 = vector.broadcast %cst_12 : f32 to vector<32x256xf32>
    %17 = arith.maximumf %15, %16 : vector<32x256xf32>
    %c0_13 = arith.constant 0 : index
    %c0_14 = arith.constant 0 : index
    %18 = vector.load %arg7[%c0_13, %c0_14] : memref<1024x256xf32, #tpu.memory_space<vmem>>, vector<256x256xf32>
    %cst_15 = arith.constant dense<0.000000e+00> : vector<32x256xf32>
    %19 = tpu.matmul %17, %18, %cst_15 {dimension_numbers = #tpu.dot_dimension_numbers<[1], [0], [0], [1], [0, 0, 1, 1], [], []>} : vector<32x256xf32>, vector<256x256xf32>, vector<32x256xf32> -> vector<32x256xf32>
    %c0_16 = arith.constant 0 : index
    %c0_17 = arith.constant 0 : index
    %20 = vector.load %arg14[%c0_16, %c0_17] : memref<32x256xf32, #tpu.memory_space<vmem>>, vector<32x256xf32>
    tpu.vector_store %arg14[%c0_16, %c0_17], %19 {strides = array<i32>} : memref<32x256xf32, #tpu.memory_space<vmem>>, vector<32x256xf32>,
    %c18_i32_18 = arith.constant 18 : i32
    %21 = arith.addi %3, %c18_i32_18 : i32
    %c6_i32 = arith.constant 6 : i32
    %22 = arith.subi %21, %c6_i32 : i32
    %23 = arith.index_cast %22 : i32 to index
    %c12 = arith.constant 12 : index
    %c0_19 = arith.constant 0 : index
    %24 = vector.load %arg11[%23, %c12, %c0_19] : memref<52x52x4xf32, #tpu.memory_space<vmem>>, vector<14x16x4xf32>
    %c0_20 = arith.constant 0 : index
    %c0_21 = arith.constant 0 : index
    %c0_22 = arith.constant 0 : index
    %25 = vector.load %arg12[%c0_20, %c0_21, %c0_22] : memref<38x16x4xf32, #tpu.memory_space<vmem>>, vector<14x16x4xf32>
    tpu.vector_store %arg12[%c0_20, %c0_21, %c0_22], %24 {strides = array<i32>} : memref<38x16x4xf32, #tpu.memory_space<vmem>>, vector<14x16x4xf32>,
    %c0_23 = arith.constant 0 : index
    %c0_24 = arith.constant 0 : index
    %c0_25 = arith.constant 0 : index
    %26 = vector.load %arg12[%c0_23, %c0_24, %c0_25] : memref<38x16x4xf32, #tpu.memory_space<vmem>>, vector<2x16x4xf32>
    %27 = vector.shape_cast %26 : vector<2x16x4xf32> to vector<32x4xf32>
    %c0_26 = arith.constant 0 : index
    %c0_27 = arith.constant 0 : index
    %c0_28 = arith.constant 0 : index
    %28 = vector.load %arg4[%c0_26, %c0_27, %c0_28] : memref<9x4x256xf32, #tpu.memory_space<vmem>>, vector<1x4x256xf32>
    %29 = vector.shape_cast %28 : vector<1x4x256xf32> to vector<4x256xf32>
    %cst_29 = arith.constant dense<0.000000e+00> : vector<32x256xf32>
    %30 = tpu.matmul %27, %29, %cst_29 {dimension_numbers = #tpu.dot_dimension_numbers<[1], [0], [0], [1], [0, 0, 1, 1], [], []>} : vector<32x4xf32>, vector<4x256xf32>, vector<32x256xf32> -> vector<32x256xf32>
    %c0_30 = arith.constant 0 : index
    %c0_31 = arith.constant 0 : index
    %31 = vector.load %arg13[%c0_30, %c0_31] : memref<32x256xf32, #tpu.memory_space<vmem>>, vector<32x256xf32>
    tpu.vector_store %arg13[%c0_30, %c0_31], %30 {strides = array<i32>} : memref<32x256xf32, #tpu.memory_space<vmem>>, vector<32x256xf32>,
    %c6 = arith.constant 6 : index
    %c0_32 = arith.constant 0 : index
    %c0_33 = arith.constant 0 : index
    %32 = vector.load %arg12[%c6, %c0_32, %c0_33] : memref<38x16x4xf32, #tpu.memory_space<vmem>>, vector<2x16x4xf32>
    %33 = vector.shape_cast %32 : vector<2x16x4xf32> to vector<32x4xf32>
    %c3 = arith.constant 3 : index
    %c0_34 = arith.constant 0 : index
    %c0_35 = arith.constant 0 : index
    %34 = vector.load %arg4[%c3, %c0_34, %c0_35] : memref<9x4x256xf32, #tpu.memory_space<vmem>>, vector<1x4x256xf32>
    %35 = vector.shape_cast %34 : vector<1x4x256xf32> to vector<4x256xf32>
    %cst_36 = arith.constant dense<0.000000e+00> : vector<32x256xf32>
    %36 = tpu.matmul %33, %35, %cst_36 {dimension_numbers = #tpu.dot_dimension_numbers<[1], [0], [0], [1], [0, 0, 1, 1], [], []>} : vector<32x4xf32>, vector<4x256xf32>, vector<32x256xf32> -> vector<32x256xf32>
    %c0_37 = arith.constant 0 : index
    %c0_38 = arith.constant 0 : index
    %37 = vector.load %arg13[%c0_37, %c0_38] : memref<32x256xf32, #tpu.memory_space<vmem>>, vector<32x256xf32>
    %38 = arith.addf %37, %36 : vector<32x256xf32>
    %c0_39 = arith.constant 0 : index
    %c0_40 = arith.constant 0 : index
    %39 = vector.load %arg13[%c0_39, %c0_40] : memref<32x256xf32, #tpu.memory_space<vmem>>, vector<32x256xf32>
    tpu.vector_store %arg13[%c0_39, %c0_40], %38 {strides = array<i32>} : memref<32x256xf32, #tpu.memory_space<vmem>>, vector<32x256xf32>,
    %c12_41 = arith.constant 12 : index
    %c0_42 = arith.constant 0 : index
    %c0_43 = arith.constant 0 : index
    %40 = vector.load %arg12[%c12_41, %c0_42, %c0_43] : memref<38x16x4xf32, #tpu.memory_space<vmem>>, vector<2x16x4xf32>
    %41 = vector.shape_cast %40 : vector<2x16x4xf32> to vector<32x4xf32>
    %c6_44 = arith.constant 6 : index
    %c0_45 = arith.constant 0 : index
    %c0_46 = arith.constant 0 : index
    %42 = vector.load %arg4[%c6_44, %c0_45, %c0_46] : memref<9x4x256xf32, #tpu.memory_space<vmem>>, vector<1x4x256xf32>
    %43 = vector.shape_cast %42 : vector<1x4x256xf32> to vector<4x256xf32>
    %cst_47 = arith.constant dense<0.000000e+00> : vector<32x256xf32>
    %44 = tpu.matmul %41, %43, %cst_47 {dimension_numbers = #tpu.dot_dimension_numbers<[1], [0], [0], [1], [0, 0, 1, 1], [], []>} : vector<32x4xf32>, vector<4x256xf32>, vector<32x256xf32> -> vector<32x256xf32>
    %c0_48 = arith.constant 0 : index
    %c0_49 = arith.constant 0 : index
    %45 = vector.load %arg13[%c0_48, %c0_49] : memref<32x256xf32, #tpu.memory_space<vmem>>, vector<32x256xf32>
    %46 = arith.addf %45, %44 : vector<32x256xf32>
    %c0_50 = arith.constant 0 : index
    %c0_51 = arith.constant 0 : index
    %47 = vector.load %arg13[%c0_50, %c0_51] : memref<32x256xf32, #tpu.memory_space<vmem>>, vector<32x256xf32>
    tpu.vector_store %arg13[%c0_50, %c0_51], %46 {strides = array<i32>} : memref<32x256xf32, #tpu.memory_space<vmem>>, vector<32x256xf32>,
    %c18_i32_52 = arith.constant 18 : i32
    %48 = arith.addi %3, %c18_i32_52 : i32
    %c6_i32_53 = arith.constant 6 : i32
    %49 = arith.subi %48, %c6_i32_53 : i32
    %50 = arith.index_cast %49 : i32 to index
    %c18_54 = arith.constant 18 : index
    %c0_55 = arith.constant 0 : index
    %51 = vector.load %arg11[%50, %c18_54, %c0_55] : memref<52x52x4xf32, #tpu.memory_space<vmem>>, vector<14x16x4xf32>
    %c0_56 = arith.constant 0 : index
    %c0_57 = arith.constant 0 : index
    %c0_58 = arith.constant 0 : index
    %52 = vector.load %arg12[%c0_56, %c0_57, %c0_58] : memref<38x16x4xf32, #tpu.memory_space<vmem>>, vector<14x16x4xf32>
    tpu.vector_store %arg12[%c0_56, %c0_57, %c0_58], %51 {strides = array<i32>} : memref<38x16x4xf32, #tpu.memory_space<vmem>>, vector<14x16x4xf32>,
    %c0_59 = arith.constant 0 : index
    %c0_60 = arith.constant 0 : index
    %c0_61 = arith.constant 0 : index
    %53 = vector.load %arg12[%c0_59, %c0_60, %c0_61] : memref<38x16x4xf32, #tpu.memory_space<vmem>>, vector<2x16x4xf32>
    %54 = vector.shape_cast %53 : vector<2x16x4xf32> to vector<32x4xf32>
    %c1 = arith.constant 1 : index
    %c0_62 = arith.constant 0 : index
    %c0_63 = arith.constant 0 : index
    %55 = vector.load %arg4[%c1, %c0_62, %c0_63] : memref<9x4x256xf32, #tpu.memory_space<vmem>>, vector<1x4x256xf32>
    %56 = vector.shape_cast %55 : vector<1x4x256xf32> to vector<4x256xf32>
    %cst_64 = arith.constant dense<0.000000e+00> : vector<32x256xf32>
    %57 = tpu.matmul %54, %56, %cst_64 {dimension_numbers = #tpu.dot_dimension_numbers<[1], [0], [0], [1], [0, 0, 1, 1], [], []>} : vector<32x4xf32>, vector<4x256xf32>, vector<32x256xf32> -> vector<32x256xf32>
    %c0_65 = arith.constant 0 : index
    %c0_66 = arith.constant 0 : index
    %58 = vector.load %arg13[%c0_65, %c0_66] : memref<32x256xf32, #tpu.memory_space<vmem>>, vector<32x256xf32>
    %59 = arith.addf %58, %57 : vector<32x256xf32>
    %c0_67 = arith.constant 0 : index
    %c0_68 = arith.constant 0 : index
    %60 = vector.load %arg13[%c0_67, %c0_68] : memref<32x256xf32, #tpu.memory_space<vmem>>, vector<32x256xf32>
    tpu.vector_store %arg13[%c0_67, %c0_68], %59 {strides = array<i32>} : memref<32x256xf32, #tpu.memory_space<vmem>>, vector<32x256xf32>,
    %c6_69 = arith.constant 6 : index
    %c0_70 = arith.constant 0 : index
    %c0_71 = arith.constant 0 : index
    %61 = vector.load %arg12[%c6_69, %c0_70, %c0_71] : memref<38x16x4xf32, #tpu.memory_space<vmem>>, vector<2x16x4xf32>
    %62 = vector.shape_cast %61 : vector<2x16x4xf32> to vector<32x4xf32>
    %c4 = arith.constant 4 : index
    %c0_72 = arith.constant 0 : index
    %c0_73 = arith.constant 0 : index
    %63 = vector.load %arg4[%c4, %c0_72, %c0_73] : memref<9x4x256xf32, #tpu.memory_space<vmem>>, vector<1x4x256xf32>
    %64 = vector.shape_cast %63 : vector<1x4x256xf32> to vector<4x256xf32>
    %cst_74 = arith.constant dense<0.000000e+00> : vector<32x256xf32>
    %65 = tpu.matmul %62, %64, %cst_74 {dimension_numbers = #tpu.dot_dimension_numbers<[1], [0], [0], [1], [0, 0, 1, 1], [], []>} : vector<32x4xf32>, vector<4x256xf32>, vector<32x256xf32> -> vector<32x256xf32>
    %c0_75 = arith.constant 0 : index
    %c0_76 = arith.constant 0 : index
    %66 = vector.load %arg13[%c0_75, %c0_76] : memref<32x256xf32, #tpu.memory_space<vmem>>, vector<32x256xf32>
    %67 = arith.addf %66, %65 : vector<32x256xf32>
    %c0_77 = arith.constant 0 : index
    %c0_78 = arith.constant 0 : index
    %68 = vector.load %arg13[%c0_77, %c0_78] : memref<32x256xf32, #tpu.memory_space<vmem>>, vector<32x256xf32>
    tpu.vector_store %arg13[%c0_77, %c0_78], %67 {strides = array<i32>} : memref<32x256xf32, #tpu.memory_space<vmem>>, vector<32x256xf32>,
    %c12_79 = arith.constant 12 : index
    %c0_80 = arith.constant 0 : index
    %c0_81 = arith.constant 0 : index
    %69 = vector.load %arg12[%c12_79, %c0_80, %c0_81] : memref<38x16x4xf32, #tpu.memory_space<vmem>>, vector<2x16x4xf32>
    %70 = vector.shape_cast %69 : vector<2x16x4xf32> to vector<32x4xf32>
    %c7 = arith.constant 7 : index
    %c0_82 = arith.constant 0 : index
    %c0_83 = arith.constant 0 : index
    %71 = vector.load %arg4[%c7, %c0_82, %c0_83] : memref<9x4x256xf32, #tpu.memory_space<vmem>>, vector<1x4x256xf32>
    %72 = vector.shape_cast %71 : vector<1x4x256xf32> to vector<4x256xf32>
    %cst_84 = arith.constant dense<0.000000e+00> : vector<32x256xf32>
    %73 = tpu.matmul %70, %72, %cst_84 {dimension_numbers = #tpu.dot_dimension_numbers<[1], [0], [0], [1], [0, 0, 1, 1], [], []>} : vector<32x4xf32>, vector<4x256xf32>, vector<32x256xf32> -> vector<32x256xf32>
    %c0_85 = arith.constant 0 : index
    %c0_86 = arith.constant 0 : index
    %74 = vector.load %arg13[%c0_85, %c0_86] : memref<32x256xf32, #tpu.memory_space<vmem>>, vector<32x256xf32>
    %75 = arith.addf %74, %73 : vector<32x256xf32>
    %c0_87 = arith.constant 0 : index
    %c0_88 = arith.constant 0 : index
    %76 = vector.load %arg13[%c0_87, %c0_88] : memref<32x256xf32, #tpu.memory_space<vmem>>, vector<32x256xf32>
    tpu.vector_store %arg13[%c0_87, %c0_88], %75 {strides = array<i32>} : memref<32x256xf32, #tpu.memory_space<vmem>>, vector<32x256xf32>,
    %c18_i32_89 = arith.constant 18 : i32
    %77 = arith.addi %3, %c18_i32_89 : i32
    %c6_i32_90 = arith.constant 6 : i32
    %78 = arith.subi %77, %c6_i32_90 : i32
    %79 = arith.index_cast %78 : i32 to index
    %c24 = arith.constant 24 : index
    %c0_91 = arith.constant 0 : index
    %80 = vector.load %arg11[%79, %c24, %c0_91] : memref<52x52x4xf32, #tpu.memory_space<vmem>>, vector<14x16x4xf32>
    %c0_92 = arith.constant 0 : index
    %c0_93 = arith.constant 0 : index
    %c0_94 = arith.constant 0 : index
    %81 = vector.load %arg12[%c0_92, %c0_93, %c0_94] : memref<38x16x4xf32, #tpu.memory_space<vmem>>, vector<14x16x4xf32>
    tpu.vector_store %arg12[%c0_92, %c0_93, %c0_94], %80 {strides = array<i32>} : memref<38x16x4xf32, #tpu.memory_space<vmem>>, vector<14x16x4xf32>,
    %c0_95 = arith.constant 0 : index
    %c0_96 = arith.constant 0 : index
    %c0_97 = arith.constant 0 : index
    %82 = vector.load %arg12[%c0_95, %c0_96, %c0_97] : memref<38x16x4xf32, #tpu.memory_space<vmem>>, vector<2x16x4xf32>
    %83 = vector.shape_cast %82 : vector<2x16x4xf32> to vector<32x4xf32>
    %c2 = arith.constant 2 : index
    %c0_98 = arith.constant 0 : index
    %c0_99 = arith.constant 0 : index
    %84 = vector.load %arg4[%c2, %c0_98, %c0_99] : memref<9x4x256xf32, #tpu.memory_space<vmem>>, vector<1x4x256xf32>
    %85 = vector.shape_cast %84 : vector<1x4x256xf32> to vector<4x256xf32>
    %cst_100 = arith.constant dense<0.000000e+00> : vector<32x256xf32>
    %86 = tpu.matmul %83, %85, %cst_100 {dimension_numbers = #tpu.dot_dimension_numbers<[1], [0], [0], [1], [0, 0, 1, 1], [], []>} : vector<32x4xf32>, vector<4x256xf32>, vector<32x256xf32> -> vector<32x256xf32>
    %c0_101 = arith.constant 0 : index
    %c0_102 = arith.constant 0 : index
    %87 = vector.load %arg13[%c0_101, %c0_102] : memref<32x256xf32, #tpu.memory_space<vmem>>, vector<32x256xf32>
    %88 = arith.addf %87, %86 : vector<32x256xf32>
    %c0_103 = arith.constant 0 : index
    %c0_104 = arith.constant 0 : index
    %89 = vector.load %arg13[%c0_103, %c0_104] : memref<32x256xf32, #tpu.memory_space<vmem>>, vector<32x256xf32>
    tpu.vector_store %arg13[%c0_103, %c0_104], %88 {strides = array<i32>} : memref<32x256xf32, #tpu.memory_space<vmem>>, vector<32x256xf32>,
    %c6_105 = arith.constant 6 : index
    %c0_106 = arith.constant 0 : index
    %c0_107 = arith.constant 0 : index
    %90 = vector.load %arg12[%c6_105, %c0_106, %c0_107] : memref<38x16x4xf32, #tpu.memory_space<vmem>>, vector<2x16x4xf32>
    %91 = vector.shape_cast %90 : vector<2x16x4xf32> to vector<32x4xf32>
    %c5 = arith.constant 5 : index
    %c0_108 = arith.constant 0 : index
    %c0_109 = arith.constant 0 : index
    %92 = vector.load %arg4[%c5, %c0_108, %c0_109] : memref<9x4x256xf32, #tpu.memory_space<vmem>>, vector<1x4x256xf32>
    %93 = vector.shape_cast %92 : vector<1x4x256xf32> to vector<4x256xf32>
    %cst_110 = arith.constant dense<0.000000e+00> : vector<32x256xf32>
    %94 = tpu.matmul %91, %93, %cst_110 {dimension_numbers = #tpu.dot_dimension_numbers<[1], [0], [0], [1], [0, 0, 1, 1], [], []>} : vector<32x4xf32>, vector<4x256xf32>, vector<32x256xf32> -> vector<32x256xf32>
    %c0_111 = arith.constant 0 : index
    %c0_112 = arith.constant 0 : index
    %95 = vector.load %arg13[%c0_111, %c0_112] : memref<32x256xf32, #tpu.memory_space<vmem>>, vector<32x256xf32>
    %96 = arith.addf %95, %94 : vector<32x256xf32>
    %c0_113 = arith.constant 0 : index
    %c0_114 = arith.constant 0 : index
    %97 = vector.load %arg13[%c0_113, %c0_114] : memref<32x256xf32, #tpu.memory_space<vmem>>, vector<32x256xf32>
    tpu.vector_store %arg13[%c0_113, %c0_114], %96 {strides = array<i32>} : memref<32x256xf32, #tpu.memory_space<vmem>>, vector<32x256xf32>,
    %c12_115 = arith.constant 12 : index
    %c0_116 = arith.constant 0 : index
    %c0_117 = arith.constant 0 : index
    %98 = vector.load %arg12[%c12_115, %c0_116, %c0_117] : memref<38x16x4xf32, #tpu.memory_space<vmem>>, vector<2x16x4xf32>
    %99 = vector.shape_cast %98 : vector<2x16x4xf32> to vector<32x4xf32>
    %c8 = arith.constant 8 : index
    %c0_118 = arith.constant 0 : index
    %c0_119 = arith.constant 0 : index
    %100 = vector.load %arg4[%c8, %c0_118, %c0_119] : memref<9x4x256xf32, #tpu.memory_space<vmem>>, vector<1x4x256xf32>
    %101 = vector.shape_cast %100 : vector<1x4x256xf32> to vector<4x256xf32>
    %cst_120 = arith.constant dense<0.000000e+00> : vector<32x256xf32>
    %102 = tpu.matmul %99, %101, %cst_120 {dimension_numbers = #tpu.dot_dimension_numbers<[1], [0], [0], [1], [0, 0, 1, 1], [], []>} : vector<32x4xf32>, vector<4x256xf32>, vector<32x256xf32> -> vector<32x256xf32>
    %c0_121 = arith.constant 0 : index
    %c0_122 = arith.constant 0 : index
    %103 = vector.load %arg13[%c0_121, %c0_122] : memref<32x256xf32, #tpu.memory_space<vmem>>, vector<32x256xf32>
    %104 = arith.addf %103, %102 : vector<32x256xf32>
    %c0_123 = arith.constant 0 : index
    %c0_124 = arith.constant 0 : index
    %105 = vector.load %arg13[%c0_123, %c0_124] : memref<32x256xf32, #tpu.memory_space<vmem>>, vector<32x256xf32>
    tpu.vector_store %arg13[%c0_123, %c0_124], %104 {strides = array<i32>} : memref<32x256xf32, #tpu.memory_space<vmem>>, vector<32x256xf32>,
    %c0_125 = arith.constant 0 : index
    %c0_126 = arith.constant 0 : index
    %106 = vector.load %arg13[%c0_125, %c0_126] : memref<32x256xf32, #tpu.memory_space<vmem>>, vector<32x256xf32>
    %c1_127 = arith.constant 1 : index
    %c0_128 = arith.constant 0 : index
    %107 = vector.load %arg9[%c1_127, %c0_128] : memref<5x256xf32, #tpu.memory_space<vmem>>, vector<1x256xf32>
    %108 = vector.broadcast %107 : vector<1x256xf32> to vector<32x256xf32>
    %109 = arith.addf %106, %108 : vector<32x256xf32>
    %cst_129 = arith.constant 0.000000e+00 : f32
    %110 = vector.broadcast %cst_129 : f32 to vector<32x256xf32>
    %111 = arith.maximumf %109, %110 : vector<32x256xf32>
    %c0_130 = arith.constant 0 : index
    %c0_131 = arith.constant 0 : index
    %112 = vector.load %arg14[%c0_130, %c0_131] : memref<32x256xf32, #tpu.memory_space<vmem>>, vector<32x256xf32>
    %c256 = arith.constant 256 : index
    %c0_132 = arith.constant 0 : index
    %113 = vector.load %arg7[%c256, %c0_132] : memref<1024x256xf32, #tpu.memory_space<vmem>>, vector<256x256xf32>
    %cst_133 = arith.constant dense<0.000000e+00> : vector<32x256xf32>
    %114 = tpu.matmul %111, %113, %cst_133 {dimension_numbers = #tpu.dot_dimension_numbers<[1], [0], [0], [1], [0, 0, 1, 1], [], []>} : vector<32x256xf32>, vector<256x256xf32>, vector<32x256xf32> -> vector<32x256xf32>
    %115 = arith.addf %112, %114 : vector<32x256xf32>
    %c0_134 = arith.constant 0 : index
    %c0_135 = arith.constant 0 : index
    %116 = vector.load %arg14[%c0_134, %c0_135] : memref<32x256xf32, #tpu.memory_space<vmem>>, vector<32x256xf32>
    tpu.vector_store %arg14[%c0_134, %c0_135], %115 {strides = array<i32>} : memref<32x256xf32, #tpu.memory_space<vmem>>, vector<32x256xf32>,
    %c18_i32_136 = arith.constant 18 : i32
    %117 = arith.addi %3, %c18_i32_136 : i32
    %c12_i32 = arith.constant 12 : i32
    %118 = arith.subi %117, %c12_i32 : i32
    %119 = arith.index_cast %118 : i32 to index
    %c6_137 = arith.constant 6 : index
    %c0_138 = arith.constant 0 : index
    %120 = vector.load %arg11[%119, %c6_137, %c0_138] : memref<52x52x4xf32, #tpu.memory_space<vmem>>, vector<26x16x4xf32>
    %c0_139 = arith.constant 0 : index
    %c0_140 = arith.constant 0 : index
    %c0_141 = arith.constant 0 : index
    %121 = vector.load %arg12[%c0_139, %c0_140, %c0_141] : memref<38x16x4xf32, #tpu.memory_space<vmem>>, vector<26x16x4xf32>
    tpu.vector_store %arg12[%c0_139, %c0_140, %c0_141], %120 {strides = array<i32>} : memref<38x16x4xf32, #tpu.memory_space<vmem>>, vector<26x16x4xf32>,
    %c0_142 = arith.constant 0 : index
    %c0_143 = arith.constant 0 : index
    %c0_144 = arith.constant 0 : index
    %122 = vector.load %arg12[%c0_142, %c0_143, %c0_144] : memref<38x16x4xf32, #tpu.memory_space<vmem>>, vector<2x16x4xf32>
    %123 = vector.shape_cast %122 : vector<2x16x4xf32> to vector<32x4xf32>
    %c0_145 = arith.constant 0 : index
    %c0_146 = arith.constant 0 : index
    %c0_147 = arith.constant 0 : index
    %124 = vector.load %arg5[%c0_145, %c0_146, %c0_147] : memref<9x4x256xf32, #tpu.memory_space<vmem>>, vector<1x4x256xf32>
    %125 = vector.shape_cast %124 : vector<1x4x256xf32> to vector<4x256xf32>
    %cst_148 = arith.constant dense<0.000000e+00> : vector<32x256xf32>
    %126 = tpu.matmul %123, %125, %cst_148 {dimension_numbers = #tpu.dot_dimension_numbers<[1], [0], [0], [1], [0, 0, 1, 1], [], []>} : vector<32x4xf32>, vector<4x256xf32>, vector<32x256xf32> -> vector<32x256xf32>
    %c0_149 = arith.constant 0 : index
    %c0_150 = arith.constant 0 : index
    %127 = vector.load %arg13[%c0_149, %c0_150] : memref<32x256xf32, #tpu.memory_space<vmem>>, vector<32x256xf32>
    tpu.vector_store %arg13[%c0_149, %c0_150], %126 {strides = array<i32>} : memref<32x256xf32, #tpu.memory_space<vmem>>, vector<32x256xf32>,
    %c12_151 = arith.constant 12 : index
    %c0_152 = arith.constant 0 : index
    %c0_153 = arith.constant 0 : index
    %128 = vector.load %arg12[%c12_151, %c0_152, %c0_153] : memref<38x16x4xf32, #tpu.memory_space<vmem>>, vector<2x16x4xf32>
    %129 = vector.shape_cast %128 : vector<2x16x4xf32> to vector<32x4xf32>
    %c3_154 = arith.constant 3 : index
    %c0_155 = arith.constant 0 : index
    %c0_156 = arith.constant 0 : index
    %130 = vector.load %arg5[%c3_154, %c0_155, %c0_156] : memref<9x4x256xf32, #tpu.memory_space<vmem>>, vector<1x4x256xf32>
    %131 = vector.shape_cast %130 : vector<1x4x256xf32> to vector<4x256xf32>
    %cst_157 = arith.constant dense<0.000000e+00> : vector<32x256xf32>
    %132 = tpu.matmul %129, %131, %cst_157 {dimension_numbers = #tpu.dot_dimension_numbers<[1], [0], [0], [1], [0, 0, 1, 1], [], []>} : vector<32x4xf32>, vector<4x256xf32>, vector<32x256xf32> -> vector<32x256xf32>
    %c0_158 = arith.constant 0 : index
    %c0_159 = arith.constant 0 : index
    %133 = vector.load %arg13[%c0_158, %c0_159] : memref<32x256xf32, #tpu.memory_space<vmem>>, vector<32x256xf32>
    %134 = arith.addf %133, %132 : vector<32x256xf32>
    %c0_160 = arith.constant 0 : index
    %c0_161 = arith.constant 0 : index
    %135 = vector.load %arg13[%c0_160, %c0_161] : memref<32x256xf32, #tpu.memory_space<vmem>>, vector<32x256xf32>
    tpu.vector_store %arg13[%c0_160, %c0_161], %134 {strides = array<i32>} : memref<32x256xf32, #tpu.memory_space<vmem>>, vector<32x256xf32>,
    %c24_162 = arith.constant 24 : index
    %c0_163 = arith.constant 0 : index
    %c0_164 = arith.constant 0 : index
    %136 = vector.load %arg12[%c24_162, %c0_163, %c0_164] : memref<38x16x4xf32, #tpu.memory_space<vmem>>, vector<2x16x4xf32>
    %137 = vector.shape_cast %136 : vector<2x16x4xf32> to vector<32x4xf32>
    %c6_165 = arith.constant 6 : index
    %c0_166 = arith.constant 0 : index
    %c0_167 = arith.constant 0 : index
    %138 = vector.load %arg5[%c6_165, %c0_166, %c0_167] : memref<9x4x256xf32, #tpu.memory_space<vmem>>, vector<1x4x256xf32>
    %139 = vector.shape_cast %138 : vector<1x4x256xf32> to vector<4x256xf32>
    %cst_168 = arith.constant dense<0.000000e+00> : vector<32x256xf32>
    %140 = tpu.matmul %137, %139, %cst_168 {dimension_numbers = #tpu.dot_dimension_numbers<[1], [0], [0], [1], [0, 0, 1, 1], [], []>} : vector<32x4xf32>, vector<4x256xf32>, vector<32x256xf32> -> vector<32x256xf32>
    %c0_169 = arith.constant 0 : index
    %c0_170 = arith.constant 0 : index
    %141 = vector.load %arg13[%c0_169, %c0_170] : memref<32x256xf32, #tpu.memory_space<vmem>>, vector<32x256xf32>
    %142 = arith.addf %141, %140 : vector<32x256xf32>
    %c0_171 = arith.constant 0 : index
    %c0_172 = arith.constant 0 : index
    %143 = vector.load %arg13[%c0_171, %c0_172] : memref<32x256xf32, #tpu.memory_space<vmem>>, vector<32x256xf32>
    tpu.vector_store %arg13[%c0_171, %c0_172], %142 {strides = array<i32>} : memref<32x256xf32, #tpu.memory_space<vmem>>, vector<32x256xf32>,
    %c18_i32_173 = arith.constant 18 : i32
    %144 = arith.addi %3, %c18_i32_173 : i32
    %c12_i32_174 = arith.constant 12 : i32
    %145 = arith.subi %144, %c12_i32_174 : i32
    %146 = arith.index_cast %145 : i32 to index
    %c18_175 = arith.constant 18 : index
    %c0_176 = arith.constant 0 : index
    %147 = vector.load %arg11[%146, %c18_175, %c0_176] : memref<52x52x4xf32, #tpu.memory_space<vmem>>, vector<26x16x4xf32>
    %c0_177 = arith.constant 0 : index
    %c0_178 = arith.constant 0 : index
    %c0_179 = arith.constant 0 : index
    %148 = vector.load %arg12[%c0_177, %c0_178, %c0_179] : memref<38x16x4xf32, #tpu.memory_space<vmem>>, vector<26x16x4xf32>
    tpu.vector_store %arg12[%c0_177, %c0_178, %c0_179], %147 {strides = array<i32>} : memref<38x16x4xf32, #tpu.memory_space<vmem>>, vector<26x16x4xf32>,
    %c0_180 = arith.constant 0 : index
    %c0_181 = arith.constant 0 : index
    %c0_182 = arith.constant 0 : index
    %149 = vector.load %arg12[%c0_180, %c0_181, %c0_182] : memref<38x16x4xf32, #tpu.memory_space<vmem>>, vector<2x16x4xf32>
    %150 = vector.shape_cast %149 : vector<2x16x4xf32> to vector<32x4xf32>
    %c1_183 = arith.constant 1 : index
    %c0_184 = arith.constant 0 : index
    %c0_185 = arith.constant 0 : index
    %151 = vector.load %arg5[%c1_183, %c0_184, %c0_185] : memref<9x4x256xf32, #tpu.memory_space<vmem>>, vector<1x4x256xf32>
    %152 = vector.shape_cast %151 : vector<1x4x256xf32> to vector<4x256xf32>
    %cst_186 = arith.constant dense<0.000000e+00> : vector<32x256xf32>
    %153 = tpu.matmul %150, %152, %cst_186 {dimension_numbers = #tpu.dot_dimension_numbers<[1], [0], [0], [1], [0, 0, 1, 1], [], []>} : vector<32x4xf32>, vector<4x256xf32>, vector<32x256xf32> -> vector<32x256xf32>
    %c0_187 = arith.constant 0 : index
    %c0_188 = arith.constant 0 : index
    %154 = vector.load %arg13[%c0_187, %c0_188] : memref<32x256xf32, #tpu.memory_space<vmem>>, vector<32x256xf32>
    %155 = arith.addf %154, %153 : vector<32x256xf32>
    %c0_189 = arith.constant 0 : index
    %c0_190 = arith.constant 0 : index
    %156 = vector.load %arg13[%c0_189, %c0_190] : memref<32x256xf32, #tpu.memory_space<vmem>>, vector<32x256xf32>
    tpu.vector_store %arg13[%c0_189, %c0_190], %155 {strides = array<i32>} : memref<32x256xf32, #tpu.memory_space<vmem>>, vector<32x256xf32>,
    %c12_191 = arith.constant 12 : index
    %c0_192 = arith.constant 0 : index
    %c0_193 = arith.constant 0 : index
    %157 = vector.load %arg12[%c12_191, %c0_192, %c0_193] : memref<38x16x4xf32, #tpu.memory_space<vmem>>, vector<2x16x4xf32>
    %158 = vector.shape_cast %157 : vector<2x16x4xf32> to vector<32x4xf32>
    %c4_194 = arith.constant 4 : index
    %c0_195 = arith.constant 0 : index
    %c0_196 = arith.constant 0 : index
    %159 = vector.load %arg5[%c4_194, %c0_195, %c0_196] : memref<9x4x256xf32, #tpu.memory_space<vmem>>, vector<1x4x256xf32>
    %160 = vector.shape_cast %159 : vector<1x4x256xf32> to vector<4x256xf32>
    %cst_197 = arith.constant dense<0.000000e+00> : vector<32x256xf32>
    %161 = tpu.matmul %158, %160, %cst_197 {dimension_numbers = #tpu.dot_dimension_numbers<[1], [0], [0], [1], [0, 0, 1, 1], [], []>} : vector<32x4xf32>, vector<4x256xf32>, vector<32x256xf32> -> vector<32x256xf32>
    %c0_198 = arith.constant 0 : index
    %c0_199 = arith.constant 0 : index
    %162 = vector.load %arg13[%c0_198, %c0_199] : memref<32x256xf32, #tpu.memory_space<vmem>>, vector<32x256xf32>
    %163 = arith.addf %162, %161 : vector<32x256xf32>
    %c0_200 = arith.constant 0 : index
    %c0_201 = arith.constant 0 : index
    %164 = vector.load %arg13[%c0_200, %c0_201] : memref<32x256xf32, #tpu.memory_space<vmem>>, vector<32x256xf32>
    tpu.vector_store %arg13[%c0_200, %c0_201], %163 {strides = array<i32>} : memref<32x256xf32, #tpu.memory_space<vmem>>, vector<32x256xf32>,
    %c24_202 = arith.constant 24 : index
    %c0_203 = arith.constant 0 : index
    %c0_204 = arith.constant 0 : index
    %165 = vector.load %arg12[%c24_202, %c0_203, %c0_204] : memref<38x16x4xf32, #tpu.memory_space<vmem>>, vector<2x16x4xf32>
    %166 = vector.shape_cast %165 : vector<2x16x4xf32> to vector<32x4xf32>
    %c7_205 = arith.constant 7 : index
    %c0_206 = arith.constant 0 : index
    %c0_207 = arith.constant 0 : index
    %167 = vector.load %arg5[%c7_205, %c0_206, %c0_207] : memref<9x4x256xf32, #tpu.memory_space<vmem>>, vector<1x4x256xf32>
    %168 = vector.shape_cast %167 : vector<1x4x256xf32> to vector<4x256xf32>
    %cst_208 = arith.constant dense<0.000000e+00> : vector<32x256xf32>
    %169 = tpu.matmul %166, %168, %cst_208 {dimension_numbers = #tpu.dot_dimension_numbers<[1], [0], [0], [1], [0, 0, 1, 1], [], []>} : vector<32x4xf32>, vector<4x256xf32>, vector<32x256xf32> -> vector<32x256xf32>
    %c0_209 = arith.constant 0 : index
    %c0_210 = arith.constant 0 : index
    %170 = vector.load %arg13[%c0_209, %c0_210] : memref<32x256xf32, #tpu.memory_space<vmem>>, vector<32x256xf32>
    %171 = arith.addf %170, %169 : vector<32x256xf32>
    %c0_211 = arith.constant 0 : index
    %c0_212 = arith.constant 0 : index
    %172 = vector.load %arg13[%c0_211, %c0_212] : memref<32x256xf32, #tpu.memory_space<vmem>>, vector<32x256xf32>
    tpu.vector_store %arg13[%c0_211, %c0_212], %171 {strides = array<i32>} : memref<32x256xf32, #tpu.memory_space<vmem>>, vector<32x256xf32>,
    %c18_i32_213 = arith.constant 18 : i32
    %173 = arith.addi %3, %c18_i32_213 : i32
    %c12_i32_214 = arith.constant 12 : i32
    %174 = arith.subi %173, %c12_i32_214 : i32
    %175 = arith.index_cast %174 : i32 to index
    %c30 = arith.constant 30 : index
    %c0_215 = arith.constant 0 : index
    %176 = vector.load %arg11[%175, %c30, %c0_215] : memref<52x52x4xf32, #tpu.memory_space<vmem>>, vector<26x16x4xf32>
    %c0_216 = arith.constant 0 : index
    %c0_217 = arith.constant 0 : index
    %c0_218 = arith.constant 0 : index
    %177 = vector.load %arg12[%c0_216, %c0_217, %c0_218] : memref<38x16x4xf32, #tpu.memory_space<vmem>>, vector<26x16x4xf32>
    tpu.vector_store %arg12[%c0_216, %c0_217, %c0_218], %176 {strides = array<i32>} : memref<38x16x4xf32, #tpu.memory_space<vmem>>, vector<26x16x4xf32>,
    %c0_219 = arith.constant 0 : index
    %c0_220 = arith.constant 0 : index
    %c0_221 = arith.constant 0 : index
    %178 = vector.load %arg12[%c0_219, %c0_220, %c0_221] : memref<38x16x4xf32, #tpu.memory_space<vmem>>, vector<2x16x4xf32>
    %179 = vector.shape_cast %178 : vector<2x16x4xf32> to vector<32x4xf32>
    %c2_222 = arith.constant 2 : index
    %c0_223 = arith.constant 0 : index
    %c0_224 = arith.constant 0 : index
    %180 = vector.load %arg5[%c2_222, %c0_223, %c0_224] : memref<9x4x256xf32, #tpu.memory_space<vmem>>, vector<1x4x256xf32>
    %181 = vector.shape_cast %180 : vector<1x4x256xf32> to vector<4x256xf32>
    %cst_225 = arith.constant dense<0.000000e+00> : vector<32x256xf32>
    %182 = tpu.matmul %179, %181, %cst_225 {dimension_numbers = #tpu.dot_dimension_numbers<[1], [0], [0], [1], [0, 0, 1, 1], [], []>} : vector<32x4xf32>, vector<4x256xf32>, vector<32x256xf32> -> vector<32x256xf32>
    %c0_226 = arith.constant 0 : index
    %c0_227 = arith.constant 0 : index
    %183 = vector.load %arg13[%c0_226, %c0_227] : memref<32x256xf32, #tpu.memory_space<vmem>>, vector<32x256xf32>
    %184 = arith.addf %183, %182 : vector<32x256xf32>
    %c0_228 = arith.constant 0 : index
    %c0_229 = arith.constant 0 : index
    %185 = vector.load %arg13[%c0_228, %c0_229] : memref<32x256xf32, #tpu.memory_space<vmem>>, vector<32x256xf32>
    tpu.vector_store %arg13[%c0_228, %c0_229], %184 {strides = array<i32>} : memref<32x256xf32, #tpu.memory_space<vmem>>, vector<32x256xf32>,
    %c12_230 = arith.constant 12 : index
    %c0_231 = arith.constant 0 : index
    %c0_232 = arith.constant 0 : index
    %186 = vector.load %arg12[%c12_230, %c0_231, %c0_232] : memref<38x16x4xf32, #tpu.memory_space<vmem>>, vector<2x16x4xf32>
    %187 = vector.shape_cast %186 : vector<2x16x4xf32> to vector<32x4xf32>
    %c5_233 = arith.constant 5 : index
    %c0_234 = arith.constant 0 : index
    %c0_235 = arith.constant 0 : index
    %188 = vector.load %arg5[%c5_233, %c0_234, %c0_235] : memref<9x4x256xf32, #tpu.memory_space<vmem>>, vector<1x4x256xf32>
    %189 = vector.shape_cast %188 : vector<1x4x256xf32> to vector<4x256xf32>
    %cst_236 = arith.constant dense<0.000000e+00> : vector<32x256xf32>
    %190 = tpu.matmul %187, %189, %cst_236 {dimension_numbers = #tpu.dot_dimension_numbers<[1], [0], [0], [1], [0, 0, 1, 1], [], []>} : vector<32x4xf32>, vector<4x256xf32>, vector<32x256xf32> -> vector<32x256xf32>
    %c0_237 = arith.constant 0 : index
    %c0_238 = arith.constant 0 : index
    %191 = vector.load %arg13[%c0_237, %c0_238] : memref<32x256xf32, #tpu.memory_space<vmem>>, vector<32x256xf32>
    %192 = arith.addf %191, %190 : vector<32x256xf32>
    %c0_239 = arith.constant 0 : index
    %c0_240 = arith.constant 0 : index
    %193 = vector.load %arg13[%c0_239, %c0_240] : memref<32x256xf32, #tpu.memory_space<vmem>>, vector<32x256xf32>
    tpu.vector_store %arg13[%c0_239, %c0_240], %192 {strides = array<i32>} : memref<32x256xf32, #tpu.memory_space<vmem>>, vector<32x256xf32>,
    %c24_241 = arith.constant 24 : index
    %c0_242 = arith.constant 0 : index
    %c0_243 = arith.constant 0 : index
    %194 = vector.load %arg12[%c24_241, %c0_242, %c0_243] : memref<38x16x4xf32, #tpu.memory_space<vmem>>, vector<2x16x4xf32>
    %195 = vector.shape_cast %194 : vector<2x16x4xf32> to vector<32x4xf32>
    %c8_244 = arith.constant 8 : index
    %c0_245 = arith.constant 0 : index
    %c0_246 = arith.constant 0 : index
    %196 = vector.load %arg5[%c8_244, %c0_245, %c0_246] : memref<9x4x256xf32, #tpu.memory_space<vmem>>, vector<1x4x256xf32>
    %197 = vector.shape_cast %196 : vector<1x4x256xf32> to vector<4x256xf32>
    %cst_247 = arith.constant dense<0.000000e+00> : vector<32x256xf32>
    %198 = tpu.matmul %195, %197, %cst_247 {dimension_numbers = #tpu.dot_dimension_numbers<[1], [0], [0], [1], [0, 0, 1, 1], [], []>} : vector<32x4xf32>, vector<4x256xf32>, vector<32x256xf32> -> vector<32x256xf32>
    %c0_248 = arith.constant 0 : index
    %c0_249 = arith.constant 0 : index
    %199 = vector.load %arg13[%c0_248, %c0_249] : memref<32x256xf32, #tpu.memory_space<vmem>>, vector<32x256xf32>
    %200 = arith.addf %199, %198 : vector<32x256xf32>
    %c0_250 = arith.constant 0 : index
    %c0_251 = arith.constant 0 : index
    %201 = vector.load %arg13[%c0_250, %c0_251] : memref<32x256xf32, #tpu.memory_space<vmem>>, vector<32x256xf32>
    tpu.vector_store %arg13[%c0_250, %c0_251], %200 {strides = array<i32>} : memref<32x256xf32, #tpu.memory_space<vmem>>, vector<32x256xf32>,
    %c0_252 = arith.constant 0 : index
    %c0_253 = arith.constant 0 : index
    %202 = vector.load %arg13[%c0_252, %c0_253] : memref<32x256xf32, #tpu.memory_space<vmem>>, vector<32x256xf32>
    %c2_254 = arith.constant 2 : index
    %c0_255 = arith.constant 0 : index
    %203 = vector.load %arg9[%c2_254, %c0_255] : memref<5x256xf32, #tpu.memory_space<vmem>>, vector<1x256xf32>
    %204 = vector.broadcast %203 : vector<1x256xf32> to vector<32x256xf32>
    %205 = arith.addf %202, %204 : vector<32x256xf32>
    %cst_256 = arith.constant 0.000000e+00 : f32
    %206 = vector.broadcast %cst_256 : f32 to vector<32x256xf32>
    %207 = arith.maximumf %205, %206 : vector<32x256xf32>
    %c0_257 = arith.constant 0 : index
    %c0_258 = arith.constant 0 : index
    %208 = vector.load %arg14[%c0_257, %c0_258] : memref<32x256xf32, #tpu.memory_space<vmem>>, vector<32x256xf32>
    %c512 = arith.constant 512 : index
    %c0_259 = arith.constant 0 : index
    %209 = vector.load %arg7[%c512, %c0_259] : memref<1024x256xf32, #tpu.memory_space<vmem>>, vector<256x256xf32>
    %cst_260 = arith.constant dense<0.000000e+00> : vector<32x256xf32>
    %210 = tpu.matmul %207, %209, %cst_260 {dimension_numbers = #tpu.dot_dimension_numbers<[1], [0], [0], [1], [0, 0, 1, 1], [], []>} : vector<32x256xf32>, vector<256x256xf32>, vector<32x256xf32> -> vector<32x256xf32>
    %211 = arith.addf %208, %210 : vector<32x256xf32>
    %c0_261 = arith.constant 0 : index
    %c0_262 = arith.constant 0 : index
    %212 = vector.load %arg14[%c0_261, %c0_262] : memref<32x256xf32, #tpu.memory_space<vmem>>, vector<32x256xf32>
    tpu.vector_store %arg14[%c0_261, %c0_262], %211 {strides = array<i32>} : memref<32x256xf32, #tpu.memory_space<vmem>>, vector<32x256xf32>,
    %c18_i32_263 = arith.constant 18 : i32
    %213 = arith.addi %3, %c18_i32_263 : i32
    %c18_i32_264 = arith.constant 18 : i32
    %214 = arith.subi %213, %c18_i32_264 : i32
    %215 = arith.index_cast %214 : i32 to index
    %c0_265 = arith.constant 0 : index
    %c0_266 = arith.constant 0 : index
    %216 = vector.load %arg11[%215, %c0_265, %c0_266] : memref<52x52x4xf32, #tpu.memory_space<vmem>>, vector<38x16x4xf32>
    %c0_267 = arith.constant 0 : index
    %c0_268 = arith.constant 0 : index
    %c0_269 = arith.constant 0 : index
    %217 = vector.load %arg12[%c0_267, %c0_268, %c0_269] : memref<38x16x4xf32, #tpu.memory_space<vmem>>, vector<38x16x4xf32>
    tpu.vector_store %arg12[%c0_267, %c0_268, %c0_269], %216 {strides = array<i32>} : memref<38x16x4xf32, #tpu.memory_space<vmem>>, vector<38x16x4xf32>,
    %c0_270 = arith.constant 0 : index
    %c0_271 = arith.constant 0 : index
    %c0_272 = arith.constant 0 : index
    %218 = vector.load %arg12[%c0_270, %c0_271, %c0_272] : memref<38x16x4xf32, #tpu.memory_space<vmem>>, vector<2x16x4xf32>
    %219 = vector.shape_cast %218 : vector<2x16x4xf32> to vector<32x4xf32>
    %c0_273 = arith.constant 0 : index
    %c0_274 = arith.constant 0 : index
    %c0_275 = arith.constant 0 : index
    %220 = vector.load %arg6[%c0_273, %c0_274, %c0_275] : memref<9x4x256xf32, #tpu.memory_space<vmem>>, vector<1x4x256xf32>
    %221 = vector.shape_cast %220 : vector<1x4x256xf32> to vector<4x256xf32>
    %cst_276 = arith.constant dense<0.000000e+00> : vector<32x256xf32>
    %222 = tpu.matmul %219, %221, %cst_276 {dimension_numbers = #tpu.dot_dimension_numbers<[1], [0], [0], [1], [0, 0, 1, 1], [], []>} : vector<32x4xf32>, vector<4x256xf32>, vector<32x256xf32> -> vector<32x256xf32>
    %c0_277 = arith.constant 0 : index
    %c0_278 = arith.constant 0 : index
    %223 = vector.load %arg13[%c0_277, %c0_278] : memref<32x256xf32, #tpu.memory_space<vmem>>, vector<32x256xf32>
    tpu.vector_store %arg13[%c0_277, %c0_278], %222 {strides = array<i32>} : memref<32x256xf32, #tpu.memory_space<vmem>>, vector<32x256xf32>,
    %c18_279 = arith.constant 18 : index
    %c0_280 = arith.constant 0 : index
    %c0_281 = arith.constant 0 : index
    %224 = vector.load %arg12[%c18_279, %c0_280, %c0_281] : memref<38x16x4xf32, #tpu.memory_space<vmem>>, vector<2x16x4xf32>
    %225 = vector.shape_cast %224 : vector<2x16x4xf32> to vector<32x4xf32>
    %c3_282 = arith.constant 3 : index
    %c0_283 = arith.constant 0 : index
    %c0_284 = arith.constant 0 : index
    %226 = vector.load %arg6[%c3_282, %c0_283, %c0_284] : memref<9x4x256xf32, #tpu.memory_space<vmem>>, vector<1x4x256xf32>
    %227 = vector.shape_cast %226 : vector<1x4x256xf32> to vector<4x256xf32>
    %cst_285 = arith.constant dense<0.000000e+00> : vector<32x256xf32>
    %228 = tpu.matmul %225, %227, %cst_285 {dimension_numbers = #tpu.dot_dimension_numbers<[1], [0], [0], [1], [0, 0, 1, 1], [], []>} : vector<32x4xf32>, vector<4x256xf32>, vector<32x256xf32> -> vector<32x256xf32>
    %c0_286 = arith.constant 0 : index
    %c0_287 = arith.constant 0 : index
    %229 = vector.load %arg13[%c0_286, %c0_287] : memref<32x256xf32, #tpu.memory_space<vmem>>, vector<32x256xf32>
    %230 = arith.addf %229, %228 : vector<32x256xf32>
    %c0_288 = arith.constant 0 : index
    %c0_289 = arith.constant 0 : index
    %231 = vector.load %arg13[%c0_288, %c0_289] : memref<32x256xf32, #tpu.memory_space<vmem>>, vector<32x256xf32>
    tpu.vector_store %arg13[%c0_288, %c0_289], %230 {strides = array<i32>} : memref<32x256xf32, #tpu.memory_space<vmem>>, vector<32x256xf32>,
    %c36 = arith.constant 36 : index
    %c0_290 = arith.constant 0 : index
    %c0_291 = arith.constant 0 : index
    %232 = vector.load %arg12[%c36, %c0_290, %c0_291] : memref<38x16x4xf32, #tpu.memory_space<vmem>>, vector<2x16x4xf32>
    %233 = vector.shape_cast %232 : vector<2x16x4xf32> to vector<32x4xf32>
    %c6_292 = arith.constant 6 : index
    %c0_293 = arith.constant 0 : index
    %c0_294 = arith.constant 0 : index
    %234 = vector.load %arg6[%c6_292, %c0_293, %c0_294] : memref<9x4x256xf32, #tpu.memory_space<vmem>>, vector<1x4x256xf32>
    %235 = vector.shape_cast %234 : vector<1x4x256xf32> to vector<4x256xf32>
    %cst_295 = arith.constant dense<0.000000e+00> : vector<32x256xf32>
    %236 = tpu.matmul %233, %235, %cst_295 {dimension_numbers = #tpu.dot_dimension_numbers<[1], [0], [0], [1], [0, 0, 1, 1], [], []>} : vector<32x4xf32>, vector<4x256xf32>, vector<32x256xf32> -> vector<32x256xf32>
    %c0_296 = arith.constant 0 : index
    %c0_297 = arith.constant 0 : index
    %237 = vector.load %arg13[%c0_296, %c0_297] : memref<32x256xf32, #tpu.memory_space<vmem>>, vector<32x256xf32>
    %238 = arith.addf %237, %236 : vector<32x256xf32>
    %c0_298 = arith.constant 0 : index
    %c0_299 = arith.constant 0 : index
    %239 = vector.load %arg13[%c0_298, %c0_299] : memref<32x256xf32, #tpu.memory_space<vmem>>, vector<32x256xf32>
    tpu.vector_store %arg13[%c0_298, %c0_299], %238 {strides = array<i32>} : memref<32x256xf32, #tpu.memory_space<vmem>>, vector<32x256xf32>,
    %c18_i32_300 = arith.constant 18 : i32
    %240 = arith.addi %3, %c18_i32_300 : i32
    %c18_i32_301 = arith.constant 18 : i32
    %241 = arith.subi %240, %c18_i32_301 : i32
    %242 = arith.index_cast %241 : i32 to index
    %c18_302 = arith.constant 18 : index
    %c0_303 = arith.constant 0 : index
    %243 = vector.load %arg11[%242, %c18_302, %c0_303] : memref<52x52x4xf32, #tpu.memory_space<vmem>>, vector<38x16x4xf32>
    %c0_304 = arith.constant 0 : index
    %c0_305 = arith.constant 0 : index
    %c0_306 = arith.constant 0 : index
    %244 = vector.load %arg12[%c0_304, %c0_305, %c0_306] : memref<38x16x4xf32, #tpu.memory_space<vmem>>, vector<38x16x4xf32>
    tpu.vector_store %arg12[%c0_304, %c0_305, %c0_306], %243 {strides = array<i32>} : memref<38x16x4xf32, #tpu.memory_space<vmem>>, vector<38x16x4xf32>,
    %c0_307 = arith.constant 0 : index
    %c0_308 = arith.constant 0 : index
    %c0_309 = arith.constant 0 : index
    %245 = vector.load %arg12[%c0_307, %c0_308, %c0_309] : memref<38x16x4xf32, #tpu.memory_space<vmem>>, vector<2x16x4xf32>
    %246 = vector.shape_cast %245 : vector<2x16x4xf32> to vector<32x4xf32>
    %c1_310 = arith.constant 1 : index
    %c0_311 = arith.constant 0 : index
    %c0_312 = arith.constant 0 : index
    %247 = vector.load %arg6[%c1_310, %c0_311, %c0_312] : memref<9x4x256xf32, #tpu.memory_space<vmem>>, vector<1x4x256xf32>
    %248 = vector.shape_cast %247 : vector<1x4x256xf32> to vector<4x256xf32>
    %cst_313 = arith.constant dense<0.000000e+00> : vector<32x256xf32>
    %249 = tpu.matmul %246, %248, %cst_313 {dimension_numbers = #tpu.dot_dimension_numbers<[1], [0], [0], [1], [0, 0, 1, 1], [], []>} : vector<32x4xf32>, vector<4x256xf32>, vector<32x256xf32> -> vector<32x256xf32>
    %c0_314 = arith.constant 0 : index
    %c0_315 = arith.constant 0 : index
    %250 = vector.load %arg13[%c0_314, %c0_315] : memref<32x256xf32, #tpu.memory_space<vmem>>, vector<32x256xf32>
    %251 = arith.addf %250, %249 : vector<32x256xf32>
    %c0_316 = arith.constant 0 : index
    %c0_317 = arith.constant 0 : index
    %252 = vector.load %arg13[%c0_316, %c0_317] : memref<32x256xf32, #tpu.memory_space<vmem>>, vector<32x256xf32>
    tpu.vector_store %arg13[%c0_316, %c0_317], %251 {strides = array<i32>} : memref<32x256xf32, #tpu.memory_space<vmem>>, vector<32x256xf32>,
    %c18_318 = arith.constant 18 : index
    %c0_319 = arith.constant 0 : index
    %c0_320 = arith.constant 0 : index
    %253 = vector.load %arg12[%c18_318, %c0_319, %c0_320] : memref<38x16x4xf32, #tpu.memory_space<vmem>>, vector<2x16x4xf32>
    %254 = vector.shape_cast %253 : vector<2x16x4xf32> to vector<32x4xf32>
    %c4_321 = arith.constant 4 : index
    %c0_322 = arith.constant 0 : index
    %c0_323 = arith.constant 0 : index
    %255 = vector.load %arg6[%c4_321, %c0_322, %c0_323] : memref<9x4x256xf32, #tpu.memory_space<vmem>>, vector<1x4x256xf32>
    %256 = vector.shape_cast %255 : vector<1x4x256xf32> to vector<4x256xf32>
    %cst_324 = arith.constant dense<0.000000e+00> : vector<32x256xf32>
    %257 = tpu.matmul %254, %256, %cst_324 {dimension_numbers = #tpu.dot_dimension_numbers<[1], [0], [0], [1], [0, 0, 1, 1], [], []>} : vector<32x4xf32>, vector<4x256xf32>, vector<32x256xf32> -> vector<32x256xf32>
    %c0_325 = arith.constant 0 : index
    %c0_326 = arith.constant 0 : index
    %258 = vector.load %arg13[%c0_325, %c0_326] : memref<32x256xf32, #tpu.memory_space<vmem>>, vector<32x256xf32>
    %259 = arith.addf %258, %257 : vector<32x256xf32>
    %c0_327 = arith.constant 0 : index
    %c0_328 = arith.constant 0 : index
    %260 = vector.load %arg13[%c0_327, %c0_328] : memref<32x256xf32, #tpu.memory_space<vmem>>, vector<32x256xf32>
    tpu.vector_store %arg13[%c0_327, %c0_328], %259 {strides = array<i32>} : memref<32x256xf32, #tpu.memory_space<vmem>>, vector<32x256xf32>,
    %c36_329 = arith.constant 36 : index
    %c0_330 = arith.constant 0 : index
    %c0_331 = arith.constant 0 : index
    %261 = vector.load %arg12[%c36_329, %c0_330, %c0_331] : memref<38x16x4xf32, #tpu.memory_space<vmem>>, vector<2x16x4xf32>
    %262 = vector.shape_cast %261 : vector<2x16x4xf32> to vector<32x4xf32>
    %c7_332 = arith.constant 7 : index
    %c0_333 = arith.constant 0 : index
    %c0_334 = arith.constant 0 : index
    %263 = vector.load %arg6[%c7_332, %c0_333, %c0_334] : memref<9x4x256xf32, #tpu.memory_space<vmem>>, vector<1x4x256xf32>
    %264 = vector.shape_cast %263 : vector<1x4x256xf32> to vector<4x256xf32>
    %cst_335 = arith.constant dense<0.000000e+00> : vector<32x256xf32>
    %265 = tpu.matmul %262, %264, %cst_335 {dimension_numbers = #tpu.dot_dimension_numbers<[1], [0], [0], [1], [0, 0, 1, 1], [], []>} : vector<32x4xf32>, vector<4x256xf32>, vector<32x256xf32> -> vector<32x256xf32>
    %c0_336 = arith.constant 0 : index
    %c0_337 = arith.constant 0 : index
    %266 = vector.load %arg13[%c0_336, %c0_337] : memref<32x256xf32, #tpu.memory_space<vmem>>, vector<32x256xf32>
    %267 = arith.addf %266, %265 : vector<32x256xf32>
    %c0_338 = arith.constant 0 : index
    %c0_339 = arith.constant 0 : index
    %268 = vector.load %arg13[%c0_338, %c0_339] : memref<32x256xf32, #tpu.memory_space<vmem>>, vector<32x256xf32>
    tpu.vector_store %arg13[%c0_338, %c0_339], %267 {strides = array<i32>} : memref<32x256xf32, #tpu.memory_space<vmem>>, vector<32x256xf32>,
    %c18_i32_340 = arith.constant 18 : i32
    %269 = arith.addi %3, %c18_i32_340 : i32
    %c18_i32_341 = arith.constant 18 : i32
    %270 = arith.subi %269, %c18_i32_341 : i32
    %271 = arith.index_cast %270 : i32 to index
    %c36_342 = arith.constant 36 : index
    %c0_343 = arith.constant 0 : index
    %272 = vector.load %arg11[%271, %c36_342, %c0_343] : memref<52x52x4xf32, #tpu.memory_space<vmem>>, vector<38x16x4xf32>
    %c0_344 = arith.constant 0 : index
    %c0_345 = arith.constant 0 : index
    %c0_346 = arith.constant 0 : index
    %273 = vector.load %arg12[%c0_344, %c0_345, %c0_346] : memref<38x16x4xf32, #tpu.memory_space<vmem>>, vector<38x16x4xf32>
    tpu.vector_store %arg12[%c0_344, %c0_345, %c0_346], %272 {strides = array<i32>} : memref<38x16x4xf32, #tpu.memory_space<vmem>>, vector<38x16x4xf32>,
    %c0_347 = arith.constant 0 : index
    %c0_348 = arith.constant 0 : index
    %c0_349 = arith.constant 0 : index
    %274 = vector.load %arg12[%c0_347, %c0_348, %c0_349] : memref<38x16x4xf32, #tpu.memory_space<vmem>>, vector<2x16x4xf32>
    %275 = vector.shape_cast %274 : vector<2x16x4xf32> to vector<32x4xf32>
    %c2_350 = arith.constant 2 : index
    %c0_351 = arith.constant 0 : index
    %c0_352 = arith.constant 0 : index
    %276 = vector.load %arg6[%c2_350, %c0_351, %c0_352] : memref<9x4x256xf32, #tpu.memory_space<vmem>>, vector<1x4x256xf32>
    %277 = vector.shape_cast %276 : vector<1x4x256xf32> to vector<4x256xf32>
    %cst_353 = arith.constant dense<0.000000e+00> : vector<32x256xf32>
    %278 = tpu.matmul %275, %277, %cst_353 {dimension_numbers = #tpu.dot_dimension_numbers<[1], [0], [0], [1], [0, 0, 1, 1], [], []>} : vector<32x4xf32>, vector<4x256xf32>, vector<32x256xf32> -> vector<32x256xf32>
    %c0_354 = arith.constant 0 : index
    %c0_355 = arith.constant 0 : index
    %279 = vector.load %arg13[%c0_354, %c0_355] : memref<32x256xf32, #tpu.memory_space<vmem>>, vector<32x256xf32>
    %280 = arith.addf %279, %278 : vector<32x256xf32>
    %c0_356 = arith.constant 0 : index
    %c0_357 = arith.constant 0 : index
    %281 = vector.load %arg13[%c0_356, %c0_357] : memref<32x256xf32, #tpu.memory_space<vmem>>, vector<32x256xf32>
    tpu.vector_store %arg13[%c0_356, %c0_357], %280 {strides = array<i32>} : memref<32x256xf32, #tpu.memory_space<vmem>>, vector<32x256xf32>,
    %c18_358 = arith.constant 18 : index
    %c0_359 = arith.constant 0 : index
    %c0_360 = arith.constant 0 : index
    %282 = vector.load %arg12[%c18_358, %c0_359, %c0_360] : memref<38x16x4xf32, #tpu.memory_space<vmem>>, vector<2x16x4xf32>
    %283 = vector.shape_cast %282 : vector<2x16x4xf32> to vector<32x4xf32>
    %c5_361 = arith.constant 5 : index
    %c0_362 = arith.constant 0 : index
    %c0_363 = arith.constant 0 : index
    %284 = vector.load %arg6[%c5_361, %c0_362, %c0_363] : memref<9x4x256xf32, #tpu.memory_space<vmem>>, vector<1x4x256xf32>
    %285 = vector.shape_cast %284 : vector<1x4x256xf32> to vector<4x256xf32>
    %cst_364 = arith.constant dense<0.000000e+00> : vector<32x256xf32>
    %286 = tpu.matmul %283, %285, %cst_364 {dimension_numbers = #tpu.dot_dimension_numbers<[1], [0], [0], [1], [0, 0, 1, 1], [], []>} : vector<32x4xf32>, vector<4x256xf32>, vector<32x256xf32> -> vector<32x256xf32>
    %c0_365 = arith.constant 0 : index
    %c0_366 = arith.constant 0 : index
    %287 = vector.load %arg13[%c0_365, %c0_366] : memref<32x256xf32, #tpu.memory_space<vmem>>, vector<32x256xf32>
    %288 = arith.addf %287, %286 : vector<32x256xf32>
    %c0_367 = arith.constant 0 : index
    %c0_368 = arith.constant 0 : index
    %289 = vector.load %arg13[%c0_367, %c0_368] : memref<32x256xf32, #tpu.memory_space<vmem>>, vector<32x256xf32>
    tpu.vector_store %arg13[%c0_367, %c0_368], %288 {strides = array<i32>} : memref<32x256xf32, #tpu.memory_space<vmem>>, vector<32x256xf32>,
    %c36_369 = arith.constant 36 : index
    %c0_370 = arith.constant 0 : index
    %c0_371 = arith.constant 0 : index
    %290 = vector.load %arg12[%c36_369, %c0_370, %c0_371] : memref<38x16x4xf32, #tpu.memory_space<vmem>>, vector<2x16x4xf32>
    %291 = vector.shape_cast %290 : vector<2x16x4xf32> to vector<32x4xf32>
    %c8_372 = arith.constant 8 : index
    %c0_373 = arith.constant 0 : index
    %c0_374 = arith.constant 0 : index
    %292 = vector.load %arg6[%c8_372, %c0_373, %c0_374] : memref<9x4x256xf32, #tpu.memory_space<vmem>>, vector<1x4x256xf32>
    %293 = vector.shape_cast %292 : vector<1x4x256xf32> to vector<4x256xf32>
    %cst_375 = arith.constant dense<0.000000e+00> : vector<32x256xf32>
    %294 = tpu.matmul %291, %293, %cst_375 {dimension_numbers = #tpu.dot_dimension_numbers<[1], [0], [0], [1], [0, 0, 1, 1], [], []>} : vector<32x4xf32>, vector<4x256xf32>, vector<32x256xf32> -> vector<32x256xf32>
    %c0_376 = arith.constant 0 : index
    %c0_377 = arith.constant 0 : index
    %295 = vector.load %arg13[%c0_376, %c0_377] : memref<32x256xf32, #tpu.memory_space<vmem>>, vector<32x256xf32>
    %296 = arith.addf %295, %294 : vector<32x256xf32>
    %c0_378 = arith.constant 0 : index
    %c0_379 = arith.constant 0 : index
    %297 = vector.load %arg13[%c0_378, %c0_379] : memref<32x256xf32, #tpu.memory_space<vmem>>, vector<32x256xf32>
    tpu.vector_store %arg13[%c0_378, %c0_379], %296 {strides = array<i32>} : memref<32x256xf32, #tpu.memory_space<vmem>>, vector<32x256xf32>,
    %c0_380 = arith.constant 0 : index
    %c0_381 = arith.constant 0 : index
    %298 = vector.load %arg13[%c0_380, %c0_381] : memref<32x256xf32, #tpu.memory_space<vmem>>, vector<32x256xf32>
    %c3_382 = arith.constant 3 : index
    %c0_383 = arith.constant 0 : index
    %299 = vector.load %arg9[%c3_382, %c0_383] : memref<5x256xf32, #tpu.memory_space<vmem>>, vector<1x256xf32>
    %300 = vector.broadcast %299 : vector<1x256xf32> to vector<32x256xf32>
    %301 = arith.addf %298, %300 : vector<32x256xf32>
    %cst_384 = arith.constant 0.000000e+00 : f32
    %302 = vector.broadcast %cst_384 : f32 to vector<32x256xf32>
    %303 = arith.maximumf %301, %302 : vector<32x256xf32>
    %c0_385 = arith.constant 0 : index
    %c0_386 = arith.constant 0 : index
    %304 = vector.load %arg14[%c0_385, %c0_386] : memref<32x256xf32, #tpu.memory_space<vmem>>, vector<32x256xf32>
    %c768 = arith.constant 768 : index
    %c0_387 = arith.constant 0 : index
    %305 = vector.load %arg7[%c768, %c0_387] : memref<1024x256xf32, #tpu.memory_space<vmem>>, vector<256x256xf32>
    %cst_388 = arith.constant dense<0.000000e+00> : vector<32x256xf32>
    %306 = tpu.matmul %303, %305, %cst_388 {dimension_numbers = #tpu.dot_dimension_numbers<[1], [0], [0], [1], [0, 0, 1, 1], [], []>} : vector<32x256xf32>, vector<256x256xf32>, vector<32x256xf32> -> vector<32x256xf32>
    %307 = arith.addf %304, %306 : vector<32x256xf32>
    %c0_389 = arith.constant 0 : index
    %c0_390 = arith.constant 0 : index
    %308 = vector.load %arg14[%c0_389, %c0_390] : memref<32x256xf32, #tpu.memory_space<vmem>>, vector<32x256xf32>
    tpu.vector_store %arg14[%c0_389, %c0_390], %307 {strides = array<i32>} : memref<32x256xf32, #tpu.memory_space<vmem>>, vector<32x256xf32>,
    %c0_391 = arith.constant 0 : index
    %c0_392 = arith.constant 0 : index
    %309 = vector.load %arg14[%c0_391, %c0_392] : memref<32x256xf32, #tpu.memory_space<vmem>>, vector<32x256xf32>
    %c0_393 = arith.constant 0 : index
    %c0_394 = arith.constant 0 : index
    %c0_395 = arith.constant 0 : index
    %310 = vector.load %arg8[%c0_393, %c0_394, %c0_395] : memref<1x1x256xf32, #tpu.memory_space<vmem>>, vector<1x1x256xf32>
    %311 = vector.shape_cast %310 : vector<1x1x256xf32> to vector<1x256xf32>
    %312 = vector.broadcast %311 : vector<1x256xf32> to vector<32x256xf32>
    %313 = arith.addf %309, %312 : vector<32x256xf32>
    %c4_396 = arith.constant 4 : index
    %c0_397 = arith.constant 0 : index
    %314 = vector.load %arg9[%c4_396, %c0_397] : memref<5x256xf32, #tpu.memory_space<vmem>>, vector<1x256xf32>
    %315 = vector.broadcast %314 : vector<1x256xf32> to vector<32x256xf32>
    %316 = arith.addf %313, %315 : vector<32x256xf32>
    %cst_398 = arith.constant 0.000000e+00 : f32
    %317 = vector.broadcast %cst_398 : f32 to vector<32x256xf32>
    %318 = arith.maximumf %316, %317 : vector<32x256xf32>
    %c0_399 = arith.constant 0 : index
    %c0_400 = arith.constant 0 : index
    %c0_401 = arith.constant 0 : index
    %319 = vector.load %arg10[%c0_399, %c0_400, %c0_401] : memref<1x32x256xf32, #tpu.memory_space<vmem>>, vector<1x32x256xf32>
    %320 = vector.shape_cast %319 : vector<1x32x256xf32> to vector<32x256xf32>
    %321 = vector.shape_cast %318 : vector<32x256xf32> to vector<1x32x256xf32>
    tpu.vector_store %arg10[%c0_399, %c0_400, %c0_401], %321 {strides = array<i32>} : memref<1x32x256xf32, #tpu.memory_space<vmem>>, vector<1x32x256xf32>,
    return
  }
  func.func @transform_0(%arg0: i32, %arg1: i32) -> (i32, i32, i32, i32) {
    %c0_i32 = arith.constant 0 : i32
    %c0_i32_0 = arith.constant 0 : i32
    %c0_i32_1 = arith.constant 0 : i32
    %c0_i32_2 = arith.constant 0 : i32
    return %arg0, %c0_i32, %c0_i32_0, %c0_i32_1 : i32, i32, i32, i32
  }
  func.func @transform_1(%arg0: i32, %arg1: i32) -> (i32, i32) {
    %c0_i32 = arith.constant 0 : i32
    %c0_i32_0 = arith.constant 0 : i32
    %c0_i32_1 = arith.constant 0 : i32
    return %c0_i32, %c0_i32_0 : i32, i32
  }
  func.func @transform_2(%arg0: i32, %arg1: i32) -> (i32, i32, i32) {
    %c0_i32 = arith.constant 0 : i32
    %c0_i32_0 = arith.constant 0 : i32
    %c0_i32_1 = arith.constant 0 : i32
    %c0_i32_2 = arith.constant 0 : i32
    return %c0_i32, %c0_i32_0, %c0_i32_1 : i32, i32, i32
  }
  func.func @transform_3(%arg0: i32, %arg1: i32) -> (i32, i32, i32) {
    %c0_i32 = arith.constant 0 : i32
    %c0_i32_0 = arith.constant 0 : i32
    %c0_i32_1 = arith.constant 0 : i32
    %c0_i32_2 = arith.constant 0 : i32
    return %c0_i32, %c0_i32_0, %c0_i32_1 : i32, i32, i32
  }
  func.func @transform_4(%arg0: i32, %arg1: i32) -> (i32, i32, i32) {
    %c0_i32 = arith.constant 0 : i32
    %c0_i32_0 = arith.constant 0 : i32
    %c0_i32_1 = arith.constant 0 : i32
    %c0_i32_2 = arith.constant 0 : i32
    return %c0_i32, %c0_i32_0, %c0_i32_1 : i32, i32, i32
  }
  func.func @transform_5(%arg0: i32, %arg1: i32) -> (i32, i32) {
    %c0_i32 = arith.constant 0 : i32
    %c0_i32_0 = arith.constant 0 : i32
    %c0_i32_1 = arith.constant 0 : i32
    return %c0_i32, %c0_i32_0 : i32, i32
  }
  func.func @transform_6(%arg0: i32, %arg1: i32) -> (i32, i32, i32) {
    %c0_i32 = arith.constant 0 : i32
    %c0_i32_0 = arith.constant 0 : i32
    %c0_i32_1 = arith.constant 0 : i32
    return %arg0, %c0_i32, %c0_i32_0 : i32, i32, i32
  }
  func.func @transform_7(%arg0: i32, %arg1: i32) -> (i32, i32) {
    %c0_i32 = arith.constant 0 : i32
    %c0_i32_0 = arith.constant 0 : i32
    %c0_i32_1 = arith.constant 0 : i32
    return %c0_i32, %c0_i32_0 : i32, i32
  }
  func.func @transform_8(%arg0: i32, %arg1: i32) -> (i32, i32, i32) {
    %c0_i32 = arith.constant 0 : i32
    %c0_i32_0 = arith.constant 0 : i32
    return %arg0, %arg1, %c0_i32 : i32, i32, i32
  }
}

module attributes {stable_mosaic.version = 11 : i64} {
  func.func @kernel(%arg0: i32, %arg1: i32, %arg2: memref<1x16x16x4xf32, #tpu.memory_space<vmem>>, %arg3: memref<4x256xf32, #tpu.memory_space<vmem>>, %arg4: memref<9x4x256xf32, #tpu.memory_space<vmem>>, %arg5: memref<9x4x256xf32, #tpu.memory_space<vmem>>, %arg6: memref<9x4x256xf32, #tpu.memory_space<vmem>>, %arg7: memref<1024x256xf32, #tpu.memory_space<vmem>>, %arg8: memref<1x1x256xf32, #tpu.memory_space<vmem>>, %arg9: memref<5x256xf32, #tpu.memory_space<vmem>>, %arg10: memref<1x32x256xf32, #tpu.memory_space<vmem>>, %arg11: memref<52x52x4xf32, #tpu.memory_space<vmem>>, %arg12: memref<38x16x4xf32, #tpu.memory_space<vmem>>, %arg13: memref<32x256xf32, #tpu.memory_space<vmem>>, %arg14: memref<32x256xf32, #tpu.memory_space<vmem>>) attributes {dimension_semantics = [#tpu.dimension_semantics<parallel>, #tpu.dimension_semantics<arbitrary>], iteration_bounds = array<i64: 2, 8>, scalar_prefetch = 0 : i64, scratch_operands = 4 : i64, tpu.core_type = #tpu.core_type<tc>, window_params = [{transform_indices = @transform_0, window_bounds = array<i64: 1, 16, 16, 4>}, {pipeline_mode = #tpu.pipeline_mode<synchronous>, transform_indices = @transform_1, window_bounds = array<i64: 4, 256>}, {pipeline_mode = #tpu.pipeline_mode<synchronous>, transform_indices = @transform_2, window_bounds = array<i64: 9, 4, 256>}, {pipeline_mode = #tpu.pipeline_mode<synchronous>, transform_indices = @transform_3, window_bounds = array<i64: 9, 4, 256>}, {pipeline_mode = #tpu.pipeline_mode<synchronous>, transform_indices = @transform_4, window_bounds = array<i64: 9, 4, 256>}, {pipeline_mode = #tpu.pipeline_mode<synchronous>, transform_indices = @transform_5, window_bounds = array<i64: 1024, 256>}, {transform_indices = @transform_6, window_bounds = array<i64: 1, 1, 256>}, {pipeline_mode = #tpu.pipeline_mode<synchronous>, transform_indices = @transform_7, window_bounds = array<i64: 5, 256>}, {transform_indices = @transform_8, window_bounds = array<i64: 1, 32, 256>}]} {
    %c0_i32 = arith.constant 0 : i32
    %0 = arith.cmpi eq, %arg1, %c0_i32 : i32
    %1 = arith.extui %0 : i1 to i32
    %c0_i32_0 = arith.constant 0 : i32
    %2 = arith.cmpi ne, %1, %c0_i32_0 : i32
    scf.if %2 {
      %cst_402 = arith.constant 0.000000e+00 : f32
      %322 = vector.broadcast %cst_402 : f32 to vector<52x52x4xf32>
      %c0_403 = arith.constant 0 : index
      %c0_404 = arith.constant 0 : index
      %c0_405 = arith.constant 0 : index
      %323 = vector.load %arg11[%c0_403, %c0_404, %c0_405] : memref<52x52x4xf32, #tpu.memory_space<vmem>>, vector<52x52x4xf32>
      tpu.vector_store %arg11[%c0_403, %c0_404, %c0_405], %322 {strides = array<i32>} : memref<52x52x4xf32, #tpu.memory_space<vmem>>, vector<52x52x4xf32>,
      %c0_406 = arith.constant 0 : index
      %c0_407 = arith.constant 0 : index
      %c0_408 = arith.constant 0 : index
      %c0_409 = arith.constant 0 : index
      %324 = vector.load %arg2[%c0_406, %c0_407, %c0_408, %c0_409] : memref<1x16x16x4xf32, #tpu.memory_space<vmem>>, vector<1x16x16x4xf32>
      %325 = vector.shape_cast %324 : vector<1x16x16x4xf32> to vector<16x16x4xf32>
      %c18_410 = arith.constant 18 : index
      %c18_411 = arith.constant 18 : index
      %c0_412 = arith.constant 0 : index
      %326 = vector.load %arg11[%c18_410, %c18_411, %c0_412] : memref<52x52x4xf32, #tpu.memory_space<vmem>>, vector<16x16x4xf32>
      tpu.vector_store %arg11[%c18_410, %c18_411, %c0_412], %325 {strides = array<i32>} : memref<52x52x4xf32, #tpu.memory_space<vmem>>, vector<16x16x4xf32>,
    } else {
    }
    %c2_i32 = arith.constant 2 : i32
    %3 = arith.muli %arg1, %c2_i32 : i32
    %c18_i32 = arith.constant 18 : i32
    %4 = arith.addi %3, %c18_i32 : i32
    %c0_i32_1 = arith.constant 0 : i32
    %5 = arith.subi %4, %c0_i32_1 : i32
    %6 = arith.index_cast %5 : i32 to index
    %c18 = arith.constant 18 : index
    %c0 = arith.constant 0 : index
    %7 = vector.load %arg11[%6, %c18, %c0] : memref<52x52x4xf32, #tpu.memory_space<vmem>>, vector<2x16x4xf32>
    %c0_2 = arith.constant 0 : index
    %c0_3 = arith.constant 0 : index
    %c0_4 = arith.constant 0 : index
    %8 = vector.load %arg12[%c0_2, %c0_3, %c0_4] : memref<38x16x4xf32, #tpu.memory_space<vmem>>, vector<2x16x4xf32>
    tpu.vector_store %arg12[%c0_2, %c0_3, %c0_4], %7 {strides = array<i32>} : memref<38x16x4xf32, #tpu.memory_space<vmem>>, vector<2x16x4xf32>,
    %c0_5 = arith.constant 0 : index
    %c0_6 = arith.constant 0 : index
    %c0_7 = arith.constant 0 : index
    %9 = vector.load %arg12[%c0_5, %c0_6, %c0_7] : memref<38x16x4xf32, #tpu.memory_space<vmem>>, vector<2x16x4xf32>
    %10 = vector.shape_cast %9 : vector<2x16x4xf32> to vector<32x4xf32>
    %c0_8 = arith.constant 0 : index
    %c0_9 = arith.constant 0 : index
    %11 = vector.load %arg3[%c0_8, %c0_9] : memref<4x256xf32, #tpu.memory_space<vmem>>, vector<4x256xf32>
    %cst = arith.constant dense<0.000000e+00> : vector<32x256xf32>
    %12 = tpu.matmul %10, %11, %cst {dimension_numbers = #tpu.dot_dimension_numbers<[1], [0], [0], [1], [0, 0, 1, 1], [], []>} : vector<32x4xf32>, vector<4x256xf32>, vector<32x256xf32> -> vector<32x256xf32>
    %c0_10 = arith.constant 0 : index
    %c0_11 = arith.constant 0 : index
    %13 = vector.load %arg9[%c0_10, %c0_11] : memref<5x256xf32, #tpu.memory_space<vmem>>, vector<1x256xf32>
    %14 = vector.broadcast %13 : vector<1x256xf32> to vector<32x256xf32>
    %15 = arith.addf %12, %14 : vector<32x256xf32>
    %cst_12 = arith.constant 0.000000e+00 : f32
    %16 = vector.broadcast %cst_12 : f32 to vector<32x256xf32>
    %17 = arith.maximumf %15, %16 : vector<32x256xf32>
    %c0_13 = arith.constant 0 : index
    %c0_14 = arith.constant 0 : index
    %18 = vector.load %arg7[%c0_13, %c0_14] : memref<1024x256xf32, #tpu.memory_space<vmem>>, vector<256x256xf32>
    %cst_15 = arith.constant dense<0.000000e+00> : vector<32x256xf32>
    %19 = tpu.matmul %17, %18, %cst_15 {dimension_numbers = #tpu.dot_dimension_numbers<[1], [0], [0], [1], [0, 0, 1, 1], [], []>} : vector<32x256xf32>, vector<256x256xf32>, vector<32x256xf32> -> vector<32x256xf32>
    %c0_16 = arith.constant 0 : index
    %c0_17 = arith.constant 0 : index
    %20 = vector.load %arg14[%c0_16, %c0_17] : memref<32x256xf32, #tpu.memory_space<vmem>>, vector<32x256xf32>
    tpu.vector_store %arg14[%c0_16, %c0_17], %19 {strides = array<i32>} : memref<32x256xf32, #tpu.memory_space<vmem>>, vector<32x256xf32>,
    %c18_i32_18 = arith.constant 18 : i32
    %21 = arith.addi %3, %c18_i32_18 : i32
    %c6_i32 = arith.constant 6 : i32
    %22 = arith.subi %21, %c6_i32 : i32
    %23 = arith.index_cast %22 : i32 to index
    %c12 = arith.constant 12 : index
    %c0_19 = arith.constant 0 : index
    %24 = vector.load %arg11[%23, %c12, %c0_19] : memref<52x52x4xf32, #tpu.memory_space<vmem>>, vector<14x16x4xf32>
    %c0_20 = arith.constant 0 : index
    %c0_21 = arith.constant 0 : index
    %c0_22 = arith.constant 0 : index
    %25 = vector.load %arg12[%c0_20, %c0_21, %c0_22] : memref<38x16x4xf32, #tpu.memory_space<vmem>>, vector<14x16x4xf32>
    tpu.vector_store %arg12[%c0_20, %c0_21, %c0_22], %24 {strides = array<i32>} : memref<38x16x4xf32, #tpu.memory_space<vmem>>, vector<14x16x4xf32>,
    %c0_23 = arith.constant 0 : index
    %c0_24 = arith.constant 0 : index
    %c0_25 = arith.constant 0 : index
    %26 = vector.load %arg12[%c0_23, %c0_24, %c0_25] : memref<38x16x4xf32, #tpu.memory_space<vmem>>, vector<2x16x4xf32>
    %27 = vector.shape_cast %26 : vector<2x16x4xf32> to vector<32x4xf32>
    %c0_26 = arith.constant 0 : index
    %c0_27 = arith.constant 0 : index
    %c0_28 = arith.constant 0 : index
    %28 = vector.load %arg4[%c0_26, %c0_27, %c0_28] : memref<9x4x256xf32, #tpu.memory_space<vmem>>, vector<1x4x256xf32>
    %29 = vector.shape_cast %28 : vector<1x4x256xf32> to vector<4x256xf32>
    %cst_29 = arith.constant dense<0.000000e+00> : vector<32x256xf32>
    %30 = tpu.matmul %27, %29, %cst_29 {dimension_numbers = #tpu.dot_dimension_numbers<[1], [0], [0], [1], [0, 0, 1, 1], [], []>} : vector<32x4xf32>, vector<4x256xf32>, vector<32x256xf32> -> vector<32x256xf32>
    %c0_30 = arith.constant 0 : index
    %c0_31 = arith.constant 0 : index
    %31 = vector.load %arg13[%c0_30, %c0_31] : memref<32x256xf32, #tpu.memory_space<vmem>>, vector<32x256xf32>
    tpu.vector_store %arg13[%c0_30, %c0_31], %30 {strides = array<i32>} : memref<32x256xf32, #tpu.memory_space<vmem>>, vector<32x256xf32>,
    %c6 = arith.constant 6 : index
    %c0_32 = arith.constant 0 : index
    %c0_33 = arith.constant 0 : index
    %32 = vector.load %arg12[%c6, %c0_32, %c0_33] : memref<38x16x4xf32, #tpu.memory_space<vmem>>, vector<2x16x4xf32>
    %33 = vector.shape_cast %32 : vector<2x16x4xf32> to vector<32x4xf32>
    %c3 = arith.constant 3 : index
    %c0_34 = arith.constant 0 : index
    %c0_35 = arith.constant 0 : index
    %34 = vector.load %arg4[%c3, %c0_34, %c0_35] : memref<9x4x256xf32, #tpu.memory_space<vmem>>, vector<1x4x256xf32>
    %35 = vector.shape_cast %34 : vector<1x4x256xf32> to vector<4x256xf32>
    %cst_36 = arith.constant dense<0.000000e+00> : vector<32x256xf32>
    %36 = tpu.matmul %33, %35, %cst_36 {dimension_numbers = #tpu.dot_dimension_numbers<[1], [0], [0], [1], [0, 0, 1, 1], [], []>} : vector<32x4xf32>, vector<4x256xf32>, vector<32x256xf32> -> vector<32x256xf32>
    %c0_37 = arith.constant 0 : index
    %c0_38 = arith.constant 0 : index
    %37 = vector.load %arg13[%c0_37, %c0_38] : memref<32x256xf32, #tpu.memory_space<vmem>>, vector<32x256xf32>
    %38 = arith.addf %37, %36 : vector<32x256xf32>
    %c0_39 = arith.constant 0 : index
    %c0_40 = arith.constant 0 : index
    %39 = vector.load %arg13[%c0_39, %c0_40] : memref<32x256xf32, #tpu.memory_space<vmem>>, vector<32x256xf32>
    tpu.vector_store %arg13[%c0_39, %c0_40], %38 {strides = array<i32>} : memref<32x256xf32, #tpu.memory_space<vmem>>, vector<32x256xf32>,
    %c12_41 = arith.constant 12 : index
    %c0_42 = arith.constant 0 : index
    %c0_43 = arith.constant 0 : index
    %40 = vector.load %arg12[%c12_41, %c0_42, %c0_43] : memref<38x16x4xf32, #tpu.memory_space<vmem>>, vector<2x16x4xf32>
    %41 = vector.shape_cast %40 : vector<2x16x4xf32> to vector<32x4xf32>
    %c6_44 = arith.constant 6 : index
    %c0_45 = arith.constant 0 : index
    %c0_46 = arith.constant 0 : index
    %42 = vector.load %arg4[%c6_44, %c0_45, %c0_46] : memref<9x4x256xf32, #tpu.memory_space<vmem>>, vector<1x4x256xf32>
    %43 = vector.shape_cast %42 : vector<1x4x256xf32> to vector<4x256xf32>
    %cst_47 = arith.constant dense<0.000000e+00> : vector<32x256xf32>
    %44 = tpu.matmul %41, %43, %cst_47 {dimension_numbers = #tpu.dot_dimension_numbers<[1], [0], [0], [1], [0, 0, 1, 1], [], []>} : vector<32x4xf32>, vector<4x256xf32>, vector<32x256xf32> -> vector<32x256xf32>
    %c0_48 = arith.constant 0 : index
    %c0_49 = arith.constant 0 : index
    %45 = vector.load %arg13[%c0_48, %c0_49] : memref<32x256xf32, #tpu.memory_space<vmem>>, vector<32x256xf32>
    %46 = arith.addf %45, %44 : vector<32x256xf32>
    %c0_50 = arith.constant 0 : index
    %c0_51 = arith.constant 0 : index
    %47 = vector.load %arg13[%c0_50, %c0_51] : memref<32x256xf32, #tpu.memory_space<vmem>>, vector<32x256xf32>
    tpu.vector_store %arg13[%c0_50, %c0_51], %46 {strides = array<i32>} : memref<32x256xf32, #tpu.memory_space<vmem>>, vector<32x256xf32>,
    %c18_i32_52 = arith.constant 18 : i32
    %48 = arith.addi %3, %c18_i32_52 : i32
    %c6_i32_53 = arith.constant 6 : i32
    %49 = arith.subi %48, %c6_i32_53 : i32
    %50 = arith.index_cast %49 : i32 to index
    %c18_54 = arith.constant 18 : index
    %c0_55 = arith.constant 0 : index
    %51 = vector.load %arg11[%50, %c18_54, %c0_55] : memref<52x52x4xf32, #tpu.memory_space<vmem>>, vector<14x16x4xf32>
    %c0_56 = arith.constant 0 : index
    %c0_57 = arith.constant 0 : index
    %c0_58 = arith.constant 0 : index
    %52 = vector.load %arg12[%c0_56, %c0_57, %c0_58] : memref<38x16x4xf32, #tpu.memory_space<vmem>>, vector<14x16x4xf32>
    tpu.vector_store %arg12[%c0_56, %c0_57, %c0_58], %51 {strides = array<i32>} : memref<38x16x4xf32, #tpu.memory_space<vmem>>, vector<14x16x4xf32>,
    %c0_59 = arith.constant 0 : index
    %c0_60 = arith.constant 0 : index
    %c0_61 = arith.constant 0 : index
    %53 = vector.load %arg12[%c0_59, %c0_60, %c0_61] : memref<38x16x4xf32, #tpu.memory_space<vmem>>, vector<2x16x4xf32>
    %54 = vector.shape_cast %53 : vector<2x16x4xf32> to vector<32x4xf32>
    %c1 = arith.constant 1 : index
    %c0_62 = arith.constant 0 : index
    %c0_63 = arith.constant 0 : index
    %55 = vector.load %arg4[%c1, %c0_62, %c0_63] : memref<9x4x256xf32, #tpu.memory_space<vmem>>, vector<1x4x256xf32>
    %56 = vector.shape_cast %55 : vector<1x4x256xf32> to vector<4x256xf32>
    %cst_64 = arith.constant dense<0.000000e+00> : vector<32x256xf32>
    %57 = tpu.matmul %54, %56, %cst_64 {dimension_numbers = #tpu.dot_dimension_numbers<[1], [0], [0], [1], [0, 0, 1, 1], [], []>} : vector<32x4xf32>, vector<4x256xf32>, vector<32x256xf32> -> vector<32x256xf32>
    %c0_65 = arith.constant 0 : index
    %c0_66 = arith.constant 0 : index
    %58 = vector.load %arg13[%c0_65, %c0_66] : memref<32x256xf32, #tpu.memory_space<vmem>>, vector<32x256xf32>
    %59 = arith.addf %58, %57 : vector<32x256xf32>
    %c0_67 = arith.constant 0 : index
    %c0_68 = arith.constant 0 : index
    %60 = vector.load %arg13[%c0_67, %c0_68] : memref<32x256xf32, #tpu.memory_space<vmem>>, vector<32x256xf32>
    tpu.vector_store %arg13[%c0_67, %c0_68], %59 {strides = array<i32>} : memref<32x256xf32, #tpu.memory_space<vmem>>, vector<32x256xf32>,
    %c6_69 = arith.constant 6 : index
    %c0_70 = arith.constant 0 : index
    %c0_71 = arith.constant 0 : index
    %61 = vector.load %arg12[%c6_69, %c0_70, %c0_71] : memref<38x16x4xf32, #tpu.memory_space<vmem>>, vector<2x16x4xf32>
    %62 = vector.shape_cast %61 : vector<2x16x4xf32> to vector<32x4xf32>
    %c4 = arith.constant 4 : index
    %c0_72 = arith.constant 0 : index
    %c0_73 = arith.constant 0 : index
    %63 = vector.load %arg4[%c4, %c0_72, %c0_73] : memref<9x4x256xf32, #tpu.memory_space<vmem>>, vector<1x4x256xf32>
    %64 = vector.shape_cast %63 : vector<1x4x256xf32> to vector<4x256xf32>
    %cst_74 = arith.constant dense<0.000000e+00> : vector<32x256xf32>
    %65 = tpu.matmul %62, %64, %cst_74 {dimension_numbers = #tpu.dot_dimension_numbers<[1], [0], [0], [1], [0, 0, 1, 1], [], []>} : vector<32x4xf32>, vector<4x256xf32>, vector<32x256xf32> -> vector<32x256xf32>
    %c0_75 = arith.constant 0 : index
    %c0_76 = arith.constant 0 : index
    %66 = vector.load %arg13[%c0_75, %c0_76] : memref<32x256xf32, #tpu.memory_space<vmem>>, vector<32x256xf32>
    %67 = arith.addf %66, %65 : vector<32x256xf32>
    %c0_77 = arith.constant 0 : index
    %c0_78 = arith.constant 0 : index
    %68 = vector.load %arg13[%c0_77, %c0_78] : memref<32x256xf32, #tpu.memory_space<vmem>>, vector<32x256xf32>
    tpu.vector_store %arg13[%c0_77, %c0_78], %67 {strides = array<i32>} : memref<32x256xf32, #tpu.memory_space<vmem>>, vector<32x256xf32>,
    %c12_79 = arith.constant 12 : index
    %c0_80 = arith.constant 0 : index
    %c0_81 = arith.constant 0 : index
    %69 = vector.load %arg12[%c12_79, %c0_80, %c0_81] : memref<38x16x4xf32, #tpu.memory_space<vmem>>, vector<2x16x4xf32>
    %70 = vector.shape_cast %69 : vector<2x16x4xf32> to vector<32x4xf32>
    %c7 = arith.constant 7 : index
    %c0_82 = arith.constant 0 : index
    %c0_83 = arith.constant 0 : index
    %71 = vector.load %arg4[%c7, %c0_82, %c0_83] : memref<9x4x256xf32, #tpu.memory_space<vmem>>, vector<1x4x256xf32>
    %72 = vector.shape_cast %71 : vector<1x4x256xf32> to vector<4x256xf32>
    %cst_84 = arith.constant dense<0.000000e+00> : vector<32x256xf32>
    %73 = tpu.matmul %70, %72, %cst_84 {dimension_numbers = #tpu.dot_dimension_numbers<[1], [0], [0], [1], [0, 0, 1, 1], [], []>} : vector<32x4xf32>, vector<4x256xf32>, vector<32x256xf32> -> vector<32x256xf32>
    %c0_85 = arith.constant 0 : index
    %c0_86 = arith.constant 0 : index
    %74 = vector.load %arg13[%c0_85, %c0_86] : memref<32x256xf32, #tpu.memory_space<vmem>>, vector<32x256xf32>
    %75 = arith.addf %74, %73 : vector<32x256xf32>
    %c0_87 = arith.constant 0 : index
    %c0_88 = arith.constant 0 : index
    %76 = vector.load %arg13[%c0_87, %c0_88] : memref<32x256xf32, #tpu.memory_space<vmem>>, vector<32x256xf32>
    tpu.vector_store %arg13[%c0_87, %c0_88], %75 {strides = array<i32>} : memref<32x256xf32, #tpu.memory_space<vmem>>, vector<32x256xf32>,
    %c18_i32_89 = arith.constant 18 : i32
    %77 = arith.addi %3, %c18_i32_89 : i32
    %c6_i32_90 = arith.constant 6 : i32
    %78 = arith.subi %77, %c6_i32_90 : i32
    %79 = arith.index_cast %78 : i32 to index
    %c24 = arith.constant 24 : index
    %c0_91 = arith.constant 0 : index
    %80 = vector.load %arg11[%79, %c24, %c0_91] : memref<52x52x4xf32, #tpu.memory_space<vmem>>, vector<14x16x4xf32>
    %c0_92 = arith.constant 0 : index
    %c0_93 = arith.constant 0 : index
    %c0_94 = arith.constant 0 : index
    %81 = vector.load %arg12[%c0_92, %c0_93, %c0_94] : memref<38x16x4xf32, #tpu.memory_space<vmem>>, vector<14x16x4xf32>
    tpu.vector_store %arg12[%c0_92, %c0_93, %c0_94], %80 {strides = array<i32>} : memref<38x16x4xf32, #tpu.memory_space<vmem>>, vector<14x16x4xf32>,
    %c0_95 = arith.constant 0 : index
    %c0_96 = arith.constant 0 : index
    %c0_97 = arith.constant 0 : index
    %82 = vector.load %arg12[%c0_95, %c0_96, %c0_97] : memref<38x16x4xf32, #tpu.memory_space<vmem>>, vector<2x16x4xf32>
    %83 = vector.shape_cast %82 : vector<2x16x4xf32> to vector<32x4xf32>
    %c2 = arith.constant 2 : index
    %c0_98 = arith.constant 0 : index
    %c0_99 = arith.constant 0 : index
    %84 = vector.load %arg4[%c2, %c0_98, %c0_99] : memref<9x4x256xf32, #tpu.memory_space<vmem>>, vector<1x4x256xf32>
    %85 = vector.shape_cast %84 : vector<1x4x256xf32> to vector<4x256xf32>
    %cst_100 = arith.constant dense<0.000000e+00> : vector<32x256xf32>
    %86 = tpu.matmul %83, %85, %cst_100 {dimension_numbers = #tpu.dot_dimension_numbers<[1], [0], [0], [1], [0, 0, 1, 1], [], []>} : vector<32x4xf32>, vector<4x256xf32>, vector<32x256xf32> -> vector<32x256xf32>
    %c0_101 = arith.constant 0 : index
    %c0_102 = arith.constant 0 : index
    %87 = vector.load %arg13[%c0_101, %c0_102] : memref<32x256xf32, #tpu.memory_space<vmem>>, vector<32x256xf32>
    %88 = arith.addf %87, %86 : vector<32x256xf32>
    %c0_103 = arith.constant 0 : index
    %c0_104 = arith.constant 0 : index
    %89 = vector.load %arg13[%c0_103, %c0_104] : memref<32x256xf32, #tpu.memory_space<vmem>>, vector<32x256xf32>
    tpu.vector_store %arg13[%c0_103, %c0_104], %88 {strides = array<i32>} : memref<32x256xf32, #tpu.memory_space<vmem>>, vector<32x256xf32>,
    %c6_105 = arith.constant 6 : index
    %c0_106 = arith.constant 0 : index
    %c0_107 = arith.constant 0 : index
    %90 = vector.load %arg12[%c6_105, %c0_106, %c0_107] : memref<38x16x4xf32, #tpu.memory_space<vmem>>, vector<2x16x4xf32>
    %91 = vector.shape_cast %90 : vector<2x16x4xf32> to vector<32x4xf32>
    %c5 = arith.constant 5 : index
    %c0_108 = arith.constant 0 : index
    %c0_109 = arith.constant 0 : index
    %92 = vector.load %arg4[%c5, %c0_108, %c0_109] : memref<9x4x256xf32, #tpu.memory_space<vmem>>, vector<1x4x256xf32>
    %93 = vector.shape_cast %92 : vector<1x4x256xf32> to vector<4x256xf32>
    %cst_110 = arith.constant dense<0.000000e+00> : vector<32x256xf32>
    %94 = tpu.matmul %91, %93, %cst_110 {dimension_numbers = #tpu.dot_dimension_numbers<[1], [0], [0], [1], [0, 0, 1, 1], [], []>} : vector<32x4xf32>, vector<4x256xf32>, vector<32x256xf32> -> vector<32x256xf32>
    %c0_111 = arith.constant 0 : index
    %c0_112 = arith.constant 0 : index
    %95 = vector.load %arg13[%c0_111, %c0_112] : memref<32x256xf32, #tpu.memory_space<vmem>>, vector<32x256xf32>
    %96 = arith.addf %95, %94 : vector<32x256xf32>
    %c0_113 = arith.constant 0 : index
    %c0_114 = arith.constant 0 : index
    %97 = vector.load %arg13[%c0_113, %c0_114] : memref<32x256xf32, #tpu.memory_space<vmem>>, vector<32x256xf32>
    tpu.vector_store %arg13[%c0_113, %c0_114], %96 {strides = array<i32>} : memref<32x256xf32, #tpu.memory_space<vmem>>, vector<32x256xf32>,
    %c12_115 = arith.constant 12 : index
    %c0_116 = arith.constant 0 : index
    %c0_117 = arith.constant 0 : index
    %98 = vector.load %arg12[%c12_115, %c0_116, %c0_117] : memref<38x16x4xf32, #tpu.memory_space<vmem>>, vector<2x16x4xf32>
    %99 = vector.shape_cast %98 : vector<2x16x4xf32> to vector<32x4xf32>
    %c8 = arith.constant 8 : index
    %c0_118 = arith.constant 0 : index
    %c0_119 = arith.constant 0 : index
    %100 = vector.load %arg4[%c8, %c0_118, %c0_119] : memref<9x4x256xf32, #tpu.memory_space<vmem>>, vector<1x4x256xf32>
    %101 = vector.shape_cast %100 : vector<1x4x256xf32> to vector<4x256xf32>
    %cst_120 = arith.constant dense<0.000000e+00> : vector<32x256xf32>
    %102 = tpu.matmul %99, %101, %cst_120 {dimension_numbers = #tpu.dot_dimension_numbers<[1], [0], [0], [1], [0, 0, 1, 1], [], []>} : vector<32x4xf32>, vector<4x256xf32>, vector<32x256xf32> -> vector<32x256xf32>
    %c0_121 = arith.constant 0 : index
    %c0_122 = arith.constant 0 : index
    %103 = vector.load %arg13[%c0_121, %c0_122] : memref<32x256xf32, #tpu.memory_space<vmem>>, vector<32x256xf32>
    %104 = arith.addf %103, %102 : vector<32x256xf32>
    %c0_123 = arith.constant 0 : index
    %c0_124 = arith.constant 0 : index
    %105 = vector.load %arg13[%c0_123, %c0_124] : memref<32x256xf32, #tpu.memory_space<vmem>>, vector<32x256xf32>
    tpu.vector_store %arg13[%c0_123, %c0_124], %104 {strides = array<i32>} : memref<32x256xf32, #tpu.memory_space<vmem>>, vector<32x256xf32>,
    %c0_125 = arith.constant 0 : index
    %c0_126 = arith.constant 0 : index
    %106 = vector.load %arg13[%c0_125, %c0_126] : memref<32x256xf32, #tpu.memory_space<vmem>>, vector<32x256xf32>
    %c1_127 = arith.constant 1 : index
    %c0_128 = arith.constant 0 : index
    %107 = vector.load %arg9[%c1_127, %c0_128] : memref<5x256xf32, #tpu.memory_space<vmem>>, vector<1x256xf32>
    %108 = vector.broadcast %107 : vector<1x256xf32> to vector<32x256xf32>
    %109 = arith.addf %106, %108 : vector<32x256xf32>
    %cst_129 = arith.constant 0.000000e+00 : f32
    %110 = vector.broadcast %cst_129 : f32 to vector<32x256xf32>
    %111 = arith.maximumf %109, %110 : vector<32x256xf32>
    %c0_130 = arith.constant 0 : index
    %c0_131 = arith.constant 0 : index
    %112 = vector.load %arg14[%c0_130, %c0_131] : memref<32x256xf32, #tpu.memory_space<vmem>>, vector<32x256xf32>
    %c256 = arith.constant 256 : index
    %c0_132 = arith.constant 0 : index
    %113 = vector.load %arg7[%c256, %c0_132] : memref<1024x256xf32, #tpu.memory_space<vmem>>, vector<256x256xf32>
    %cst_133 = arith.constant dense<0.000000e+00> : vector<32x256xf32>
    %114 = tpu.matmul %111, %113, %cst_133 {dimension_numbers = #tpu.dot_dimension_numbers<[1], [0], [0], [1], [0, 0, 1, 1], [], []>} : vector<32x256xf32>, vector<256x256xf32>, vector<32x256xf32> -> vector<32x256xf32>
    %115 = arith.addf %112, %114 : vector<32x256xf32>
    %c0_134 = arith.constant 0 : index
    %c0_135 = arith.constant 0 : index
    %116 = vector.load %arg14[%c0_134, %c0_135] : memref<32x256xf32, #tpu.memory_space<vmem>>, vector<32x256xf32>
    tpu.vector_store %arg14[%c0_134, %c0_135], %115 {strides = array<i32>} : memref<32x256xf32, #tpu.memory_space<vmem>>, vector<32x256xf32>,
    %c18_i32_136 = arith.constant 18 : i32
    %117 = arith.addi %3, %c18_i32_136 : i32
    %c12_i32 = arith.constant 12 : i32
    %118 = arith.subi %117, %c12_i32 : i32
    %119 = arith.index_cast %118 : i32 to index
    %c6_137 = arith.constant 6 : index
    %c0_138 = arith.constant 0 : index
    %120 = vector.load %arg11[%119, %c6_137, %c0_138] : memref<52x52x4xf32, #tpu.memory_space<vmem>>, vector<26x16x4xf32>
    %c0_139 = arith.constant 0 : index
    %c0_140 = arith.constant 0 : index
    %c0_141 = arith.constant 0 : index
    %121 = vector.load %arg12[%c0_139, %c0_140, %c0_141] : memref<38x16x4xf32, #tpu.memory_space<vmem>>, vector<26x16x4xf32>
    tpu.vector_store %arg12[%c0_139, %c0_140, %c0_141], %120 {strides = array<i32>} : memref<38x16x4xf32, #tpu.memory_space<vmem>>, vector<26x16x4xf32>,
    %c0_142 = arith.constant 0 : index
    %c0_143 = arith.constant 0 : index
    %c0_144 = arith.constant 0 : index
    %122 = vector.load %arg12[%c0_142, %c0_143, %c0_144] : memref<38x16x4xf32, #tpu.memory_space<vmem>>, vector<2x16x4xf32>
    %123 = vector.shape_cast %122 : vector<2x16x4xf32> to vector<32x4xf32>
    %c0_145 = arith.constant 0 : index
    %c0_146 = arith.constant 0 : index
    %c0_147 = arith.constant 0 : index
    %124 = vector.load %arg5[%c0_145, %c0_146, %c0_147] : memref<9x4x256xf32, #tpu.memory_space<vmem>>, vector<1x4x256xf32>
    %125 = vector.shape_cast %124 : vector<1x4x256xf32> to vector<4x256xf32>
    %cst_148 = arith.constant dense<0.000000e+00> : vector<32x256xf32>
    %126 = tpu.matmul %123, %125, %cst_148 {dimension_numbers = #tpu.dot_dimension_numbers<[1], [0], [0], [1], [0, 0, 1, 1], [], []>} : vector<32x4xf32>, vector<4x256xf32>, vector<32x256xf32> -> vector<32x256xf32>
    %c0_149 = arith.constant 0 : index
    %c0_150 = arith.constant 0 : index
    %127 = vector.load %arg13[%c0_149, %c0_150] : memref<32x256xf32, #tpu.memory_space<vmem>>, vector<32x256xf32>
    tpu.vector_store %arg13[%c0_149, %c0_150], %126 {strides = array<i32>} : memref<32x256xf32, #tpu.memory_space<vmem>>, vector<32x256xf32>,
    %c12_151 = arith.constant 12 : index
    %c0_152 = arith.constant 0 : index
    %c0_153 = arith.constant 0 : index
    %128 = vector.load %arg12[%c12_151, %c0_152, %c0_153] : memref<38x16x4xf32, #tpu.memory_space<vmem>>, vector<2x16x4xf32>
    %129 = vector.shape_cast %128 : vector<2x16x4xf32> to vector<32x4xf32>
    %c3_154 = arith.constant 3 : index
    %c0_155 = arith.constant 0 : index
    %c0_156 = arith.constant 0 : index
    %130 = vector.load %arg5[%c3_154, %c0_155, %c0_156] : memref<9x4x256xf32, #tpu.memory_space<vmem>>, vector<1x4x256xf32>
    %131 = vector.shape_cast %130 : vector<1x4x256xf32> to vector<4x256xf32>
    %cst_157 = arith.constant dense<0.000000e+00> : vector<32x256xf32>
    %132 = tpu.matmul %129, %131, %cst_157 {dimension_numbers = #tpu.dot_dimension_numbers<[1], [0], [0], [1], [0, 0, 1, 1], [], []>} : vector<32x4xf32>, vector<4x256xf32>, vector<32x256xf32> -> vector<32x256xf32>
    %c0_158 = arith.constant 0 : index
    %c0_159 = arith.constant 0 : index
    %133 = vector.load %arg13[%c0_158, %c0_159] : memref<32x256xf32, #tpu.memory_space<vmem>>, vector<32x256xf32>
    %134 = arith.addf %133, %132 : vector<32x256xf32>
    %c0_160 = arith.constant 0 : index
    %c0_161 = arith.constant 0 : index
    %135 = vector.load %arg13[%c0_160, %c0_161] : memref<32x256xf32, #tpu.memory_space<vmem>>, vector<32x256xf32>
    tpu.vector_store %arg13[%c0_160, %c0_161], %134 {strides = array<i32>} : memref<32x256xf32, #tpu.memory_space<vmem>>, vector<32x256xf32>,
    %c24_162 = arith.constant 24 : index
    %c0_163 = arith.constant 0 : index
    %c0_164 = arith.constant 0 : index
    %136 = vector.load %arg12[%c24_162, %c0_163, %c0_164] : memref<38x16x4xf32, #tpu.memory_space<vmem>>, vector<2x16x4xf32>
    %137 = vector.shape_cast %136 : vector<2x16x4xf32> to vector<32x4xf32>
    %c6_165 = arith.constant 6 : index
    %c0_166 = arith.constant 0 : index
    %c0_167 = arith.constant 0 : index
    %138 = vector.load %arg5[%c6_165, %c0_166, %c0_167] : memref<9x4x256xf32, #tpu.memory_space<vmem>>, vector<1x4x256xf32>
    %139 = vector.shape_cast %138 : vector<1x4x256xf32> to vector<4x256xf32>
    %cst_168 = arith.constant dense<0.000000e+00> : vector<32x256xf32>
    %140 = tpu.matmul %137, %139, %cst_168 {dimension_numbers = #tpu.dot_dimension_numbers<[1], [0], [0], [1], [0, 0, 1, 1], [], []>} : vector<32x4xf32>, vector<4x256xf32>, vector<32x256xf32> -> vector<32x256xf32>
    %c0_169 = arith.constant 0 : index
    %c0_170 = arith.constant 0 : index
    %141 = vector.load %arg13[%c0_169, %c0_170] : memref<32x256xf32, #tpu.memory_space<vmem>>, vector<32x256xf32>
    %142 = arith.addf %141, %140 : vector<32x256xf32>
    %c0_171 = arith.constant 0 : index
    %c0_172 = arith.constant 0 : index
    %143 = vector.load %arg13[%c0_171, %c0_172] : memref<32x256xf32, #tpu.memory_space<vmem>>, vector<32x256xf32>
    tpu.vector_store %arg13[%c0_171, %c0_172], %142 {strides = array<i32>} : memref<32x256xf32, #tpu.memory_space<vmem>>, vector<32x256xf32>,
    %c18_i32_173 = arith.constant 18 : i32
    %144 = arith.addi %3, %c18_i32_173 : i32
    %c12_i32_174 = arith.constant 12 : i32
    %145 = arith.subi %144, %c12_i32_174 : i32
    %146 = arith.index_cast %145 : i32 to index
    %c18_175 = arith.constant 18 : index
    %c0_176 = arith.constant 0 : index
    %147 = vector.load %arg11[%146, %c18_175, %c0_176] : memref<52x52x4xf32, #tpu.memory_space<vmem>>, vector<26x16x4xf32>
    %c0_177 = arith.constant 0 : index
    %c0_178 = arith.constant 0 : index
    %c0_179 = arith.constant 0 : index
    %148 = vector.load %arg12[%c0_177, %c0_178, %c0_179] : memref<38x16x4xf32, #tpu.memory_space<vmem>>, vector<26x16x4xf32>
    tpu.vector_store %arg12[%c0_177, %c0_178, %c0_179], %147 {strides = array<i32>} : memref<38x16x4xf32, #tpu.memory_space<vmem>>, vector<26x16x4xf32>,
    %c0_180 = arith.constant 0 : index
    %c0_181 = arith.constant 0 : index
    %c0_182 = arith.constant 0 : index
    %149 = vector.load %arg12[%c0_180, %c0_181, %c0_182] : memref<38x16x4xf32, #tpu.memory_space<vmem>>, vector<2x16x4xf32>
    %150 = vector.shape_cast %149 : vector<2x16x4xf32> to vector<32x4xf32>
    %c1_183 = arith.constant 1 : index
    %c0_184 = arith.constant 0 : index
    %c0_185 = arith.constant 0 : index
    %151 = vector.load %arg5[%c1_183, %c0_184, %c0_185] : memref<9x4x256xf32, #tpu.memory_space<vmem>>, vector<1x4x256xf32>
    %152 = vector.shape_cast %151 : vector<1x4x256xf32> to vector<4x256xf32>
    %cst_186 = arith.constant dense<0.000000e+00> : vector<32x256xf32>
    %153 = tpu.matmul %150, %152, %cst_186 {dimension_numbers = #tpu.dot_dimension_numbers<[1], [0], [0], [1], [0, 0, 1, 1], [], []>} : vector<32x4xf32>, vector<4x256xf32>, vector<32x256xf32> -> vector<32x256xf32>
    %c0_187 = arith.constant 0 : index
    %c0_188 = arith.constant 0 : index
    %154 = vector.load %arg13[%c0_187, %c0_188] : memref<32x256xf32, #tpu.memory_space<vmem>>, vector<32x256xf32>
    %155 = arith.addf %154, %153 : vector<32x256xf32>
    %c0_189 = arith.constant 0 : index
    %c0_190 = arith.constant 0 : index
    %156 = vector.load %arg13[%c0_189, %c0_190] : memref<32x256xf32, #tpu.memory_space<vmem>>, vector<32x256xf32>
    tpu.vector_store %arg13[%c0_189, %c0_190], %155 {strides = array<i32>} : memref<32x256xf32, #tpu.memory_space<vmem>>, vector<32x256xf32>,
    %c12_191 = arith.constant 12 : index
    %c0_192 = arith.constant 0 : index
    %c0_193 = arith.constant 0 : index
    %157 = vector.load %arg12[%c12_191, %c0_192, %c0_193] : memref<38x16x4xf32, #tpu.memory_space<vmem>>, vector<2x16x4xf32>
    %158 = vector.shape_cast %157 : vector<2x16x4xf32> to vector<32x4xf32>
    %c4_194 = arith.constant 4 : index
    %c0_195 = arith.constant 0 : index
    %c0_196 = arith.constant 0 : index
    %159 = vector.load %arg5[%c4_194, %c0_195, %c0_196] : memref<9x4x256xf32, #tpu.memory_space<vmem>>, vector<1x4x256xf32>
    %160 = vector.shape_cast %159 : vector<1x4x256xf32> to vector<4x256xf32>
    %cst_197 = arith.constant dense<0.000000e+00> : vector<32x256xf32>
    %161 = tpu.matmul %158, %160, %cst_197 {dimension_numbers = #tpu.dot_dimension_numbers<[1], [0], [0], [1], [0, 0, 1, 1], [], []>} : vector<32x4xf32>, vector<4x256xf32>, vector<32x256xf32> -> vector<32x256xf32>
    %c0_198 = arith.constant 0 : index
    %c0_199 = arith.constant 0 : index
    %162 = vector.load %arg13[%c0_198, %c0_199] : memref<32x256xf32, #tpu.memory_space<vmem>>, vector<32x256xf32>
    %163 = arith.addf %162, %161 : vector<32x256xf32>
    %c0_200 = arith.constant 0 : index
    %c0_201 = arith.constant 0 : index
    %164 = vector.load %arg13[%c0_200, %c0_201] : memref<32x256xf32, #tpu.memory_space<vmem>>, vector<32x256xf32>
    tpu.vector_store %arg13[%c0_200, %c0_201], %163 {strides = array<i32>} : memref<32x256xf32, #tpu.memory_space<vmem>>, vector<32x256xf32>,
    %c24_202 = arith.constant 24 : index
    %c0_203 = arith.constant 0 : index
    %c0_204 = arith.constant 0 : index
    %165 = vector.load %arg12[%c24_202, %c0_203, %c0_204] : memref<38x16x4xf32, #tpu.memory_space<vmem>>, vector<2x16x4xf32>
    %166 = vector.shape_cast %165 : vector<2x16x4xf32> to vector<32x4xf32>
    %c7_205 = arith.constant 7 : index
    %c0_206 = arith.constant 0 : index
    %c0_207 = arith.constant 0 : index
    %167 = vector.load %arg5[%c7_205, %c0_206, %c0_207] : memref<9x4x256xf32, #tpu.memory_space<vmem>>, vector<1x4x256xf32>
    %168 = vector.shape_cast %167 : vector<1x4x256xf32> to vector<4x256xf32>
    %cst_208 = arith.constant dense<0.000000e+00> : vector<32x256xf32>
    %169 = tpu.matmul %166, %168, %cst_208 {dimension_numbers = #tpu.dot_dimension_numbers<[1], [0], [0], [1], [0, 0, 1, 1], [], []>} : vector<32x4xf32>, vector<4x256xf32>, vector<32x256xf32> -> vector<32x256xf32>
    %c0_209 = arith.constant 0 : index
    %c0_210 = arith.constant 0 : index
    %170 = vector.load %arg13[%c0_209, %c0_210] : memref<32x256xf32, #tpu.memory_space<vmem>>, vector<32x256xf32>
    %171 = arith.addf %170, %169 : vector<32x256xf32>
    %c0_211 = arith.constant 0 : index
    %c0_212 = arith.constant 0 : index
    %172 = vector.load %arg13[%c0_211, %c0_212] : memref<32x256xf32, #tpu.memory_space<vmem>>, vector<32x256xf32>
    tpu.vector_store %arg13[%c0_211, %c0_212], %171 {strides = array<i32>} : memref<32x256xf32, #tpu.memory_space<vmem>>, vector<32x256xf32>,
    %c18_i32_213 = arith.constant 18 : i32
    %173 = arith.addi %3, %c18_i32_213 : i32
    %c12_i32_214 = arith.constant 12 : i32
    %174 = arith.subi %173, %c12_i32_214 : i32
    %175 = arith.index_cast %174 : i32 to index
    %c30 = arith.constant 30 : index
    %c0_215 = arith.constant 0 : index
    %176 = vector.load %arg11[%175, %c30, %c0_215] : memref<52x52x4xf32, #tpu.memory_space<vmem>>, vector<26x16x4xf32>
    %c0_216 = arith.constant 0 : index
    %c0_217 = arith.constant 0 : index
    %c0_218 = arith.constant 0 : index
    %177 = vector.load %arg12[%c0_216, %c0_217, %c0_218] : memref<38x16x4xf32, #tpu.memory_space<vmem>>, vector<26x16x4xf32>
    tpu.vector_store %arg12[%c0_216, %c0_217, %c0_218], %176 {strides = array<i32>} : memref<38x16x4xf32, #tpu.memory_space<vmem>>, vector<26x16x4xf32>,
    %c0_219 = arith.constant 0 : index
    %c0_220 = arith.constant 0 : index
    %c0_221 = arith.constant 0 : index
    %178 = vector.load %arg12[%c0_219, %c0_220, %c0_221] : memref<38x16x4xf32, #tpu.memory_space<vmem>>, vector<2x16x4xf32>
    %179 = vector.shape_cast %178 : vector<2x16x4xf32> to vector<32x4xf32>
    %c2_222 = arith.constant 2 : index
    %c0_223 = arith.constant 0 : index
    %c0_224 = arith.constant 0 : index
    %180 = vector.load %arg5[%c2_222, %c0_223, %c0_224] : memref<9x4x256xf32, #tpu.memory_space<vmem>>, vector<1x4x256xf32>
    %181 = vector.shape_cast %180 : vector<1x4x256xf32> to vector<4x256xf32>
    %cst_225 = arith.constant dense<0.000000e+00> : vector<32x256xf32>
    %182 = tpu.matmul %179, %181, %cst_225 {dimension_numbers = #tpu.dot_dimension_numbers<[1], [0], [0], [1], [0, 0, 1, 1], [], []>} : vector<32x4xf32>, vector<4x256xf32>, vector<32x256xf32> -> vector<32x256xf32>
    %c0_226 = arith.constant 0 : index
    %c0_227 = arith.constant 0 : index
    %183 = vector.load %arg13[%c0_226, %c0_227] : memref<32x256xf32, #tpu.memory_space<vmem>>, vector<32x256xf32>
    %184 = arith.addf %183, %182 : vector<32x256xf32>
    %c0_228 = arith.constant 0 : index
    %c0_229 = arith.constant 0 : index
    %185 = vector.load %arg13[%c0_228, %c0_229] : memref<32x256xf32, #tpu.memory_space<vmem>>, vector<32x256xf32>
    tpu.vector_store %arg13[%c0_228, %c0_229], %184 {strides = array<i32>} : memref<32x256xf32, #tpu.memory_space<vmem>>, vector<32x256xf32>,
    %c12_230 = arith.constant 12 : index
    %c0_231 = arith.constant 0 : index
    %c0_232 = arith.constant 0 : index
    %186 = vector.load %arg12[%c12_230, %c0_231, %c0_232] : memref<38x16x4xf32, #tpu.memory_space<vmem>>, vector<2x16x4xf32>
    %187 = vector.shape_cast %186 : vector<2x16x4xf32> to vector<32x4xf32>
    %c5_233 = arith.constant 5 : index
    %c0_234 = arith.constant 0 : index
    %c0_235 = arith.constant 0 : index
    %188 = vector.load %arg5[%c5_233, %c0_234, %c0_235] : memref<9x4x256xf32, #tpu.memory_space<vmem>>, vector<1x4x256xf32>
    %189 = vector.shape_cast %188 : vector<1x4x256xf32> to vector<4x256xf32>
    %cst_236 = arith.constant dense<0.000000e+00> : vector<32x256xf32>
    %190 = tpu.matmul %187, %189, %cst_236 {dimension_numbers = #tpu.dot_dimension_numbers<[1], [0], [0], [1], [0, 0, 1, 1], [], []>} : vector<32x4xf32>, vector<4x256xf32>, vector<32x256xf32> -> vector<32x256xf32>
    %c0_237 = arith.constant 0 : index
    %c0_238 = arith.constant 0 : index
    %191 = vector.load %arg13[%c0_237, %c0_238] : memref<32x256xf32, #tpu.memory_space<vmem>>, vector<32x256xf32>
    %192 = arith.addf %191, %190 : vector<32x256xf32>
    %c0_239 = arith.constant 0 : index
    %c0_240 = arith.constant 0 : index
    %193 = vector.load %arg13[%c0_239, %c0_240] : memref<32x256xf32, #tpu.memory_space<vmem>>, vector<32x256xf32>
    tpu.vector_store %arg13[%c0_239, %c0_240], %192 {strides = array<i32>} : memref<32x256xf32, #tpu.memory_space<vmem>>, vector<32x256xf32>,
    %c24_241 = arith.constant 24 : index
    %c0_242 = arith.constant 0 : index
    %c0_243 = arith.constant 0 : index
    %194 = vector.load %arg12[%c24_241, %c0_242, %c0_243] : memref<38x16x4xf32, #tpu.memory_space<vmem>>, vector<2x16x4xf32>
    %195 = vector.shape_cast %194 : vector<2x16x4xf32> to vector<32x4xf32>
    %c8_244 = arith.constant 8 : index
    %c0_245 = arith.constant 0 : index
    %c0_246 = arith.constant 0 : index
    %196 = vector.load %arg5[%c8_244, %c0_245, %c0_246] : memref<9x4x256xf32, #tpu.memory_space<vmem>>, vector<1x4x256xf32>
    %197 = vector.shape_cast %196 : vector<1x4x256xf32> to vector<4x256xf32>
    %cst_247 = arith.constant dense<0.000000e+00> : vector<32x256xf32>
    %198 = tpu.matmul %195, %197, %cst_247 {dimension_numbers = #tpu.dot_dimension_numbers<[1], [0], [0], [1], [0, 0, 1, 1], [], []>} : vector<32x4xf32>, vector<4x256xf32>, vector<32x256xf32> -> vector<32x256xf32>
    %c0_248 = arith.constant 0 : index
    %c0_249 = arith.constant 0 : index
    %199 = vector.load %arg13[%c0_248, %c0_249] : memref<32x256xf32, #tpu.memory_space<vmem>>, vector<32x256xf32>
    %200 = arith.addf %199, %198 : vector<32x256xf32>
    %c0_250 = arith.constant 0 : index
    %c0_251 = arith.constant 0 : index
    %201 = vector.load %arg13[%c0_250, %c0_251] : memref<32x256xf32, #tpu.memory_space<vmem>>, vector<32x256xf32>
    tpu.vector_store %arg13[%c0_250, %c0_251], %200 {strides = array<i32>} : memref<32x256xf32, #tpu.memory_space<vmem>>, vector<32x256xf32>,
    %c0_252 = arith.constant 0 : index
    %c0_253 = arith.constant 0 : index
    %202 = vector.load %arg13[%c0_252, %c0_253] : memref<32x256xf32, #tpu.memory_space<vmem>>, vector<32x256xf32>
    %c2_254 = arith.constant 2 : index
    %c0_255 = arith.constant 0 : index
    %203 = vector.load %arg9[%c2_254, %c0_255] : memref<5x256xf32, #tpu.memory_space<vmem>>, vector<1x256xf32>
    %204 = vector.broadcast %203 : vector<1x256xf32> to vector<32x256xf32>
    %205 = arith.addf %202, %204 : vector<32x256xf32>
    %cst_256 = arith.constant 0.000000e+00 : f32
    %206 = vector.broadcast %cst_256 : f32 to vector<32x256xf32>
    %207 = arith.maximumf %205, %206 : vector<32x256xf32>
    %c0_257 = arith.constant 0 : index
    %c0_258 = arith.constant 0 : index
    %208 = vector.load %arg14[%c0_257, %c0_258] : memref<32x256xf32, #tpu.memory_space<vmem>>, vector<32x256xf32>
    %c512 = arith.constant 512 : index
    %c0_259 = arith.constant 0 : index
    %209 = vector.load %arg7[%c512, %c0_259] : memref<1024x256xf32, #tpu.memory_space<vmem>>, vector<256x256xf32>
    %cst_260 = arith.constant dense<0.000000e+00> : vector<32x256xf32>
    %210 = tpu.matmul %207, %209, %cst_260 {dimension_numbers = #tpu.dot_dimension_numbers<[1], [0], [0], [1], [0, 0, 1, 1], [], []>} : vector<32x256xf32>, vector<256x256xf32>, vector<32x256xf32> -> vector<32x256xf32>
    %211 = arith.addf %208, %210 : vector<32x256xf32>
    %c0_261 = arith.constant 0 : index
    %c0_262 = arith.constant 0 : index
    %212 = vector.load %arg14[%c0_261, %c0_262] : memref<32x256xf32, #tpu.memory_space<vmem>>, vector<32x256xf32>
    tpu.vector_store %arg14[%c0_261, %c0_262], %211 {strides = array<i32>} : memref<32x256xf32, #tpu.memory_space<vmem>>, vector<32x256xf32>,
    %c18_i32_263 = arith.constant 18 : i32
    %213 = arith.addi %3, %c18_i32_263 : i32
    %c18_i32_264 = arith.constant 18 : i32
    %214 = arith.subi %213, %c18_i32_264 : i32
    %215 = arith.index_cast %214 : i32 to index
    %c0_265 = arith.constant 0 : index
    %c0_266 = arith.constant 0 : index
    %216 = vector.load %arg11[%215, %c0_265, %c0_266] : memref<52x52x4xf32, #tpu.memory_space<vmem>>, vector<38x16x4xf32>
    %c0_267 = arith.constant 0 : index
    %c0_268 = arith.constant 0 : index
    %c0_269 = arith.constant 0 : index
    %217 = vector.load %arg12[%c0_267, %c0_268, %c0_269] : memref<38x16x4xf32, #tpu.memory_space<vmem>>, vector<38x16x4xf32>
    tpu.vector_store %arg12[%c0_267, %c0_268, %c0_269], %216 {strides = array<i32>} : memref<38x16x4xf32, #tpu.memory_space<vmem>>, vector<38x16x4xf32>,
    %c0_270 = arith.constant 0 : index
    %c0_271 = arith.constant 0 : index
    %c0_272 = arith.constant 0 : index
    %218 = vector.load %arg12[%c0_270, %c0_271, %c0_272] : memref<38x16x4xf32, #tpu.memory_space<vmem>>, vector<2x16x4xf32>
    %219 = vector.shape_cast %218 : vector<2x16x4xf32> to vector<32x4xf32>
    %c0_273 = arith.constant 0 : index
    %c0_274 = arith.constant 0 : index
    %c0_275 = arith.constant 0 : index
    %220 = vector.load %arg6[%c0_273, %c0_274, %c0_275] : memref<9x4x256xf32, #tpu.memory_space<vmem>>, vector<1x4x256xf32>
    %221 = vector.shape_cast %220 : vector<1x4x256xf32> to vector<4x256xf32>
    %cst_276 = arith.constant dense<0.000000e+00> : vector<32x256xf32>
    %222 = tpu.matmul %219, %221, %cst_276 {dimension_numbers = #tpu.dot_dimension_numbers<[1], [0], [0], [1], [0, 0, 1, 1], [], []>} : vector<32x4xf32>, vector<4x256xf32>, vector<32x256xf32> -> vector<32x256xf32>
    %c0_277 = arith.constant 0 : index
    %c0_278 = arith.constant 0 : index
    %223 = vector.load %arg13[%c0_277, %c0_278] : memref<32x256xf32, #tpu.memory_space<vmem>>, vector<32x256xf32>
    tpu.vector_store %arg13[%c0_277, %c0_278], %222 {strides = array<i32>} : memref<32x256xf32, #tpu.memory_space<vmem>>, vector<32x256xf32>,
    %c18_279 = arith.constant 18 : index
    %c0_280 = arith.constant 0 : index
    %c0_281 = arith.constant 0 : index
    %224 = vector.load %arg12[%c18_279, %c0_280, %c0_281] : memref<38x16x4xf32, #tpu.memory_space<vmem>>, vector<2x16x4xf32>
    %225 = vector.shape_cast %224 : vector<2x16x4xf32> to vector<32x4xf32>
    %c3_282 = arith.constant 3 : index
    %c0_283 = arith.constant 0 : index
    %c0_284 = arith.constant 0 : index
    %226 = vector.load %arg6[%c3_282, %c0_283, %c0_284] : memref<9x4x256xf32, #tpu.memory_space<vmem>>, vector<1x4x256xf32>
    %227 = vector.shape_cast %226 : vector<1x4x256xf32> to vector<4x256xf32>
    %cst_285 = arith.constant dense<0.000000e+00> : vector<32x256xf32>
    %228 = tpu.matmul %225, %227, %cst_285 {dimension_numbers = #tpu.dot_dimension_numbers<[1], [0], [0], [1], [0, 0, 1, 1], [], []>} : vector<32x4xf32>, vector<4x256xf32>, vector<32x256xf32> -> vector<32x256xf32>
    %c0_286 = arith.constant 0 : index
    %c0_287 = arith.constant 0 : index
    %229 = vector.load %arg13[%c0_286, %c0_287] : memref<32x256xf32, #tpu.memory_space<vmem>>, vector<32x256xf32>
    %230 = arith.addf %229, %228 : vector<32x256xf32>
    %c0_288 = arith.constant 0 : index
    %c0_289 = arith.constant 0 : index
    %231 = vector.load %arg13[%c0_288, %c0_289] : memref<32x256xf32, #tpu.memory_space<vmem>>, vector<32x256xf32>
    tpu.vector_store %arg13[%c0_288, %c0_289], %230 {strides = array<i32>} : memref<32x256xf32, #tpu.memory_space<vmem>>, vector<32x256xf32>,
    %c36 = arith.constant 36 : index
    %c0_290 = arith.constant 0 : index
    %c0_291 = arith.constant 0 : index
    %232 = vector.load %arg12[%c36, %c0_290, %c0_291] : memref<38x16x4xf32, #tpu.memory_space<vmem>>, vector<2x16x4xf32>
    %233 = vector.shape_cast %232 : vector<2x16x4xf32> to vector<32x4xf32>
    %c6_292 = arith.constant 6 : index
    %c0_293 = arith.constant 0 : index
    %c0_294 = arith.constant 0 : index
    %234 = vector.load %arg6[%c6_292, %c0_293, %c0_294] : memref<9x4x256xf32, #tpu.memory_space<vmem>>, vector<1x4x256xf32>
    %235 = vector.shape_cast %234 : vector<1x4x256xf32> to vector<4x256xf32>
    %cst_295 = arith.constant dense<0.000000e+00> : vector<32x256xf32>
    %236 = tpu.matmul %233, %235, %cst_295 {dimension_numbers = #tpu.dot_dimension_numbers<[1], [0], [0], [1], [0, 0, 1, 1], [], []>} : vector<32x4xf32>, vector<4x256xf32>, vector<32x256xf32> -> vector<32x256xf32>
    %c0_296 = arith.constant 0 : index
    %c0_297 = arith.constant 0 : index
    %237 = vector.load %arg13[%c0_296, %c0_297] : memref<32x256xf32, #tpu.memory_space<vmem>>, vector<32x256xf32>
    %238 = arith.addf %237, %236 : vector<32x256xf32>
    %c0_298 = arith.constant 0 : index
    %c0_299 = arith.constant 0 : index
    %239 = vector.load %arg13[%c0_298, %c0_299] : memref<32x256xf32, #tpu.memory_space<vmem>>, vector<32x256xf32>
    tpu.vector_store %arg13[%c0_298, %c0_299], %238 {strides = array<i32>} : memref<32x256xf32, #tpu.memory_space<vmem>>, vector<32x256xf32>,
    %c18_i32_300 = arith.constant 18 : i32
    %240 = arith.addi %3, %c18_i32_300 : i32
    %c18_i32_301 = arith.constant 18 : i32
    %241 = arith.subi %240, %c18_i32_301 : i32
    %242 = arith.index_cast %241 : i32 to index
    %c18_302 = arith.constant 18 : index
    %c0_303 = arith.constant 0 : index
    %243 = vector.load %arg11[%242, %c18_302, %c0_303] : memref<52x52x4xf32, #tpu.memory_space<vmem>>, vector<38x16x4xf32>
    %c0_304 = arith.constant 0 : index
    %c0_305 = arith.constant 0 : index
    %c0_306 = arith.constant 0 : index
    %244 = vector.load %arg12[%c0_304, %c0_305, %c0_306] : memref<38x16x4xf32, #tpu.memory_space<vmem>>, vector<38x16x4xf32>
    tpu.vector_store %arg12[%c0_304, %c0_305, %c0_306], %243 {strides = array<i32>} : memref<38x16x4xf32, #tpu.memory_space<vmem>>, vector<38x16x4xf32>,
    %c0_307 = arith.constant 0 : index
    %c0_308 = arith.constant 0 : index
    %c0_309 = arith.constant 0 : index
    %245 = vector.load %arg12[%c0_307, %c0_308, %c0_309] : memref<38x16x4xf32, #tpu.memory_space<vmem>>, vector<2x16x4xf32>
    %246 = vector.shape_cast %245 : vector<2x16x4xf32> to vector<32x4xf32>
    %c1_310 = arith.constant 1 : index
    %c0_311 = arith.constant 0 : index
    %c0_312 = arith.constant 0 : index
    %247 = vector.load %arg6[%c1_310, %c0_311, %c0_312] : memref<9x4x256xf32, #tpu.memory_space<vmem>>, vector<1x4x256xf32>
    %248 = vector.shape_cast %247 : vector<1x4x256xf32> to vector<4x256xf32>
    %cst_313 = arith.constant dense<0.000000e+00> : vector<32x256xf32>
    %249 = tpu.matmul %246, %248, %cst_313 {dimension_numbers = #tpu.dot_dimension_numbers<[1], [0], [0], [1], [0, 0, 1, 1], [], []>} : vector<32x4xf32>, vector<4x256xf32>, vector<32x256xf32> -> vector<32x256xf32>
    %c0_314 = arith.constant 0 : index
    %c0_315 = arith.constant 0 : index
    %250 = vector.load %arg13[%c0_314, %c0_315] : memref<32x256xf32, #tpu.memory_space<vmem>>, vector<32x256xf32>
    %251 = arith.addf %250, %249 : vector<32x256xf32>
    %c0_316 = arith.constant 0 : index
    %c0_317 = arith.constant 0 : index
    %252 = vector.load %arg13[%c0_316, %c0_317] : memref<32x256xf32, #tpu.memory_space<vmem>>, vector<32x256xf32>
    tpu.vector_store %arg13[%c0_316, %c0_317], %251 {strides = array<i32>} : memref<32x256xf32, #tpu.memory_space<vmem>>, vector<32x256xf32>,
    %c18_318 = arith.constant 18 : index
    %c0_319 = arith.constant 0 : index
    %c0_320 = arith.constant 0 : index
    %253 = vector.load %arg12[%c18_318, %c0_319, %c0_320] : memref<38x16x4xf32, #tpu.memory_space<vmem>>, vector<2x16x4xf32>
    %254 = vector.shape_cast %253 : vector<2x16x4xf32> to vector<32x4xf32>
    %c4_321 = arith.constant 4 : index
    %c0_322 = arith.constant 0 : index
    %c0_323 = arith.constant 0 : index
    %255 = vector.load %arg6[%c4_321, %c0_322, %c0_323] : memref<9x4x256xf32, #tpu.memory_space<vmem>>, vector<1x4x256xf32>
    %256 = vector.shape_cast %255 : vector<1x4x256xf32> to vector<4x256xf32>
    %cst_324 = arith.constant dense<0.000000e+00> : vector<32x256xf32>
    %257 = tpu.matmul %254, %256, %cst_324 {dimension_numbers = #tpu.dot_dimension_numbers<[1], [0], [0], [1], [0, 0, 1, 1], [], []>} : vector<32x4xf32>, vector<4x256xf32>, vector<32x256xf32> -> vector<32x256xf32>
    %c0_325 = arith.constant 0 : index
    %c0_326 = arith.constant 0 : index
    %258 = vector.load %arg13[%c0_325, %c0_326] : memref<32x256xf32, #tpu.memory_space<vmem>>, vector<32x256xf32>
    %259 = arith.addf %258, %257 : vector<32x256xf32>
    %c0_327 = arith.constant 0 : index
    %c0_328 = arith.constant 0 : index
    %260 = vector.load %arg13[%c0_327, %c0_328] : memref<32x256xf32, #tpu.memory_space<vmem>>, vector<32x256xf32>
    tpu.vector_store %arg13[%c0_327, %c0_328], %259 {strides = array<i32>} : memref<32x256xf32, #tpu.memory_space<vmem>>, vector<32x256xf32>,
    %c36_329 = arith.constant 36 : index
    %c0_330 = arith.constant 0 : index
    %c0_331 = arith.constant 0 : index
    %261 = vector.load %arg12[%c36_329, %c0_330, %c0_331] : memref<38x16x4xf32, #tpu.memory_space<vmem>>, vector<2x16x4xf32>
    %262 = vector.shape_cast %261 : vector<2x16x4xf32> to vector<32x4xf32>
    %c7_332 = arith.constant 7 : index
    %c0_333 = arith.constant 0 : index
    %c0_334 = arith.constant 0 : index
    %263 = vector.load %arg6[%c7_332, %c0_333, %c0_334] : memref<9x4x256xf32, #tpu.memory_space<vmem>>, vector<1x4x256xf32>
    %264 = vector.shape_cast %263 : vector<1x4x256xf32> to vector<4x256xf32>
    %cst_335 = arith.constant dense<0.000000e+00> : vector<32x256xf32>
    %265 = tpu.matmul %262, %264, %cst_335 {dimension_numbers = #tpu.dot_dimension_numbers<[1], [0], [0], [1], [0, 0, 1, 1], [], []>} : vector<32x4xf32>, vector<4x256xf32>, vector<32x256xf32> -> vector<32x256xf32>
    %c0_336 = arith.constant 0 : index
    %c0_337 = arith.constant 0 : index
    %266 = vector.load %arg13[%c0_336, %c0_337] : memref<32x256xf32, #tpu.memory_space<vmem>>, vector<32x256xf32>
    %267 = arith.addf %266, %265 : vector<32x256xf32>
    %c0_338 = arith.constant 0 : index
    %c0_339 = arith.constant 0 : index
    %268 = vector.load %arg13[%c0_338, %c0_339] : memref<32x256xf32, #tpu.memory_space<vmem>>, vector<32x256xf32>
    tpu.vector_store %arg13[%c0_338, %c0_339], %267 {strides = array<i32>} : memref<32x256xf32, #tpu.memory_space<vmem>>, vector<32x256xf32>,
    %c18_i32_340 = arith.constant 18 : i32
    %269 = arith.addi %3, %c18_i32_340 : i32
    %c18_i32_341 = arith.constant 18 : i32
    %270 = arith.subi %269, %c18_i32_341 : i32
    %271 = arith.index_cast %270 : i32 to index
    %c36_342 = arith.constant 36 : index
    %c0_343 = arith.constant 0 : index
    %272 = vector.load %arg11[%271, %c36_342, %c0_343] : memref<52x52x4xf32, #tpu.memory_space<vmem>>, vector<38x16x4xf32>
    %c0_344 = arith.constant 0 : index
    %c0_345 = arith.constant 0 : index
    %c0_346 = arith.constant 0 : index
    %273 = vector.load %arg12[%c0_344, %c0_345, %c0_346] : memref<38x16x4xf32, #tpu.memory_space<vmem>>, vector<38x16x4xf32>
    tpu.vector_store %arg12[%c0_344, %c0_345, %c0_346], %272 {strides = array<i32>} : memref<38x16x4xf32, #tpu.memory_space<vmem>>, vector<38x16x4xf32>,
    %c0_347 = arith.constant 0 : index
    %c0_348 = arith.constant 0 : index
    %c0_349 = arith.constant 0 : index
    %274 = vector.load %arg12[%c0_347, %c0_348, %c0_349] : memref<38x16x4xf32, #tpu.memory_space<vmem>>, vector<2x16x4xf32>
    %275 = vector.shape_cast %274 : vector<2x16x4xf32> to vector<32x4xf32>
    %c2_350 = arith.constant 2 : index
    %c0_351 = arith.constant 0 : index
    %c0_352 = arith.constant 0 : index
    %276 = vector.load %arg6[%c2_350, %c0_351, %c0_352] : memref<9x4x256xf32, #tpu.memory_space<vmem>>, vector<1x4x256xf32>
    %277 = vector.shape_cast %276 : vector<1x4x256xf32> to vector<4x256xf32>
    %cst_353 = arith.constant dense<0.000000e+00> : vector<32x256xf32>
    %278 = tpu.matmul %275, %277, %cst_353 {dimension_numbers = #tpu.dot_dimension_numbers<[1], [0], [0], [1], [0, 0, 1, 1], [], []>} : vector<32x4xf32>, vector<4x256xf32>, vector<32x256xf32> -> vector<32x256xf32>
    %c0_354 = arith.constant 0 : index
    %c0_355 = arith.constant 0 : index
    %279 = vector.load %arg13[%c0_354, %c0_355] : memref<32x256xf32, #tpu.memory_space<vmem>>, vector<32x256xf32>
    %280 = arith.addf %279, %278 : vector<32x256xf32>
    %c0_356 = arith.constant 0 : index
    %c0_357 = arith.constant 0 : index
    %281 = vector.load %arg13[%c0_356, %c0_357] : memref<32x256xf32, #tpu.memory_space<vmem>>, vector<32x256xf32>
    tpu.vector_store %arg13[%c0_356, %c0_357], %280 {strides = array<i32>} : memref<32x256xf32, #tpu.memory_space<vmem>>, vector<32x256xf32>,
    %c18_358 = arith.constant 18 : index
    %c0_359 = arith.constant 0 : index
    %c0_360 = arith.constant 0 : index
    %282 = vector.load %arg12[%c18_358, %c0_359, %c0_360] : memref<38x16x4xf32, #tpu.memory_space<vmem>>, vector<2x16x4xf32>
    %283 = vector.shape_cast %282 : vector<2x16x4xf32> to vector<32x4xf32>
    %c5_361 = arith.constant 5 : index
    %c0_362 = arith.constant 0 : index
    %c0_363 = arith.constant 0 : index
    %284 = vector.load %arg6[%c5_361, %c0_362, %c0_363] : memref<9x4x256xf32, #tpu.memory_space<vmem>>, vector<1x4x256xf32>
    %285 = vector.shape_cast %284 : vector<1x4x256xf32> to vector<4x256xf32>
    %cst_364 = arith.constant dense<0.000000e+00> : vector<32x256xf32>
    %286 = tpu.matmul %283, %285, %cst_364 {dimension_numbers = #tpu.dot_dimension_numbers<[1], [0], [0], [1], [0, 0, 1, 1], [], []>} : vector<32x4xf32>, vector<4x256xf32>, vector<32x256xf32> -> vector<32x256xf32>
    %c0_365 = arith.constant 0 : index
    %c0_366 = arith.constant 0 : index
    %287 = vector.load %arg13[%c0_365, %c0_366] : memref<32x256xf32, #tpu.memory_space<vmem>>, vector<32x256xf32>
    %288 = arith.addf %287, %286 : vector<32x256xf32>
    %c0_367 = arith.constant 0 : index
    %c0_368 = arith.constant 0 : index
    %289 = vector.load %arg13[%c0_367, %c0_368] : memref<32x256xf32, #tpu.memory_space<vmem>>, vector<32x256xf32>
    tpu.vector_store %arg13[%c0_367, %c0_368], %288 {strides = array<i32>} : memref<32x256xf32, #tpu.memory_space<vmem>>, vector<32x256xf32>,
    %c36_369 = arith.constant 36 : index
    %c0_370 = arith.constant 0 : index
    %c0_371 = arith.constant 0 : index
    %290 = vector.load %arg12[%c36_369, %c0_370, %c0_371] : memref<38x16x4xf32, #tpu.memory_space<vmem>>, vector<2x16x4xf32>
    %291 = vector.shape_cast %290 : vector<2x16x4xf32> to vector<32x4xf32>
    %c8_372 = arith.constant 8 : index
    %c0_373 = arith.constant 0 : index
    %c0_374 = arith.constant 0 : index
    %292 = vector.load %arg6[%c8_372, %c0_373, %c0_374] : memref<9x4x256xf32, #tpu.memory_space<vmem>>, vector<1x4x256xf32>
    %293 = vector.shape_cast %292 : vector<1x4x256xf32> to vector<4x256xf32>
    %cst_375 = arith.constant dense<0.000000e+00> : vector<32x256xf32>
    %294 = tpu.matmul %291, %293, %cst_375 {dimension_numbers = #tpu.dot_dimension_numbers<[1], [0], [0], [1], [0, 0, 1, 1], [], []>} : vector<32x4xf32>, vector<4x256xf32>, vector<32x256xf32> -> vector<32x256xf32>
    %c0_376 = arith.constant 0 : index
    %c0_377 = arith.constant 0 : index
    %295 = vector.load %arg13[%c0_376, %c0_377] : memref<32x256xf32, #tpu.memory_space<vmem>>, vector<32x256xf32>
    %296 = arith.addf %295, %294 : vector<32x256xf32>
    %c0_378 = arith.constant 0 : index
    %c0_379 = arith.constant 0 : index
    %297 = vector.load %arg13[%c0_378, %c0_379] : memref<32x256xf32, #tpu.memory_space<vmem>>, vector<32x256xf32>
    tpu.vector_store %arg13[%c0_378, %c0_379], %296 {strides = array<i32>} : memref<32x256xf32, #tpu.memory_space<vmem>>, vector<32x256xf32>,
    %c0_380 = arith.constant 0 : index
    %c0_381 = arith.constant 0 : index
    %298 = vector.load %arg13[%c0_380, %c0_381] : memref<32x256xf32, #tpu.memory_space<vmem>>, vector<32x256xf32>
    %c3_382 = arith.constant 3 : index
    %c0_383 = arith.constant 0 : index
    %299 = vector.load %arg9[%c3_382, %c0_383] : memref<5x256xf32, #tpu.memory_space<vmem>>, vector<1x256xf32>
    %300 = vector.broadcast %299 : vector<1x256xf32> to vector<32x256xf32>
    %301 = arith.addf %298, %300 : vector<32x256xf32>
    %cst_384 = arith.constant 0.000000e+00 : f32
    %302 = vector.broadcast %cst_384 : f32 to vector<32x256xf32>
    %303 = arith.maximumf %301, %302 : vector<32x256xf32>
    %c0_385 = arith.constant 0 : index
    %c0_386 = arith.constant 0 : index
    %304 = vector.load %arg14[%c0_385, %c0_386] : memref<32x256xf32, #tpu.memory_space<vmem>>, vector<32x256xf32>
    %c768 = arith.constant 768 : index
    %c0_387 = arith.constant 0 : index
    %305 = vector.load %arg7[%c768, %c0_387] : memref<1024x256xf32, #tpu.memory_space<vmem>>, vector<256x256xf32>
    %cst_388 = arith.constant dense<0.000000e+00> : vector<32x256xf32>
    %306 = tpu.matmul %303, %305, %cst_388 {dimension_numbers = #tpu.dot_dimension_numbers<[1], [0], [0], [1], [0, 0, 1, 1], [], []>} : vector<32x256xf32>, vector<256x256xf32>, vector<32x256xf32> -> vector<32x256xf32>
    %307 = arith.addf %304, %306 : vector<32x256xf32>
    %c0_389 = arith.constant 0 : index
    %c0_390 = arith.constant 0 : index
    %308 = vector.load %arg14[%c0_389, %c0_390] : memref<32x256xf32, #tpu.memory_space<vmem>>, vector<32x256xf32>
    tpu.vector_store %arg14[%c0_389, %c0_390], %307 {strides = array<i32>} : memref<32x256xf32, #tpu.memory_space<vmem>>, vector<32x256xf32>,
    %c0_391 = arith.constant 0 : index
    %c0_392 = arith.constant 0 : index
    %309 = vector.load %arg14[%c0_391, %c0_392] : memref<32x256xf32, #tpu.memory_space<vmem>>, vector<32x256xf32>
    %c0_393 = arith.constant 0 : index
    %c0_394 = arith.constant 0 : index
    %c0_395 = arith.constant 0 : index
    %310 = vector.load %arg8[%c0_393, %c0_394, %c0_395] : memref<1x1x256xf32, #tpu.memory_space<vmem>>, vector<1x1x256xf32>
    %311 = vector.shape_cast %310 : vector<1x1x256xf32> to vector<1x256xf32>
    %312 = vector.broadcast %311 : vector<1x256xf32> to vector<32x256xf32>
    %313 = arith.addf %309, %312 : vector<32x256xf32>
    %c4_396 = arith.constant 4 : index
    %c0_397 = arith.constant 0 : index
    %314 = vector.load %arg9[%c4_396, %c0_397] : memref<5x256xf32, #tpu.memory_space<vmem>>, vector<1x256xf32>
    %315 = vector.broadcast %314 : vector<1x256xf32> to vector<32x256xf32>
    %316 = arith.addf %313, %315 : vector<32x256xf32>
    %cst_398 = arith.constant 0.000000e+00 : f32
    %317 = vector.broadcast %cst_398 : f32 to vector<32x256xf32>
    %318 = arith.maximumf %316, %317 : vector<32x256xf32>
    %c0_399 = arith.constant 0 : index
    %c0_400 = arith.constant 0 : index
    %c0_401 = arith.constant 0 : index
    %319 = vector.load %arg10[%c0_399, %c0_400, %c0_401] : memref<1x32x256xf32, #tpu.memory_space<vmem>>, vector<1x32x256xf32>
    %320 = vector.shape_cast %319 : vector<1x32x256xf32> to vector<32x256xf32>
    %321 = vector.shape_cast %318 : vector<32x256xf32> to vector<1x32x256xf32>
    tpu.vector_store %arg10[%c0_399, %c0_400, %c0_401], %321 {strides = array<i32>} : memref<1x32x256xf32, #tpu.memory_space<vmem>>, vector<1x32x256xf32>,
    return
  }
  func.func @transform_0(%arg0: i32, %arg1: i32) -> (i32, i32, i32, i32) {
    %c0_i32 = arith.constant 0 : i32
    %c0_i32_0 = arith.constant 0 : i32
    %c0_i32_1 = arith.constant 0 : i32
    %c0_i32_2 = arith.constant 0 : i32
    return %arg0, %c0_i32, %c0_i32_0, %c0_i32_1 : i32, i32, i32, i32
  }
  func.func @transform_1(%arg0: i32, %arg1: i32) -> (i32, i32) {
    %c0_i32 = arith.constant 0 : i32
    %c0_i32_0 = arith.constant 0 : i32
    %c0_i32_1 = arith.constant 0 : i32
    return %c0_i32, %c0_i32_0 : i32, i32
  }
  func.func @transform_2(%arg0: i32, %arg1: i32) -> (i32, i32, i32) {
    %c0_i32 = arith.constant 0 : i32
    %c0_i32_0 = arith.constant 0 : i32
    %c0_i32_1 = arith.constant 0 : i32
    %c0_i32_2 = arith.constant 0 : i32
    return %c0_i32, %c0_i32_0, %c0_i32_1 : i32, i32, i32
  }
  func.func @transform_3(%arg0: i32, %arg1: i32) -> (i32, i32, i32) {
    %c0_i32 = arith.constant 0 : i32
    %c0_i32_0 = arith.constant 0 : i32
    %c0_i32_1 = arith.constant 0 : i32
    %c0_i32_2 = arith.constant 0 : i32
    return %c0_i32, %c0_i32_0, %c0_i32_1 : i32, i32, i32
  }
  func.func @transform_4(%arg0: i32, %arg1: i32) -> (i32, i32, i32) {
    %c0_i32 = arith.constant 0 : i32
    %c0_i32_0 = arith.constant 0 : i32
    %c0_i32_1 = arith.constant 0 : i32
    %c0_i32_2 = arith.constant 0 : i32
    return %c0_i32, %c0_i32_0, %c0_i32_1 : i32, i32, i32
  }
  func.func @transform_5(%arg0: i32, %arg1: i32) -> (i32, i32) {
    %c0_i32 = arith.constant 0 : i32
    %c0_i32_0 = arith.constant 0 : i32
    %c0_i32_1 = arith.constant 0 : i32
    return %c0_i32, %c0_i32_0 : i32, i32
  }
  func.func @transform_6(%arg0: i32, %arg1: i32) -> (i32, i32, i32) {
    %c0_i32 = arith.constant 0 : i32
    %c0_i32_0 = arith.constant 0 : i32
    %c0_i32_1 = arith.constant 0 : i32
    return %arg0, %c0_i32, %c0_i32_0 : i32, i32, i32
  }
  func.func @transform_7(%arg0: i32, %arg1: i32) -> (i32, i32) {
    %c0_i32 = arith.constant 0 : i32
    %c0_i32_0 = arith.constant 0 : i32
    %c0_i32_1 = arith.constant 0 : i32
    return %c0_i32, %c0_i32_0 : i32, i32
  }
  func.func @transform_8(%arg0: i32, %arg1: i32) -> (i32, i32, i32) {
    %c0_i32 = arith.constant 0 : i32
    %c0_i32_0 = arith.constant 0 : i32
    return %arg0, %arg1, %c0_i32 : i32, i32, i32
  }
}

</mosaic_0001>

<bundles_post_ra>
// kernel: tpu_custom_call.1
= control target key start
LH: loop header
LB: loop body
LE: loop exit
PB: predicated region body
PF: predicated region fallthrough
CT: control target
= control target key end

     0   :  { %13 = vsyncpa [#allocation7], 0  ;;  %s9898_s0 = inlined_call_operand.vmem [shape: f32[2,16,16,4], index: 0, kind: input, shape index: {}]   ;;  %s9899_s1 = inlined_call_operand.vmem [shape: f32[4,256], index: 1, kind: input, shape index: {}]   ;;  %s9900_s2 = inlined_call_operand.vmem [shape: f32[9,4,256], index: 2, kind: input, shape index: {}]   ;;  %s9901_s3 = inlined_call_operand.vmem [shape: f32[9,4,256], index: 3, kind: input, shape index: {}]   ;;  %s9902_s4 = inlined_call_operand.vmem [shape: f32[9,4,256], index: 4, kind: input, shape index: {}]   ;;  %s9903_s5 = inlined_call_operand.hbm [shape: f32[1024,256], index: 5, kind: input, shape index: {}]   ;;  %s9904_s6 = inlined_call_operand.vmem [shape: f32[2,1,256], index: 6, kind: input, shape index: {}]   ;;  %s9905_s7 = inlined_call_operand.vmem [shape: f32[5,256], index: 7, kind: input, shape index: {}]   ;;  %s9906_s8 = inlined_call_operand.hbm [shape: f32[2,256,256], index: 8, kind: output, shape index: {}]  }
   0x1   :  { %14 = vsyncpa [#allocation8], 0 }
   0x2   :  { %16 = vsyncpa [#allocation8 + $0x1], 0  ;;  %s7766_s27 = smov 0   ;;  %s7768_s28 = smov 0  }
   0x3   :  { %s7770_s29 = smov 0   ;;  %s7772_s30 = smov 0  }
   0x4   :  { %s7774_s9 = smov 0   ;;  %s7776_s10 = smov 0  }
   0x5   :  { %s7778_s11 = smov 0   ;;  %s7780_s12 = smov 0  }
   0x6 LB: > { %9916 = sst [smem:[#allocation12_spill]] %s7707_s11  ;;  %s6528_s13 = sadd.s32 4294967295, %s7711_s12   ;;  %s7711_s12 = sphi %s7780_s12, %s22_s12   ;;  %s7707_s11 = sphi %s7778_s11, %s9931_s11   ;;  %s7703_s10 = sphi %s7776_s10, %s9936_s10   ;;  %s7699_s9 = sphi %s7774_s9, %s9929_s9   ;;  %s7695_s30 = sphi %s7772_s30, %s9935_s30   ;;  %s7691_s29 = sphi %s7770_s29, %s9934_s29   ;;  %s7687_s28 = sphi %s7768_s28, %s9933_s28   ;;  %s7683_s27 = sphi %s7766_s27, %s9932_s27  }
   0x7   : > { %s6529_s14 = sadd.s32 4294967294, %s7711_s12   ;;  %s31_s15 = sadd.s32 1, %s7703_s10 }
   0x8   : > { %s34_s16 = sadd.s32 1, %s7707_s11  ;;  %p32_p0 = scmp.ge.s32.totalorder %s31_s15, 8 }
   0x9   : > { %s221_s17 = sadd.s32 1, %s7691_s29  ;;  %p231_p1 = scmp.ne.s32.totalorder %s7691_s29, %s7687_s28 }
   0xa   : > { %p232_p2 = scmp.eq.s32.totalorder %s6528_s13, 15  ;;  %s9938_s15 = smov (%p32_p0, %s31_s15), 0 }
   0xb   : > { %9917 = sst [smem:[#allocation13_spill]] %s9938_s15  ;;  %s9940_s16 = smov (!%p32_p0, %s34_s16), %s7707_s11 }
   0xc   : > { %s217_s18 = ssub.s32 %s7703_s10, %s9938_s15  ;;  %p7818_p3 = por %p232_p2, %p231_p1 }
   0xd   : > { %p36_p4 = scmp.ge.s32.totalorder %s9940_s16, 2  ;;  %p237_p5 = scmp.ne.s32.totalorder %s7687_s28, %s7683_s27 }
   0xe   : > { %s9918_s19 = scalar_select %p7818_p3, 1, 0 }
   0xf   : > { %p238_p6 = scmp.eq.s32.totalorder %s6529_s14, 15  ;;  %p6530_p7 = scmp.ge.s32.totalorder %s7711_s12, 1 }
  0x10   : > { %s9942_s16 = smov (%p36_p4, %s9940_s16), 0  ;;  %p245_p9 = scmp.lt.s32.totalorder %s7711_s12, 17 }
  0x11   : > { %9919 = sst [smem:[#allocation14_spill]] %s9942_s16  ;;  %p7827_p8 = por %p238_p6, %p237_p5 }
  0x12   : > { %s216_s21 = ssub.s32 %s7707_s11, %s9942_s16  ;;  %p7834_p10 = pnand %p6530_p7, %p245_p9 }
  0x13   : > { %s9920_s20 = scalar_select %p7827_p8, 1, 0 }
  0x14   : > { %s218_s22 = sor.u32 %s217_s18, %s216_s21  ;;  %p7838_p12 = scmp.eq.s32.totalorder %s6528_s13, 0 }
  0x15   : > { %s9921_s23 = scalar_select %p7834_p10, 1, 0 }
  0x16   : > { %p219_p11 = scmp.eq.s32.totalorder %s218_s22, 0  ;;  %p7475_p13 = pneg %p7834_p10 }
  0x17   : > { %s9922_s24 = scalar_select %p7838_p12, 1, 0 }
  0x18   : > { %s7845_s25 = scalar_select %p219_p11, %s7691_s29, %s221_s17  }
  0x19   : > { %s7713_s26 = smov [#allocation6]   ;;  %p7849_p0 = pnand %p7838_p12, %p7475_p13 }
  0x1a   : > { %s269_s14 = sshll.u32 %s7713_s26, 4  ;;  %s7585_s13 = scalar_lea.hbm %s9903_s5, 32768  ;;  %s270_s14 = int_to_ptr.vmem [resolvable:$true] %s269_s14 }
  0x1b   : > { %p7586_p1 = scmp.ne.s32.totalorder %s9903_s5, %s7585_s13  ;;  %p7587_p2 = pneg %p7849_p0 }
  0x1c   : > { %p7592_p6 = scmp.lt.u32.totalorder %s7585_s13, %s9903_s5 }
  0x1d   : > { %p7588_p4 = pnand %p7587_p2, %p7586_p1 }
  0x1f   : > { %p7589_p5 = pneg %p7588_p4 }
  0x21   : > { %p7594_p7 = pnand %p7592_p6, %p7589_p5 }
  0x23   : > { %7597 = shalt.err (!%p7594_p7)
}
  0x24   : > { %s7598_s11 = scalar_lea.vmem %s270_s14, 32768  ;;  %p7606_p8 = scmp.lt.s32.totalorder %s270_s14, %s270_s14 }
  0x25   : > { %p7599_p9 = scmp.ne.s32.totalorder %s270_s14, %s7598_s11  ;;  %p7607_p3 = scmp.lt.s32.totalorder %s7598_s11, %s7598_s11 }
  0x27   : > { %p7601_p11 = pnand %p7599_p9, %p7587_p2  ;;  %p7608_p12 = por %p7607_p3, %p7606_p8 }
  0x29   : > { %p7602_p13 = pneg %p7601_p11 }
  0x2b   : > { %p7609_p10 = pnand %p7608_p12, %p7602_p13 }
  0x2d   : > { %7612 = shalt.err (!%p7609_p10)
}
  0x2e   : > { %s7714_s15 = smov 256   ;;  %s7715_s16 = smov 16  }
  0x2f   : > { %7478 = dma.hbm_to_vmem [thread:$0]  (!%p7849_p0), %s9903_s5, 32768, %s270_s14, [#allocation7], %s7714_s15, %s7714_s15, %s7715_s16  }
  0x30   : > { %p9924_p1 = scmp.ne.s32.totalorder %s9921_s23, 0 }
  0x31   : > { %p9925_p4 = scmp.ne.s32.totalorder (!%p9924_p1), %s9922_s24, 0 }
  0x32   : > { %303 = sbr.rel (%p9924_p1) target bundleno = 1516 (0x5ec), region = 52 }
  0x39   : > { %7674 = dma.done.wait (%p9925_p4), [#allocation7], 32768  }
  0x3a   : > { %7676 = vsyncadd (%p9925_p4), [#allocation7], 4294934528  ;;  %s338_s11 = sand.u32 1, %s7687_s28   ;;  %p341_p3 = scmp.lt.s32.totalorder %s7699_s9, 1 }
  0x3b   : > { %s6535_s18 = sshll.u32 %s338_s11, 6  ;;  %p6539_p8 = scmp.ne.s32.totalorder %s7695_s30, 0 }
  0x3c   : > { %s342_s13 = scalar_select %p341_p3, %s7699_s9, 1 }
  0x3d   : > { %s7890_s22 = scalar_lea.vmem [#allocation9], %s6535_s18  ;;  %354 = sbr.rel (%p6539_p8) target bundleno = 261 (0x105), region = 60  ;;  %vm355_vm0 = vcmask (!%p6539_p8), 31744   ;;  %vm362_vm1 = vcmask (!%p6539_p8), 27648   ;;  %v7716_v3 = vmov (!%p6539_p8), 0.0  }
  0x3e   : > { %s6995_s17 = sshll.u32 %s342_s13, 8  ;;  %s6538_s14 = sshll.u32 %s342_s13, 1  ;;  %485 = vst.msk [vmem:[#allocation2 + $0x400] sm:$0xff] (!%p6539_p8), %vm355_vm0, %v7716_v3  ;;  %356 = vst.msk [vmem:[#allocation2] sm:$0xff] (!%p6539_p8), %vm355_vm0, %v7716_v3 }
  0x3f   : > { %s7883_s15 = scalar_lea.vmem %s9898_s0, %s6995_s17  ;;  %s7888_s24 = scalar_lea.vmem %s9904_s6, %s6538_s14  ;;  %357 = vst.msk [vmem:[#allocation2 + $0x8] sm:$0xff] (!%p6539_p8), %vm355_vm0, %v7716_v3  ;;  %358 = vst.msk [vmem:[#allocation2 + $0x10] sm:$0xff] (!%p6539_p8), %vm355_vm0, %v7716_v3 }
  0x40   : > { %v7894_v0 = vld [vmem:[%s7883_s15] sm:$0xff] (!%p6539_p8)  ;;  %v7897_v1 = vld [vmem:[%s7883_s15 + $0x8] sm:$0xff] (!%p6539_p8)  ;;  %v7900_v2 = vld [vmem:[%s7883_s15 + $0x10] sm:$0xff] (!%p6539_p8)  ;;  %359 = vst.msk [vmem:[#allocation2 + $0x18] sm:$0xff] (!%p6539_p8), %vm355_vm0, %v7716_v3 }
  0x41   : > { %360 = vst.msk [vmem:[#allocation2 + $0x20] sm:$0xff] (!%p6539_p8), %vm355_vm0, %v7716_v3  ;;  %361 = vst.msk [vmem:[#allocation2 + $0x28] sm:$0xff] (!%p6539_p8), %vm355_vm0, %v7716_v3  ;;  %v724_v4 = vld [vmem:[%s7883_s15 + $0x18] sm:$0xff] (!%p6539_p8)  ;;  %v725_v5 = vld [vmem:[%s7883_s15 + $0x20] sm:$0xff] (!%p6539_p8) }
  0x42   : > { %364 = vst.msk [vmem:[#allocation2 + $0x38] sm:$0xff] (!%p6539_p8), %vm355_vm0, %v7716_v3  ;;  %365 = vst.msk [vmem:[#allocation2 + $0x40] sm:$0xff] (!%p6539_p8), %vm355_vm0, %v7716_v3  ;;  %v726_v6 = vld [vmem:[%s7883_s15 + $0x28] sm:$0xff] (!%p6539_p8)  ;;  %v727_v7 = vld [vmem:[%s7883_s15 + $0x30] sm:$0xff] (!%p6539_p8) }
  0x43   : > { %366 = vst.msk [vmem:[#allocation2 + $0x48] sm:$0xff] (!%p6539_p8), %vm355_vm0, %v7716_v3  ;;  %367 = vst.msk [vmem:[#allocation2 + $0x50] sm:$0xff] (!%p6539_p8), %vm355_vm0, %v7716_v3  ;;  %v728_v8 = vld [vmem:[%s7883_s15 + $0x38] sm:$0xff] (!%p6539_p8)  ;;  %v729_v9 = vld [vmem:[%s7883_s15 + $0x40] sm:$0xff] (!%p6539_p8) }
  0x44   : > { %368 = vst.msk [vmem:[#allocation2 + $0x58] sm:$0xff] %vm355_vm0, %v7716_v3  ;;  %369 = vst.msk [vmem:[#allocation2 + $0x60] sm:$0xff] %vm355_vm0, %v7716_v3  ;;  %v730_v10 = vld [vmem:[%s7883_s15 + $0x48] sm:$0xff]  ;;  %v731_v11 = vld [vmem:[%s7883_s15 + $0x50] sm:$0xff] }
  0x45   : > { %371 = vst.msk [vmem:[#allocation2 + $0x70] sm:$0xff] %vm355_vm0, %v7716_v3  ;;  %372 = vst.msk [vmem:[#allocation2 + $0x78] sm:$0xff] %vm355_vm0, %v7716_v3  ;;  %v732_v12 = vld [vmem:[%s7883_s15 + $0x58] sm:$0xff]  ;;  %v733_v13 = vld [vmem:[%s7883_s15 + $0x60] sm:$0xff] }
  0x46   : > { %373 = vst.msk [vmem:[#allocation2 + $0x80] sm:$0xff] %vm355_vm0, %v7716_v3  ;;  %374 = vst.msk [vmem:[#allocation2 + $0x88] sm:$0xff] %vm355_vm0, %v7716_v3  ;;  %v734_v14 = vld [vmem:[%s7883_s15 + $0x68] sm:$0xff]  ;;  %v735_v15 = vld [vmem:[%s7883_s15 + $0x70] sm:$0xff] }
  0x47   : > { %375 = vst.msk [vmem:[#allocation2 + $0x90] sm:$0xff] %vm355_vm0, %v7716_v3  ;;  %376 = vst.msk [vmem:[#allocation2 + $0x98] sm:$0xff] %vm355_vm0, %v7716_v3  ;;  %v736_v16 = vld [vmem:[%s7883_s15 + $0x78] sm:$0xff]  ;;  %v737_v17 = vld [vmem:[%s7883_s15 + $0x80] sm:$0xff] }
  0x48   : > { %378 = vst.msk [vmem:[#allocation2 + $0xa8] sm:$0xff] %vm355_vm0, %v7716_v3  ;;  %379 = vst.msk [vmem:[#allocation2 + $0xb0] sm:$0xff] %vm355_vm0, %v7716_v3  ;;  %v738_v18 = vld [vmem:[%s7883_s15 + $0x88] sm:$0xff]  ;;  %v739_v19 = vld [vmem:[%s7883_s15 + $0x90] sm:$0xff] }
  0x49   : > { %380 = vst.msk [vmem:[#allocation2 + $0xb8] sm:$0xff] %vm355_vm0, %v7716_v3  ;;  %381 = vst.msk [vmem:[#allocation2 + $0xc0] sm:$0xff] %vm355_vm0, %v7716_v3  ;;  %v740_v20 = vld [vmem:[%s7883_s15 + $0x98] sm:$0xff]  ;;  %v741_v21 = vld [vmem:[%s7883_s15 + $0xa0] sm:$0xff] }
  0x4a   : > { %382 = vst.msk [vmem:[#allocation2 + $0xc8] sm:$0xff] %vm355_vm0, %v7716_v3  ;;  %383 = vst.msk [vmem:[#allocation2 + $0xd0] sm:$0xff] %vm355_vm0, %v7716_v3  ;;  %v742_v22 = vld [vmem:[%s7883_s15 + $0xa8] sm:$0xff]  ;;  %v743_v23 = vld [vmem:[%s7883_s15 + $0xb0] sm:$0xff] }
  0x4b   : > { %385 = vst.msk [vmem:[#allocation2 + $0xe0] sm:$0xff] %vm355_vm0, %v7716_v3  ;;  %386 = vst.msk [vmem:[#allocation2 + $0xe8] sm:$0xff] %vm355_vm0, %v7716_v3  ;;  %v744_v24 = vld [vmem:[%s7883_s15 + $0xb8] sm:$0xff]  ;;  %v745_v25 = vld [vmem:[%s7883_s15 + $0xc0] sm:$0xff] }
  0x4c   : > { %387 = vst.msk [vmem:[#allocation2 + $0xf0] sm:$0xff] %vm355_vm0, %v7716_v3  ;;  %388 = vst.msk [vmem:[#allocation2 + $0xf8] sm:$0xff] %vm355_vm0, %v7716_v3  ;;  %v746_v26 = vld [vmem:[%s7883_s15 + $0xc8] sm:$0xff]  ;;  %v747_v27 = vld [vmem:[%s7883_s15 + $0xd0] sm:$0xff] }
  0x4d   : > { %389 = vst.msk [vmem:[#allocation2 + $0x100] sm:$0xff] %vm355_vm0, %v7716_v3  ;;  %390 = vst.msk [vmem:[#allocation2 + $0x108] sm:$0xff] %vm355_vm0, %v7716_v3  ;;  %v748_v28 = vld [vmem:[%s7883_s15 + $0xd8] sm:$0xff]  ;;  %v749_v29 = vld [vmem:[%s7883_s15 + $0xe0] sm:$0xff] }
  0x4e   : > { %392 = vst.msk [vmem:[#allocation2 + $0x118] sm:$0xff] %vm355_vm0, %v7716_v3  ;;  %393 = vst.msk [vmem:[#allocation2 + $0x120] sm:$0xff] %vm355_vm0, %v7716_v3  ;;  %v750_v30 = vld [vmem:[%s7883_s15 + $0xe8] sm:$0xff]  ;;  %v751_v31 = vld [vmem:[%s7883_s15 + $0xf0] sm:$0xff] }
  0x4f   : > { %394 = vst.msk [vmem:[#allocation2 + $0x128] sm:$0xff] %vm355_vm0, %v7716_v3  ;;  %395 = vst.msk [vmem:[#allocation2 + $0x130] sm:$0xff] %vm355_vm0, %v7716_v3  ;;  %v752_v32 = vld [vmem:[%s7883_s15 + $0xf8] sm:$0xff] }
  0x50   : > { %396 = vst.msk [vmem:[#allocation2 + $0x138] sm:$0xff] %vm355_vm0, %v7716_v3  ;;  %397 = vst.msk [vmem:[#allocation2 + $0x140] sm:$0xff] %vm355_vm0, %v7716_v3 }
  0x51   : > { %399 = vst.msk [vmem:[#allocation2 + $0x150] sm:$0xff] %vm355_vm0, %v7716_v3  ;;  %400 = vst.msk [vmem:[#allocation2 + $0x158] sm:$0xff] %vm355_vm0, %v7716_v3 }
  0x52   : > { %401 = vst.msk [vmem:[#allocation2 + $0x160] sm:$0xff] %vm355_vm0, %v7716_v3  ;;  %402 = vst.msk [vmem:[#allocation2 + $0x168] sm:$0xff] %vm355_vm0, %v7716_v3 }
  0x53   : > { %403 = vst.msk [vmem:[#allocation2 + $0x170] sm:$0xff] %vm355_vm0, %v7716_v3  ;;  %404 = vst.msk [vmem:[#allocation2 + $0x178] sm:$0xff] %vm355_vm0, %v7716_v3 }
  0x54   : > { %406 = vst.msk [vmem:[#allocation2 + $0x188] sm:$0xff] %vm355_vm0, %v7716_v3  ;;  %407 = vst.msk [vmem:[#allocation2 + $0x190] sm:$0xff] %vm355_vm0, %v7716_v3 }
  0x55   : > { %408 = vst.msk [vmem:[#allocation2 + $0x198] sm:$0xff] %vm355_vm0, %v7716_v3  ;;  %409 = vst.msk [vmem:[#allocation2 + $0x1a0] sm:$0xff] %vm355_vm0, %v7716_v3 }
  0x56   : > { %410 = vst.msk [vmem:[#allocation2 + $0x1a8] sm:$0xff] %vm355_vm0, %v7716_v3  ;;  %411 = vst.msk [vmem:[#allocation2 + $0x1b0] sm:$0xff] %vm355_vm0, %v7716_v3 }
  0x57   : > { %413 = vst.msk [vmem:[#allocation2 + $0x1c0] sm:$0xff] %vm355_vm0, %v7716_v3  ;;  %414 = vst.msk [vmem:[#allocation2 + $0x1c8] sm:$0xff] %vm355_vm0, %v7716_v3 }
  0x58   : > { %415 = vst.msk [vmem:[#allocation2 + $0x1d0] sm:$0xff] %vm355_vm0, %v7716_v3  ;;  %416 = vst.msk [vmem:[#allocation2 + $0x1d8] sm:$0xff] %vm355_vm0, %v7716_v3 }
  0x59   : > { %417 = vst.msk [vmem:[#allocation2 + $0x1e0] sm:$0xff] %vm355_vm0, %v7716_v3  ;;  %418 = vst.msk [vmem:[#allocation2 + $0x1e8] sm:$0xff] %vm355_vm0, %v7716_v3 }
  0x5a   : > { %420 = vst.msk [vmem:[#allocation2 + $0x1f8] sm:$0xff] %vm355_vm0, %v7716_v3  ;;  %421 = vst.msk [vmem:[#allocation2 + $0x200] sm:$0xff] %vm355_vm0, %v7716_v3 }
  0x5b   : > { %422 = vst.msk [vmem:[#allocation2 + $0x208] sm:$0xff] %vm355_vm0, %v7716_v3  ;;  %423 = vst.msk [vmem:[#allocation2 + $0x210] sm:$0xff] %vm355_vm0, %v7716_v3 }
  0x5c   : > { %424 = vst.msk [vmem:[#allocation2 + $0x218] sm:$0xff] %vm355_vm0, %v7716_v3  ;;  %425 = vst.msk [vmem:[#allocation2 + $0x220] sm:$0xff] %vm355_vm0, %v7716_v3 }
  0x5d   : > { %427 = vst.msk [vmem:[#allocation2 + $0x230] sm:$0xff] %vm355_vm0, %v7716_v3  ;;  %428 = vst.msk [vmem:[#allocation2 + $0x238] sm:$0xff] %vm355_vm0, %v7716_v3 }
  0x5e   : > { %429 = vst.msk [vmem:[#allocation2 + $0x240] sm:$0xff] %vm355_vm0, %v7716_v3  ;;  %430 = vst.msk [vmem:[#allocation2 + $0x248] sm:$0xff] %vm355_vm0, %v7716_v3 }
  0x5f   : > { %431 = vst.msk [vmem:[#allocation2 + $0x250] sm:$0xff] %vm355_vm0, %v7716_v3  ;;  %432 = vst.msk [vmem:[#allocation2 + $0x258] sm:$0xff] %vm355_vm0, %v7716_v3 }
  0x60   : > { %434 = vst.msk [vmem:[#allocation2 + $0x268] sm:$0xff] %vm355_vm0, %v7716_v3  ;;  %435 = vst.msk [vmem:[#allocation2 + $0x270] sm:$0xff] %vm355_vm0, %v7716_v3 }
  0x61   : > { %436 = vst.msk [vmem:[#allocation2 + $0x278] sm:$0xff] %vm355_vm0, %v7716_v3  ;;  %437 = vst.msk [vmem:[#allocation2 + $0x280] sm:$0xff] %vm355_vm0, %v7716_v3 }
  0x62   : > { %438 = vst.msk [vmem:[#allocation2 + $0x288] sm:$0xff] %vm355_vm0, %v7716_v3  ;;  %439 = vst.msk [vmem:[#allocation2 + $0x290] sm:$0xff] %vm355_vm0, %v7716_v3 }
  0x63   : > { %441 = vst.msk [vmem:[#allocation2 + $0x2a0] sm:$0xff] %vm355_vm0, %v7716_v3  ;;  %442 = vst.msk [vmem:[#allocation2 + $0x2a8] sm:$0xff] %vm355_vm0, %v7716_v3 }
  0x64   : > { %443 = vst.msk [vmem:[#allocation2 + $0x2b0] sm:$0xff] %vm355_vm0, %v7716_v3  ;;  %444 = vst.msk [vmem:[#allocation2 + $0x2b8] sm:$0xff] %vm355_vm0, %v7716_v3 }
  0x65   : > { %445 = vst.msk [vmem:[#allocation2 + $0x2c0] sm:$0xff] %vm355_vm0, %v7716_v3  ;;  %446 = vst.msk [vmem:[#allocation2 + $0x2c8] sm:$0xff] %vm355_vm0, %v7716_v3 }
  0x66   : > { %448 = vst.msk [vmem:[#allocation2 + $0x2d8] sm:$0xff] %vm355_vm0, %v7716_v3  ;;  %449 = vst.msk [vmem:[#allocation2 + $0x2e0] sm:$0xff] %vm355_vm0, %v7716_v3 }
  0x67   : > { %450 = vst.msk [vmem:[#allocation2 + $0x2e8] sm:$0xff] %vm355_vm0, %v7716_v3  ;;  %451 = vst.msk [vmem:[#allocation2 + $0x2f0] sm:$0xff] %vm355_vm0, %v7716_v3 }
  0x68   : > { %452 = vst.msk [vmem:[#allocation2 + $0x2f8] sm:$0xff] %vm355_vm0, %v7716_v3  ;;  %453 = vst.msk [vmem:[#allocation2 + $0x300] sm:$0xff] %vm355_vm0, %v7716_v3 }
  0x69   : > { %455 = vst.msk [vmem:[#allocation2 + $0x310] sm:$0xff] %vm355_vm0, %v7716_v3  ;;  %456 = vst.msk [vmem:[#allocation2 + $0x318] sm:$0xff] %vm355_vm0, %v7716_v3 }
  0x6a   : > { %457 = vst.msk [vmem:[#allocation2 + $0x320] sm:$0xff] %vm355_vm0, %v7716_v3  ;;  %458 = vst.msk [vmem:[#allocation2 + $0x328] sm:$0xff] %vm355_vm0, %v7716_v3 }
  0x6b   : > { %459 = vst.msk [vmem:[#allocation2 + $0x330] sm:$0xff] %vm355_vm0, %v7716_v3  ;;  %460 = vst.msk [vmem:[#allocation2 + $0x338] sm:$0xff] %vm355_vm0, %v7716_v3 }
  0x6c   : > { %462 = vst.msk [vmem:[#allocation2 + $0x348] sm:$0xff] %vm355_vm0, %v7716_v3  ;;  %463 = vst.msk [vmem:[#allocation2 + $0x350] sm:$0xff] %vm355_vm0, %v7716_v3 }
  0x6d   : > { %464 = vst.msk [vmem:[#allocation2 + $0x358] sm:$0xff] %vm355_vm0, %v7716_v3  ;;  %465 = vst.msk [vmem:[#allocation2 + $0x360] sm:$0xff] %vm355_vm0, %v7716_v3 }
  0x6e   : > { %466 = vst.msk [vmem:[#allocation2 + $0x368] sm:$0xff] %vm355_vm0, %v7716_v3  ;;  %467 = vst.msk [vmem:[#allocation2 + $0x370] sm:$0xff] %vm355_vm0, %v7716_v3 }
  0x6f   : > { %469 = vst.msk [vmem:[#allocation2 + $0x380] sm:$0xff] %vm355_vm0, %v7716_v3  ;;  %470 = vst.msk [vmem:[#allocation2 + $0x388] sm:$0xff] %vm355_vm0, %v7716_v3 }
  0x70   : > { %471 = vst.msk [vmem:[#allocation2 + $0x390] sm:$0xff] %vm355_vm0, %v7716_v3  ;;  %472 = vst.msk [vmem:[#allocation2 + $0x398] sm:$0xff] %vm355_vm0, %v7716_v3 }
  0x71   : > { %473 = vst.msk [vmem:[#allocation2 + $0x3a0] sm:$0xff] %vm355_vm0, %v7716_v3  ;;  %474 = vst.msk [vmem:[#allocation2 + $0x3a8] sm:$0xff] %vm355_vm0, %v7716_v3 }
  0x72   : > { %476 = vst.msk [vmem:[#allocation2 + $0x3b8] sm:$0xff] %vm355_vm0, %v7716_v3  ;;  %477 = vst.msk [vmem:[#allocation2 + $0x3c0] sm:$0xff] %vm355_vm0, %v7716_v3 }
  0x73   : > { %478 = vst.msk [vmem:[#allocation2 + $0x3c8] sm:$0xff] %vm355_vm0, %v7716_v3  ;;  %479 = vst.msk [vmem:[#allocation2 + $0x3d0] sm:$0xff] %vm355_vm0, %v7716_v3 }
  0x74   : > { %480 = vst.msk [vmem:[#allocation2 + $0x3d8] sm:$0xff] %vm355_vm0, %v7716_v3  ;;  %481 = vst.msk [vmem:[#allocation2 + $0x3e0] sm:$0xff] %vm355_vm0, %v7716_v3 }
  0x75   : > { %483 = vst.msk [vmem:[#allocation2 + $0x3f0] sm:$0xff] %vm355_vm0, %v7716_v3  ;;  %484 = vst.msk [vmem:[#allocation2 + $0x3f8] sm:$0xff] %vm355_vm0, %v7716_v3 }
  0x76   : > { %486 = vst.msk [vmem:[#allocation2 + $0x408] sm:$0xff] %vm355_vm0, %v7716_v3  ;;  %487 = vst.msk [vmem:[#allocation2 + $0x410] sm:$0xff] %vm355_vm0, %v7716_v3 }
  0x77   : > { %488 = vst.msk [vmem:[#allocation2 + $0x418] sm:$0xff] %vm355_vm0, %v7716_v3  ;;  %490 = vst.msk [vmem:[#allocation2 + $0x428] sm:$0xff] %vm355_vm0, %v7716_v3 }
  0x78   : > { %491 = vst.msk [vmem:[#allocation2 + $0x430] sm:$0xff] %vm355_vm0, %v7716_v3  ;;  %492 = vst.msk [vmem:[#allocation2 + $0x438] sm:$0xff] %vm355_vm0, %v7716_v3 }
  0x79   : > { %493 = vst.msk [vmem:[#allocation2 + $0x440] sm:$0xff] %vm355_vm0, %v7716_v3  ;;  %494 = vst.msk [vmem:[#allocation2 + $0x448] sm:$0xff] %vm355_vm0, %v7716_v3 }
  0x7a   : > { %495 = vst.msk [vmem:[#allocation2 + $0x450] sm:$0xff] %vm355_vm0, %v7716_v3  ;;  %497 = vst.msk [vmem:[#allocation2 + $0x460] sm:$0xff] %vm355_vm0, %v7716_v3 }
  0x7b   : > { %498 = vst.msk [vmem:[#allocation2 + $0x468] sm:$0xff] %vm355_vm0, %v7716_v3  ;;  %499 = vst.msk [vmem:[#allocation2 + $0x470] sm:$0xff] %vm355_vm0, %v7716_v3 }
  0x7c   : > { %500 = vst.msk [vmem:[#allocation2 + $0x478] sm:$0xff] %vm355_vm0, %v7716_v3  ;;  %501 = vst.msk [vmem:[#allocation2 + $0x480] sm:$0xff] %vm355_vm0, %v7716_v3 }
  0x7d   : > { %502 = vst.msk [vmem:[#allocation2 + $0x488] sm:$0xff] %vm355_vm0, %v7716_v3  ;;  %504 = vst.msk [vmem:[#allocation2 + $0x498] sm:$0xff] %vm355_vm0, %v7716_v3 }
  0x7e   : > { %505 = vst.msk [vmem:[#allocation2 + $0x4a0] sm:$0xff] %vm355_vm0, %v7716_v3  ;;  %506 = vst.msk [vmem:[#allocation2 + $0x4a8] sm:$0xff] %vm355_vm0, %v7716_v3 }
  0x7f   : > { %507 = vst.msk [vmem:[#allocation2 + $0x4b0] sm:$0xff] %vm355_vm0, %v7716_v3  ;;  %508 = vst.msk [vmem:[#allocation2 + $0x4b8] sm:$0xff] %vm355_vm0, %v7716_v3 }
  0x80   : > { %509 = vst.msk [vmem:[#allocation2 + $0x4c0] sm:$0xff] %vm355_vm0, %v7716_v3  ;;  %511 = vst.msk [vmem:[#allocation2 + $0x4d0] sm:$0xff] %vm355_vm0, %v7716_v3 }
  0x81   : > { %512 = vst.msk [vmem:[#allocation2 + $0x4d8] sm:$0xff] %vm355_vm0, %v7716_v3  ;;  %513 = vst.msk [vmem:[#allocation2 + $0x4e0] sm:$0xff] %vm355_vm0, %v7716_v3 }
  0x82   : > { %514 = vst.msk [vmem:[#allocation2 + $0x4e8] sm:$0xff] %vm355_vm0, %v7716_v3  ;;  %515 = vst.msk [vmem:[#allocation2 + $0x4f0] sm:$0xff] %vm355_vm0, %v7716_v3 }
  0x83   : > { %516 = vst.msk [vmem:[#allocation2 + $0x4f8] sm:$0xff] %vm355_vm0, %v7716_v3  ;;  %518 = vst.msk [vmem:[#allocation2 + $0x508] sm:$0xff] %vm355_vm0, %v7716_v3 }
  0x84   : > { %519 = vst.msk [vmem:[#allocation2 + $0x510] sm:$0xff] %vm355_vm0, %v7716_v3  ;;  %520 = vst.msk [vmem:[#allocation2 + $0x518] sm:$0xff] %vm355_vm0, %v7716_v3 }
  0x85   : > { %521 = vst.msk [vmem:[#allocation2 + $0x520] sm:$0xff] %vm355_vm0, %v7716_v3  ;;  %522 = vst.msk [vmem:[#allocation2 + $0x528] sm:$0xff] %vm355_vm0, %v7716_v3 }
  0x86   : > { %523 = vst.msk [vmem:[#allocation2 + $0x530] sm:$0xff] %vm355_vm0, %v7716_v3  ;;  %525 = vst.msk [vmem:[#allocation2 + $0x540] sm:$0xff] %vm355_vm0, %v7716_v3 }
  0x87   : > { %526 = vst.msk [vmem:[#allocation2 + $0x548] sm:$0xff] %vm355_vm0, %v7716_v3  ;;  %527 = vst.msk [vmem:[#allocation2 + $0x550] sm:$0xff] %vm355_vm0, %v7716_v3 }
  0x88   : > { %528 = vst.msk [vmem:[#allocation2 + $0x558] sm:$0xff] %vm355_vm0, %v7716_v3  ;;  %529 = vst.msk [vmem:[#allocation2 + $0x560] sm:$0xff] %vm355_vm0, %v7716_v3 }
  0x89   : > { %530 = vst.msk [vmem:[#allocation2 + $0x568] sm:$0xff] %vm355_vm0, %v7716_v3  ;;  %532 = vst.msk [vmem:[#allocation2 + $0x578] sm:$0xff] %vm355_vm0, %v7716_v3 }
  0x8a   : > { %533 = vst.msk [vmem:[#allocation2 + $0x580] sm:$0xff] %vm355_vm0, %v7716_v3  ;;  %534 = vst.msk [vmem:[#allocation2 + $0x588] sm:$0xff] %vm355_vm0, %v7716_v3 }
  0x8b   : > { %535 = vst.msk [vmem:[#allocation2 + $0x590] sm:$0xff] %vm355_vm0, %v7716_v3  ;;  %536 = vst.msk [vmem:[#allocation2 + $0x598] sm:$0xff] %vm355_vm0, %v7716_v3 }
  0x8c   : > { %537 = vst.msk [vmem:[#allocation2 + $0x5a0] sm:$0xff] %vm355_vm0, %v7716_v3  ;;  %539 = vst.msk [vmem:[#allocation2 + $0x5b0] sm:$0xff] %vm355_vm0, %v7716_v3 }
  0x8d   : > { %540 = vst.msk [vmem:[#allocation2 + $0x5b8] sm:$0xff] %vm355_vm0, %v7716_v3  ;;  %541 = vst.msk [vmem:[#allocation2 + $0x5c0] sm:$0xff] %vm355_vm0, %v7716_v3 }
  0x8e   : > { %542 = vst.msk [vmem:[#allocation2 + $0x5c8] sm:$0xff] %vm355_vm0, %v7716_v3  ;;  %543 = vst.msk [vmem:[#allocation2 + $0x5d0] sm:$0xff] %vm355_vm0, %v7716_v3 }
  0x8f   : > { %544 = vst.msk [vmem:[#allocation2 + $0x5d8] sm:$0xff] %vm355_vm0, %v7716_v3  ;;  %546 = vst.msk [vmem:[#allocation2 + $0x5e8] sm:$0xff] %vm355_vm0, %v7716_v3 }
  0x90   : > { %547 = vst.msk [vmem:[#allocation2 + $0x5f0] sm:$0xff] %vm355_vm0, %v7716_v3  ;;  %548 = vst.msk [vmem:[#allocation2 + $0x5f8] sm:$0xff] %vm355_vm0, %v7716_v3 }
  0x91   : > { %549 = vst.msk [vmem:[#allocation2 + $0x600] sm:$0xff] %vm355_vm0, %v7716_v3  ;;  %550 = vst.msk [vmem:[#allocation2 + $0x608] sm:$0xff] %vm355_vm0, %v7716_v3 }
  0x92   : > { %551 = vst.msk [vmem:[#allocation2 + $0x610] sm:$0xff] %vm355_vm0, %v7716_v3  ;;  %553 = vst.msk [vmem:[#allocation2 + $0x620] sm:$0xff] %vm355_vm0, %v7716_v3 }
  0x93   : > { %554 = vst.msk [vmem:[#allocation2 + $0x628] sm:$0xff] %vm355_vm0, %v7716_v3  ;;  %555 = vst.msk [vmem:[#allocation2 + $0x630] sm:$0xff] %vm355_vm0, %v7716_v3 }
  0x94   : > { %556 = vst.msk [vmem:[#allocation2 + $0x638] sm:$0xff] %vm355_vm0, %v7716_v3  ;;  %557 = vst.msk [vmem:[#allocation2 + $0x640] sm:$0xff] %vm355_vm0, %v7716_v3 }
  0x95   : > { %558 = vst.msk [vmem:[#allocation2 + $0x648] sm:$0xff] %vm355_vm0, %v7716_v3  ;;  %560 = vst.msk [vmem:[#allocation2 + $0x658] sm:$0xff] %vm355_vm0, %v7716_v3 }
  0x96   : > { %561 = vst.msk [vmem:[#allocation2 + $0x660] sm:$0xff] %vm355_vm0, %v7716_v3  ;;  %562 = vst.msk [vmem:[#allocation2 + $0x668] sm:$0xff] %vm355_vm0, %v7716_v3 }
  0x97   : > { %563 = vst.msk [vmem:[#allocation2 + $0x670] sm:$0xff] %vm355_vm0, %v7716_v3  ;;  %564 = vst.msk [vmem:[#allocation2 + $0x678] sm:$0xff] %vm355_vm0, %v7716_v3 }
  0x98   : > { %565 = vst.msk [vmem:[#allocation2 + $0x680] sm:$0xff] %vm355_vm0, %v7716_v3  ;;  %567 = vst.msk [vmem:[#allocation2 + $0x690] sm:$0xff] %vm355_vm0, %v7716_v3 }
  0x99   : > { %568 = vst.msk [vmem:[#allocation2 + $0x698] sm:$0xff] %vm355_vm0, %v7716_v3  ;;  %569 = vst.msk [vmem:[#allocation2 + $0x6a0] sm:$0xff] %vm355_vm0, %v7716_v3 }
  0x9a   : > { %570 = vst.msk [vmem:[#allocation2 + $0x6a8] sm:$0xff] %vm355_vm0, %v7716_v3  ;;  %571 = vst.msk [vmem:[#allocation2 + $0x6b0] sm:$0xff] %vm355_vm0, %v7716_v3 }
  0x9b   : > { %572 = vst.msk [vmem:[#allocation2 + $0x6b8] sm:$0xff] %vm355_vm0, %v7716_v3  ;;  %574 = vst.msk [vmem:[#allocation2 + $0x6c8] sm:$0xff] %vm355_vm0, %v7716_v3 }
  0x9c   : > { %575 = vst.msk [vmem:[#allocation2 + $0x6d0] sm:$0xff] %vm355_vm0, %v7716_v3  ;;  %576 = vst.msk [vmem:[#allocation2 + $0x6d8] sm:$0xff] %vm355_vm0, %v7716_v3 }
  0x9d   : > { %577 = vst.msk [vmem:[#allocation2 + $0x6e0] sm:$0xff] %vm355_vm0, %v7716_v3  ;;  %578 = vst.msk [vmem:[#allocation2 + $0x6e8] sm:$0xff] %vm355_vm0, %v7716_v3 }
  0x9e   : > { %579 = vst.msk [vmem:[#allocation2 + $0x6f0] sm:$0xff] %vm355_vm0, %v7716_v3  ;;  %581 = vst.msk [vmem:[#allocation2 + $0x700] sm:$0xff] %vm355_vm0, %v7716_v3 }
  0x9f   : > { %582 = vst.msk [vmem:[#allocation2 + $0x708] sm:$0xff] %vm355_vm0, %v7716_v3  ;;  %583 = vst.msk [vmem:[#allocation2 + $0x710] sm:$0xff] %vm355_vm0, %v7716_v3 }
  0xa0   : > { %584 = vst.msk [vmem:[#allocation2 + $0x718] sm:$0xff] %vm355_vm0, %v7716_v3  ;;  %585 = vst.msk [vmem:[#allocation2 + $0x720] sm:$0xff] %vm355_vm0, %v7716_v3 }
  0xa1   : > { %586 = vst.msk [vmem:[#allocation2 + $0x728] sm:$0xff] %vm355_vm0, %v7716_v3  ;;  %588 = vst.msk [vmem:[#allocation2 + $0x738] sm:$0xff] %vm355_vm0, %v7716_v3 }
  0xa2   : > { %589 = vst.msk [vmem:[#allocation2 + $0x740] sm:$0xff] %vm355_vm0, %v7716_v3  ;;  %590 = vst.msk [vmem:[#allocation2 + $0x748] sm:$0xff] %vm355_vm0, %v7716_v3 }
  0xa3   : > { %591 = vst.msk [vmem:[#allocation2 + $0x750] sm:$0xff] %vm355_vm0, %v7716_v3  ;;  %592 = vst.msk [vmem:[#allocation2 + $0x758] sm:$0xff] %vm355_vm0, %v7716_v3 }
  0xa4   : > { %593 = vst.msk [vmem:[#allocation2 + $0x760] sm:$0xff] %vm355_vm0, %v7716_v3  ;;  %595 = vst.msk [vmem:[#allocation2 + $0x770] sm:$0xff] %vm355_vm0, %v7716_v3 }
  0xa5   : > { %596 = vst.msk [vmem:[#allocation2 + $0x778] sm:$0xff] %vm355_vm0, %v7716_v3  ;;  %597 = vst.msk [vmem:[#allocation2 + $0x780] sm:$0xff] %vm355_vm0, %v7716_v3 }
  0xa6   : > { %598 = vst.msk [vmem:[#allocation2 + $0x788] sm:$0xff] %vm355_vm0, %v7716_v3  ;;  %599 = vst.msk [vmem:[#allocation2 + $0x790] sm:$0xff] %vm355_vm0, %v7716_v3 }
  0xa7   : > { %600 = vst.msk [vmem:[#allocation2 + $0x798] sm:$0xff] %vm355_vm0, %v7716_v3  ;;  %602 = vst.msk [vmem:[#allocation2 + $0x7a8] sm:$0xff] %vm355_vm0, %v7716_v3 }
  0xa8   : > { %603 = vst.msk [vmem:[#allocation2 + $0x7b0] sm:$0xff] %vm355_vm0, %v7716_v3  ;;  %604 = vst.msk [vmem:[#allocation2 + $0x7b8] sm:$0xff] %vm355_vm0, %v7716_v3 }
  0xa9   : > { %605 = vst.msk [vmem:[#allocation2 + $0x7c0] sm:$0xff] %vm355_vm0, %v7716_v3  ;;  %606 = vst.msk [vmem:[#allocation2 + $0x7c8] sm:$0xff] %vm355_vm0, %v7716_v3 }
  0xaa   : > { %607 = vst.msk [vmem:[#allocation2 + $0x7d0] sm:$0xff] %vm355_vm0, %v7716_v3  ;;  %609 = vst.msk [vmem:[#allocation2 + $0x7e0] sm:$0xff] %vm355_vm0, %v7716_v3 }
  0xab   : > { %610 = vst.msk [vmem:[#allocation2 + $0x7e8] sm:$0xff] %vm355_vm0, %v7716_v3  ;;  %611 = vst.msk [vmem:[#allocation2 + $0x7f0] sm:$0xff] %vm355_vm0, %v7716_v3 }
  0xac   : > { %612 = vst.msk [vmem:[#allocation2 + $0x7f8] sm:$0xff] %vm355_vm0, %v7716_v3  ;;  %613 = vst.msk [vmem:[#allocation2 + $0x800] sm:$0xff] %vm355_vm0, %v7716_v3 }
  0xad   : > { %614 = vst.msk [vmem:[#allocation2 + $0x808] sm:$0xff] %vm355_vm0, %v7716_v3  ;;  %616 = vst.msk [vmem:[#allocation2 + $0x818] sm:$0xff] %vm355_vm0, %v7716_v3 }
  0xae   : > { %617 = vst.msk [vmem:[#allocation2 + $0x820] sm:$0xff] %vm355_vm0, %v7716_v3  ;;  %618 = vst.msk [vmem:[#allocation2 + $0x828] sm:$0xff] %vm355_vm0, %v7716_v3 }
  0xaf   : > { %619 = vst.msk [vmem:[#allocation2 + $0x830] sm:$0xff] %vm355_vm0, %v7716_v3  ;;  %620 = vst.msk [vmem:[#allocation2 + $0x838] sm:$0xff] %vm355_vm0, %v7716_v3 }
  0xb0   : > { %621 = vst.msk [vmem:[#allocation2 + $0x840] sm:$0xff] %vm355_vm0, %v7716_v3  ;;  %623 = vst.msk [vmem:[#allocation2 + $0x850] sm:$0xff] %vm355_vm0, %v7716_v3 }
  0xb1   : > { %624 = vst.msk [vmem:[#allocation2 + $0x858] sm:$0xff] %vm355_vm0, %v7716_v3  ;;  %625 = vst.msk [vmem:[#allocation2 + $0x860] sm:$0xff] %vm355_vm0, %v7716_v3 }
  0xb2   : > { %626 = vst.msk [vmem:[#allocation2 + $0x868] sm:$0xff] %vm355_vm0, %v7716_v3  ;;  %627 = vst.msk [vmem:[#allocation2 + $0x870] sm:$0xff] %vm355_vm0, %v7716_v3 }
  0xb3   : > { %628 = vst.msk [vmem:[#allocation2 + $0x878] sm:$0xff] %vm355_vm0, %v7716_v3  ;;  %630 = vst.msk [vmem:[#allocation2 + $0x888] sm:$0xff] %vm355_vm0, %v7716_v3 }
  0xb4   : > { %631 = vst.msk [vmem:[#allocation2 + $0x890] sm:$0xff] %vm355_vm0, %v7716_v3  ;;  %632 = vst.msk [vmem:[#allocation2 + $0x898] sm:$0xff] %vm355_vm0, %v7716_v3 }
  0xb5   : > { %633 = vst.msk [vmem:[#allocation2 + $0x8a0] sm:$0xff] %vm355_vm0, %v7716_v3  ;;  %634 = vst.msk [vmem:[#allocation2 + $0x8a8] sm:$0xff] %vm355_vm0, %v7716_v3 }
  0xb6   : > { %635 = vst.msk [vmem:[#allocation2 + $0x8b0] sm:$0xff] %vm355_vm0, %v7716_v3  ;;  %637 = vst.msk [vmem:[#allocation2 + $0x8c0] sm:$0xff] %vm355_vm0, %v7716_v3 }
  0xb7   : > { %638 = vst.msk [vmem:[#allocation2 + $0x8c8] sm:$0xff] %vm355_vm0, %v7716_v3  ;;  %639 = vst.msk [vmem:[#allocation2 + $0x8d0] sm:$0xff] %vm355_vm0, %v7716_v3 }
  0xb8   : > { %640 = vst.msk [vmem:[#allocation2 + $0x8d8] sm:$0xff] %vm355_vm0, %v7716_v3  ;;  %641 = vst.msk [vmem:[#allocation2 + $0x8e0] sm:$0xff] %vm355_vm0, %v7716_v3 }
  0xb9   : > { %642 = vst.msk [vmem:[#allocation2 + $0x8e8] sm:$0xff] %vm355_vm0, %v7716_v3  ;;  %644 = vst.msk [vmem:[#allocation2 + $0x8f8] sm:$0xff] %vm355_vm0, %v7716_v3 }
  0xba   : > { %645 = vst.msk [vmem:[#allocation2 + $0x900] sm:$0xff] %vm355_vm0, %v7716_v3  ;;  %646 = vst.msk [vmem:[#allocation2 + $0x908] sm:$0xff] %vm355_vm0, %v7716_v3 }
  0xbb   : > { %647 = vst.msk [vmem:[#allocation2 + $0x910] sm:$0xff] %vm355_vm0, %v7716_v3  ;;  %648 = vst.msk [vmem:[#allocation2 + $0x918] sm:$0xff] %vm355_vm0, %v7716_v3 }
  0xbc   : > { %649 = vst.msk [vmem:[#allocation2 + $0x920] sm:$0xff] %vm355_vm0, %v7716_v3  ;;  %651 = vst.msk [vmem:[#allocation2 + $0x930] sm:$0xff] %vm355_vm0, %v7716_v3 }
  0xbd   : > { %652 = vst.msk [vmem:[#allocation2 + $0x938] sm:$0xff] %vm355_vm0, %v7716_v3  ;;  %653 = vst.msk [vmem:[#allocation2 + $0x940] sm:$0xff] %vm355_vm0, %v7716_v3 }
  0xbe   : > { %654 = vst.msk [vmem:[#allocation2 + $0x948] sm:$0xff] %vm355_vm0, %v7716_v3  ;;  %655 = vst.msk [vmem:[#allocation2 + $0x950] sm:$0xff] %vm355_vm0, %v7716_v3 }
  0xbf   : > { %656 = vst.msk [vmem:[#allocation2 + $0x958] sm:$0xff] %vm355_vm0, %v7716_v3  ;;  %658 = vst.msk [vmem:[#allocation2 + $0x968] sm:$0xff] %vm355_vm0, %v7716_v3 }
  0xc0   : > { %659 = vst.msk [vmem:[#allocation2 + $0x970] sm:$0xff] %vm355_vm0, %v7716_v3  ;;  %660 = vst.msk [vmem:[#allocation2 + $0x978] sm:$0xff] %vm355_vm0, %v7716_v3 }
  0xc1   : > { %661 = vst.msk [vmem:[#allocation2 + $0x980] sm:$0xff] %vm355_vm0, %v7716_v3  ;;  %662 = vst.msk [vmem:[#allocation2 + $0x988] sm:$0xff] %vm355_vm0, %v7716_v3 }
  0xc2   : > { %663 = vst.msk [vmem:[#allocation2 + $0x990] sm:$0xff] %vm355_vm0, %v7716_v3  ;;  %665 = vst.msk [vmem:[#allocation2 + $0x9a0] sm:$0xff] %vm355_vm0, %v7716_v3 }
  0xc3   : > { %666 = vst.msk [vmem:[#allocation2 + $0x9a8] sm:$0xff] %vm355_vm0, %v7716_v3  ;;  %667 = vst.msk [vmem:[#allocation2 + $0x9b0] sm:$0xff] %vm355_vm0, %v7716_v3 }
  0xc4   : > { %668 = vst.msk [vmem:[#allocation2 + $0x9b8] sm:$0xff] %vm355_vm0, %v7716_v3  ;;  %669 = vst.msk [vmem:[#allocation2 + $0x9c0] sm:$0xff] %vm355_vm0, %v7716_v3 }
  0xc5   : > { %670 = vst.msk [vmem:[#allocation2 + $0x9c8] sm:$0xff] %vm355_vm0, %v7716_v3  ;;  %672 = vst.msk [vmem:[#allocation2 + $0x9d8] sm:$0xff] %vm355_vm0, %v7716_v3 }
  0xc6   : > { %673 = vst.msk [vmem:[#allocation2 + $0x9e0] sm:$0xff] %vm355_vm0, %v7716_v3  ;;  %674 = vst.msk [vmem:[#allocation2 + $0x9e8] sm:$0xff] %vm355_vm0, %v7716_v3 }
  0xc7   : > { %675 = vst.msk [vmem:[#allocation2 + $0x9f0] sm:$0xff] %vm355_vm0, %v7716_v3  ;;  %676 = vst.msk [vmem:[#allocation2 + $0x9f8] sm:$0xff] %vm355_vm0, %v7716_v3 }
  0xc8   : > { %677 = vst.msk [vmem:[#allocation2 + $0xa00] sm:$0xff] %vm355_vm0, %v7716_v3  ;;  %679 = vst.msk [vmem:[#allocation2 + $0xa10] sm:$0xff] %vm355_vm0, %v7716_v3 }
  0xc9   : > { %680 = vst.msk [vmem:[#allocation2 + $0xa18] sm:$0xff] %vm355_vm0, %v7716_v3  ;;  %681 = vst.msk [vmem:[#allocation2 + $0xa20] sm:$0xff] %vm355_vm0, %v7716_v3 }
  0xca   : > { %682 = vst.msk [vmem:[#allocation2 + $0xa28] sm:$0xff] %vm355_vm0, %v7716_v3  ;;  %683 = vst.msk [vmem:[#allocation2 + $0xa30] sm:$0xff] %vm355_vm0, %v7716_v3 }
  0xcb   : > { %684 = vst.msk [vmem:[#allocation2 + $0xa38] sm:$0xff] %vm355_vm0, %v7716_v3  ;;  %686 = vst.msk [vmem:[#allocation2 + $0xa48] sm:$0xff] %vm355_vm0, %v7716_v3 }
  0xcc   : > { %687 = vst.msk [vmem:[#allocation2 + $0xa50] sm:$0xff] %vm355_vm0, %v7716_v3  ;;  %688 = vst.msk [vmem:[#allocation2 + $0xa58] sm:$0xff] %vm355_vm0, %v7716_v3 }
  0xcd   : > { %689 = vst.msk [vmem:[#allocation2 + $0xa60] sm:$0xff] %vm355_vm0, %v7716_v3  ;;  %690 = vst.msk [vmem:[#allocation2 + $0xa68] sm:$0xff] %vm355_vm0, %v7716_v3 }
  0xce   : > { %691 = vst.msk [vmem:[#allocation2 + $0xa70] sm:$0xff] %vm355_vm0, %v7716_v3  ;;  %693 = vst.msk [vmem:[#allocation2 + $0xa80] sm:$0xff] %vm355_vm0, %v7716_v3 }
  0xcf   : > { %694 = vst.msk [vmem:[#allocation2 + $0xa88] sm:$0xff] %vm355_vm0, %v7716_v3  ;;  %695 = vst.msk [vmem:[#allocation2 + $0xa90] sm:$0xff] %vm355_vm0, %v7716_v3 }
  0xd0   : > { %696 = vst.msk [vmem:[#allocation2 + $0xa98] sm:$0xff] %vm355_vm0, %v7716_v3  ;;  %697 = vst.msk [vmem:[#allocation2 + $0xaa0] sm:$0xff] %vm355_vm0, %v7716_v3 }
  0xd1   : > { %698 = vst.msk [vmem:[#allocation2 + $0xaa8] sm:$0xff] %vm355_vm0, %v7716_v3  ;;  %700 = vst.msk [vmem:[#allocation2 + $0xab8] sm:$0xff] %vm355_vm0, %v7716_v3 }
  0xd2   : > { %701 = vst.msk [vmem:[#allocation2 + $0xac0] sm:$0xff] %vm355_vm0, %v7716_v3  ;;  %702 = vst.msk [vmem:[#allocation2 + $0xac8] sm:$0xff] %vm355_vm0, %v7716_v3 }
  0xd3   : > { %703 = vst.msk [vmem:[#allocation2 + $0xad0] sm:$0xff] %vm355_vm0, %v7716_v3  ;;  %704 = vst.msk [vmem:[#allocation2 + $0xad8] sm:$0xff] %vm355_vm0, %v7716_v3 }
  0xd4   : > { %705 = vst.msk [vmem:[#allocation2 + $0xae0] sm:$0xff] %vm355_vm0, %v7716_v3  ;;  %707 = vst.msk [vmem:[#allocation2 + $0xaf0] sm:$0xff] %vm355_vm0, %v7716_v3 }
  0xd5   : > { %708 = vst.msk [vmem:[#allocation2 + $0xaf8] sm:$0xff] %vm355_vm0, %v7716_v3  ;;  %709 = vst.msk [vmem:[#allocation2 + $0xb00] sm:$0xff] %vm355_vm0, %v7716_v3 }
  0xd6   : > { %710 = vst.msk [vmem:[#allocation2 + $0xb08] sm:$0xff] %vm355_vm0, %v7716_v3  ;;  %711 = vst.msk [vmem:[#allocation2 + $0xb10] sm:$0xff] %vm355_vm0, %v7716_v3 }
  0xd7   : > { %712 = vst.msk [vmem:[#allocation2 + $0xb18] sm:$0xff] %vm355_vm0, %v7716_v3  ;;  %714 = vst.msk [vmem:[#allocation2 + $0xb28] sm:$0xff] %vm355_vm0, %v7716_v3 }
  0xd8   : > { %715 = vst.msk [vmem:[#allocation2 + $0xb30] sm:$0xff] %vm355_vm0, %v7716_v3  ;;  %716 = vst.msk [vmem:[#allocation2 + $0xb38] sm:$0xff] %vm355_vm0, %v7716_v3 }
  0xd9   : > { %717 = vst.msk [vmem:[#allocation2 + $0xb40] sm:$0xff] %vm355_vm0, %v7716_v3  ;;  %718 = vst.msk [vmem:[#allocation2 + $0xb48] sm:$0xff] %vm355_vm0, %v7716_v3 }
  0xda   : > { %719 = vst.msk [vmem:[#allocation2 + $0xb50] sm:$0xff] %vm355_vm0, %v7716_v3  ;;  %754 = vst.msk [vmem:[#allocation2 + $0x402] sm:$0xff] %vm355_vm0, %v7894_v0 }
  0xdb   : > { %363 = vst.msk [vmem:[#allocation2 + $0x30] sm:$0xf] %vm362_vm1, %v7716_v3  ;;  %370 = vst.msk [vmem:[#allocation2 + $0x68] sm:$0xf] %vm362_vm1, %v7716_v3 }
  0xdc   : > { %377 = vst.msk [vmem:[#allocation2 + $0xa0] sm:$0xf] %vm362_vm1, %v7716_v3  ;;  %384 = vst.msk [vmem:[#allocation2 + $0xd8] sm:$0xf] %vm362_vm1, %v7716_v3 }
  0xdd   : > { %391 = vst.msk [vmem:[#allocation2 + $0x110] sm:$0xf] %vm362_vm1, %v7716_v3  ;;  %398 = vst.msk [vmem:[#allocation2 + $0x148] sm:$0xf] %vm362_vm1, %v7716_v3 }
  0xde   : > { %405 = vst.msk [vmem:[#allocation2 + $0x180] sm:$0xf] %vm362_vm1, %v7716_v3  ;;  %412 = vst.msk [vmem:[#allocation2 + $0x1b8] sm:$0xf] %vm362_vm1, %v7716_v3 }
  0xdf   : > { %419 = vst.msk [vmem:[#allocation2 + $0x1f0] sm:$0xf] %vm362_vm1, %v7716_v3  ;;  %426 = vst.msk [vmem:[#allocation2 + $0x228] sm:$0xf] %vm362_vm1, %v7716_v3 }
  0xe0   : > { %433 = vst.msk [vmem:[#allocation2 + $0x260] sm:$0xf] %vm362_vm1, %v7716_v3  ;;  %440 = vst.msk [vmem:[#allocation2 + $0x298] sm:$0xf] %vm362_vm1, %v7716_v3 }
  0xe1   : > { %447 = vst.msk [vmem:[#allocation2 + $0x2d0] sm:$0xf] %vm362_vm1, %v7716_v3  ;;  %454 = vst.msk [vmem:[#allocation2 + $0x308] sm:$0xf] %vm362_vm1, %v7716_v3 }
  0xe2   : > { %461 = vst.msk [vmem:[#allocation2 + $0x340] sm:$0xf] %vm362_vm1, %v7716_v3  ;;  %468 = vst.msk [vmem:[#allocation2 + $0x378] sm:$0xf] %vm362_vm1, %v7716_v3 }
  0xe3   : > { %475 = vst.msk [vmem:[#allocation2 + $0x3b0] sm:$0xf] %vm362_vm1, %v7716_v3  ;;  %482 = vst.msk [vmem:[#allocation2 + $0x3e8] sm:$0xf] %vm362_vm1, %v7716_v3 }
  0xe4   : > { %489 = vst.msk [vmem:[#allocation2 + $0x420] sm:$0xf] %vm362_vm1, %v7716_v3  ;;  %496 = vst.msk [vmem:[#allocation2 + $0x458] sm:$0xf] %vm362_vm1, %v7716_v3 }
  0xe5   : > { %503 = vst.msk [vmem:[#allocation2 + $0x490] sm:$0xf] %vm362_vm1, %v7716_v3  ;;  %510 = vst.msk [vmem:[#allocation2 + $0x4c8] sm:$0xf] %vm362_vm1, %v7716_v3 }
  0xe6   : > { %517 = vst.msk [vmem:[#allocation2 + $0x500] sm:$0xf] %vm362_vm1, %v7716_v3  ;;  %524 = vst.msk [vmem:[#allocation2 + $0x538] sm:$0xf] %vm362_vm1, %v7716_v3 }
  0xe7   : > { %531 = vst.msk [vmem:[#allocation2 + $0x570] sm:$0xf] %vm362_vm1, %v7716_v3  ;;  %538 = vst.msk [vmem:[#allocation2 + $0x5a8] sm:$0xf] %vm362_vm1, %v7716_v3 }
  0xe8   : > { %545 = vst.msk [vmem:[#allocation2 + $0x5e0] sm:$0xf] %vm362_vm1, %v7716_v3  ;;  %552 = vst.msk [vmem:[#allocation2 + $0x618] sm:$0xf] %vm362_vm1, %v7716_v3 }
  0xe9   : > { %559 = vst.msk [vmem:[#allocation2 + $0x650] sm:$0xf] %vm362_vm1, %v7716_v3  ;;  %566 = vst.msk [vmem:[#allocation2 + $0x688] sm:$0xf] %vm362_vm1, %v7716_v3 }
  0xea   : > { %573 = vst.msk [vmem:[#allocation2 + $0x6c0] sm:$0xf] %vm362_vm1, %v7716_v3  ;;  %580 = vst.msk [vmem:[#allocation2 + $0x6f8] sm:$0xf] %vm362_vm1, %v7716_v3 }
  0xeb   : > { %587 = vst.msk [vmem:[#allocation2 + $0x730] sm:$0xf] %vm362_vm1, %v7716_v3  ;;  %594 = vst.msk [vmem:[#allocation2 + $0x768] sm:$0xf] %vm362_vm1, %v7716_v3 }
  0xec   : > { %601 = vst.msk [vmem:[#allocation2 + $0x7a0] sm:$0xf] %vm362_vm1, %v7716_v3  ;;  %608 = vst.msk [vmem:[#allocation2 + $0x7d8] sm:$0xf] %vm362_vm1, %v7716_v3 }
  0xed   : > { %615 = vst.msk [vmem:[#allocation2 + $0x810] sm:$0xf] %vm362_vm1, %v7716_v3  ;;  %622 = vst.msk [vmem:[#allocation2 + $0x848] sm:$0xf] %vm362_vm1, %v7716_v3 }
  0xee   : > { %629 = vst.msk [vmem:[#allocation2 + $0x880] sm:$0xf] %vm362_vm1, %v7716_v3  ;;  %636 = vst.msk [vmem:[#allocation2 + $0x8b8] sm:$0xf] %vm362_vm1, %v7716_v3 }
  0xef   : > { %643 = vst.msk [vmem:[#allocation2 + $0x8f0] sm:$0xf] %vm362_vm1, %v7716_v3  ;;  %650 = vst.msk [vmem:[#allocation2 + $0x928] sm:$0xf] %vm362_vm1, %v7716_v3 }
  0xf0   : > { %657 = vst.msk [vmem:[#allocation2 + $0x960] sm:$0xf] %vm362_vm1, %v7716_v3  ;;  %664 = vst.msk [vmem:[#allocation2 + $0x998] sm:$0xf] %vm362_vm1, %v7716_v3 }
  0xf1   : > { %671 = vst.msk [vmem:[#allocation2 + $0x9d0] sm:$0xf] %vm362_vm1, %v7716_v3  ;;  %678 = vst.msk [vmem:[#allocation2 + $0xa08] sm:$0xf] %vm362_vm1, %v7716_v3 }
  0xf2   : > { %685 = vst.msk [vmem:[#allocation2 + $0xa40] sm:$0xf] %vm362_vm1, %v7716_v3  ;;  %692 = vst.msk [vmem:[#allocation2 + $0xa78] sm:$0xf] %vm362_vm1, %v7716_v3 }
  0xf3   : > { %699 = vst.msk [vmem:[#allocation2 + $0xab0] sm:$0xf] %vm362_vm1, %v7716_v3  ;;  %706 = vst.msk [vmem:[#allocation2 + $0xae8] sm:$0xf] %vm362_vm1, %v7716_v3 }
  0xf4   : > { %713 = vst.msk [vmem:[#allocation2 + $0xb20] sm:$0xf] %vm362_vm1, %v7716_v3  ;;  %720 = vst.msk [vmem:[#allocation2 + $0xb58] sm:$0xf] %vm362_vm1, %v7716_v3 }
  0xf5   : > { %755 = vst.msk [vmem:[#allocation2 + $0x40a] sm:$0xff] %vm355_vm0, %v7897_v1  ;;  %756 = vst.msk [vmem:[#allocation2 + $0x43a] sm:$0xff] %vm355_vm0, %v7900_v2 }
  0xf6   : > { %757 = vst.msk [vmem:[#allocation2 + $0x442] sm:$0xff] %vm355_vm0, %v724_v4  ;;  %758 = vst.msk [vmem:[#allocation2 + $0x472] sm:$0xff] %vm355_vm0, %v725_v5 }
  0xf7   : > { %759 = vst.msk [vmem:[#allocation2 + $0x47a] sm:$0xff] %vm355_vm0, %v726_v6  ;;  %760 = vst.msk [vmem:[#allocation2 + $0x4aa] sm:$0xff] %vm355_vm0, %v727_v7 }
  0xf8   : > { %761 = vst.msk [vmem:[#allocation2 + $0x4b2] sm:$0xff] %vm355_vm0, %v728_v8  ;;  %762 = vst.msk [vmem:[#allocation2 + $0x4e2] sm:$0xff] %vm355_vm0, %v729_v9 }
  0xf9   : > { %763 = vst.msk [vmem:[#allocation2 + $0x4ea] sm:$0xff] %vm355_vm0, %v730_v10  ;;  %764 = vst.msk [vmem:[#allocation2 + $0x51a] sm:$0xff] %vm355_vm0, %v731_v11 }
  0xfa   : > { %765 = vst.msk [vmem:[#allocation2 + $0x522] sm:$0xff] %vm355_vm0, %v732_v12  ;;  %766 = vst.msk [vmem:[#allocation2 + $0x552] sm:$0xff] %vm355_vm0, %v733_v13 }
  0xfb   : > { %767 = vst.msk [vmem:[#allocation2 + $0x55a] sm:$0xff] %vm355_vm0, %v734_v14  ;;  %768 = vst.msk [vmem:[#allocation2 + $0x58a] sm:$0xff] %vm355_vm0, %v735_v15 }
  0xfc   : > { %769 = vst.msk [vmem:[#allocation2 + $0x592] sm:$0xff] %vm355_vm0, %v736_v16  ;;  %770 = vst.msk [vmem:[#allocation2 + $0x5c2] sm:$0xff] %vm355_vm0, %v737_v17 }
  0xfd   : > { %771 = vst.msk [vmem:[#allocation2 + $0x5ca] sm:$0xff] %vm355_vm0, %v738_v18  ;;  %772 = vst.msk [vmem:[#allocation2 + $0x5fa] sm:$0xff] %vm355_vm0, %v739_v19 }
  0xfe   : > { %773 = vst.msk [vmem:[#allocation2 + $0x602] sm:$0xff] %vm355_vm0, %v740_v20  ;;  %774 = vst.msk [vmem:[#allocation2 + $0x632] sm:$0xff] %vm355_vm0, %v741_v21 }
  0xff   : > { %775 = vst.msk [vmem:[#allocation2 + $0x63a] sm:$0xff] %vm355_vm0, %v742_v22  ;;  %776 = vst.msk [vmem:[#allocation2 + $0x66a] sm:$0xff] %vm355_vm0, %v743_v23 }
 0x100   : > { %777 = vst.msk [vmem:[#allocation2 + $0x672] sm:$0xff] %vm355_vm0, %v744_v24  ;;  %778 = vst.msk [vmem:[#allocation2 + $0x6a2] sm:$0xff] %vm355_vm0, %v745_v25 }
 0x101   : > { %779 = vst.msk [vmem:[#allocation2 + $0x6aa] sm:$0xff] %vm355_vm0, %v746_v26  ;;  %780 = vst.msk [vmem:[#allocation2 + $0x6da] sm:$0xff] %vm355_vm0, %v747_v27 }
 0x102   : > { %781 = vst.msk [vmem:[#allocation2 + $0x6e2] sm:$0xff] %vm355_vm0, %v748_v28  ;;  %782 = vst.msk [vmem:[#allocation2 + $0x712] sm:$0xff] %vm355_vm0, %v749_v29 }
 0x103   : > { %783 = vst.msk [vmem:[#allocation2 + $0x71a] sm:$0xff] %vm355_vm0, %v750_v30  ;;  %784 = vst.msk [vmem:[#allocation2 + $0x74a] sm:$0xff] %vm355_vm0, %v751_v31 }
 0x104   : > { %785 = vst.msk [vmem:[#allocation2 + $0x752] sm:$0xff] %vm355_vm0, %v752_v32 }
 0x105 PF: > { %v803_v33 = vld [vmem:[%s9899_s1] sm:$0xff]  ;;  %vm830_vm2 = vcmask 1043456   ;;  %s6542_s17 = smul.u32 112, %s7695_s30  ;;  %v933_v34 = vld [vmem:[#allocation6 + $0x8] sm:$0xff]  ;;  %v9914_v36 = vmov 0.0   ;;  %vm794_vm3 = vcmask 31744  }
 0x106   : > { %v817_v35 = vcombine.high %v803_v33, %v803_v33  ;;  %899 = vmatprep.mubr.f32.mxu0 %v9914_v36  ;;  %v935_v37 = vld [vmem:[#allocation6 + $0x18] sm:$0xff]  ;;  %1239 = vmatprep.mubr.f32.mxu1 %v9914_v36  ;;  %v932_v43 = vld [vmem:[#allocation6] sm:$0xff]  ;;  %v934_v44 = vld [vmem:[#allocation6 + $0x10] sm:$0xff]  ;;  %s6991_s13 = sshll.u32 %s7699_s9, 6  ;;  %s6414_s9 = sshll.u32 %s7890_s22, 4  ;;  %s9840_s9 = int_to_ptr.vmem [resolvable:$true] %s6414_s9 }
 0x107   : > { %v6997_v38 = vpack.c.bf16 %v935_v37, %v933_v34  ;;  %s8701_s14 = scalar_lea.vmem [#allocation2], %s6542_s17  ;;  %v937_v45 = vld [vmem:[#allocation6 + $0x28] sm:$0xff]  ;;  %v939_v46 = vld [vmem:[#allocation6 + $0x38] sm:$0xff]  ;;  %v6999_v49 = vpack.c.bf16 %v934_v44, %v932_v43  ;;  %v936_v50 = vld [vmem:[#allocation6 + $0x20] sm:$0xff]  ;;  %s9846_s15 = scalar_lea.sflag [#allocation8], %s338_s11 }
 0x108   : > { %6547 = vmatprep.subr.msk.mxu0 %vm830_vm2, %v817_v35  ;;  %v7001_v53 = vpack.c.bf16 %v939_v46, %v937_v45  ;;  %v938_v54 = vld [vmem:[#allocation6 + $0x30] sm:$0xff]  ;;  %v941_v56 = vld [vmem:[#allocation6 + $0x48] sm:$0xff]  ;;  %v943_v57 = vld [vmem:[#allocation6 + $0x58] sm:$0xff]  ;;  %s7613_s16 = scalar_lea.vmem %s9840_s9, 1024  ;;  %p9927_p12 = scmp.ne.s32.totalorder %s9918_s19, 0 }
 0x109   : > { %6548 = vmatpush1.msk.msra.mxu0 %vm830_vm2, %v803_v33  ;;  %v7003_v61 = vpack.c.bf16 %v938_v54, %v936_v50  ;;  %v7005_v62 = vpack.c.bf16 %v943_v57, %v941_v56  ;;  %v940_v63 = vld [vmem:[#allocation6 + $0x40] sm:$0xff]  ;;  %v942_v0 = vld [vmem:[#allocation6 + $0x50] sm:$0xff]  ;;  %v945_v1 = vld [vmem:[#allocation6 + $0x68] sm:$0xff]  ;;  %p7614_p10 = scmp.ne.s32.totalorder %s9840_s9, %s7613_s16  ;;  %s7718_s21 = smov [#allocation9]  }
 0x10a   : > { %6998 = vmatprep.subr.bf16.mxu0 %v6997_v38  ;;  %v947_v2 = vld [vmem:[#allocation6 + $0x78] sm:$0xff]  ;;  %v7007_v4 = vpack.c.bf16 %v942_v0, %v940_v63  ;;  %v944_v6 = vld [vmem:[#allocation6 + $0x60] sm:$0xff]  ;;  %v946_v7 = vld [vmem:[#allocation6 + $0x70] sm:$0xff]  ;;  %s7617_s18 = sshll.u32 %s7718_s21, 4  ;;  %s7618_s18 = int_to_ptr.vmem [resolvable:$false] %s7617_s18 }
 0x10b   : > { %v8704_v39 = vld [vmem:[%s8701_s14 + $0x402] sm:$0xff]  ;;  %v8710_v40 = vld [vmem:[%s8701_s14 + $0x40a] sm:$0xff]  ;;  %v8713_v41 = vld [vmem:[%s8701_s14 + $0x43a] sm:$0xff]  ;;  %v7009_v5 = vpack.c.bf16 %v947_v2, %v945_v1  ;;  %v7011_v11 = vpack.c.bf16 %v946_v7, %v944_v6  ;;  %p7615_p0 = pnand %p7614_p10, %p9927_p12  ;;  %p7620_p5 = scmp.lt.s32.totalorder %s9840_s9, %s7618_s18 }
 0x10c   : > { %795 = vst.msk [vmem:[#allocation3] sm:$0xff] %vm794_vm3, %v8704_v39  ;;  %796 = vst.msk [vmem:[#allocation3 + $0x8] sm:$0xff] %vm794_vm3, %v8710_v40  ;;  %v8720_v42 = vld [vmem:[%s8701_s14 + $0x442] sm:$0xff]  ;;  %v6555_v47 = vld [vmem:[%s8701_s14 + $0x2ac] sm:$0xff] }
 0x10d   : > { %797 = vst.msk [vmem:[#allocation3 + $0x10] sm:$0xff] %vm794_vm3, %v8713_v41  ;;  %798 = vst.msk [vmem:[#allocation3 + $0x18] sm:$0xff] %vm794_vm3, %v8720_v42  ;;  %v6556_v48 = vld [vmem:[%s8701_s14 + $0x2b4] sm:$0xff]  ;;  %v6557_v51 = vld [vmem:[%s8701_s14 + $0x2e4] sm:$0xff]  ;;  %p7616_p2 = pneg %p7615_p0 }
 0x10e   : > { %v6558_v52 = vld [vmem:[%s8701_s14 + $0x2ec] sm:$0xff]  ;;  %v951_v10 = vld [vmem:[#allocation6 + $0x98] sm:$0xff]  ;;  %v948_v13 = vld [vmem:[#allocation6 + $0x80] sm:$0xff] }
 0x10f   : > { %v8736_v3 = vld [vmem:[%s8701_s14 + $0x2b2] sm:$0xff]  ;;  %v949_v9 = vld [vmem:[#allocation6 + $0x88] sm:$0xff]  ;;  %v952_v19 = vld [vmem:[#allocation6 + $0xa0] sm:$0xff] }
 0x110   : > { %v7013_v12 = vpack.c.bf16 %v951_v10, %v949_v9  ;;  %v950_v14 = vld [vmem:[#allocation6 + $0x90] sm:$0xff]  ;;  %v953_v15 = vld [vmem:[#allocation6 + $0xa8] sm:$0xff]  ;;  %v955_v16 = vld [vmem:[#allocation6 + $0xb8] sm:$0xff] }
 0x111   : > { %v7015_v17 = vpack.c.bf16 %v950_v14, %v948_v13  ;;  %v7017_v18 = vpack.c.bf16 %v955_v16, %v953_v15  ;;  %v954_v20 = vld [vmem:[#allocation6 + $0xb0] sm:$0xff]  ;;  %v957_v21 = vld [vmem:[#allocation6 + $0xc8] sm:$0xff]  ;;  %v959_v22 = vld [vmem:[#allocation6 + $0xd8] sm:$0xff] }
 0x112   : > { %v7019_v23 = vpack.c.bf16 %v954_v20, %v952_v19  ;;  %v7021_v24 = vpack.c.bf16 %v959_v22, %v957_v21  ;;  %v956_v25 = vld [vmem:[#allocation6 + $0xc0] sm:$0xff]  ;;  %v958_v26 = vld [vmem:[#allocation6 + $0xd0] sm:$0xff]  ;;  %v961_v27 = vld [vmem:[#allocation6 + $0xe8] sm:$0xff] }
 0x113   : > { %v799_v55 = vld [vmem:[#allocation3] sm:$0xff]  ;;  %v800_v58 = vld [vmem:[#allocation3 + $0x8] sm:$0xff]  ;;  %v963_v28 = vld [vmem:[#allocation6 + $0xf8] sm:$0xff]  ;;  %v7023_v29 = vpack.c.bf16 %v958_v26, %v956_v25 }
 0x114   : > { %6549 = vmatmul.mubr.msk.f32.vlgmr.msra.gmra.mrb[0].mxu0 %vm794_vm3, %v799_v55  ;;  %1124 = vst.msk [vmem:[#allocation3] sm:$0xff] %vm794_vm3, %v6555_v47  ;;  %v801_v59 = vld [vmem:[#allocation3 + $0x10] sm:$0xff]  ;;  %1125 = vst.msk [vmem:[#allocation3 + $0x8] sm:$0xff] %vm794_vm3, %v6556_v48  ;;  %v802_v60 = vld [vmem:[#allocation3 + $0x18] sm:$0xff]  ;;  %v7025_v30 = vpack.c.bf16 %v963_v28, %v961_v27 }
 0x115   : > { %905 = vmatprep.mubr.f32.mxu0 %v9914_v36  ;;  %1126 = vst.msk [vmem:[#allocation3 + $0x10] sm:$0xff] %vm794_vm3, %v6557_v51  ;;  %7000 = vmatpush1.bf16.msra.mxu0 %v6999_v49  ;;  %1127 = vst.msk [vmem:[#allocation3 + $0x18] sm:$0xff] %vm794_vm3, %v6558_v52  ;;  %v960_v31 = vld [vmem:[#allocation6 + $0xe0] sm:$0xff]  ;;  %v962_v32 = vld [vmem:[#allocation6 + $0xf0] sm:$0xff] }
 0x116   : > { %7002 = vmatprep.subr.bf16.mxu0 %v7001_v53  ;;  %v965_v33 = vld [vmem:[#allocation6 + $0x108] sm:$0xff]  ;;  %v967_v34 = vld [vmem:[#allocation6 + $0x118] sm:$0xff]  ;;  %v7027_v35 = vpack.c.bf16 %v962_v32, %v960_v31  ;;  %v964_v38 = vld [vmem:[#allocation6 + $0x100] sm:$0xff] }
 0x117   : > { %v7029_v37 = vpack.c.bf16 %v967_v34, %v965_v33  ;;  %v966_v43 = vld [vmem:[#allocation6 + $0x110] sm:$0xff]  ;;  %v969_v44 = vld [vmem:[#allocation6 + $0x128] sm:$0xff]  ;;  %v971_v45 = vld [vmem:[#allocation6 + $0x138] sm:$0xff] }
 0x118   : > { %6550 = vmatmul.mubr.msk.f32.gmra.mrb[2].mxu0 %vm794_vm3, %v800_v58  ;;  %v7031_v46 = vpack.c.bf16 %v966_v43, %v964_v38  ;;  %v7033_v47 = vpack.c.bf16 %v971_v45, %v969_v44  ;;  %v968_v48 = vld [vmem:[#allocation6 + $0x120] sm:$0xff]  ;;  %v970_v49 = vld [vmem:[#allocation6 + $0x130] sm:$0xff]  ;;  %v973_v50 = vld [vmem:[#allocation6 + $0x148] sm:$0xff] }
 0x119   : > { %911 = vmatprep.mubr.f32.mxu0 %v9914_v36  ;;  %7004 = vmatpush1.bf16.msra.mxu0 %v7003_v61  ;;  %v975_v51 = vld [vmem:[#allocation6 + $0x158] sm:$0xff]  ;;  %v7035_v52 = vpack.c.bf16 %v970_v49, %v968_v48  ;;  %v972_v54 = vld [vmem:[#allocation6 + $0x140] sm:$0xff]  ;;  %v974_v55 = vld [vmem:[#allocation6 + $0x150] sm:$0xff] }
 0x11a   : > { %7006 = vmatprep.subr.bf16.mxu0 %v7005_v62  ;;  %v7037_v53 = vpack.c.bf16 %v975_v51, %v973_v50  ;;  %v977_v56 = vld [vmem:[#allocation6 + $0x168] sm:$0xff]  ;;  %v979_v57 = vld [vmem:[#allocation6 + $0x178] sm:$0xff]  ;;  %v7039_v58 = vpack.c.bf16 %v974_v55, %v972_v54  ;;  %v978_v61 = vld [vmem:[#allocation6 + $0x170] sm:$0xff] }
 0x11b   : > { %v8739_v8 = vld [vmem:[#allocation3] sm:$0xff]  ;;  %v981_v62 = vld [vmem:[#allocation6 + $0x188] sm:$0xff]  ;;  %v983_v63 = vld [vmem:[#allocation6 + $0x198] sm:$0xff] }
 0x11c   : > { %1576 = vst.msk [vmem:[#allocation3] sm:$0xff] %vm794_vm3, %v8736_v3  ;;  %6551 = vmatmul.mubr.msk.f32.gmra.mrb[4].mxu0 %vm794_vm3, %v801_v59  ;;  %v7041_v59 = vpack.c.bf16 %v979_v57, %v977_v56  ;;  %v7045_v1 = vpack.c.bf16 %v983_v63, %v981_v62  ;;  %v980_v2 = vld [vmem:[#allocation6 + $0x180] sm:$0xff]  ;;  %v987_v6 = vld [vmem:[#allocation6 + $0x1b8] sm:$0xff]  ;;  %v993_v19 = vld [vmem:[#allocation6 + $0x1e8] sm:$0xff] }
 0x11d   : > { %917 = vmatprep.mubr.f32.mxu0 %v9914_v36  ;;  %7008 = vmatpush1.bf16.msra.mxu0 %v7007_v4  ;;  %v982_v4 = vld [vmem:[#allocation6 + $0x190] sm:$0xff]  ;;  %v984_v10 = vld [vmem:[#allocation6 + $0x1a0] sm:$0xff]  ;;  %v991_v13 = vld [vmem:[#allocation6 + $0x1d8] sm:$0xff] }
 0x11e   : > { %7010 = vmatprep.subr.bf16.mxu0 %v7009_v5  ;;  %v985_v5 = vld [vmem:[#allocation6 + $0x1a8] sm:$0xff]  ;;  %v7047_v7 = vpack.c.bf16 %v982_v4, %v980_v2  ;;  %v988_v16 = vld [vmem:[#allocation6 + $0x1c0] sm:$0xff]  ;;  %v995_v20 = vld [vmem:[#allocation6 + $0x1f8] sm:$0xff] }
 0x11f   : > { %v7049_v9 = vpack.c.bf16 %v987_v6, %v985_v5  ;;  %v7057_v21 = vpack.c.bf16 %v995_v20, %v993_v19  ;;  %v992_v22 = vld [vmem:[#allocation6 + $0x1e0] sm:$0xff]  ;;  %v8749_v25 = vld [vmem:[%s9900_s2 + $0x18] sm:$0xff]  ;;  %v6579_v34 = vld [vmem:[%s8701_s14 + $0x54c] sm:$0xff] }
 0x120   : > { %6552 = vmatmul.mubr.msk.f32.gmra.mrb[6].mxu0 %vm794_vm3, %v802_v60  ;;  %v976_v60 = vld [vmem:[#allocation6 + $0x160] sm:$0xff]  ;;  %v1280_v26 = vcombine.high %v8749_v25, %v8749_v25  ;;  %1148 = vst.msk [vmem:[#allocation3 + $0xc0] sm:$0xff] %vm794_vm3, %v6579_v34  ;;  %v6582_v44 = vld [vmem:[%s8701_s14 + $0x58c] sm:$0xff]  ;;  %v8820_v54 = vld [vmem:[#allocation3 + $0x18] sm:$0xff] }
 0x121   : > { %7012 = vmatpush1.bf16.msra.mxu0 %v7011_v11  ;;  %v7043_v0 = vpack.c.bf16 %v978_v61, %v976_v60  ;;  %v986_v11 = vld [vmem:[#allocation6 + $0x1b0] sm:$0xff]  ;;  %v6567_v27 = vld [vmem:[%s8701_s14 + $0x3fc] sm:$0xff]  ;;  %v6568_v28 = vld [vmem:[%s8701_s14 + $0x404] sm:$0xff]  ;;  %1151 = vst.msk [vmem:[#allocation3 + $0xd8] sm:$0xff] %vm794_vm3, %v6582_v44 }
 0x122   : > { %7014 = vmatprep.subr.bf16.mxu0 %v7013_v12  ;;  %v989_v12 = vld [vmem:[#allocation6 + $0x1c8] sm:$0xff]  ;;  %v7051_v14 = vpack.c.bf16 %v986_v11, %v984_v10  ;;  %1136 = vst.msk [vmem:[#allocation3 + $0x60] sm:$0xff] %vm794_vm3, %v6567_v27  ;;  %1137 = vst.msk [vmem:[#allocation3 + $0x68] sm:$0xff] %vm794_vm3, %v6568_v28  ;;  %v6570_v32 = vld [vmem:[%s8701_s14 + $0x43c] sm:$0xff] }
 0x123   : > { %v7053_v15 = vpack.c.bf16 %v991_v13, %v989_v12  ;;  %1139 = vst.msk [vmem:[#allocation3 + $0x78] sm:$0xff] %vm794_vm3, %v6570_v32  ;;  %v6581_v38 = vld [vmem:[%s8701_s14 + $0x584] sm:$0xff]  ;;  %v6628_v43 = vld [vmem:[%s8701_s14 + $0x55a] sm:$0xff]  ;;  %v6630_v49 = vld [vmem:[%s8701_s14 + $0x592] sm:$0xff] }
 0x124   : > { %1150 = vst.msk [vmem:[#allocation3 + $0xd0] sm:$0xff] %vm794_vm3, %v6581_v38  ;;  %v8809_v50 = vld [vmem:[#allocation3 + $0x10] sm:$0xff]  ;;  %v6653_v57 = vld [vmem:[%s8701_s14 + $0x2c0] sm:$0xff]  ;;  %v6655_v61 = vld [vmem:[%s8701_s14 + $0x2f8] sm:$0xff] }
 0x125   : > { %7016 = vmatpush1.bf16.msra.mxu0 %v7015_v17  ;;  %v990_v17 = vld [vmem:[#allocation6 + $0x1d0] sm:$0xff]  ;;  %v6664_v63 = vld [vmem:[%s8701_s14 + $0x408] sm:$0xff]  ;;  %v6666_v4 = vld [vmem:[%s8701_s14 + $0x440] sm:$0xff] }
 0x126   : > { %7018 = vmatprep.subr.bf16.mxu0 %v7017_v18  ;;  %v7055_v18 = vpack.c.bf16 %v990_v17, %v988_v16  ;;  %v8812_v51 = vld [vmem:[%s8701_s14 + $0x2ea] sm:$0xff]  ;;  %v8823_v55 = vld [vmem:[%s8701_s14 + $0x2f2] sm:$0xff]  ;;  %v6677_v11 = vld [vmem:[%s8701_s14 + $0x560] sm:$0xff] }
 0x127   : > { %1578 = vst.msk [vmem:[#allocation3 + $0x10] sm:$0xff] %vm794_vm3, %v8812_v51  ;;  %1579 = vst.msk [vmem:[#allocation3 + $0x18] sm:$0xff] %vm794_vm3, %v8823_v55  ;;  %v6667_v6 = vld [vmem:[%s8701_s14 + $0x448] sm:$0xff]  ;;  %v6678_v13 = vld [vmem:[%s8701_s14 + $0x590] sm:$0xff] }
 0x128   : > { %v8803_v48 = vld [vmem:[#allocation3 + $0xd8] sm:$0xff]  ;;  %v6776_v20 = vld [vmem:[%s8701_s14 + $0x162] sm:$0xff]  ;;  %v4456_v44 = vld [vmem:[%s8701_s14 + $0x150] sm:$0xff] }
 0x129   : > { %7020 = vmatpush1.bf16.msra.mxu0 %v7019_v23  ;;  %v994_v23 = vld [vmem:[#allocation6 + $0x1f0] sm:$0xff]  ;;  %v8764_v31 = vld [vmem:[#allocation3 + $0x68] sm:$0xff]  ;;  %1603 = vst.msk [vmem:[#allocation3 + $0xd8] sm:$0xff] %vm794_vm3, %v6630_v49  ;;  %v6705_v19 = vld [vmem:[%s8701_s14 + $0x15e] sm:$0xff] }
 0x12a   : > { %7022 = vmatprep.subr.bf16.mxu0 %v7021_v24  ;;  %v7059_v24 = vpack.c.bf16 %v994_v23, %v992_v22  ;;  %1589 = vst.msk [vmem:[#allocation3 + $0x68] sm:$0xff] %vm794_vm3, %v8710_v40  ;;  %v8782_v40 = vld [vmem:[#allocation3 + $0xc0] sm:$0xff]  ;;  %v6704_v17 = vld [vmem:[%s8701_s14 + $0x156] sm:$0xff]  ;;  %v6706_v23 = vld [vmem:[%s8701_s14 + $0x18e] sm:$0xff] }
 0x12b   : > { %v8795_v45 = vld [vmem:[#allocation3 + $0xd0] sm:$0xff]  ;;  %v6778_v34 = vld [vmem:[%s8701_s14 + $0x19a] sm:$0xff]  ;;  %v6716_v38 = vld [vmem:[%s8701_s14 + $0x2a6] sm:$0xff] }
 0x12c   : > { %v8908_v49 = vld [vmem:[%s8701_s14 + $0x1a2] sm:$0xff] }
 0x12d   : > { %7024 = vmatpush1.bf16.msra.mxu0 %v7023_v29  ;;  %v8758_v29 = vld [vmem:[#allocation3 + $0x60] sm:$0xff] }
 0x12e   : > { %7026 = vmatprep.subr.bf16.mxu0 %v7025_v30  ;;  %v6569_v30 = vld [vmem:[%s8701_s14 + $0x434] sm:$0xff]  ;;  %1588 = vst.msk [vmem:[#allocation3 + $0x60] sm:$0xff] %vm794_vm3, %v8704_v39 }
 0x12f   : > { %1138 = vst.msk [vmem:[#allocation3 + $0x70] sm:$0xff] %vm794_vm3, %v6569_v30  ;;  %v8776_v39 = vld [vmem:[#allocation3 + $0x78] sm:$0xff] }
 0x130   : > { %1591 = vst.msk [vmem:[#allocation3 + $0x78] sm:$0xff] %vm794_vm3, %v8720_v42  ;;  %v6629_v42 = vld [vmem:[%s8701_s14 + $0x58a] sm:$0xff]  ;;  %v8835_v60 = vld [vmem:[#allocation3 + $0x18] sm:$0xff] }
 0x131   : > { %7028 = vmatpush1.bf16.msra.mxu0 %v7027_v35  ;;  %v6580_v35 = vld [vmem:[%s8701_s14 + $0x554] sm:$0xff]  ;;  %1602 = vst.msk [vmem:[#allocation3 + $0xd0] sm:$0xff] %vm794_vm3, %v6629_v42  ;;  %2046 = vst.msk [vmem:[#allocation3 + $0x18] sm:$0xff] %vm794_vm3, %v6655_v61 }
 0x132   : > { %7030 = vmatprep.subr.bf16.mxu0 %v7029_v37  ;;  %1149 = vst.msk [vmem:[#allocation3 + $0xc8] sm:$0xff] %vm794_vm3, %v6580_v35  ;;  %v6627_v37 = vld [vmem:[%s8701_s14 + $0x552] sm:$0xff] }
 0x133   : > { %1600 = vst.msk [vmem:[#allocation3 + $0xc0] sm:$0xff] %vm794_vm3, %v6627_v37  ;;  %v6707_v30 = vld [vmem:[%s8701_s14 + $0x196] sm:$0xff] }
 0x135   : > { %7032 = vmatpush1.bf16.msra.mxu0 %v7031_v46  ;;  %v8797_v46 = vld [vmem:[#allocation3 + $0x8] sm:$0xff]  ;;  %v8839_v62 = vld [vmem:[#allocation3 + $0x60] sm:$0xff] }
 0x136   : > { %7034 = vmatprep.subr.bf16.mxu0 %v7033_v47  ;;  %v8770_v33 = vld [vmem:[#allocation3 + $0x70] sm:$0xff]  ;;  %v8800_v47 = vld [vmem:[%s8701_s14 + $0x2ba] sm:$0xff]  ;;  %2055 = vst.msk [vmem:[#allocation3 + $0x60] sm:$0xff] %vm794_vm3, %v6664_v63 }
 0x137   : > { %1590 = vst.msk [vmem:[#allocation3 + $0x70] sm:$0xff] %vm794_vm3, %v8713_v41  ;;  %1577 = vst.msk [vmem:[#allocation3 + $0x8] sm:$0xff] %vm794_vm3, %v8800_v47  ;;  %v8851_v5 = vld [vmem:[#allocation3 + $0x78] sm:$0xff] }
 0x138   : > { %2058 = vst.msk [vmem:[#allocation3 + $0x78] sm:$0xff] %vm794_vm3, %v6667_v6  ;;  %v8863_v12 = vld [vmem:[#allocation3 + $0xd0] sm:$0xff]  ;;  %v8890_v28 = vld [vmem:[#allocation3 + $0x18] sm:$0xff] }
 0x139   : > { %7036 = vmatpush1.bf16.msra.mxu0 %v7035_v52  ;;  %v8787_v41 = vld [vmem:[#allocation3 + $0xc8] sm:$0xff]  ;;  %v8814_v52 = vld [vmem:[#allocation3] sm:$0xff]  ;;  %2069 = vst.msk [vmem:[#allocation3 + $0xd0] sm:$0xff] %vm794_vm3, %v6678_v13  ;;  %2754 = vst.msk [vmem:[#allocation3 + $0x18] sm:$0xff] %vm794_vm3, %v6707_v30 }
 0x13a   : > { %7038 = vmatprep.subr.bf16.mxu0 %v7037_v53  ;;  %1601 = vst.msk [vmem:[#allocation3 + $0xc8] sm:$0xff] %vm794_vm3, %v6628_v43  ;;  %v6652_v53 = vld [vmem:[%s8701_s14 + $0x2b8] sm:$0xff]  ;;  %v1156_v30 = vld [vmem:[%s9900_s2] sm:$0xff] }
 0x13b   : > { %2043 = vst.msk [vmem:[#allocation3] sm:$0xff] %vm794_vm3, %v6652_v53  ;;  %v6861_v43 = vld [vmem:[%s8701_s14 + $0x2be] sm:$0xff] }
 0x13c   : > { %v804_v53 = vld [vmem:[%s9905_s7] ss:$8 sm:$0x3] }
 0x13d   : > { %7040 = vmatpush1.bf16.msra.mxu0 %v7039_v58  ;;  %v8831_v58 = vld [vmem:[#allocation3 + $0x10] sm:$0xff]  ;;  %v8896_v35 = vld [vmem:[#allocation3 + $0x60] sm:$0xff] }
 0x13e   : > { %7042 = vmatprep.subr.bf16.mxu0 %v7041_v59  ;;  %v8825_v56 = vld [vmem:[#allocation3 + $0x8] sm:$0xff]  ;;  %v6654_v59 = vld [vmem:[%s8701_s14 + $0x2f0] sm:$0xff]  ;;  %2763 = vst.msk [vmem:[#allocation3 + $0x60] sm:$0xff] %vm794_vm3, %v6716_v38 }
 0x13f   : > { %2044 = vst.msk [vmem:[#allocation3 + $0x8] sm:$0xff] %vm794_vm3, %v6653_v57  ;;  %2045 = vst.msk [vmem:[#allocation3 + $0x10] sm:$0xff] %vm794_vm3, %v6654_v59  ;;  %v8847_v2 = vld [vmem:[#allocation3 + $0x70] sm:$0xff]  ;;  %v8965_v38 = vld [vmem:[#allocation3 + $0x78] sm:$0xff] }
 0x140   : > { %2057 = vst.msk [vmem:[#allocation3 + $0x70] sm:$0xff] %vm794_vm3, %v6666_v4  ;;  %3262 = vst.msk [vmem:[#allocation3 + $0x60] sm:$0xff] %vm794_vm3, %v8736_v3  ;;  %v5567_v59 = vld [vmem:[%s8701_s14 + $0x174] sm:$0xff]  ;;  %v6862_v3 = vld [vmem:[%s8701_s14 + $0x2c6] sm:$0xff] }
 0x141   : > { %7044 = vmatpush1.bf16.msra.mxu0 %v7043_v0  ;;  %v8843_v0 = vld [vmem:[#allocation3 + $0x68] sm:$0xff]  ;;  %3777 = vst.msk [vmem:[#allocation3 + $0x60] sm:$0xff] %vm794_vm3, %v6861_v43  ;;  %v8921_v63 = vld [vmem:[#allocation3 + $0x18] sm:$0xff]  ;;  %v1158_v43 = vcombine.high %v1156_v30, %v1156_v30 }
 0x142   : > { %7046 = vmatprep.subr.bf16.mxu0 %v7045_v1  ;;  %v6665_v1 = vld [vmem:[%s8701_s14 + $0x410] sm:$0xff]  ;;  %v8859_v10 = vld [vmem:[#allocation3 + $0xc8] sm:$0xff]  ;;  %v8871_v16 = vld [vmem:[#allocation3] sm:$0xff]  ;;  %4532 = vst.msk [vmem:[#allocation3 + $0x60] sm:$0xff] %vm794_vm3, %v4456_v44 }
 0x143   : > { %2056 = vst.msk [vmem:[#allocation3 + $0x68] sm:$0xff] %vm794_vm3, %v6665_v1  ;;  %2068 = vst.msk [vmem:[#allocation3 + $0xc8] sm:$0xff] %vm794_vm3, %v6677_v11  ;;  %v6717_v1 = vld [vmem:[%s8701_s14 + $0x2ae] sm:$0xff]  ;;  %v4457_v4 = vld [vmem:[%s8701_s14 + $0x158] sm:$0xff]  ;;  %6583 = vmatprep.subr.msk.mxu1 %vm830_vm2, %v1158_v43 }
 0x144   : > { %2751 = vst.msk [vmem:[#allocation3] sm:$0xff] %vm794_vm3, %v6704_v17  ;;  %3253 = vst.msk [vmem:[#allocation3 + $0x18] sm:$0xff] %vm794_vm3, %v8908_v49  ;;  %v5568_v11 = vld [vmem:[%s8701_s14 + $0x17c] sm:$0xff]  ;;  %v6719_v44 = vld [vmem:[%s8701_s14 + $0x2e6] sm:$0xff]  ;;  %6584 = vmatpush1.msk.msra.mxu1 %vm830_vm2, %v1156_v30 }
 0x145   : > { %7048 = vmatpush1.bf16.msra.mxu0 %v7047_v7  ;;  %v8855_v7 = vld [vmem:[#allocation3 + $0xc0] sm:$0xff]  ;;  %5080 = vst.msk [vmem:[#allocation3 + $0x60] sm:$0xff] %vm794_vm3, %v6776_v20  ;;  %v6863_v17 = vld [vmem:[%s8701_s14 + $0x2f6] sm:$0xff]  ;;  %2766 = vst.msk [vmem:[#allocation3 + $0x78] sm:$0xff] %vm794_vm3, %v6719_v44  ;;  %6585 = vmatmul.mubr.msk.f32.vlgmr.msra.gmra.mrb[0].mxu1 %vm794_vm3, %v8739_v8 }
 0x146   : > { %7050 = vmatprep.subr.bf16.mxu0 %v7049_v9  ;;  %v6676_v9 = vld [vmem:[%s8701_s14 + $0x558] sm:$0xff]  ;;  %v8882_v22 = vld [vmem:[#allocation3 + $0x10] sm:$0xff]  ;;  %5643 = vst.msk [vmem:[#allocation3 + $0x60] sm:$0xff] %vm794_vm3, %v5567_v59  ;;  %3265 = vst.msk [vmem:[#allocation3 + $0x78] sm:$0xff] %vm794_vm3, %v8823_v55  ;;  %1245 = vmatprep.mubr.f32.mxu1 %v9914_v36 }
 0x147   : > { %2067 = vst.msk [vmem:[#allocation3 + $0xc0] sm:$0xff] %vm794_vm3, %v6676_v9  ;;  %2753 = vst.msk [vmem:[#allocation3 + $0x10] sm:$0xff] %vm794_vm3, %v6706_v23  ;;  %v8943_v13 = vld [vmem:[#allocation3 + $0x70] sm:$0xff] }
 0x148   : > { %v4459_v59 = vld [vmem:[%s8701_s14 + $0x190] sm:$0xff] }
 0x149   : > { %7052 = vmatpush1.bf16.msra.mxu0 %v7051_v14  ;;  %v8867_v14 = vld [vmem:[#allocation3 + $0xd8] sm:$0xff]  ;;  %6586 = vmatmul.mubr.msk.f32.gmra.mrb[2].mxu1 %vm794_vm3, %v8797_v46 }
 0x14a   : > { %7054 = vmatprep.subr.bf16.mxu0 %v7053_v15  ;;  %v6679_v15 = vld [vmem:[%s8701_s14 + $0x598] sm:$0xff]  ;;  %v8919_v61 = vld [vmem:[#allocation3 + $0x68] sm:$0xff]  ;;  %1251 = vmatprep.mubr.f32.mxu1 %v9914_v36 }
 0x14b   : > { %2070 = vst.msk [vmem:[#allocation3 + $0xd8] sm:$0xff] %vm794_vm3, %v6679_v15  ;;  %2764 = vst.msk [vmem:[#allocation3 + $0x68] sm:$0xff] %vm794_vm3, %v6717_v1  ;;  %v6718_v15 = vld [vmem:[%s8701_s14 + $0x2de] sm:$0xff] }
 0x14c   : > { %3263 = vst.msk [vmem:[#allocation3 + $0x68] sm:$0xff] %vm794_vm3, %v8800_v47  ;;  %2765 = vst.msk [vmem:[#allocation3 + $0x70] sm:$0xff] %vm794_vm3, %v6718_v15  ;;  %v4458_v47 = vld [vmem:[%s8701_s14 + $0x188] sm:$0xff] }
 0x14d   : > { %7056 = vmatpush1.bf16.msra.mxu0 %v7055_v18  ;;  %v8875_v18 = vld [vmem:[#allocation3 + $0x8] sm:$0xff]  ;;  %3778 = vst.msk [vmem:[#allocation3 + $0x68] sm:$0xff] %vm794_vm3, %v6862_v3  ;;  %3264 = vst.msk [vmem:[#allocation3 + $0x70] sm:$0xff] %vm794_vm3, %v8812_v51  ;;  %v5570_v51 = vld [vmem:[%s8701_s14 + $0x1b4] sm:$0xff]  ;;  %6587 = vmatmul.mubr.msk.f32.gmra.mrb[4].mxu1 %vm794_vm3, %v8809_v50 }
 0x14e   : > { %7058 = vmatprep.subr.bf16.mxu0 %v7057_v21  ;;  %2752 = vst.msk [vmem:[#allocation3 + $0x8] sm:$0xff] %vm794_vm3, %v6705_v19  ;;  %v8880_v21 = vld [vmem:[#allocation3] sm:$0xff]  ;;  %v8898_v37 = vld [vmem:[#allocation3 + $0x10] sm:$0xff]  ;;  %4533 = vst.msk [vmem:[#allocation3 + $0x68] sm:$0xff] %vm794_vm3, %v4457_v4  ;;  %1257 = vmatprep.mubr.f32.mxu1 %v9914_v36 }
 0x14f   : > { %3250 = vst.msk [vmem:[#allocation3] sm:$0xff] %vm794_vm3, %v6776_v20  ;;  %3252 = vst.msk [vmem:[#allocation3 + $0x10] sm:$0xff] %vm794_vm3, %v6778_v34  ;;  %v8950_v20 = vld [vmem:[%s9900_s2 + $0x30] sm:$0xff]  ;;  %v8996_v30 = vld [vmem:[#allocation3 + $0xc0] sm:$0xff] }
 0x150   : > { %3779 = vst.msk [vmem:[#allocation3 + $0x70] sm:$0xff] %vm794_vm3, %v6863_v17  ;;  %v1418_v17 = vcombine.high %v8950_v20, %v8950_v20 }
 0x151   : > { %7060 = vmatpush1.bf16.msra.mxu0 %v7059_v24  ;;  %v806_v24 = vlaneseq  ;;  %4534 = vst.msk [vmem:[#allocation3 + $0x70] sm:$0xff] %vm794_vm3, %v4458_v47  ;;  %6588 = vmatmul.mubr.msk.f32.gmra.mrb[6].mxu1 %vm794_vm3, %v8820_v54 }
 0x152   : > { %6590 = vmatprep.subr.msk.mxu0 %vm830_vm2, %v1280_v26  ;;  %v6777_v26 = vld [vmem:[%s8701_s14 + $0x16a] sm:$0xff]  ;;  %5082 = vst.msk [vmem:[#allocation3 + $0x70] sm:$0xff] %vm794_vm3, %v6778_v34  ;;  %v9021_v50 = vld [vmem:[#allocation3 + $0xd8] sm:$0xff] }
 0x153   : > { %v807_v32 = vshrl.u32 %v806_v24, 7  ;;  %5081 = vst.msk [vmem:[#allocation3 + $0x68] sm:$0xff] %vm794_vm3, %v6777_v26 }
 0x154   : > { %5644 = vst.msk [vmem:[#allocation3 + $0x68] sm:$0xff] %vm794_vm3, %v5568_v11 }
 0x155   : > { %v8888_v27 = vld [vmem:[#allocation3 + $0x8] sm:$0xff]  ;;  %v8905_v42 = vsub.s32 0, %v807_v32  ;;  %v8915_v57 = vsub.s32 1, %v807_v32 }
 0x156   : > { %3251 = vst.msk [vmem:[#allocation3 + $0x8] sm:$0xff] %vm794_vm3, %v6777_v26  ;;  %v5569_v26 = vld [vmem:[%s8701_s14 + $0x1ac] sm:$0xff] }
 0x157   : > { %v8932_v6 = vrot.slane %v804_v53, %v8905_v42  ;;  %v8938_v9 = vrot.slane %v804_v53, %v8915_v57  ;;  %v6864_v53 = vld [vmem:[%s8701_s14 + $0x2fe] sm:$0xff]  ;;  %5645 = vst.msk [vmem:[#allocation3 + $0x70] sm:$0xff] %vm794_vm3, %v5569_v26 }
 0x158   : > { %3780 = vst.msk [vmem:[#allocation3 + $0x78] sm:$0xff] %vm794_vm3, %v6864_v53 }
 0x159   : > { %4535 = vst.msk [vmem:[#allocation3 + $0x78] sm:$0xff] %vm794_vm3, %v4459_v59 }
 0x15a   : > { %5083 = vst.msk [vmem:[#allocation3 + $0x78] sm:$0xff] %vm794_vm3, %v8908_v49  ;;  %v6729_v49 = vld [vmem:[%s8701_s14 + $0x3fe] sm:$0xff] }
 0x15b   : > { %5646 = vst.msk [vmem:[#allocation3 + $0x78] sm:$0xff] %vm794_vm3, %v5570_v51 }
 0x1e7   : > { %v901_v19 = vpop.f32.mrb[0].mxu0 }
 0x1e8   : > { %v902_v23 = vadd.f32 %v901_v19, %v8932_v6  ;;  %v903_v24 = vpop.f32.mrb[1].mxu0 }
 0x1e9   : > { %v904_v32 = vadd.f32 %v903_v24, %v8938_v9 }
 0x1ea   : > { %v924_v4 = vmax.f32 %v902_v23, 0.0 }
 0x1eb   : > { %v925_v1 = vmax.f32 %v904_v32, 0.0  ;;  %v907_v3 = vpop.f32.mrb[2].mxu0  ;;  %v6728_v32 = vld [vmem:[%s8701_s14 + $0x3f6] sm:$0xff] }
 0x1ec   : > { %v908_v11 = vadd.f32 %v907_v3, %v8932_v6  ;;  %v909_v15 = vpop.f32.mrb[3].mxu0  ;;  %2775 = vst.msk [vmem:[#allocation3 + $0xc0] sm:$0xff] %vm794_vm3, %v6728_v32  ;;  %v6730_v3 = vld [vmem:[%s8701_s14 + $0x42e] sm:$0xff] }
 0x1ed   : > { %v910_v34 = vadd.f32 %v909_v15, %v8938_v9  ;;  %1060 = vmatprep.mubr.f32.mxu0 %v925_v1  ;;  %v9011_v1 = vld [vmem:[#allocation3 + $0xd0] sm:$0xff] }
 0x1ee   : > { %1061 = vmatmul.mubr.f32.vlgmr.msra.gmra.mrb[8].mxu0 %v924_v4  ;;  %v926_v47 = vmax.f32 %v908_v11, 0.0  ;;  %2777 = vst.msk [vmem:[#allocation3 + $0xd0] sm:$0xff] %vm794_vm3, %v6730_v3  ;;  %v6850_v3 = vld [vmem:[%s8701_s14 + $0x176] sm:$0xff] }
 0x1ef   : > { %v927_v19 = vmax.f32 %v910_v34, 0.0  ;;  %6591 = vmatpush1.msk.msra.mxu0 %vm830_vm2, %v8749_v25  ;;  %v913_v55 = vpop.f32.mrb[4].mxu0  ;;  %v9002_v25 = vld [vmem:[#allocation3 + $0xc8] sm:$0xff]  ;;  %v2535_v34 = vld [vmem:[#allocation6 + $0x240] sm:$0xff] }
 0x1f0   : > { %v914_v23 = vadd.f32 %v913_v55, %v8932_v6  ;;  %v915_v24 = vpop.f32.mrb[5].mxu0  ;;  %6597 = vmatprep.subr.msk.mxu0 %vm830_vm2, %v1418_v17  ;;  %2776 = vst.msk [vmem:[#allocation3 + $0xc8] sm:$0xff] %vm794_vm3, %v6729_v49  ;;  %v2540_v55 = vld [vmem:[#allocation6 + $0x268] sm:$0xff]  ;;  %v9136_v49 = vld [vmem:[#allocation3] sm:$0xff] }
 0x1f1   : > { %v916_v8 = vadd.f32 %v915_v24, %v8938_v9  ;;  %1066 = vmatprep.mubr.f32.mxu0 %v927_v19  ;;  %v2537_v19 = vld [vmem:[#allocation6 + $0x250] sm:$0xff] }
 0x1f2   : > { %1067 = vmatmul.mubr.f32.gmra.mrb[10].mxu0 %v926_v47  ;;  %v928_v44 = vmax.f32 %v914_v23, 0.0  ;;  %v2542_v47 = vld [vmem:[#allocation6 + $0x278] sm:$0xff]  ;;  %v7071_v23 = vpack.c.bf16 %v2537_v19, %v2535_v34  ;;  %v4447_v19 = vld [vmem:[%s8701_s14 + $0x40] sm:$0xff] }
 0x1f3   : > { %v929_v26 = vmax.f32 %v916_v8, 0.0  ;;  %v919_v43 = vpop.f32.mrb[6].mxu0  ;;  %v7073_v24 = vpack.c.bf16 %v2542_v47, %v2540_v55  ;;  %v2541_v8 = vld [vmem:[#allocation6 + $0x270] sm:$0xff]  ;;  %v2560_v47 = vld [vmem:[#allocation6 + $0x308] sm:$0xff] }
 0x1f4   : > { %v920_v53 = vadd.f32 %v919_v43, %v8932_v6  ;;  %v921_v59 = vpop.f32.mrb[7].mxu0  ;;  %v6631_v6 = vld [vmem:[%s9900_s2 + $0x8] sm:$0xff]  ;;  %v2546_v43 = vld [vmem:[#allocation6 + $0x298] sm:$0xff] }
 0x1f5   : > { %v922_v46 = vadd.f32 %v921_v59, %v8938_v9  ;;  %1072 = vmatprep.mubr.f32.mxu0 %v929_v26  ;;  %v6731_v9 = vld [vmem:[%s8701_s14 + $0x436] sm:$0xff]  ;;  %v1611_v11 = vcombine.high %v6631_v6, %v6631_v6  ;;  %v6849_v26 = vld [vmem:[%s8701_s14 + $0x16e] sm:$0xff] }
 0x1f6   : > { %1073 = vmatmul.mubr.f32.gmra.mrb[12].mxu0 %v928_v44  ;;  %v930_v4 = vmax.f32 %v920_v53, 0.0  ;;  %2778 = vst.msk [vmem:[#allocation3 + $0xd8] sm:$0xff] %vm794_vm3, %v6731_v9  ;;  %3765 = vst.msk [vmem:[#allocation3] sm:$0xff] %vm794_vm3, %v6849_v26  ;;  %v2543_v44 = vld [vmem:[#allocation6 + $0x280] sm:$0xff]  ;;  %v2545_v53 = vld [vmem:[#allocation6 + $0x290] sm:$0xff] }
 0x1f7   : > { %v931_v51 = vmax.f32 %v922_v46, 0.0  ;;  %v9144_v59 = vld [vmem:[#allocation3 + $0x8] sm:$0xff]  ;;  %v7079_v46 = vpack.c.bf16 %v2545_v53, %v2543_v44  ;;  %v2549_v9 = vld [vmem:[#allocation6 + $0x2b0] sm:$0xff] }
 0x1f8   : > { %3766 = vst.msk [vmem:[#allocation3 + $0x8] sm:$0xff] %vm794_vm3, %v6850_v3  ;;  %v2564_v53 = vld [vmem:[#allocation6 + $0x328] sm:$0xff]  ;;  %v2563_v3 = vld [vmem:[#allocation6 + $0x320] sm:$0xff] }
 0x1f9   : > { %1078 = vmatprep.mubr.f32.mxu0 %v931_v51  ;;  %v2550_v51 = vld [vmem:[#allocation6 + $0x2b8] sm:$0xff] }
 0x1fa   : > { %1079 = vmatmul.mubr.f32.gmra.mrb[14].mxu0 %v930_v4  ;;  %v2547_v4 = vld [vmem:[#allocation6 + $0x2a0] sm:$0xff] }
 0x1fb   : > { %1361 = vmatprep.mubr.f32.mxu0 %v9914_v36 }
 0x1fe   : > { %6592 = vmatmul.mubr.msk.f32.vlgmr.msra.gmra.mrb[16].mxu0 %vm794_vm3, %v8758_v29  ;;  %v6638_v29 = vld [vmem:[%s9900_s2 + $0x20] sm:$0xff] }
 0x1ff   : > { %6598 = vmatpush1.msk.msra.mxu0 %vm830_vm2, %v8950_v20  ;;  %1367 = vmatprep.mubr.f32.mxu0 %v9914_v36  ;;  %v1748_v54 = vcombine.high %v6638_v29, %v6638_v29  ;;  %v2536_v20 = vld [vmem:[#allocation6 + $0x248] sm:$0xff] }
 0x200   : > { %6632 = vmatprep.subr.msk.mxu0 %vm830_vm2, %v1611_v11  ;;  %v9150_v11 = vld [vmem:[#allocation3 + $0x10] sm:$0xff] }
 0x202   : > { %6593 = vmatmul.mubr.msk.f32.gmra.mrb[18].mxu0 %vm794_vm3, %v8764_v31  ;;  %v6645_v31 = vld [vmem:[%s9900_s2 + $0x38] sm:$0xff] }
 0x203   : > { %1373 = vmatprep.mubr.f32.mxu0 %v9914_v36 }
 0x206   : > { %6594 = vmatmul.mubr.msk.f32.gmra.mrb[20].mxu0 %vm794_vm3, %v8770_v33  ;;  %v1885_v33 = vcombine.high %v6645_v31, %v6645_v31 }
 0x207   : > { %1379 = vmatprep.mubr.f32.mxu0 %v9914_v36 }
 0x20a   : > { %6595 = vmatmul.mubr.msk.f32.gmra.mrb[22].mxu0 %vm794_vm3, %v8776_v39  ;;  %v6680_v39 = vld [vmem:[%s9900_s2 + $0x10] sm:$0xff] }
 0x20b   : > { %1499 = vmatprep.mubr.f32.mxu0 %v9914_v36 }
 0x20e   : > { %6599 = vmatmul.mubr.msk.f32.vlgmr.msra.gmra.mrb[16].mxu0 %vm794_vm3, %v8782_v40  ;;  %v2078_v40 = vcombine.high %v6680_v39, %v6680_v39 }
 0x20f   : > { %6633 = vmatpush1.msk.msra.mxu0 %vm830_vm2, %v6631_v6  ;;  %1505 = vmatprep.mubr.f32.mxu0 %v9914_v36 }
 0x210   : > { %6639 = vmatprep.subr.msk.mxu0 %vm830_vm2, %v1748_v54  ;;  %v4444_v54 = vld [vmem:[%s8701_s14] sm:$0xff] }
 0x212   : > { %6600 = vmatmul.mubr.msk.f32.gmra.mrb[18].mxu0 %vm794_vm3, %v8787_v41  ;;  %v6687_v41 = vld [vmem:[%s9900_s2 + $0x28] sm:$0xff] }
 0x213   : > { %1511 = vmatprep.mubr.f32.mxu0 %v9914_v36 }
 0x216   : > { %6601 = vmatmul.mubr.msk.f32.gmra.mrb[20].mxu0 %vm794_vm3, %v8795_v45  ;;  %v2215_v45 = vcombine.high %v6687_v41, %v6687_v41 }
 0x217   : > { %1517 = vmatprep.mubr.f32.mxu0 %v9914_v36 }
 0x21a   : > { %6602 = vmatmul.mubr.msk.f32.gmra.mrb[22].mxu0 %vm794_vm3, %v8803_v48  ;;  %v6694_v48 = vld [vmem:[%s9900_s2 + $0x40] sm:$0xff] }
 0x21b   : > { %1692 = vmatprep.mubr.f32.mxu0 %v9914_v36 }
 0x21e   : > { %6634 = vmatmul.mubr.msk.f32.vlgmr.msra.gmra.mrb[16].mxu0 %vm794_vm3, %v8814_v52  ;;  %v2352_v52 = vcombine.high %v6694_v48, %v6694_v48 }
 0x21f   : > { %6640 = vmatpush1.msk.msra.mxu0 %vm830_vm2, %v6638_v29  ;;  %1698 = vmatprep.mubr.f32.mxu0 %v9914_v36  ;;  %v6851_v29 = vld [vmem:[%s8701_s14 + $0x1a6] sm:$0xff] }
 0x220   : > { %6646 = vmatprep.subr.msk.mxu0 %vm830_vm2, %v1885_v33  ;;  %3767 = vst.msk [vmem:[#allocation3 + $0x10] sm:$0xff] %vm794_vm3, %v6851_v29  ;;  %v2552_v33 = vld [vmem:[#allocation6 + $0x2c8] sm:$0xff]  ;;  %v4995_v29 = vld [vmem:[%s8701_s14 + $0x52] sm:$0xff] }
 0x222   : > { %6635 = vmatmul.mubr.msk.f32.gmra.mrb[18].mxu0 %vm794_vm3, %v8825_v56  ;;  %v2528_v56 = vld [vmem:[#allocation6 + $0x208] sm:$0xff] }
 0x223   : > { %1704 = vmatprep.mubr.f32.mxu0 %v9914_v36 }
 0x226   : > { %6636 = vmatmul.mubr.msk.f32.gmra.mrb[20].mxu0 %vm794_vm3, %v8831_v58  ;;  %v2530_v58 = vld [vmem:[#allocation6 + $0x218] sm:$0xff] }
 0x227   : > { %1710 = vmatprep.mubr.f32.mxu0 %v9914_v36  ;;  %v9187_v34 = vld [vmem:[#allocation3 + $0x10] sm:$0xff] }
 0x22a   : > { %6637 = vmatmul.mubr.msk.f32.gmra.mrb[22].mxu0 %vm794_vm3, %v8835_v60  ;;  %v2527_v60 = vld [vmem:[#allocation6 + $0x200] sm:$0xff] }
 0x22b   : > { %1829 = vmatprep.mubr.f32.mxu0 %v9914_v36 }
 0x22e   : > { %6641 = vmatmul.mubr.msk.f32.vlgmr.msra.gmra.mrb[16].mxu0 %vm794_vm3, %v8839_v62  ;;  %v7061_v62 = vpack.c.bf16 %v2530_v58, %v2528_v56  ;;  %v4445_v56 = vld [vmem:[%s8701_s14 + $0x8] sm:$0xff]  ;;  %v4446_v58 = vld [vmem:[%s8701_s14 + $0x38] sm:$0xff] }
 0x22f   : > { %6647 = vmatpush1.msk.msra.mxu0 %vm830_vm2, %v6645_v31  ;;  %1835 = vmatprep.mubr.f32.mxu0 %v9914_v36  ;;  %v7083_v31 = vpack.c.bf16 %v2549_v9, %v2547_v4  ;;  %4522 = vst.msk [vmem:[#allocation3 + $0x10] sm:$0xff] %vm794_vm3, %v4446_v58  ;;  %v6887_v9 = vld [vmem:[%s8701_s14 + $0x596] sm:$0xff] }
 0x230   : > { %6681 = vmatprep.subr.msk.mxu0 %vm830_vm2, %v2078_v40  ;;  %7062 = vmatprep.subr.bf16.mxu1 %v7061_v62  ;;  %v2551_v40 = vld [vmem:[#allocation6 + $0x2c0] sm:$0xff]  ;;  %v2556_v62 = vld [vmem:[#allocation6 + $0x2e8] sm:$0xff] }
 0x232   : > { %6642 = vmatmul.mubr.msk.f32.gmra.mrb[18].mxu0 %vm794_vm3, %v8843_v0  ;;  %v2529_v0 = vld [vmem:[#allocation6 + $0x210] sm:$0xff] }
 0x233   : > { %1841 = vmatprep.mubr.f32.mxu0 %v9914_v36 }
 0x236   : > { %6643 = vmatmul.mubr.msk.f32.gmra.mrb[20].mxu0 %vm794_vm3, %v8847_v2  ;;  %v2532_v2 = vld [vmem:[#allocation6 + $0x228] sm:$0xff] }
 0x237   : > { %1847 = vmatprep.mubr.f32.mxu0 %v9914_v36 }
 0x23a   : > { %6644 = vmatmul.mubr.msk.f32.gmra.mrb[22].mxu0 %vm794_vm3, %v8851_v5  ;;  %v2534_v5 = vld [vmem:[#allocation6 + $0x238] sm:$0xff] }
 0x23b   : > { %1966 = vmatprep.mubr.f32.mxu0 %v9914_v36 }
 0x23e   : > { %6648 = vmatmul.mubr.msk.f32.vlgmr.msra.gmra.mrb[16].mxu0 %vm794_vm3, %v8855_v7  ;;  %v7063_v7 = vpack.c.bf16 %v2529_v0, %v2527_v60  ;;  %v2558_v0 = vld [vmem:[#allocation6 + $0x2f8] sm:$0xff] }
 0x23f   : > { %6682 = vmatpush1.msk.msra.mxu0 %vm830_vm2, %v6680_v39  ;;  %1972 = vmatprep.mubr.f32.mxu0 %v9914_v36  ;;  %v2554_v39 = vld [vmem:[#allocation6 + $0x2d8] sm:$0xff] }
 0x240   : > { %6688 = vmatprep.subr.msk.mxu0 %vm830_vm2, %v2215_v45  ;;  %7064 = vmatpush1.bf16.msra.mxu1 %v7063_v7  ;;  %v7085_v45 = vpack.c.bf16 %v2554_v39, %v2552_v33  ;;  %v7089_v7 = vpack.c.bf16 %v2558_v0, %v2556_v62  ;;  %v2568_v33 = vld [vmem:[#allocation6 + $0x348] sm:$0xff]  ;;  %v9226_v39 = vld [vmem:[#allocation3 + $0x10] sm:$0xff]  ;;  %v6888_v62 = vld [vmem:[%s8701_s14 + $0x59e] sm:$0xff] }
 0x241   : > { %v4483_v0 = vld [vmem:[%s8701_s14 + $0x430] sm:$0xff] }
 0x242   : > { %6649 = vmatmul.mubr.msk.f32.gmra.mrb[18].mxu0 %vm794_vm3, %v8859_v10  ;;  %v7065_v10 = vpack.c.bf16 %v2534_v5, %v2532_v2  ;;  %v2557_v2 = vld [vmem:[#allocation6 + $0x2f0] sm:$0xff]  ;;  %v9169_v5 = vld [vmem:[#allocation3 + $0x8] sm:$0xff] }
 0x243   : > { %1978 = vmatprep.mubr.f32.mxu0 %v9914_v36  ;;  %4521 = vst.msk [vmem:[#allocation3 + $0x8] sm:$0xff] %vm794_vm3, %v4445_v56  ;;  %v6743_v56 = vld [vmem:[%s8701_s14 + $0x586] sm:$0xff] }
 0x244   : > { %7066 = vmatprep.subr.bf16.mxu1 %v7065_v10  ;;  %v9174_v10 = vld [vmem:[%s9902_s4 + $0x18] sm:$0xff]  ;;  %2790 = vst.msk [vmem:[#allocation3 + $0x138] sm:$0xff] %vm794_vm3, %v6743_v56  ;;  %v2585_v56 = vld [vmem:[#allocation6 + $0x3d0] sm:$0xff] }
 0x246   : > { %6650 = vmatmul.mubr.msk.f32.gmra.mrb[20].mxu0 %vm794_vm3, %v8863_v12  ;;  %v2531_v12 = vld [vmem:[#allocation6 + $0x220] sm:$0xff] }
 0x247   : > { %1984 = vmatprep.mubr.f32.mxu0 %v9914_v36 }
 0x24a   : > { %6651 = vmatmul.mubr.msk.f32.gmra.mrb[22].mxu0 %vm794_vm3, %v8867_v14  ;;  %v2533_v14 = vld [vmem:[#allocation6 + $0x230] sm:$0xff]  ;;  %v4597_v4 = vld [vmem:[#allocation3 + $0x8] sm:$0xff] }
 0x24b   : > { %2159 = vmatprep.mubr.f32.mxu0 %v9914_v36  ;;  %v7067_v15 = vpack.c.bf16 %v2533_v14, %v2531_v12  ;;  %v6740_v12 = vld [vmem:[%s8701_s14 + $0x546] sm:$0xff]  ;;  %v4992_v14 = vld [vmem:[%s8701_s14 + $0x12] sm:$0xff] }
 0x24c   : > { %2787 = vst.msk [vmem:[#allocation3 + $0x120] sm:$0xff] %vm794_vm3, %v6740_v12 }
 0x24d   : > { %7068 = vmatpush1.bf16.msra.mxu1 %v7067_v15  ;;  %v6885_v15 = vld [vmem:[%s8701_s14 + $0x55e] sm:$0xff] }
 0x24e   : > { %6683 = vmatmul.mubr.msk.f32.vlgmr.msra.gmra.mrb[16].mxu0 %vm794_vm3, %v8871_v16  ;;  %v2538_v16 = vld [vmem:[#allocation6 + $0x258] sm:$0xff] }
 0x24f   : > { %6689 = vmatpush1.msk.msra.mxu0 %vm830_vm2, %v6687_v41  ;;  %2165 = vmatprep.mubr.f32.mxu0 %v9914_v36  ;;  %v7069_v17 = vpack.c.bf16 %v2538_v16, %v2536_v20  ;;  %v9156_v41 = vld [vmem:[#allocation3] sm:$0xff]  ;;  %v4724_v20 = vcombine.high %v9174_v10, %v9174_v10  ;;  %v6812_v16 = vld [vmem:[%s8701_s14 + $0x552] sm:$0xff] }
 0x250   : > { %6695 = vmatprep.subr.msk.mxu0 %vm830_vm2, %v2352_v52  ;;  %v6852_v52 = vld [vmem:[%s8701_s14 + $0x1ae] sm:$0xff]  ;;  %4520 = vst.msk [vmem:[#allocation3] sm:$0xff] %vm794_vm3, %v4444_v54  ;;  %3286 = vst.msk [vmem:[#allocation3 + $0x120] sm:$0xff] %vm794_vm3, %v6812_v16  ;;  %v9220_v54 = vld [vmem:[%s8701_s14 + $0x402] sm:$0xff] }
 0x251   : > { %7070 = vmatprep.subr.bf16.mxu1 %v7069_v17  ;;  %v4480_v17 = vld [vmem:[%s8701_s14 + $0x3f0] sm:$0xff]  ;;  %3801 = vst.msk [vmem:[#allocation3 + $0x120] sm:$0xff] %vm794_vm3, %v6885_v15 }
 0x252   : > { %6684 = vmatmul.mubr.msk.f32.gmra.mrb[18].mxu0 %vm794_vm3, %v8875_v18  ;;  %v2539_v18 = vld [vmem:[#allocation6 + $0x260] sm:$0xff]  ;;  %7072 = vmatpush1.bf16.msra.mxu1 %v7071_v23  ;;  %4556 = vst.msk [vmem:[#allocation3 + $0x120] sm:$0xff] %vm794_vm3, %v4480_v17  ;;  %v2573_v16 = vld [vmem:[#allocation6 + $0x370] sm:$0xff] }
 0x253   : > { %2171 = vmatprep.mubr.f32.mxu0 %v9914_v36  ;;  %v7075_v32 = vpack.c.bf16 %v2541_v8, %v2539_v18  ;;  %7074 = vmatprep.subr.bf16.mxu1 %v7073_v24  ;;  %v2559_v23 = vld [vmem:[#allocation6 + $0x300] sm:$0xff]  ;;  %v2561_v24 = vld [vmem:[#allocation6 + $0x310] sm:$0xff] }
 0x254   : > { %v4993_v18 = vld [vmem:[%s8701_s14 + $0x1a] sm:$0xff]  ;;  %v7095_v44 = vpack.c.bf16 %v2561_v24, %v2559_v23  ;;  %v4517_v24 = vld [vmem:[%s8701_s14 + $0x7e8] sm:$0xff] }
 0x255   : > { %5069 = vst.msk [vmem:[#allocation3 + $0x8] sm:$0xff] %vm794_vm3, %v4993_v18  ;;  %v2578_v23 = vld [vmem:[#allocation6 + $0x398] sm:$0xff]  ;;  %4593 = vst.msk [vmem:[#allocation3 + $0x248] sm:$0xff] %vm794_vm3, %v4517_v24 }
 0x256   : > { %6685 = vmatmul.mubr.msk.f32.gmra.mrb[20].mxu0 %vm794_vm3, %v8882_v22  ;;  %7076 = vmatpush1.bf16.msra.mxu1 %v7075_v32  ;;  %v4600_v22 = vld [vmem:[%s9902_s4] sm:$0xff]  ;;  %v6741_v32 = vld [vmem:[%s8701_s14 + $0x54e] sm:$0xff] }
 0x257   : > { %2177 = vmatprep.mubr.f32.mxu0 %v9914_v36  ;;  %v4596_v26 = vld [vmem:[#allocation3] sm:$0xff]  ;;  %2788 = vst.msk [vmem:[#allocation3 + $0x128] sm:$0xff] %vm794_vm3, %v6741_v32  ;;  %v5067_v24 = vld [vmem:[%s8701_s14 + $0x832] sm:$0xff] }
 0x258   : > { %5068 = vst.msk [vmem:[#allocation3] sm:$0xff] %vm794_vm3, %v4992_v14  ;;  %v2574_v14 = vld [vmem:[#allocation6 + $0x378] sm:$0xff]  ;;  %v9269_v32 = vld [vmem:[%s8701_s14 + $0x442] sm:$0xff] }
 0x25a   : > { %6686 = vmatmul.mubr.msk.f32.gmra.mrb[22].mxu0 %vm794_vm3, %v8890_v28  ;;  %v4602_v28 = vcombine.high %v4600_v22, %v4600_v22 }
 0x25b   : > { %2296 = vmatprep.mubr.f32.mxu0 %v9914_v36 }
 0x25e   : > { %6690 = vmatmul.mubr.msk.f32.vlgmr.msra.gmra.mrb[16].mxu0 %vm794_vm3, %v8896_v35  ;;  %v2544_v35 = vld [vmem:[#allocation6 + $0x288] sm:$0xff] }
 0x25f   : > { %6696 = vmatpush1.msk.msra.mxu0 %vm830_vm2, %v6694_v48  ;;  %2302 = vmatprep.mubr.f32.mxu0 %v9914_v36  ;;  %v9158_v48 = vld [vmem:[#allocation3 + $0x18] sm:$0xff] }
 0x260   : > { %6924 = vmatprep.subr.msk.mxu0 %vm830_vm2, %v4602_v28  ;;  %3768 = vst.msk [vmem:[#allocation3 + $0x18] sm:$0xff] %vm794_vm3, %v6852_v52  ;;  %v6886_v28 = vld [vmem:[%s8701_s14 + $0x566] sm:$0xff] }
 0x261   : > { %v9231_v52 = vld [vmem:[#allocation3 + $0x120] sm:$0xff] }
 0x262   : > { %6691 = vmatmul.mubr.msk.f32.gmra.mrb[18].mxu0 %vm794_vm3, %v8919_v61  ;;  %v7077_v61 = vpack.c.bf16 %v2546_v43, %v2544_v35  ;;  %v4481_v43 = vld [vmem:[%s8701_s14 + $0x3f8] sm:$0xff]  ;;  %5104 = vst.msk [vmem:[#allocation3 + $0x120] sm:$0xff] %vm794_vm3, %v9220_v54 }
 0x263   : > { %2308 = vmatprep.mubr.f32.mxu0 %v9914_v36 }
 0x264   : > { %7078 = vmatprep.subr.bf16.mxu1 %v7077_v61  ;;  %v4994_v61 = vld [vmem:[%s8701_s14 + $0x4a] sm:$0xff] }
 0x265   : > { %7080 = vmatpush1.bf16.msra.mxu1 %v7079_v46  ;;  %v2566_v46 = vld [vmem:[#allocation6 + $0x338] sm:$0xff]  ;;  %5070 = vst.msk [vmem:[#allocation3 + $0x10] sm:$0xff] %vm794_vm3, %v4994_v61 }
 0x266   : > { %6692 = vmatmul.mubr.msk.f32.gmra.mrb[20].mxu0 %vm794_vm3, %v8943_v13  ;;  %v2548_v13 = vld [vmem:[#allocation6 + $0x2a8] sm:$0xff]  ;;  %v2582_v61 = vld [vmem:[#allocation6 + $0x3b8] sm:$0xff] }
 0x267   : > { %2314 = vmatprep.mubr.f32.mxu0 %v9914_v36  ;;  %v7081_v6 = vpack.c.bf16 %v2550_v51, %v2548_v13  ;;  %v9200_v35 = vld [vmem:[#allocation3 + $0x18] sm:$0xff]  ;;  %v2565_v13 = vld [vmem:[#allocation6 + $0x330] sm:$0xff] }
 0x268   : > { %4523 = vst.msk [vmem:[#allocation3 + $0x18] sm:$0xff] %vm794_vm3, %v4447_v19  ;;  %v6742_v51 = vld [vmem:[%s8701_s14 + $0x57e] sm:$0xff]  ;;  %v6937_v19 = vld [vmem:[%s9902_s4 + $0x30] sm:$0xff] }
 0x269   : > { %7082 = vmatprep.subr.bf16.mxu1 %v7081_v6  ;;  %2789 = vst.msk [vmem:[#allocation3 + $0x130] sm:$0xff] %vm794_vm3, %v6742_v51  ;;  %v6814_v6 = vld [vmem:[%s8701_s14 + $0x58a] sm:$0xff] }
 0x26a   : > { %6693 = vmatmul.mubr.msk.f32.gmra.mrb[22].mxu0 %vm794_vm3, %v8965_v38  ;;  %v2553_v38 = vld [vmem:[#allocation6 + $0x2d0] sm:$0xff]  ;;  %7084 = vmatpush1.bf16.msra.mxu1 %v7083_v31  ;;  %3288 = vst.msk [vmem:[#allocation3 + $0x130] sm:$0xff] %vm794_vm3, %v6814_v6  ;;  %v4482_v31 = vld [vmem:[%s8701_s14 + $0x428] sm:$0xff] }
 0x26b   : > { %2433 = vmatprep.mubr.f32.mxu0 %v9914_v36  ;;  %v7087_v60 = vpack.c.bf16 %v2553_v38, %v2551_v40  ;;  %7086 = vmatprep.subr.bf16.mxu1 %v7085_v45  ;;  %v7099_v40 = vpack.c.bf16 %v2565_v13, %v2563_v3  ;;  %3803 = vst.msk [vmem:[#allocation3 + $0x130] sm:$0xff] %vm794_vm3, %v6887_v9  ;;  %v2570_v38 = vld [vmem:[#allocation6 + $0x358] sm:$0xff]  ;;  %v2567_v45 = vld [vmem:[#allocation6 + $0x340] sm:$0xff]  ;;  %v2581_v6 = vld [vmem:[#allocation6 + $0x3b0] sm:$0xff] }
 0x26c   : > { %4558 = vst.msk [vmem:[#allocation3 + $0x130] sm:$0xff] %vm794_vm3, %v4482_v31  ;;  %v7101_v58 = vpack.c.bf16 %v2570_v38, %v2568_v33  ;;  %v5065_v3 = vld [vmem:[%s8701_s14 + $0x7fa] sm:$0xff]  ;;  %v4856_v9 = vld [vmem:[#allocation3 + $0x248] sm:$0xff] }
 0x26d   : > { %5141 = vst.msk [vmem:[#allocation3 + $0x248] sm:$0xff] %vm794_vm3, %v5065_v3  ;;  %v5066_v31 = vld [vmem:[%s8701_s14 + $0x82a] sm:$0xff]  ;;  %v2586_v38 = vld [vmem:[#allocation6 + $0x3d8] sm:$0xff] }
 0x26e   : > { %6697 = vmatmul.mubr.msk.f32.vlgmr.msra.gmra.mrb[16].mxu0 %vm794_vm3, %v8996_v30  ;;  %v2555_v30 = vld [vmem:[#allocation6 + $0x2e0] sm:$0xff]  ;;  %7088 = vmatpush1.bf16.msra.mxu1 %v7087_v60  ;;  %v6815_v60 = vld [vmem:[%s8701_s14 + $0x592] sm:$0xff] }
 0x26f   : > { %2439 = vmatprep.mubr.f32.mxu0 %v9914_v36  ;;  %6925 = vmatpush1.msk.msra.mxu0 %vm830_vm2, %v4600_v22  ;;  %v7091_v55 = vpack.c.bf16 %v2557_v2, %v2555_v30  ;;  %v6813_v22 = vld [vmem:[%s8701_s14 + $0x55a] sm:$0xff]  ;;  %v9242_v2 = vld [vmem:[%s8701_s14 + $0x40a] sm:$0xff]  ;;  %3289 = vst.msk [vmem:[#allocation3 + $0x138] sm:$0xff] %vm794_vm3, %v6815_v60 }
 0x270   : > { %7090 = vmatprep.subr.bf16.mxu1 %v7089_v7  ;;  %6931 = vmatprep.subr.msk.mxu0 %vm830_vm2, %v4724_v20  ;;  %3287 = vst.msk [vmem:[#allocation3 + $0x128] sm:$0xff] %vm794_vm3, %v6813_v22  ;;  %v4599_v30 = vld [vmem:[#allocation3 + $0x18] sm:$0xff]  ;;  %v2572_v7 = vld [vmem:[#allocation6 + $0x368] sm:$0xff]  ;;  %3804 = vst.msk [vmem:[#allocation3 + $0x138] sm:$0xff] %vm794_vm3, %v6888_v62 }
 0x271   : > { %3802 = vst.msk [vmem:[#allocation3 + $0x128] sm:$0xff] %vm794_vm3, %v6886_v28  ;;  %5071 = vst.msk [vmem:[#allocation3 + $0x18] sm:$0xff] %vm794_vm3, %v4995_v29  ;;  %v2571_v20 = vld [vmem:[#allocation6 + $0x360] sm:$0xff]  ;;  %v7105_v17 = vpack.c.bf16 %v2574_v14, %v2572_v7  ;;  %v2588_v7 = vld [vmem:[#allocation6 + $0x3e8] sm:$0xff] }
 0x272   : > { %6698 = vmatmul.mubr.msk.f32.gmra.mrb[18].mxu0 %vm794_vm3, %v9002_v25  ;;  %v2562_v25 = vld [vmem:[#allocation6 + $0x318] sm:$0xff]  ;;  %7092 = vmatpush1.bf16.msra.mxu1 %v7091_v55  ;;  %4557 = vst.msk [vmem:[#allocation3 + $0x128] sm:$0xff] %vm794_vm3, %v4481_v43  ;;  %4559 = vst.msk [vmem:[#allocation3 + $0x138] sm:$0xff] %vm794_vm3, %v4483_v0  ;;  %v4516_v55 = vld [vmem:[%s8701_s14 + $0x7e0] sm:$0xff] }
 0x273   : > { %2445 = vmatprep.mubr.f32.mxu0 %v9914_v36  ;;  %v7093_v8 = vpack.c.bf16 %v2562_v25, %v2560_v47  ;;  %v9259_v47 = vld [vmem:[%s8701_s14 + $0x43a] sm:$0xff]  ;;  %v4862_v25 = vcombine.high %v6937_v19, %v6937_v19  ;;  %4592 = vst.msk [vmem:[#allocation3 + $0x240] sm:$0xff] %vm794_vm3, %v4516_v55  ;;  %v4719_v18 = vld [vmem:[#allocation3 + $0x130] sm:$0xff]  ;;  %v2580_v43 = vld [vmem:[#allocation6 + $0x3a8] sm:$0xff] }
 0x274   : > { %5106 = vst.msk [vmem:[#allocation3 + $0x130] sm:$0xff] %vm794_vm3, %v9259_v47  ;;  %v2575_v28 = vld [vmem:[#allocation6 + $0x380] sm:$0xff]  ;;  %v7113_v51 = vpack.c.bf16 %v2582_v61, %v2580_v43 }
 0x275   : > { %7094 = vmatprep.subr.bf16.mxu1 %v7093_v8  ;;  %v7107_v8 = vpack.c.bf16 %v2573_v16, %v2571_v20  ;;  %v2587_v16 = vld [vmem:[#allocation6 + $0x3e0] sm:$0xff] }
 0x276   : > { %6699 = vmatmul.mubr.msk.f32.gmra.mrb[20].mxu0 %vm794_vm3, %v9011_v1  ;;  %v7097_v1 = vpack.c.bf16 %v2566_v46, %v2564_v53  ;;  %7096 = vmatpush1.bf16.msra.mxu1 %v7095_v44  ;;  %v4518_v44 = vld [vmem:[%s8701_s14 + $0x818] sm:$0xff] }
 0x277   : > { %2451 = vmatprep.mubr.f32.mxu0 %v9914_v36  ;;  %v5064_v53 = vld [vmem:[%s8701_s14 + $0x7f2] sm:$0xff]  ;;  %4594 = vst.msk [vmem:[#allocation3 + $0x250] sm:$0xff] %vm794_vm3, %v4518_v44  ;;  %v9355_v3 = vld [vmem:[%s8701_s14 + $0x6da] sm:$0xff] }
 0x278   : > { %7098 = vmatprep.subr.bf16.mxu1 %v7097_v1 }
 0x279   : > { %v4718_v15 = vld [vmem:[#allocation3 + $0x128] sm:$0xff]  ;;  %v4720_v46 = vld [vmem:[#allocation3 + $0x138] sm:$0xff] }
 0x27a   : > { %6700 = vmatmul.mubr.msk.f32.gmra.mrb[22].mxu0 %vm794_vm3, %v9021_v50  ;;  %v2569_v50 = vld [vmem:[#allocation6 + $0x350] sm:$0xff]  ;;  %7100 = vmatpush1.bf16.msra.mxu1 %v7099_v40  ;;  %5105 = vst.msk [vmem:[#allocation3 + $0x128] sm:$0xff] %vm794_vm3, %v9242_v2  ;;  %5107 = vst.msk [vmem:[#allocation3 + $0x138] sm:$0xff] %vm794_vm3, %v9269_v32  ;;  %v4855_v13 = vld [vmem:[#allocation3 + $0x240] sm:$0xff] }
 0x27b   : > { %4683 = vmatprep.mubr.f32.mxu0 %v9914_v36  ;;  %v7103_v12 = vpack.c.bf16 %v2569_v50, %v2567_v45  ;;  %7102 = vmatprep.subr.bf16.mxu1 %v7101_v58  ;;  %5140 = vst.msk [vmem:[#allocation3 + $0x240] sm:$0xff] %vm794_vm3, %v5064_v53  ;;  %v2584_v40 = vld [vmem:[#allocation6 + $0x3c8] sm:$0xff]  ;;  %v9305_v45 = vpop.f32.mrb[0].mxu1  ;;  %v2583_v50 = vld [vmem:[#allocation6 + $0x3c0] sm:$0xff] }
 0x27c   : > { %v9309_v60 = vpop.f32.mrb[1].mxu1  ;;  %v7119_v62 = vpack.c.bf16 %v2585_v56, %v2583_v50  ;;  %v5281_v50 = vld [vmem:[#allocation3 + $0x120] sm:$0xff]  ;;  %v5591_v56 = vld [vmem:[%s8701_s14 + $0x414] sm:$0xff] }
 0x27d   : > { %v9313_v14 = vpop.f32.mrb[2].mxu1  ;;  %5667 = vst.msk [vmem:[#allocation3 + $0x120] sm:$0xff] %vm794_vm3, %v5591_v56  ;;  %v6755_v56 = vld [vmem:[%s8701_s14 + $0x6d6] sm:$0xff] }
 0x27e   : > { %6926 = vmatmul.mubr.msk.f32.vlgmr.msra.gmra.mrb[24].mxu0 %vm794_vm3, %v4596_v26  ;;  %7104 = vmatpush1.bf16.msra.mxu1 %v7103_v12  ;;  %v2577_v26 = vld [vmem:[#allocation6 + $0x390] sm:$0xff]  ;;  %v2590_v12 = vld [vmem:[#allocation6 + $0x3f8] sm:$0xff]  ;;  %v9321_v55 = vpop.f32.mrb[3].mxu1  ;;  %2802 = vst.msk [vmem:[#allocation3 + $0x198] sm:$0xff] %vm794_vm3, %v6755_v56 }
 0x27f   : > { %4689 = vmatprep.mubr.f32.mxu0 %v9914_v36  ;;  %6932 = vmatpush1.msk.msra.mxu0 %vm830_vm2, %v9174_v10  ;;  %v2576_v10 = vld [vmem:[#allocation6 + $0x388] sm:$0xff]  ;;  %v7111_v1 = vpack.c.bf16 %v2577_v26, %v2575_v28  ;;  %v4857_v33 = vld [vmem:[#allocation3 + $0x250] sm:$0xff]  ;;  %v7121_v20 = vpack.c.bf16 %v2590_v12, %v2588_v7 }
 0x280   : > { %7106 = vmatprep.subr.bf16.mxu1 %v7105_v17  ;;  %v7109_v22 = vpack.c.bf16 %v2578_v23, %v2576_v10  ;;  %6938 = vmatprep.subr.msk.mxu0 %vm830_vm2, %v4862_v25  ;;  %5142 = vst.msk [vmem:[#allocation3 + $0x250] sm:$0xff] %vm794_vm3, %v5066_v31  ;;  %v6944_v17 = vld [vmem:[%s9902_s4 + $0x8] sm:$0xff]  ;;  %v5146_v31 = vld [vmem:[#allocation3 + $0x10] sm:$0xff] }
 0x281   : > { %v5151_v10 = vcombine.high %v6944_v17, %v6944_v17  ;;  %v5283_v7 = vld [vmem:[#allocation3 + $0x130] sm:$0xff] }
 0x282   : > { %6927 = vmatmul.mubr.msk.f32.gmra.mrb[26].mxu0 %vm794_vm3, %v4597_v4  ;;  %7108 = vmatpush1.bf16.msra.mxu1 %v7107_v8  ;;  %v2579_v4 = vld [vmem:[#allocation6 + $0x3a0] sm:$0xff]  ;;  %v9330_v8 = vpop.f32.mrb[4].mxu1  ;;  %v5593_v12 = vld [vmem:[%s8701_s14 + $0x44c] sm:$0xff] }
 0x283   : > { %4695 = vmatprep.mubr.f32.mxu0 %v9914_v36  ;;  %7110 = vmatprep.subr.bf16.mxu1 %v7109_v22  ;;  %v7115_v29 = vpack.c.bf16 %v2581_v6, %v2579_v4  ;;  %v9335_v28 = vpop.f32.mrb[5].mxu1  ;;  %v9365_v4 = vld [vmem:[%s9901_s3] sm:$0xff]  ;;  %v5145_v6 = vld [vmem:[#allocation3 + $0x8] sm:$0xff]  ;;  %5669 = vst.msk [vmem:[#allocation3 + $0x130] sm:$0xff] %vm794_vm3, %v5593_v12 }
 0x284   : > { %v9340_v43 = vpop.f32.mrb[6].mxu1  ;;  %v6979_v12 = vld [vmem:[%s9902_s4 + $0x40] sm:$0xff] }
 0x285   : > { %v9344_v44 = vpop.f32.mrb[7].mxu1 }
 0x286   : > { %6928 = vmatmul.mubr.msk.f32.gmra.mrb[28].mxu0 %vm794_vm3, %v9226_v39  ;;  %7112 = vmatpush1.bf16.msra.mxu1 %v7111_v1  ;;  %v4519_v39 = vld [vmem:[%s8701_s14 + $0x820] sm:$0xff]  ;;  %v9352_v1 = vld [vmem:[%s8701_s14 + $0x6aa] sm:$0xff] }
 0x287   : > { %4701 = vmatprep.mubr.f32.mxu0 %v9914_v36  ;;  %7114 = vmatprep.subr.bf16.mxu1 %v7113_v51  ;;  %4595 = vst.msk [vmem:[#allocation3 + $0x258] sm:$0xff] %vm794_vm3, %v4519_v39  ;;  %v5555_v51 = vld [vmem:[%s8701_s14 + $0x24] sm:$0xff]  ;;  %v5147_v39 = vld [vmem:[#allocation3 + $0x18] sm:$0xff] }
 0x28a   : > { %6929 = vmatmul.mubr.msk.f32.gmra.mrb[30].mxu0 %vm794_vm3, %v4599_v30  ;;  %7116 = vmatpush1.bf16.msra.mxu1 %v7115_v29  ;;  %v5556_v29 = vld [vmem:[%s8701_s14 + $0x2c] sm:$0xff] }
 0x28b   : > { %4805 = vmatprep.mubr.f32.mxu0 %v9914_v36  ;;  %5632 = vst.msk [vmem:[#allocation3 + $0x8] sm:$0xff] %vm794_vm3, %v5556_v29  ;;  %v5629_v29 = vld [vmem:[%s8701_s14 + $0x83c] sm:$0xff] }
 0x28e   : > { %6933 = vmatmul.mubr.msk.f32.vlgmr.msra.gmra.mrb[24].mxu0 %vm794_vm3, %v9231_v52  ;;  %v7117_v52 = vpack.c.bf16 %v2586_v38, %v2584_v40  ;;  %v4858_v30 = vld [vmem:[#allocation3 + $0x258] sm:$0xff]  ;;  %v5558_v40 = vld [vmem:[%s8701_s14 + $0x64] sm:$0xff] }
 0x28f   : > { %4811 = vmatprep.mubr.f32.mxu0 %v9914_v36  ;;  %6939 = vmatpush1.msk.msra.mxu0 %vm830_vm2, %v6937_v19  ;;  %5143 = vst.msk [vmem:[#allocation3 + $0x258] sm:$0xff] %vm794_vm3, %v5067_v24  ;;  %v6951_v38 = vld [vmem:[%s9902_s4 + $0x20] sm:$0xff]  ;;  %5634 = vst.msk [vmem:[#allocation3 + $0x18] sm:$0xff] %vm794_vm3, %v5558_v40  ;;  %v6965_v40 = vld [vmem:[%s9902_s4 + $0x10] sm:$0xff] }
 0x290   : > { %7118 = vmatprep.subr.bf16.mxu1 %v7117_v52  ;;  %6945 = vmatprep.subr.msk.mxu0 %vm830_vm2, %v5151_v10  ;;  %v5288_v52 = vcombine.high %v6951_v38, %v6951_v38  ;;  %v9398_v24 = vld [vmem:[#allocation3 + $0xc0] sm:$0xff] }
 0x291   : > { %7120 = vmatpush1.bf16.msra.mxu1 %v7119_v62  ;;  %v5282_v62 = vld [vmem:[#allocation3 + $0x128] sm:$0xff]  ;;  %3274 = vst.msk [vmem:[#allocation3 + $0xc0] sm:$0xff] %vm794_vm3, %v9220_v54  ;;  %v6752_v54 = vld [vmem:[%s8701_s14 + $0x696] sm:$0xff] }
 0x292   : > { %6934 = vmatmul.mubr.msk.f32.gmra.mrb[26].mxu0 %vm794_vm3, %v4718_v15  ;;  %v2589_v15 = vld [vmem:[#allocation6 + $0x3f0] sm:$0xff]  ;;  %7122 = vmatprep.subr.bf16.mxu1 %v7121_v20  ;;  %v5284_v20 = vld [vmem:[#allocation3 + $0x138] sm:$0xff]  ;;  %2799 = vst.msk [vmem:[#allocation3 + $0x180] sm:$0xff] %vm794_vm3, %v6752_v54 }
 0x293   : > { %4817 = vmatprep.mubr.f32.mxu0 %v9914_v36  ;;  %v7123_v25 = vpack.c.bf16 %v2589_v15, %v2587_v16  ;;  %v5594_v16 = vld [vmem:[%s8701_s14 + $0x454] sm:$0xff] }
 0x294   : > { %5670 = vst.msk [vmem:[#allocation3 + $0x138] sm:$0xff] %vm794_vm3, %v5594_v16  ;;  %v6958_v15 = vld [vmem:[%s9902_s4 + $0x38] sm:$0xff]  ;;  %v5708_v16 = vld [vmem:[#allocation3 + $0x8] sm:$0xff] }
 0x295   : > { %7124 = vmatpush1.bf16.msra.mxu1 %v7123_v25  ;;  %v5627_v25 = vld [vmem:[%s8701_s14 + $0x804] sm:$0xff]  ;;  %v5425_v10 = vcombine.high %v6958_v15, %v6958_v15 }
 0x296   : > { %6935 = vmatmul.mubr.msk.f32.gmra.mrb[28].mxu0 %vm794_vm3, %v4719_v18  ;;  %v5144_v18 = vld [vmem:[#allocation3] sm:$0xff] }
 0x297   : > { %4823 = vmatprep.mubr.f32.mxu0 %v9914_v36  ;;  %5631 = vst.msk [vmem:[#allocation3] sm:$0xff] %vm794_vm3, %v5555_v51  ;;  %v5628_v51 = vld [vmem:[%s8701_s14 + $0x80c] sm:$0xff] }
 0x29a   : > { %6936 = vmatmul.mubr.msk.f32.gmra.mrb[30].mxu0 %vm794_vm3, %v4720_v46  ;;  %v9349_v46 = vld [vmem:[%s8701_s14 + $0x6a2] sm:$0xff] }
 0x29b   : > { %4943 = vmatprep.mubr.f32.mxu0 %v9914_v36 }
 0x29e   : > { %6940 = vmatmul.mubr.msk.f32.vlgmr.msra.gmra.mrb[24].mxu0 %vm794_vm3, %v4855_v13  ;;  %v9358_v13 = vld [vmem:[%s8701_s14 + $0x6e2] sm:$0xff] }
 0x29f   : > { %4949 = vmatprep.mubr.f32.mxu0 %v9914_v36  ;;  %6946 = vmatpush1.msk.msra.mxu0 %vm830_vm2, %v6944_v17  ;;  %v5418_v17 = vld [vmem:[#allocation3 + $0x240] sm:$0xff] }
 0x2a0   : > { %6952 = vmatprep.subr.msk.mxu0 %vm830_vm2, %v5288_v52  ;;  %5703 = vst.msk [vmem:[#allocation3 + $0x240] sm:$0xff] %vm794_vm3, %v5627_v25 }
 0x2a2   : > { %6941 = vmatmul.mubr.msk.f32.gmra.mrb[26].mxu0 %vm794_vm3, %v4856_v9  ;;  %v2809_v9 = vcombine.high %v9365_v4, %v9365_v4 }
 0x2a3   : > { %4955 = vmatprep.mubr.f32.mxu0 %v9914_v36 }
 0x2a4   : > { %6756 = vmatprep.subr.msk.mxu1 %vm830_vm2, %v2809_v9  ;;  %v5420_v9 = vld [vmem:[#allocation3 + $0x250] sm:$0xff] }
 0x2a5   : > { %5705 = vst.msk [vmem:[#allocation3 + $0x250] sm:$0xff] %vm794_vm3, %v5629_v29 }
 0x2a6   : > { %6942 = vmatmul.mubr.msk.f32.gmra.mrb[28].mxu0 %vm794_vm3, %v4857_v33  ;;  %v5557_v33 = vld [vmem:[%s8701_s14 + $0x5c] sm:$0xff] }
 0x2a7   : > { %4961 = vmatprep.mubr.f32.mxu0 %v9914_v36  ;;  %5633 = vst.msk [vmem:[#allocation3 + $0x10] sm:$0xff] %vm794_vm3, %v5557_v33  ;;  %v5421_v33 = vld [vmem:[#allocation3 + $0x258] sm:$0xff] }
 0x2aa   : > { %6943 = vmatmul.mubr.msk.f32.gmra.mrb[30].mxu0 %vm794_vm3, %v4858_v30  ;;  %v5592_v30 = vld [vmem:[%s8701_s14 + $0x41c] sm:$0xff] }
 0x2ab   : > { %5232 = vmatprep.mubr.f32.mxu0 %v9914_v36  ;;  %5668 = vst.msk [vmem:[#allocation3 + $0x128] sm:$0xff] %vm794_vm3, %v5592_v30 }
 0x2ae   : > { %6947 = vmatmul.mubr.msk.f32.vlgmr.msra.gmra.mrb[24].mxu0 %vm794_vm3, %v5144_v18  ;;  %v5419_v18 = vld [vmem:[#allocation3 + $0x248] sm:$0xff] }
 0x2af   : > { %5238 = vmatprep.mubr.f32.mxu0 %v9914_v36  ;;  %6953 = vmatpush1.msk.msra.mxu0 %vm830_vm2, %v6951_v38  ;;  %5704 = vst.msk [vmem:[#allocation3 + $0x248] sm:$0xff] %vm794_vm3, %v5628_v51  ;;  %v5714_v38 = vcombine.high %v6965_v40, %v6965_v40 }
 0x2b0   : > { %6959 = vmatprep.subr.msk.mxu0 %vm830_vm2, %v5425_v10  ;;  %v6874_v10 = vld [vmem:[%s8701_s14 + $0x416] sm:$0xff] }
 0x2b2   : > { %6948 = vmatmul.mubr.msk.f32.gmra.mrb[26].mxu0 %vm794_vm3, %v5145_v6  ;;  %v9403_v6 = vld [vmem:[#allocation3 + $0xc8] sm:$0xff] }
 0x2b3   : > { %5244 = vmatprep.mubr.f32.mxu0 %v9914_v36  ;;  %3275 = vst.msk [vmem:[#allocation3 + $0xc8] sm:$0xff] %vm794_vm3, %v9242_v2  ;;  %v9421_v2 = vld [vmem:[#allocation3 + $0xd8] sm:$0xff]  ;;  %v5845_v29 = vld [vmem:[#allocation3 + $0x128] sm:$0xff] }
 0x2b4   : > { %3277 = vst.msk [vmem:[#allocation3 + $0xd8] sm:$0xff] %vm794_vm3, %v9269_v32  ;;  %v9444_v32 = vld [vmem:[#allocation3 + $0x180] sm:$0xff] }
 0x2b5   : > { %3298 = vst.msk [vmem:[#allocation3 + $0x180] sm:$0xff] %vm794_vm3, %v9349_v46  ;;  %v5707_v46 = vld [vmem:[#allocation3] sm:$0xff] }
 0x2b6   : > { %6949 = vmatmul.mubr.msk.f32.gmra.mrb[28].mxu0 %vm794_vm3, %v5146_v31  ;;  %v9411_v31 = vld [vmem:[#allocation3 + $0xd0] sm:$0xff] }
 0x2b7   : > { %5250 = vmatprep.mubr.f32.mxu0 %v9914_v36  ;;  %3276 = vst.msk [vmem:[#allocation3 + $0xd0] sm:$0xff] %vm794_vm3, %v9259_v47  ;;  %v6753_v47 = vld [vmem:[%s8701_s14 + $0x69e] sm:$0xff] }
 0x2b8   : > { %2800 = vst.msk [vmem:[#allocation3 + $0x188] sm:$0xff] %vm794_vm3, %v6753_v47 }
 0x2ba   : > { %6950 = vmatmul.mubr.msk.f32.gmra.mrb[30].mxu0 %vm794_vm3, %v5147_v39  ;;  %v5630_v39 = vld [vmem:[%s8701_s14 + $0x844] sm:$0xff] }
 0x2bb   : > { %5369 = vmatprep.mubr.f32.mxu0 %v9914_v36  ;;  %5706 = vst.msk [vmem:[#allocation3 + $0x258] sm:$0xff] %vm794_vm3, %v5630_v39  ;;  %v9488_v25 = vld [vmem:[#allocation3 + $0xc8] sm:$0xff]  ;;  %v9501_v54 = vld [vmem:[#allocation3 + $0xd8] sm:$0xff]  ;;  %v5846_v39 = vld [vmem:[#allocation3 + $0x130] sm:$0xff] }
 0x2bc   : > { %3790 = vst.msk [vmem:[#allocation3 + $0xc8] sm:$0xff] %vm794_vm3, %v6874_v10  ;;  %v9511_v47 = vld [vmem:[#allocation3 + $0x180] sm:$0xff] }
 0x2be   : > { %6954 = vmatmul.mubr.msk.f32.vlgmr.msra.gmra.mrb[24].mxu0 %vm794_vm3, %v5281_v50  ;;  %v6754_v50 = vld [vmem:[%s8701_s14 + $0x6ce] sm:$0xff] }
 0x2bf   : > { %5375 = vmatprep.mubr.f32.mxu0 %v9914_v36  ;;  %6960 = vmatpush1.msk.msra.mxu0 %vm830_vm2, %v6958_v15  ;;  %v9446_v52 = vld [vmem:[#allocation3 + $0x188] sm:$0xff]  ;;  %2801 = vst.msk [vmem:[#allocation3 + $0x190] sm:$0xff] %vm794_vm3, %v6754_v50  ;;  %v9494_v51 = vld [vmem:[#allocation3 + $0xd0] sm:$0xff] }
 0x2c0   : > { %6966 = vmatprep.subr.msk.mxu0 %vm830_vm2, %v5714_v38  ;;  %3299 = vst.msk [vmem:[#allocation3 + $0x188] sm:$0xff] %vm794_vm3, %v9352_v1  ;;  %v6873_v15 = vld [vmem:[%s8701_s14 + $0x40e] sm:$0xff]  ;;  %v5981_v38 = vld [vmem:[#allocation3 + $0x240] sm:$0xff] }
 0x2c1   : > { %v9307_v58 = vpop.f32.mrb[8].mxu0  ;;  %v6897_v50 = vld [vmem:[%s8701_s14 + $0x6ae] sm:$0xff] }
 0x2c2   : > { %v9311_v0 = vpop.f32.mrb[9].mxu0  ;;  %6955 = vmatmul.mubr.msk.f32.gmra.mrb[26].mxu0 %vm794_vm3, %v5282_v62  ;;  %v6972_v62 = vld [vmem:[%s9902_s4 + $0x28] sm:$0xff]  ;;  %3813 = vst.msk [vmem:[#allocation3 + $0x180] sm:$0xff] %vm794_vm3, %v6897_v50 }
 0x2c3   : > { %5381 = vmatprep.mubr.f32.mxu0 %v9914_v36  ;;  %v5851_v30 = vcombine.high %v6972_v62, %v6972_v62 }
 0x2c5   : > { %v9319_v19 = vpop.f32.mrb[10].mxu0 }
 0x2c6   : > { %v9324_v23 = vpop.f32.mrb[11].mxu0  ;;  %6956 = vmatmul.mubr.msk.f32.gmra.mrb[28].mxu0 %vm794_vm3, %v5283_v7  ;;  %v9465_v1 = vld [vmem:[#allocation3 + $0x190] sm:$0xff]  ;;  %v9469_v7 = vld [vmem:[#allocation3 + $0x198] sm:$0xff] }
 0x2c7   : > { %5387 = vmatprep.mubr.f32.mxu0 %v9914_v36  ;;  %3300 = vst.msk [vmem:[#allocation3 + $0x190] sm:$0xff] %vm794_vm3, %v9355_v3  ;;  %3301 = vst.msk [vmem:[#allocation3 + $0x198] sm:$0xff] %vm794_vm3, %v9358_v13  ;;  %v5709_v3 = vld [vmem:[#allocation3 + $0x10] sm:$0xff]  ;;  %v9482_v13 = vld [vmem:[#allocation3 + $0xc0] sm:$0xff] }
 0x2c8   : > { %3789 = vst.msk [vmem:[#allocation3 + $0xc0] sm:$0xff] %vm794_vm3, %v6873_v15  ;;  %v9514_v56 = vld [vmem:[#allocation3 + $0x188] sm:$0xff] }
 0x2c9   : > { %v9332_v22 = vpop.f32.mrb[12].mxu0  ;;  %v6701_v15 = vld [vmem:[%s9905_s7 + $0x1] ss:$8 sm:$0x3] }
 0x2ca   : > { %v9337_v26 = vpop.f32.mrb[13].mxu0  ;;  %6957 = vmatmul.mubr.msk.f32.gmra.mrb[30].mxu0 %vm794_vm3, %v5284_v20  ;;  %v5988_v20 = vcombine.high %v6979_v12, %v6979_v12  ;;  %v2496_v10 = vrot.slane %v6701_v15, %v8905_v42 }
 0x2cb   : > { %5506 = vmatprep.mubr.f32.mxu0 %v9914_v36 }
 0x2cd   : > { %v9342_v61 = vpop.f32.mrb[14].mxu0 }
 0x2ce   : > { %v9346_v53 = vpop.f32.mrb[15].mxu0  ;;  %6961 = vmatmul.mubr.msk.f32.vlgmr.msra.gmra.mrb[24].mxu0 %vm794_vm3, %v5418_v17  ;;  %v5710_v17 = vld [vmem:[#allocation3 + $0x18] sm:$0xff] }
 0x2cf   : > { %5512 = vmatprep.mubr.f32.mxu0 %v9914_v36  ;;  %6967 = vmatpush1.msk.msra.mxu0 %vm830_vm2, %v6965_v40  ;;  %v5847_v40 = vld [vmem:[#allocation3 + $0x138] sm:$0xff] }
 0x2d0   : > { %6973 = vmatprep.subr.msk.mxu0 %vm830_vm2, %v5851_v30  ;;  %v9518_v30 = vld [vmem:[#allocation3 + $0x190] sm:$0xff] }
 0x2d2   : > { %6962 = vmatmul.mubr.msk.f32.gmra.mrb[26].mxu0 %vm794_vm3, %v5419_v18  ;;  %v5844_v18 = vld [vmem:[#allocation3 + $0x120] sm:$0xff] }
 0x2d3   : > { %5518 = vmatprep.mubr.f32.mxu0 %v9914_v36 }
 0x2d6   : > { %6963 = vmatmul.mubr.msk.f32.gmra.mrb[28].mxu0 %vm794_vm3, %v5420_v9  ;;  %v6875_v9 = vld [vmem:[%s8701_s14 + $0x446] sm:$0xff] }
 0x2d7   : > { %5524 = vmatprep.mubr.f32.mxu0 %v9914_v36  ;;  %3791 = vst.msk [vmem:[#allocation3 + $0xd0] sm:$0xff] %vm794_vm3, %v6875_v9  ;;  %v2500_v9 = vrot.slane %v6701_v15, %v8915_v57 }
 0x2da   : > { %6964 = vmatmul.mubr.msk.f32.gmra.mrb[30].mxu0 %vm794_vm3, %v5421_v33  ;;  %v6876_v33 = vld [vmem:[%s8701_s14 + $0x44e] sm:$0xff] }
 0x2db   : > { %5795 = vmatprep.mubr.f32.mxu0 %v9914_v36  ;;  %3792 = vst.msk [vmem:[#allocation3 + $0xd8] sm:$0xff] %vm794_vm3, %v6876_v33 }
 0x2de   : > { %6968 = vmatmul.mubr.msk.f32.vlgmr.msra.gmra.mrb[24].mxu0 %vm794_vm3, %v5707_v46  ;;  %v6899_v46 = vld [vmem:[%s8701_s14 + $0x6e6] sm:$0xff] }
 0x2df   : > { %5801 = vmatprep.mubr.f32.mxu0 %v9914_v36  ;;  %6974 = vmatpush1.msk.msra.mxu0 %vm830_vm2, %v6972_v62  ;;  %v6898_v62 = vld [vmem:[%s8701_s14 + $0x6b6] sm:$0xff]  ;;  %3815 = vst.msk [vmem:[#allocation3 + $0x190] sm:$0xff] %vm794_vm3, %v6899_v46 }
 0x2e0   : > { %6980 = vmatprep.subr.msk.mxu0 %vm830_vm2, %v5988_v20  ;;  %3814 = vst.msk [vmem:[#allocation3 + $0x188] sm:$0xff] %vm794_vm3, %v6898_v62  ;;  %v9525_v20 = vld [vmem:[#allocation3 + $0x198] sm:$0xff] }
 0x2e1   : > { %v9544_v62 = vld [vmem:[%s9901_s3 + $0x18] sm:$0xff] }
 0x2e2   : > { %6969 = vmatmul.mubr.msk.f32.gmra.mrb[26].mxu0 %vm794_vm3, %v5708_v16  ;;  %v6900_v16 = vld [vmem:[%s8701_s14 + $0x6ee] sm:$0xff] }
 0x2e3   : > { %5807 = vmatprep.mubr.f32.mxu0 %v9914_v36  ;;  %3816 = vst.msk [vmem:[#allocation3 + $0x198] sm:$0xff] %vm794_vm3, %v6900_v16 }
 0x2e6   : > { %6970 = vmatmul.mubr.msk.f32.gmra.mrb[28].mxu0 %vm794_vm3, %v5709_v3  ;;  %v5983_v3 = vld [vmem:[#allocation3 + $0x250] sm:$0xff] }
 0x2e7   : > { %5813 = vmatprep.mubr.f32.mxu0 %v9914_v36 }
 0x2ea   : > { %6971 = vmatmul.mubr.msk.f32.gmra.mrb[30].mxu0 %vm794_vm3, %v5710_v17  ;;  %v5984_v17 = vld [vmem:[#allocation3 + $0x258] sm:$0xff] }
 0x2eb   : > { %5932 = vmatprep.mubr.f32.mxu0 %v9914_v36 }
 0x2ee   : > { %6975 = vmatmul.mubr.msk.f32.vlgmr.msra.gmra.mrb[24].mxu0 %vm794_vm3, %v5844_v18 }
 0x2ef   : > { %5938 = vmatprep.mubr.f32.mxu0 %v9914_v36  ;;  %6981 = vmatpush1.msk.msra.mxu0 %vm830_vm2, %v6979_v12  ;;  %v5982_v12 = vld [vmem:[#allocation3 + $0x248] sm:$0xff] }
 0x2f2   : > { %6976 = vmatmul.mubr.msk.f32.gmra.mrb[26].mxu0 %vm794_vm3, %v5845_v29 }
 0x2f3   : > { %5944 = vmatprep.mubr.f32.mxu0 %v9914_v36 }
 0x2f6   : > { %6977 = vmatmul.mubr.msk.f32.gmra.mrb[28].mxu0 %vm794_vm3, %v5846_v39 }
 0x2f7   : > { %5950 = vmatprep.mubr.f32.mxu0 %v9914_v36 }
 0x2fa   : > { %6978 = vmatmul.mubr.msk.f32.gmra.mrb[30].mxu0 %vm794_vm3, %v5847_v40 }
 0x2fb   : > { %6069 = vmatprep.mubr.f32.mxu0 %v9914_v36 }
 0x2fe   : > { %6982 = vmatmul.mubr.msk.f32.vlgmr.msra.gmra.mrb[24].mxu0 %vm794_vm3, %v5981_v38 }
 0x2ff   : > { %6075 = vmatprep.mubr.f32.mxu0 %v9914_v36 }
 0x302   : > { %6983 = vmatmul.mubr.msk.f32.gmra.mrb[26].mxu0 %vm794_vm3, %v5982_v12 }
 0x303   : > { %6081 = vmatprep.mubr.f32.mxu0 %v9914_v36 }
 0x306   : > { %6984 = vmatmul.mubr.msk.f32.gmra.mrb[28].mxu0 %vm794_vm3, %v5983_v3 }
 0x307   : > { %6087 = vmatprep.mubr.f32.mxu0 %v9914_v36  ;;  %v5579_v36 = vld [vmem:[%s8701_s14 + $0x2c4] sm:$0xff] }
 0x30a   : > { %6985 = vmatmul.mubr.msk.f32.gmra.mrb[30].mxu0 %vm794_vm3, %v5984_v17 }
 0x341   : > { %v2435_v18 = vpop.f32.mrb[16].mxu0 }
 0x342   : > { %v7261_v29 = vadd.f32 %v2435_v18, %v9305_v45  ;;  %v2437_v33 = vpop.f32.mrb[17].mxu0 }
 0x343   : > { %v7262_v39 = vadd.f32 %v2437_v33, %v9309_v60  ;;  %v2930_v60 = vcombine.high %v9544_v62, %v9544_v62 }
 0x344   : > { %v2503_v40 = vadd.f32 %v7261_v29, %v2496_v10  ;;  %v9550_v29 = vld [vmem:[#allocation3 + $0xc0] sm:$0xff] }
 0x345   : > { %v2504_v38 = vadd.f32 %v7262_v39, %v2500_v9  ;;  %v2441_v50 = vpop.f32.mrb[18].mxu0 }
 0x346   : > { %v7263_v46 = vadd.f32 %v2441_v50, %v9313_v14  ;;  %v2443_v12 = vpop.f32.mrb[19].mxu0  ;;  %v2511_v3 = vmax.f32 %v2503_v40, 0.0  ;;  %v4468_v14 = vld [vmem:[%s8701_s14 + $0x2a0] sm:$0xff]  ;;  %v5016_v50 = vld [vmem:[%s8701_s14 + $0x2b2] sm:$0xff] }
 0x347   : > { %v2512_v16 = vmax.f32 %v2504_v38, 0.0  ;;  %v7264_v45 = vadd.f32 %v2443_v12, %v9321_v55  ;;  %4544 = vst.msk [vmem:[#allocation3 + $0xc0] sm:$0xff] %vm794_vm3, %v4468_v14  ;;  %v5018_v14 = vld [vmem:[%s8701_s14 + $0x2ea] sm:$0xff] }
 0x348   : > { %v2505_v15 = vadd.f32 %v7263_v46, %v2496_v10  ;;  %5092 = vst.msk [vmem:[#allocation3 + $0xc0] sm:$0xff] %vm794_vm3, %v5016_v50  ;;  %v5581_v50 = vld [vmem:[%s8701_s14 + $0x2fc] sm:$0xff] }
 0x349   : > { %v2506_v17 = vadd.f32 %v7264_v45, %v2500_v9  ;;  %v2447_v18 = vpop.f32.mrb[20].mxu0  ;;  %2655 = vmatprep.mubr.f32.mxu1 %v2512_v16  ;;  %5655 = vst.msk [vmem:[#allocation3 + $0xc0] sm:$0xff] %vm794_vm3, %v5579_v36  ;;  %v9563_v16 = vld [vmem:[#allocation3 + $0xc8] sm:$0xff] }
 0x34a   : > { %v7265_v33 = vadd.f32 %v2447_v18, %v9330_v8  ;;  %v2449_v39 = vpop.f32.mrb[21].mxu0  ;;  %2656 = vmatmul.mubr.f32.vlgmr.msra.gmra.mrb[8].mxu1 %v2511_v3  ;;  %v2513_v40 = vmax.f32 %v2505_v15, 0.0  ;;  %v5017_v3 = vld [vmem:[%s8701_s14 + $0x2ba] sm:$0xff]  ;;  %v5580_v15 = vld [vmem:[%s8701_s14 + $0x2cc] sm:$0xff] }
 0x34b   : > { %v2514_v38 = vmax.f32 %v2506_v17, 0.0  ;;  %v7266_v55 = vadd.f32 %v2449_v39, %v9335_v28  ;;  %6757 = vmatpush1.msk.msra.mxu1 %vm830_vm2, %v9365_v4  ;;  %v4469_v4 = vld [vmem:[%s8701_s14 + $0x2a8] sm:$0xff]  ;;  %v4470_v39 = vld [vmem:[%s8701_s14 + $0x2d8] sm:$0xff] }
 0x34c   : > { %v2507_v46 = vadd.f32 %v7265_v33, %v2496_v10  ;;  %6763 = vmatprep.subr.msk.mxu1 %vm830_vm2, %v2930_v60  ;;  %4545 = vst.msk [vmem:[#allocation3 + $0xc8] sm:$0xff] %vm794_vm3, %v4469_v4  ;;  %v5040_v4 = vld [vmem:[%s8701_s14 + $0x552] sm:$0xff] }
 0x34d   : > { %v2508_v8 = vadd.f32 %v7266_v55, %v2500_v9  ;;  %v2453_v12 = vpop.f32.mrb[22].mxu0  ;;  %2661 = vmatprep.mubr.f32.mxu1 %v2514_v38  ;;  %5093 = vst.msk [vmem:[#allocation3 + $0xc8] sm:$0xff] %vm794_vm3, %v5017_v3  ;;  %v4471_v55 = vld [vmem:[%s8701_s14 + $0x2e0] sm:$0xff] }
 0x34e   : > { %v7267_v28 = vadd.f32 %v2453_v12, %v9340_v43  ;;  %v2455_v45 = vpop.f32.mrb[23].mxu0  ;;  %2662 = vmatmul.mubr.f32.gmra.mrb[10].mxu1 %v2513_v40  ;;  %v2515_v18 = vmax.f32 %v2507_v46, 0.0  ;;  %5656 = vst.msk [vmem:[#allocation3 + $0xc8] sm:$0xff] %vm794_vm3, %v5580_v15  ;;  %v9573_v43 = vld [vmem:[#allocation3 + $0xd0] sm:$0xff]  ;;  %v5582_v46 = vld [vmem:[%s8701_s14 + $0x304] sm:$0xff] }
 0x34f   : > { %v2516_v60 = vmax.f32 %v2508_v8, 0.0  ;;  %v7268_v17 = vadd.f32 %v2455_v45, %v9344_v44  ;;  %4546 = vst.msk [vmem:[#allocation3 + $0xd0] sm:$0xff] %vm794_vm3, %v4470_v39  ;;  %v5019_v40 = vld [vmem:[%s8701_s14 + $0x2f2] sm:$0xff]  ;;  %v9926_v8 = vmov 0.0   ;;  %v4492_v45 = vld [vmem:[%s8701_s14 + $0x540] sm:$0xff]  ;;  %v4493_v15 = vld [vmem:[%s8701_s14 + $0x548] sm:$0xff] }
 0x350   : > { %v2509_v33 = vadd.f32 %v7267_v28, %v2496_v10  ;;  %5094 = vst.msk [vmem:[#allocation3 + $0xd0] sm:$0xff] %vm794_vm3, %v5018_v14  ;;  %v6769_v10 = vld [vmem:[%s9901_s3 + $0x30] sm:$0xff]  ;;  %v9593_v28 = vld [vmem:[#allocation3 + $0x180] sm:$0xff]  ;;  %v9632_v39 = vld [vmem:[#allocation3 + $0x198] sm:$0xff] }
 0x351   : > { %v2510_v36 = vadd.f32 %v7268_v17, %v2500_v9  ;;  %2667 = vmatprep.mubr.f32.mxu1 %v2516_v60  ;;  %5657 = vst.msk [vmem:[#allocation3 + $0xd0] sm:$0xff] %vm794_vm3, %v5581_v50  ;;  %v9584_v9 = vld [vmem:[#allocation3 + $0xd8] sm:$0xff]  ;;  %v3068_v12 = vcombine.high %v6769_v10, %v6769_v10  ;;  %v5603_v3 = vld [vmem:[%s8701_s14 + $0x564] sm:$0xff]  ;;  %4568 = vst.msk [vmem:[#allocation3 + $0x180] sm:$0xff] %vm794_vm3, %v4492_v45 }
 0x352   : > { %2668 = vmatmul.mubr.f32.gmra.mrb[12].mxu1 %v2515_v18  ;;  %v2517_v38 = vmax.f32 %v2509_v33, 0.0  ;;  %4547 = vst.msk [vmem:[#allocation3 + $0xd8] sm:$0xff] %vm794_vm3, %v4471_v55  ;;  %5116 = vst.msk [vmem:[#allocation3 + $0x180] sm:$0xff] %vm794_vm3, %v5040_v4  ;;  %v5604_v60 = vld [vmem:[%s8701_s14 + $0x56c] sm:$0xff]  ;;  %v5605_v33 = vld [vmem:[%s8701_s14 + $0x59c] sm:$0xff] }
 0x353   : > { %v2518_v44 = vmax.f32 %v2510_v36, 0.0  ;;  %5095 = vst.msk [vmem:[#allocation3 + $0xd8] sm:$0xff] %vm794_vm3, %v5019_v40  ;;  %5679 = vst.msk [vmem:[#allocation3 + $0x180] sm:$0xff] %vm794_vm3, %v5603_v3  ;;  %v9618_v17 = vld [vmem:[#allocation3 + $0x190] sm:$0xff]  ;;  %v6828_v36 = vld [vmem:[%s9901_s3 + $0x8] sm:$0xff] }
 0x354   : > { %5658 = vst.msk [vmem:[#allocation3 + $0xd8] sm:$0xff] %vm794_vm3, %v5582_v46  ;;  %v5042_v18 = vld [vmem:[%s8701_s14 + $0x58a] sm:$0xff]  ;;  %v5043_v14 = vld [vmem:[%s8701_s14 + $0x592] sm:$0xff]  ;;  %v4285_v55 = vld [vmem:[#allocation6 + $0x460] sm:$0xff] }
 0x355   : > { %2673 = vmatprep.mubr.f32.mxu1 %v2518_v44  ;;  %v5606_v50 = vld [vmem:[%s8701_s14 + $0x5a4] sm:$0xff]  ;;  %v3309_v44 = vcombine.high %v6828_v36, %v6828_v36  ;;  %v4287_v40 = vld [vmem:[#allocation6 + $0x470] sm:$0xff] }
 0x356   : > { %2674 = vmatmul.mubr.f32.gmra.mrb[14].mxu1 %v2517_v38  ;;  %v4288_v38 = vld [vmem:[#allocation6 + $0x478] sm:$0xff]  ;;  %v4290_v46 = vld [vmem:[#allocation6 + $0x488] sm:$0xff]  ;;  %v4289_v4 = vld [vmem:[#allocation6 + $0x480] sm:$0xff] }
 0x357   : > { %2890 = vmatprep.mubr.f32.mxu1 %v9926_v8  ;;  %v4291_v3 = vld [vmem:[#allocation6 + $0x490] sm:$0xff] }
 0x35a   : > { %6758 = vmatmul.mubr.msk.f32.vlgmr.msra.gmra.mrb[16].mxu1 %vm794_vm3, %v8880_v21  ;;  %v9607_v21 = vld [vmem:[#allocation3 + $0x188] sm:$0xff] }
 0x35b   : > { %6764 = vmatpush1.msk.msra.mxu1 %vm830_vm2, %v9544_v62  ;;  %2896 = vmatprep.mubr.f32.mxu1 %v9926_v8  ;;  %v5041_v62 = vld [vmem:[%s8701_s14 + $0x55a] sm:$0xff]  ;;  %4569 = vst.msk [vmem:[#allocation3 + $0x188] sm:$0xff] %vm794_vm3, %v4493_v15 }
 0x35c   : > { %6770 = vmatprep.subr.msk.mxu1 %vm830_vm2, %v3068_v12  ;;  %5117 = vst.msk [vmem:[#allocation3 + $0x188] sm:$0xff] %vm794_vm3, %v5041_v62  ;;  %v4292_v12 = vld [vmem:[#allocation6 + $0x498] sm:$0xff]  ;;  %v7143_v62 = vpack.c.bf16 %v4291_v3, %v4289_v4 }
 0x35d   : > { %5680 = vst.msk [vmem:[#allocation3 + $0x188] sm:$0xff] %vm794_vm3, %v5604_v60  ;;  %v7141_v45 = vpack.c.bf16 %v4292_v12, %v4290_v46  ;;  %v4296_v15 = vld [vmem:[#allocation6 + $0x4b8] sm:$0xff]  ;;  %v4326_v46 = vld [vmem:[#allocation6 + $0x5a8] sm:$0xff] }
 0x35e   : > { %6759 = vmatmul.mubr.msk.f32.gmra.mrb[18].mxu1 %vm794_vm3, %v8888_v27  ;;  %v4494_v27 = vld [vmem:[%s8701_s14 + $0x578] sm:$0xff] }
 0x35f   : > { %2902 = vmatprep.mubr.f32.mxu1 %v9926_v8  ;;  %4570 = vst.msk [vmem:[#allocation3 + $0x190] sm:$0xff] %vm794_vm3, %v4494_v27  ;;  %v4293_v27 = vld [vmem:[#allocation6 + $0x4a0] sm:$0xff]  ;;  %v4328_v12 = vld [vmem:[#allocation6 + $0x5b8] sm:$0xff] }
 0x360   : > { %5118 = vst.msk [vmem:[#allocation3 + $0x190] sm:$0xff] %vm794_vm3, %v5042_v18  ;;  %v4295_v18 = vld [vmem:[#allocation6 + $0x4b0] sm:$0xff]  ;;  %v7177_v3 = vpack.c.bf16 %v4328_v12, %v4326_v46 }
 0x361   : > { %5681 = vst.msk [vmem:[#allocation3 + $0x190] sm:$0xff] %vm794_vm3, %v5605_v33  ;;  %v4300_v33 = vld [vmem:[#allocation6 + $0x4d8] sm:$0xff] }
 0x362   : > { %6760 = vmatmul.mubr.msk.f32.gmra.mrb[20].mxu1 %vm794_vm3, %v8898_v37  ;;  %v4495_v37 = vld [vmem:[%s8701_s14 + $0x580] sm:$0xff] }
 0x363   : > { %2908 = vmatprep.mubr.f32.mxu1 %v9926_v8  ;;  %4571 = vst.msk [vmem:[#allocation3 + $0x198] sm:$0xff] %vm794_vm3, %v4495_v37  ;;  %v4297_v37 = vld [vmem:[#allocation6 + $0x4c0] sm:$0xff] }
 0x364   : > { %5119 = vst.msk [vmem:[#allocation3 + $0x198] sm:$0xff] %vm794_vm3, %v5043_v14  ;;  %v4299_v14 = vld [vmem:[#allocation6 + $0x4d0] sm:$0xff] }
 0x365   : > { %5682 = vst.msk [vmem:[#allocation3 + $0x198] sm:$0xff] %vm794_vm3, %v5606_v50  ;;  %v4302_v50 = vld [vmem:[#allocation6 + $0x4e8] sm:$0xff] }
 0x366   : > { %6761 = vmatmul.mubr.msk.f32.gmra.mrb[22].mxu1 %vm794_vm3, %v8921_v63  ;;  %v6835_v63 = vld [vmem:[%s9901_s3 + $0x20] sm:$0xff] }
 0x367   : > { %3011 = vmatprep.mubr.f32.mxu1 %v9926_v8 }
 0x36a   : > { %6765 = vmatmul.mubr.msk.f32.vlgmr.msra.gmra.mrb[16].mxu1 %vm794_vm3, %v9398_v24  ;;  %v3446_v24 = vcombine.high %v6835_v63, %v6835_v63 }
 0x36b   : > { %6771 = vmatpush1.msk.msra.mxu1 %vm830_vm2, %v6769_v10  ;;  %3017 = vmatprep.mubr.f32.mxu1 %v9926_v8 }
 0x36c   : > { %6829 = vmatprep.subr.msk.mxu1 %vm830_vm2, %v3309_v44  ;;  %v4304_v44 = vld [vmem:[#allocation6 + $0x4f8] sm:$0xff] }
 0x36e   : > { %6766 = vmatmul.mubr.msk.f32.gmra.mrb[18].mxu1 %vm794_vm3, %v9403_v6  ;;  %v6842_v6 = vld [vmem:[%s9901_s3 + $0x38] sm:$0xff] }
 0x36f   : > { %3023 = vmatprep.mubr.f32.mxu1 %v9926_v8 }
 0x372   : > { %6767 = vmatmul.mubr.msk.f32.gmra.mrb[20].mxu1 %vm794_vm3, %v9411_v31  ;;  %v3583_v31 = vcombine.high %v6842_v6, %v6842_v6 }
 0x373   : > { %3029 = vmatprep.mubr.f32.mxu1 %v9926_v8 }
 0x376   : > { %6768 = vmatmul.mubr.msk.f32.gmra.mrb[22].mxu1 %vm794_vm3, %v9421_v2 }
 0x377   : > { %3149 = vmatprep.mubr.f32.mxu1 %v9926_v8 }
 0x37a   : > { %6772 = vmatmul.mubr.msk.f32.vlgmr.msra.gmra.mrb[16].mxu1 %vm794_vm3, %v9444_v32 }
 0x37b   : > { %6830 = vmatpush1.msk.msra.mxu1 %vm830_vm2, %v6828_v36  ;;  %3155 = vmatprep.mubr.f32.mxu1 %v9926_v8 }
 0x37c   : > { %6836 = vmatprep.subr.msk.mxu1 %vm830_vm2, %v3446_v24  ;;  %v4301_v24 = vld [vmem:[#allocation6 + $0x4e0] sm:$0xff] }
 0x37e   : > { %6773 = vmatmul.mubr.msk.f32.gmra.mrb[18].mxu1 %vm794_vm3, %v9446_v52  ;;  %v4274_v52 = vld [vmem:[#allocation6 + $0x408] sm:$0xff] }
 0x37f   : > { %3161 = vmatprep.mubr.f32.mxu1 %v9926_v8 }
 0x382   : > { %6774 = vmatmul.mubr.msk.f32.gmra.mrb[20].mxu1 %vm794_vm3, %v9465_v1  ;;  %v4276_v1 = vld [vmem:[#allocation6 + $0x418] sm:$0xff] }
 0x383   : > { %3167 = vmatprep.mubr.f32.mxu1 %v9926_v8 }
 0x386   : > { %6775 = vmatmul.mubr.msk.f32.gmra.mrb[22].mxu1 %vm794_vm3, %v9469_v7  ;;  %v4280_v7 = vld [vmem:[#allocation6 + $0x438] sm:$0xff] }
 0x387   : > { %3390 = vmatprep.mubr.f32.mxu1 %v9926_v8 }
 0x38a   : > { %6831 = vmatmul.mubr.msk.f32.vlgmr.msra.gmra.mrb[16].mxu1 %vm794_vm3, %v9136_v49  ;;  %v6901_v49 = vld [vmem:[%s9901_s3 + $0x10] sm:$0xff] }
 0x38b   : > { %6837 = vmatpush1.msk.msra.mxu1 %vm830_vm2, %v6835_v63  ;;  %3396 = vmatprep.mubr.f32.mxu1 %v9926_v8  ;;  %v3824_v2 = vcombine.high %v6901_v49, %v6901_v49  ;;  %v7151_v63 = vpack.c.bf16 %v4299_v14, %v4297_v37 }
 0x38c   : > { %6843 = vmatprep.subr.msk.mxu1 %vm830_vm2, %v3583_v31  ;;  %v4306_v31 = vld [vmem:[#allocation6 + $0x508] sm:$0xff] }
 0x38e   : > { %6832 = vmatmul.mubr.msk.f32.gmra.mrb[18].mxu1 %vm794_vm3, %v9144_v59  ;;  %v6908_v59 = vld [vmem:[%s9901_s3 + $0x28] sm:$0xff] }
 0x38f   : > { %3402 = vmatprep.mubr.f32.mxu1 %v9926_v8 }
 0x392   : > { %6833 = vmatmul.mubr.msk.f32.gmra.mrb[20].mxu1 %vm794_vm3, %v9150_v11  ;;  %v3961_v11 = vcombine.high %v6908_v59, %v6908_v59 }
 0x393   : > { %3408 = vmatprep.mubr.f32.mxu1 %v9926_v8 }
 0x396   : > { %6834 = vmatmul.mubr.msk.f32.gmra.mrb[22].mxu1 %vm794_vm3, %v9158_v48  ;;  %v6915_v48 = vld [vmem:[%s9901_s3 + $0x40] sm:$0xff] }
 0x397   : > { %3527 = vmatprep.mubr.f32.mxu1 %v9926_v8  ;;  %v4098_v32 = vcombine.high %v6915_v48, %v6915_v48 }
 0x39a   : > { %6838 = vmatmul.mubr.msk.f32.vlgmr.msra.gmra.mrb[16].mxu1 %vm794_vm3, %v9482_v13 }
 0x39b   : > { %6844 = vmatpush1.msk.msra.mxu1 %vm830_vm2, %v6842_v6  ;;  %3533 = vmatprep.mubr.f32.mxu1 %v9926_v8  ;;  %v4303_v6 = vld [vmem:[#allocation6 + $0x4f0] sm:$0xff] }
 0x39c   : > { %6902 = vmatprep.subr.msk.mxu1 %vm830_vm2, %v3824_v2  ;;  %v7155_v2 = vpack.c.bf16 %v4303_v6, %v4301_v24  ;;  %v4336_v24 = vld [vmem:[#allocation6 + $0x5f8] sm:$0xff] }
 0x39e   : > { %6839 = vmatmul.mubr.msk.f32.gmra.mrb[18].mxu1 %vm794_vm3, %v9488_v25 }
 0x39f   : > { %3539 = vmatprep.mubr.f32.mxu1 %v9926_v8 }
 0x3a2   : > { %6840 = vmatmul.mubr.msk.f32.gmra.mrb[20].mxu1 %vm794_vm3, %v9494_v51  ;;  %v4277_v51 = vld [vmem:[#allocation6 + $0x420] sm:$0xff] }
 0x3a3   : > { %3545 = vmatprep.mubr.f32.mxu1 %v9926_v8 }
 0x3a6   : > { %6841 = vmatmul.mubr.msk.f32.gmra.mrb[22].mxu1 %vm794_vm3, %v9501_v54  ;;  %v4279_v54 = vld [vmem:[#allocation6 + $0x430] sm:$0xff] }
 0x3a7   : > { %3664 = vmatprep.mubr.f32.mxu1 %v9926_v8 }
 0x3aa   : > { %6845 = vmatmul.mubr.msk.f32.vlgmr.msra.gmra.mrb[16].mxu1 %vm794_vm3, %v9511_v47  ;;  %v4282_v47 = vld [vmem:[#allocation6 + $0x448] sm:$0xff] }
 0x3ab   : > { %6903 = vmatpush1.msk.msra.mxu1 %vm830_vm2, %v6901_v49  ;;  %3670 = vmatprep.mubr.f32.mxu1 %v9926_v8  ;;  %v4308_v49 = vld [vmem:[#allocation6 + $0x518] sm:$0xff] }
 0x3ac   : > { %6909 = vmatprep.subr.msk.mxu1 %vm830_vm2, %v3961_v11  ;;  %v4305_v11 = vld [vmem:[#allocation6 + $0x500] sm:$0xff] }
 0x3ae   : > { %6846 = vmatmul.mubr.msk.f32.gmra.mrb[18].mxu1 %vm794_vm3, %v9514_v56  ;;  %v4284_v56 = vld [vmem:[#allocation6 + $0x458] sm:$0xff] }
 0x3af   : > { %3676 = vmatprep.mubr.f32.mxu1 %v9926_v8 }
 0x3b2   : > { %6847 = vmatmul.mubr.msk.f32.gmra.mrb[20].mxu1 %vm794_vm3, %v9518_v30  ;;  %v7131_v30 = vpack.c.bf16 %v4279_v54, %v4277_v51  ;;  %v4313_v51 = vld [vmem:[#allocation6 + $0x540] sm:$0xff]  ;;  %v4315_v54 = vld [vmem:[#allocation6 + $0x550] sm:$0xff] }
 0x3b3   : > { %3682 = vmatprep.mubr.f32.mxu1 %v9926_v8 }
 0x3b6   : > { %6848 = vmatmul.mubr.msk.f32.gmra.mrb[22].mxu1 %vm794_vm3, %v9525_v20  ;;  %v7133_v20 = vpack.c.bf16 %v4284_v56, %v4282_v47  ;;  %v4318_v47 = vld [vmem:[#allocation6 + $0x568] sm:$0xff]  ;;  %v4320_v56 = vld [vmem:[#allocation6 + $0x578] sm:$0xff] }
 0x3b7   : > { %3905 = vmatprep.mubr.f32.mxu1 %v9926_v8 }
 0x3ba   : > { %6904 = vmatmul.mubr.msk.f32.vlgmr.msra.gmra.mrb[16].mxu1 %vm794_vm3, %v9156_v41  ;;  %v7125_v41 = vpack.c.bf16 %v4276_v1, %v4274_v52  ;;  %v4312_v52 = vld [vmem:[#allocation6 + $0x538] sm:$0xff] }
 0x3bb   : > { %6910 = vmatpush1.msk.msra.mxu1 %vm830_vm2, %v6908_v59  ;;  %3911 = vmatprep.mubr.f32.mxu1 %v9926_v8  ;;  %v7157_v59 = vpack.c.bf16 %v4308_v49, %v4306_v31  ;;  %v4333_v31 = vld [vmem:[#allocation6 + $0x5e0] sm:$0xff]  ;;  %v4335_v49 = vld [vmem:[#allocation6 + $0x5f0] sm:$0xff] }
 0x3bc   : > { %6916 = vmatprep.subr.msk.mxu1 %vm830_vm2, %v4098_v32  ;;  %v4310_v32 = vld [vmem:[#allocation6 + $0x528] sm:$0xff] }
 0x3be   : > { %6905 = vmatmul.mubr.msk.f32.gmra.mrb[18].mxu1 %vm794_vm3, %v9169_v5  ;;  %v4273_v5 = vld [vmem:[#allocation6 + $0x400] sm:$0xff] }
 0x3bf   : > { %3917 = vmatprep.mubr.f32.mxu1 %v9926_v8 }
 0x3c2   : > { %6906 = vmatmul.mubr.msk.f32.gmra.mrb[20].mxu1 %vm794_vm3, %v9187_v34  ;;  %v4275_v34 = vld [vmem:[#allocation6 + $0x410] sm:$0xff] }
 0x3c3   : > { %3923 = vmatprep.mubr.f32.mxu1 %v9926_v8  ;;  %v7127_v13 = vpack.c.bf16 %v4275_v34, %v4273_v5  ;;  %v4309_v5 = vld [vmem:[#allocation6 + $0x520] sm:$0xff]  ;;  %v4311_v34 = vld [vmem:[#allocation6 + $0x530] sm:$0xff] }
 0x3c6   : > { %6907 = vmatmul.mubr.msk.f32.gmra.mrb[22].mxu1 %vm794_vm3, %v9200_v35  ;;  %v4278_v35 = vld [vmem:[#allocation6 + $0x428] sm:$0xff] }
 0x3c7   : > { %4042 = vmatprep.mubr.f32.mxu1 %v9926_v8  ;;  %v7129_v25 = vpack.c.bf16 %v4280_v7, %v4278_v35  ;;  %v4314_v35 = vld [vmem:[#allocation6 + $0x548] sm:$0xff]  ;;  %v4316_v7 = vld [vmem:[#allocation6 + $0x558] sm:$0xff] }
 0x3ca   : > { %6911 = vmatmul.mubr.msk.f32.vlgmr.msra.gmra.mrb[16].mxu1 %vm794_vm3, %v9550_v29  ;;  %v4281_v29 = vld [vmem:[#allocation6 + $0x440] sm:$0xff] }
 0x3cb   : > { %6917 = vmatpush1.msk.msra.mxu1 %vm830_vm2, %v6915_v48  ;;  %4048 = vmatprep.mubr.f32.mxu1 %v9926_v8  ;;  %v4307_v48 = vld [vmem:[#allocation6 + $0x510] sm:$0xff] }
 0x3cc   : > { %7126 = vmatprep.subr.bf16.mxu1 %v7125_v41  ;;  %v7159_v1 = vpack.c.bf16 %v4307_v48, %v4305_v11  ;;  %v7161_v41 = vpack.c.bf16 %v4312_v52, %v4310_v32  ;;  %v6166_v11 = vld [vmem:[#allocation6 + $0x618] sm:$0xff]  ;;  %v6922_v32 = vld [vmem:[%s9905_s7 + $0x2] ss:$8 sm:$0x3] }
 0x3cd   : > { %v4242_v52 = vrot.slane %v6922_v32, %v8905_v42 }
 0x3ce   : > { %6912 = vmatmul.mubr.msk.f32.gmra.mrb[18].mxu1 %vm794_vm3, %v9563_v16  ;;  %v4283_v16 = vld [vmem:[#allocation6 + $0x450] sm:$0xff] }
 0x3cf   : > { %4054 = vmatprep.mubr.f32.mxu1 %v9926_v8  ;;  %v7135_v10 = vpack.c.bf16 %v4283_v16, %v4281_v29  ;;  %v4317_v29 = vld [vmem:[#allocation6 + $0x560] sm:$0xff]  ;;  %v4319_v16 = vld [vmem:[#allocation6 + $0x570] sm:$0xff] }
 0x3d2   : > { %6913 = vmatmul.mubr.msk.f32.gmra.mrb[20].mxu1 %vm794_vm3, %v9573_v43  ;;  %v4286_v43 = vld [vmem:[#allocation6 + $0x468] sm:$0xff] }
 0x3d3   : > { %4060 = vmatprep.mubr.f32.mxu1 %v9926_v8 }
 0x3d6   : > { %6914 = vmatmul.mubr.msk.f32.gmra.mrb[22].mxu1 %vm794_vm3, %v9584_v9  ;;  %v7137_v9 = vpack.c.bf16 %v4288_v38, %v4286_v43  ;;  %v4322_v43 = vld [vmem:[#allocation6 + $0x588] sm:$0xff]  ;;  %v4324_v38 = vld [vmem:[#allocation6 + $0x598] sm:$0xff] }
 0x3d7   : > { %4179 = vmatprep.mubr.f32.mxu1 %v9926_v8 }
 0x3da   : > { %6918 = vmatmul.mubr.msk.f32.vlgmr.msra.gmra.mrb[16].mxu1 %vm794_vm3, %v9593_v28  ;;  %v7139_v28 = vpack.c.bf16 %v4287_v40, %v4285_v55  ;;  %v4321_v55 = vld [vmem:[#allocation6 + $0x580] sm:$0xff]  ;;  %v4323_v40 = vld [vmem:[#allocation6 + $0x590] sm:$0xff] }
 0x3db   : > { %4185 = vmatprep.mubr.f32.mxu1 %v9926_v8  ;;  %7128 = vmatpush1.bf16.msra.mxu1 %v7127_v13  ;;  %v7163_v13 = vpack.c.bf16 %v4311_v34, %v4309_v5 }
 0x3dc   : > { %7130 = vmatprep.subr.bf16.mxu1 %v7129_v25  ;;  %v7165_v25 = vpack.c.bf16 %v4316_v7, %v4314_v35  ;;  %v6163_v35 = vld [vmem:[#allocation6 + $0x600] sm:$0xff]  ;;  %v6165_v7 = vld [vmem:[#allocation6 + $0x610] sm:$0xff] }
 0x3de   : > { %6919 = vmatmul.mubr.msk.f32.gmra.mrb[18].mxu1 %vm794_vm3, %v9607_v21  ;;  %v4294_v21 = vld [vmem:[#allocation6 + $0x4a8] sm:$0xff] }
 0x3df   : > { %4191 = vmatprep.mubr.f32.mxu1 %v9926_v8  ;;  %7132 = vmatpush1.bf16.msra.mxu1 %v7131_v30  ;;  %v7145_v60 = vpack.c.bf16 %v4296_v15, %v4294_v21  ;;  %v7167_v30 = vpack.c.bf16 %v4315_v54, %v4313_v51  ;;  %v4325_v21 = vld [vmem:[#allocation6 + $0x5a0] sm:$0xff]  ;;  %v4327_v15 = vld [vmem:[#allocation6 + $0x5b0] sm:$0xff]  ;;  %v6170_v51 = vld [vmem:[#allocation6 + $0x638] sm:$0xff] }
 0x3e0   : > { %7134 = vmatprep.subr.bf16.mxu1 %v7133_v20  ;;  %v7169_v20 = vpack.c.bf16 %v4320_v56, %v4318_v47  ;;  %v7191_v56 = vpack.c.bf16 %v6165_v7, %v6163_v35 }
 0x3e2   : > { %6920 = vmatmul.mubr.msk.f32.gmra.mrb[20].mxu1 %vm794_vm3, %v9618_v17  ;;  %v4298_v17 = vld [vmem:[#allocation6 + $0x4c8] sm:$0xff] }
 0x3e3   : > { %4197 = vmatprep.mubr.f32.mxu1 %v9926_v8  ;;  %7136 = vmatpush1.bf16.msra.mxu1 %v7135_v10  ;;  %v7147_v8 = vpack.c.bf16 %v4295_v18, %v4293_v27  ;;  %v7149_v36 = vpack.c.bf16 %v4300_v33, %v4298_v17  ;;  %v7171_v10 = vpack.c.bf16 %v4319_v16, %v4317_v29 }
 0x3e4   : > { %7138 = vmatprep.subr.bf16.mxu1 %v7137_v9  ;;  %v7173_v9 = vpack.c.bf16 %v4324_v38, %v4322_v43  ;;  %v7179_v18 = vpack.c.bf16 %v4327_v15, %v4325_v21  ;;  %v6167_v43 = vld [vmem:[#allocation6 + $0x620] sm:$0xff]  ;;  %v6169_v38 = vld [vmem:[#allocation6 + $0x630] sm:$0xff] }
 0x3e6   : > { %6921 = vmatmul.mubr.msk.f32.gmra.mrb[22].mxu1 %vm794_vm3, %v9632_v39  ;;  %v7153_v39 = vpack.c.bf16 %v4304_v44, %v4302_v50 }
 0x3e7   : > { %7140 = vmatpush1.bf16.msra.mxu1 %v7139_v28  ;;  %v9766_v28 = vpop.f32.mrb[24].mxu0 }
 0x3e8   : > { %7142 = vmatprep.subr.bf16.mxu1 %v7141_v45  ;;  %v7175_v45 = vpack.c.bf16 %v4323_v40, %v4321_v55  ;;  %v9768_v4 = vpop.f32.mrb[25].mxu0  ;;  %v6174_v55 = vld [vmem:[#allocation6 + $0x658] sm:$0xff]  ;;  %v9790_v40 = vld [vmem:[%s9905_s7 + $0x3] ss:$8 sm:$0x3] }
 0x3e9   : > { %v9770_v27 = vpop.f32.mrb[26].mxu0 }
 0x3ea   : > { %v9772_v17 = vpop.f32.mrb[27].mxu0 }
 0x3eb   : > { %7144 = vmatpush1.bf16.msra.mxu1 %v7143_v62  ;;  %v4330_v62 = vld [vmem:[#allocation6 + $0x5c8] sm:$0xff]  ;;  %v9774_v37 = vpop.f32.mrb[28].mxu0 }
 0x3ec   : > { %7146 = vmatprep.subr.bf16.mxu1 %v7145_v60  ;;  %v4332_v60 = vld [vmem:[#allocation6 + $0x5d8] sm:$0xff]  ;;  %v9776_v50 = vpop.f32.mrb[29].mxu0 }
 0x3ed   : > { %v7181_v33 = vpack.c.bf16 %v4332_v60, %v4330_v62  ;;  %v9778_v44 = vpop.f32.mrb[30].mxu0  ;;  %v6171_v60 = vld [vmem:[#allocation6 + $0x640] sm:$0xff] }
 0x3ef   : > { %7148 = vmatpush1.bf16.msra.mxu1 %v7147_v8  ;;  %v4329_v8 = vld [vmem:[#allocation6 + $0x5c0] sm:$0xff] }
 0x3f0   : > { %7150 = vmatprep.subr.bf16.mxu1 %v7149_v36  ;;  %v4331_v36 = vld [vmem:[#allocation6 + $0x5d0] sm:$0xff] }
 0x3f1   : > { %v7183_v14 = vpack.c.bf16 %v4331_v36, %v4329_v8  ;;  %v6176_v36 = vld [vmem:[#allocation6 + $0x668] sm:$0xff] }
 0x3f3   : > { %7152 = vmatpush1.bf16.msra.mxu1 %v7151_v63  ;;  %v9780_v63 = vpop.f32.mrb[31].mxu0 }
 0x3f4   : > { %7154 = vmatprep.subr.bf16.mxu1 %v7153_v39  ;;  %v4334_v39 = vld [vmem:[#allocation6 + $0x5e8] sm:$0xff] }
 0x3f5   : > { %v7185_v6 = vpack.c.bf16 %v4336_v24, %v4334_v39 }
 0x3f7   : > { %7156 = vmatpush1.bf16.msra.mxu1 %v7155_v2  ;;  %v7187_v2 = vpack.c.bf16 %v4335_v49, %v4333_v31 }
 0x3f8   : > { %7158 = vmatprep.subr.bf16.mxu1 %v7157_v59  ;;  %v6164_v59 = vld [vmem:[#allocation6 + $0x608] sm:$0xff] }
 0x3f9   : > { %v7189_v48 = vpack.c.bf16 %v6166_v11, %v6164_v59  ;;  %v6175_v11 = vld [vmem:[#allocation6 + $0x660] sm:$0xff] }
 0x3fb   : > { %7160 = vmatpush1.bf16.msra.mxu1 %v7159_v1  ;;  %v4246_v1 = vrot.slane %v6922_v32, %v8915_v57 }
 0x3fc   : > { %7162 = vmatprep.subr.bf16.mxu1 %v7161_v41 }
 0x3ff   : > { %7164 = vmatpush1.bf16.msra.mxu1 %v7163_v13 }
 0x400   : > { %7166 = vmatprep.subr.bf16.mxu1 %v7165_v25  ;;  %v6168_v25 = vld [vmem:[#allocation6 + $0x628] sm:$0xff] }
 0x401   : > { %v7193_v16 = vpack.c.bf16 %v6170_v51, %v6168_v25  ;;  %v6181_v51 = vld [vmem:[#allocation6 + $0x690] sm:$0xff] }
 0x403   : > { %7168 = vmatpush1.bf16.msra.mxu1 %v7167_v30 }
 0x404   : > { %7170 = vmatprep.subr.bf16.mxu1 %v7169_v20 }
 0x407   : > { %7172 = vmatpush1.bf16.msra.mxu1 %v7171_v10 }
 0x408   : > { %7174 = vmatprep.subr.bf16.mxu1 %v7173_v9  ;;  %v6172_v9 = vld [vmem:[#allocation6 + $0x648] sm:$0xff] }
 0x409   : > { %v7197_v62 = vpack.c.bf16 %v6174_v55, %v6172_v9  ;;  %v6189_v9 = vld [vmem:[#allocation6 + $0x6d0] sm:$0xff]  ;;  %v6192_v55 = vld [vmem:[#allocation6 + $0x6e8] sm:$0xff] }
 0x40b   : > { %7176 = vmatpush1.bf16.msra.mxu1 %v7175_v45  ;;  %v7195_v45 = vpack.c.bf16 %v6169_v38, %v6167_v43 }
 0x40c   : > { %7178 = vmatprep.subr.bf16.mxu1 %v7177_v3 }
 0x40f   : > { %7180 = vmatpush1.bf16.msra.mxu1 %v7179_v18  ;;  %v6173_v18 = vld [vmem:[#allocation6 + $0x650] sm:$0xff] }
 0x410   : > { %7182 = vmatprep.subr.bf16.mxu1 %v7181_v33  ;;  %v9794_v33 = vrot.slane %v9790_v40, %v8915_v57 }
 0x412   : > { %v6140_v32 = vadd.f32 %v9794_v33, %v9768_v4 }
 0x413   : > { %7184 = vmatpush1.bf16.msra.mxu1 %v7183_v14  ;;  %v6178_v14 = vld [vmem:[#allocation6 + $0x678] sm:$0xff] }
 0x414   : > { %7186 = vmatprep.subr.bf16.mxu1 %v7185_v6  ;;  %v7199_v6 = vpack.c.bf16 %v6173_v18, %v6171_v60  ;;  %v7201_v59 = vpack.c.bf16 %v6178_v14, %v6176_v36  ;;  %v6197_v36 = vld [vmem:[#allocation6 + $0x710] sm:$0xff]  ;;  %v6200_v14 = vld [vmem:[#allocation6 + $0x728] sm:$0xff] }
 0x417   : > { %7188 = vmatpush1.bf16.msra.mxu1 %v7187_v2 }
 0x418   : > { %7190 = vmatprep.subr.bf16.mxu1 %v7189_v48  ;;  %v6177_v48 = vld [vmem:[#allocation6 + $0x670] sm:$0xff] }
 0x419   : > { %v7203_v7 = vpack.c.bf16 %v6177_v48, %v6175_v11 }
 0x4ad   : > { %v4181_v41 = vpop.f32.mrb[16].mxu1 }
 0x4ae   : > { %v4249_v5 = vadd.f32 %v4242_v52, %v4181_v41  ;;  %v4183_v34 = vpop.f32.mrb[17].mxu1 }
 0x4af   : > { %v4250_v13 = vadd.f32 %v4246_v1, %v4183_v34  ;;  %v6182_v34 = vld [vmem:[#allocation6 + $0x698] sm:$0xff] }
 0x4b0   : > { %v4257_v30 = vmax.f32 %v4249_v5, 0.0  ;;  %v6180_v5 = vld [vmem:[#allocation6 + $0x688] sm:$0xff] }
 0x4b1   : > { %v4258_v54 = vmax.f32 %v4250_v13, 0.0  ;;  %v4187_v47 = vpop.f32.mrb[18].mxu1  ;;  %v7205_v25 = vpack.c.bf16 %v6182_v34, %v6180_v5  ;;  %v6208_v5 = vld [vmem:[#allocation6 + $0x768] sm:$0xff]  ;;  %v6210_v34 = vld [vmem:[#allocation6 + $0x778] sm:$0xff] }
 0x4b2   : > { %v4251_v20 = vadd.f32 %v4242_v52, %v4187_v47  ;;  %v4189_v29 = vpop.f32.mrb[19].mxu1  ;;  %v6184_v47 = vld [vmem:[#allocation6 + $0x6a8] sm:$0xff] }
 0x4b3   : > { %v4252_v10 = vadd.f32 %v4246_v1, %v4189_v29  ;;  %4401 = vmatprep.mubr.f32.mxu1 %v4258_v54  ;;  %v6148_v54 = vmax.f32 %v6140_v32, 0.0  ;;  %v6188_v29 = vld [vmem:[#allocation6 + $0x6c8] sm:$0xff]  ;;  %v6203_v32 = vld [vmem:[#allocation6 + $0x740] sm:$0xff] }
 0x4b4   : > { %4402 = vmatmul.mubr.f32.vlgmr.msra.gmra.mrb[8].mxu1 %v4257_v30  ;;  %v4259_v3 = vmax.f32 %v4251_v20, 0.0  ;;  %v6183_v30 = vld [vmem:[#allocation6 + $0x6a0] sm:$0xff]  ;;  %v6185_v20 = vld [vmem:[#allocation6 + $0x6b0] sm:$0xff] }
 0x4b5   : > { %v4260_v46 = vmax.f32 %v4252_v10, 0.0  ;;  %7192 = vmatpush1.bf16.msra.mxu1 %v7191_v56  ;;  %v4193_v12 = vpop.f32.mrb[20].mxu1  ;;  %v6186_v56 = vld [vmem:[#allocation6 + $0x6b8] sm:$0xff]  ;;  %v7211_v43 = vpack.c.bf16 %v6185_v20, %v6183_v30  ;;  %v6187_v10 = vld [vmem:[#allocation6 + $0x6c0] sm:$0xff] }
 0x4b6   : > { %v4253_v21 = vadd.f32 %v4242_v52, %v4193_v12  ;;  %v4195_v15 = vpop.f32.mrb[21].mxu1  ;;  %7194 = vmatprep.subr.bf16.mxu1 %v7193_v16  ;;  %v6190_v16 = vld [vmem:[#allocation6 + $0x6d8] sm:$0xff]  ;;  %v7215_v12 = vpack.c.bf16 %v6189_v9, %v6187_v10 }
 0x4b7   : > { %v4254_v8 = vadd.f32 %v4246_v1, %v4195_v15  ;;  %4407 = vmatprep.mubr.f32.mxu1 %v4260_v46  ;;  %v7213_v38 = vpack.c.bf16 %v6190_v16, %v6188_v29  ;;  %v6194_v46 = vld [vmem:[#allocation6 + $0x6f8] sm:$0xff]  ;;  %v6196_v15 = vld [vmem:[#allocation6 + $0x708] sm:$0xff]  ;;  %v6215_v16 = vld [vmem:[#allocation6 + $0x7a0] sm:$0xff] }
 0x4b8   : > { %4408 = vmatmul.mubr.f32.gmra.mrb[10].mxu1 %v4259_v3  ;;  %v4261_v31 = vmax.f32 %v4253_v21, 0.0  ;;  %v6191_v3 = vld [vmem:[#allocation6 + $0x6e0] sm:$0xff]  ;;  %v6193_v21 = vld [vmem:[#allocation6 + $0x6f0] sm:$0xff]  ;;  %v6218_v30 = vld [vmem:[#allocation6 + $0x7b8] sm:$0xff] }
 0x4b9   : > { %v4262_v39 = vmax.f32 %v4254_v8, 0.0  ;;  %7196 = vmatpush1.bf16.msra.mxu1 %v7195_v45  ;;  %v4199_v24 = vpop.f32.mrb[22].mxu1  ;;  %v7217_v45 = vpack.c.bf16 %v6194_v46, %v6192_v55  ;;  %v7219_v60 = vpack.c.bf16 %v6193_v21, %v6191_v3  ;;  %v6195_v8 = vld [vmem:[#allocation6 + $0x700] sm:$0xff]  ;;  %v6222_v10 = vld [vmem:[#allocation6 + $0x7d8] sm:$0xff] }
 0x4ba   : > { %v4255_v49 = vadd.f32 %v4242_v52, %v4199_v24  ;;  %v4201_v2 = vpop.f32.mrb[23].mxu1  ;;  %7198 = vmatprep.subr.bf16.mxu1 %v7197_v62  ;;  %v6179_v52 = vld [vmem:[#allocation6 + $0x680] sm:$0xff]  ;;  %v6198_v62 = vld [vmem:[#allocation6 + $0x718] sm:$0xff]  ;;  %v7223_v24 = vpack.c.bf16 %v6197_v36, %v6195_v8 }
 0x4bb   : > { %v4256_v41 = vadd.f32 %v4246_v1, %v4201_v2  ;;  %4413 = vmatprep.mubr.f32.mxu1 %v4262_v39  ;;  %v7207_v4 = vpack.c.bf16 %v6181_v51, %v6179_v52  ;;  %v7209_v1 = vpack.c.bf16 %v6186_v56, %v6184_v47  ;;  %v7221_v18 = vpack.c.bf16 %v6198_v62, %v6196_v15  ;;  %v6202_v39 = vld [vmem:[#allocation6 + $0x738] sm:$0xff]  ;;  %v6204_v2 = vld [vmem:[#allocation6 + $0x748] sm:$0xff]  ;;  %v6211_v56 = vld [vmem:[#allocation6 + $0x780] sm:$0xff] }
 0x4bc   : > { %4414 = vmatmul.mubr.f32.gmra.mrb[12].mxu1 %v4261_v31  ;;  %v4263_v13 = vmax.f32 %v4255_v49, 0.0  ;;  %v6199_v31 = vld [vmem:[#allocation6 + $0x720] sm:$0xff]  ;;  %v6201_v49 = vld [vmem:[#allocation6 + $0x730] sm:$0xff]  ;;  %v6212_v52 = vld [vmem:[#allocation6 + $0x788] sm:$0xff]  ;;  %v6132_v15 = vrot.slane %v9790_v40, %v8905_v42  ;;  %v6144_v40 = vadd.f32 %v9794_v33, %v9776_v50 }
 0x4bd   : > { %v4264_v35 = vmax.f32 %v4256_v41, 0.0  ;;  %7200 = vmatpush1.bf16.msra.mxu1 %v7199_v6  ;;  %v7225_v6 = vpack.c.bf16 %v6202_v39, %v6200_v14  ;;  %v7227_v11 = vpack.c.bf16 %v6201_v49, %v6199_v31  ;;  %v6205_v41 = vld [vmem:[#allocation6 + $0x750] sm:$0xff]  ;;  %v6214_v51 = vld [vmem:[#allocation6 + $0x798] sm:$0xff]  ;;  %v6219_v46 = vld [vmem:[#allocation6 + $0x7c0] sm:$0xff]  ;;  %v6142_v14 = vadd.f32 %v9794_v33, %v9772_v17 }
 0x4be   : > { %7202 = vmatprep.subr.bf16.mxu1 %v7201_v59  ;;  %v6206_v59 = vld [vmem:[#allocation6 + $0x758] sm:$0xff]  ;;  %v7237_v47 = vpack.c.bf16 %v6214_v51, %v6212_v52  ;;  %v6139_v36 = vadd.f32 %v6132_v15, %v9766_v28  ;;  %v6143_v49 = vadd.f32 %v6132_v15, %v9774_v37  ;;  %v6146_v28 = vadd.f32 %v9794_v33, %v9780_v63  ;;  %v6340_v50 = vld [vmem:[%s7888_s24] sm:$0x3]  ;;  %s6996_s24 = sshll.u32 %s7695_s30, 3 }
 0x4bf   : > { %4419 = vmatprep.mubr.f32.mxu1 %v4264_v35  ;;  %v7229_v48 = vpack.c.bf16 %v6206_v59, %v6204_v2  ;;  %v7231_v35 = vpack.c.bf16 %v6205_v41, %v6203_v32  ;;  %v6226_v3 = vld [vmem:[#allocation6 + $0x7f8] sm:$0xff]  ;;  %v6152_v2 = vmax.f32 %v6144_v40, 0.0  ;;  %v6145_v59 = vadd.f32 %v6132_v15, %v9778_v44  ;;  %s6411_s17 = sadd.s32 %s6996_s24, %s6991_s13  ;;  %s7619_s24 = scalar_lea.vmem %s7618_s18, 2048 }
 0x4c0   : > { %4420 = vmatmul.mubr.f32.gmra.mrb[14].mxu1 %v4263_v13  ;;  %v6207_v13 = vld [vmem:[#allocation6 + $0x760] sm:$0xff]  ;;  %v6147_v39 = vmax.f32 %v6139_v36, 0.0  ;;  %v6151_v17 = vmax.f32 %v6143_v49, 0.0  ;;  %v6345_v37 = vrot.slane %v6340_v50, %v8905_v42  ;;  %v6349_v63 = vrot.slane %v6340_v50, %v8915_v57  ;;  %s6992_s30 = sshll.u32 %s6411_s17, 7  ;;  %p7621_p6 = scmp.lt.s32.totalorder %s7619_s24, %s7613_s16 }
 0x4c1   : > { %7204 = vmatpush1.bf16.msra.mxu1 %v7203_v7  ;;  %6291 = vmatprep.mubr.f32.mxu1 %v6148_v54  ;;  %v7233_v7 = vpack.c.bf16 %v6210_v34, %v6208_v5  ;;  %s9838_s23 = scalar_lea.hbm %s9906_s8, %s6992_s30 }
 0x4c2   : > { %7206 = vmatprep.subr.bf16.mxu1 %v7205_v25  ;;  %v6209_v25 = vld [vmem:[#allocation6 + $0x770] sm:$0xff]  ;;  %p7622_p7 = por %p7621_p6, %p7620_p5 }
 0x4c3   : > { %v7235_v54 = vpack.c.bf16 %v6209_v25, %v6207_v13 }
 0x4c4   : > { %p7623_p9 = pnand %p7622_p7, %p7616_p2 }
 0x4c5   : > { %7208 = vmatpush1.bf16.msra.mxu1 %v7207_v4  ;;  %v6213_v4 = vld [vmem:[#allocation6 + $0x790] sm:$0xff] }
 0x4c6   : > { %7210 = vmatprep.subr.bf16.mxu1 %v7209_v1  ;;  %v6216_v1 = vld [vmem:[#allocation6 + $0x7a8] sm:$0xff]  ;;  %v7239_v20 = vpack.c.bf16 %v6213_v4, %v6211_v56 }
 0x4c7   : > { %v7241_v29 = vpack.c.bf16 %v6218_v30, %v6216_v1 }
 0x4c9   : > { %7212 = vmatpush1.bf16.msra.mxu1 %v7211_v43  ;;  %v6217_v43 = vld [vmem:[#allocation6 + $0x7b0] sm:$0xff] }
 0x4ca   : > { %7214 = vmatprep.subr.bf16.mxu1 %v7213_v38  ;;  %v6220_v38 = vld [vmem:[#allocation6 + $0x7c8] sm:$0xff]  ;;  %v7243_v9 = vpack.c.bf16 %v6217_v43, %v6215_v16 }
 0x4cb   : > { %v7245_v55 = vpack.c.bf16 %v6222_v10, %v6220_v38 }
 0x4cd   : > { %7216 = vmatpush1.bf16.msra.mxu1 %v7215_v12  ;;  %v6221_v12 = vld [vmem:[#allocation6 + $0x7d0] sm:$0xff] }
 0x4ce   : > { %7218 = vmatprep.subr.bf16.mxu1 %v7217_v45  ;;  %v6224_v45 = vld [vmem:[#allocation6 + $0x7e8] sm:$0xff]  ;;  %v7247_v21 = vpack.c.bf16 %v6221_v12, %v6219_v46 }
 0x4cf   : > { %v7249_v62 = vpack.c.bf16 %v6226_v3, %v6224_v45 }
 0x4d1   : > { %7220 = vmatpush1.bf16.msra.mxu1 %v7219_v60  ;;  %v6223_v60 = vld [vmem:[#allocation6 + $0x7e0] sm:$0xff] }
 0x4d2   : > { %7222 = vmatprep.subr.bf16.mxu1 %v7221_v18  ;;  %v6225_v18 = vld [vmem:[#allocation6 + $0x7f0] sm:$0xff] }
 0x4d3   : > { %v7251_v8 = vpack.c.bf16 %v6225_v18, %v6223_v60 }
 0x4d5   : > { %7224 = vmatpush1.bf16.msra.mxu1 %v7223_v24  ;;  %v6141_v24 = vadd.f32 %v6132_v15, %v9770_v27  ;;  %v6154_v27 = vmax.f32 %v6146_v28, 0.0 }
 0x4d6   : > { %7226 = vmatprep.subr.bf16.mxu1 %v7225_v6  ;;  %v6150_v6 = vmax.f32 %v6142_v14, 0.0 }
 0x4d7   : > { %v6149_v31 = vmax.f32 %v6141_v24, 0.0 }
 0x4d9   : > { %7228 = vmatpush1.bf16.msra.mxu1 %v7227_v11  ;;  %v6153_v11 = vmax.f32 %v6145_v59, 0.0 }
 0x4da   : > { %7230 = vmatprep.subr.bf16.mxu1 %v7229_v48  ;;  %v6987_v48 = vld [vmem:[%s9905_s7 + $0x4] ss:$8 sm:$0x3] }
 0x4db   : > { %v6366_v41 = vrot.slane %v6987_v48, %v8905_v42  ;;  %v6370_v34 = vrot.slane %v6987_v48, %v8915_v57 }
 0x4dd   : > { %7232 = vmatpush1.bf16.msra.mxu1 %v7231_v35 }
 0x4de   : > { %7234 = vmatprep.subr.bf16.mxu1 %v7233_v7 }
 0x4e1   : > { %7236 = vmatpush1.bf16.msra.mxu1 %v7235_v54 }
 0x4e2   : > { %7238 = vmatprep.subr.bf16.mxu1 %v7237_v47 }
 0x4e5   : > { %7240 = vmatpush1.bf16.msra.mxu1 %v7239_v20 }
 0x4e6   : > { %7242 = vmatprep.subr.bf16.mxu1 %v7241_v29 }
 0x4e9   : > { %7244 = vmatpush1.bf16.msra.mxu1 %v7243_v9 }
 0x4ea   : > { %7246 = vmatprep.subr.bf16.mxu1 %v7245_v55 }
 0x4ed   : > { %7248 = vmatpush1.bf16.msra.mxu1 %v7247_v21 }
 0x4ee   : > { %7250 = vmatprep.subr.bf16.mxu1 %v7249_v62 }
 0x4f1   : > { %7252 = vmatpush1.bf16.msra.mxu1 %v7251_v8 }
 0x4f4   : > { %6292 = vmatmul.mubr.f32.vlgmr.msra.gmra.mrb[8].mxu1 %v6147_v39 }
 0x4f5   : > { %6297 = vmatprep.mubr.f32.mxu1 %v6150_v6 }
 0x4f8   : > { %6298 = vmatmul.mubr.f32.gmra.mrb[10].mxu1 %v6149_v31 }
 0x4f9   : > { %6303 = vmatprep.mubr.f32.mxu1 %v6152_v2 }
 0x4fc   : > { %6304 = vmatmul.mubr.f32.gmra.mrb[12].mxu1 %v6151_v17 }
 0x4fd   : > { %6309 = vmatprep.mubr.f32.mxu1 %v6154_v27 }
 0x500   : > { %6310 = vmatmul.mubr.f32.gmra.mrb[14].mxu1 %v6153_v11 }
 0x5c7   : > { %v6293_v32 = vpop.f32.mrb[8].mxu1 }
 0x5c8   : > { %v7253_v33 = vadd.f32 %v6293_v32, %v9307_v58  ;;  %v6295_v44 = vpop.f32.mrb[9].mxu1 }
 0x5c9   : > { %v7254_v5 = vadd.f32 %v6295_v44, %v9311_v0 }
 0x5ca   : > { %v6352_v35 = vadd.f32 %v7253_v33, %v6345_v37 }
 0x5cb   : > { %v6353_v7 = vadd.f32 %v7254_v5, %v6349_v63  ;;  %v6299_v13 = vpop.f32.mrb[10].mxu1 }
 0x5cc   : > { %v6373_v25 = vadd.f32 %v6366_v41, %v6352_v35  ;;  %v7255_v52 = vadd.f32 %v6299_v13, %v9319_v19  ;;  %v6301_v51 = vpop.f32.mrb[11].mxu1 }
 0x5cd   : > { %v6374_v54 = vadd.f32 %v6370_v34, %v6353_v7  ;;  %v7256_v58 = vadd.f32 %v6301_v51, %v9324_v23 }
 0x5ce   : > { %v6381_v42 = vmax.f32 %v6373_v25, 0.0  ;;  %v6354_v47 = vadd.f32 %v7255_v52, %v6345_v37 }
 0x5cf   : > { %v6382_v56 = vmax.f32 %v6374_v54, 0.0  ;;  %v6355_v4 = vadd.f32 %v7256_v58, %v6349_v63  ;;  %v6305_v0 = vpop.f32.mrb[12].mxu1 }
 0x5d0   : > { %6389 = vst [vmem:[%s7890_s22] sm:$0xff] %v6381_v42  ;;  %v6375_v57 = vadd.f32 %v6366_v41, %v6354_v47  ;;  %v7257_v1 = vadd.f32 %v6305_v0, %v9332_v22  ;;  %v6307_v30 = vpop.f32.mrb[13].mxu1 }
 0x5d1   : > { %6390 = vst [vmem:[%s7890_s22 + $0x8] sm:$0xff] %v6382_v56  ;;  %v6376_v19 = vadd.f32 %v6370_v34, %v6355_v4  ;;  %v7258_v20 = vadd.f32 %v6307_v30, %v9337_v26 }
 0x5d2   : > { %v6383_v29 = vmax.f32 %v6375_v57, 0.0  ;;  %v6356_v23 = vadd.f32 %v7257_v1, %v6345_v37 }
 0x5d3   : > { %v6384_v16 = vmax.f32 %v6376_v19, 0.0  ;;  %v6357_v43 = vadd.f32 %v7258_v20, %v6349_v63  ;;  %v6311_v38 = vpop.f32.mrb[14].mxu1 }
 0x5d4   : > { %6391 = vst [vmem:[%s7890_s22 + $0x10] sm:$0xff] %v6383_v29  ;;  %v6377_v10 = vadd.f32 %v6366_v41, %v6356_v23  ;;  %v7259_v22 = vadd.f32 %v6311_v38, %v9342_v61  ;;  %v6313_v9 = vpop.f32.mrb[15].mxu1 }
 0x5d5   : > { %6392 = vst [vmem:[%s7890_s22 + $0x18] sm:$0xff] %v6384_v16  ;;  %v6378_v55 = vadd.f32 %v6370_v34, %v6357_v43  ;;  %v7260_v26 = vadd.f32 %v6313_v9, %v9346_v53 }
 0x5d6   : > { %v6385_v46 = vmax.f32 %v6377_v10, 0.0  ;;  %v6358_v12 = vadd.f32 %v7259_v22, %v6345_v37 }
 0x5d7   : > { %v6386_v45 = vmax.f32 %v6378_v55, 0.0  ;;  %v6359_v3 = vadd.f32 %v7260_v26, %v6349_v63 }
 0x5d8   : > { %6393 = vst [vmem:[%s7890_s22 + $0x20] sm:$0xff] %v6385_v46  ;;  %v6379_v21 = vadd.f32 %v6366_v41, %v6358_v12 }
 0x5d9   : > { %6394 = vst [vmem:[%s7890_s22 + $0x28] sm:$0xff] %v6386_v45  ;;  %v6380_v61 = vadd.f32 %v6370_v34, %v6359_v3 }
 0x5da   : > { %v6387_v15 = vmax.f32 %v6379_v21, 0.0 }
 0x5db   : > { %v6388_v53 = vmax.f32 %v6380_v61, 0.0 }
 0x5dc   : > { %6395 = vst [vmem:[%s7890_s22 + $0x30] sm:$0xff] %v6387_v15 }
 0x5dd   : > { %6396 = vst [vmem:[%s7890_s22 + $0x38] sm:$0xff] %v6388_v53 }
 0x5de   : > { %7626 = shalt.err (!%p7623_p9)
}
 0x5df   : > { %s7627_s11 = scalar_lea.hbm %s9838_s23, 1024  ;;  %s7631_s17 = scalar_lea.hbm %s9906_s8, 16384 }
 0x5e0   : > { %p7628_p11 = scmp.ne.s32.totalorder %s9838_s23, %s7627_s11  ;;  %p7632_p4 = scmp.lt.u32.totalorder %s9838_s23, %s9906_s8 }
 0x5e1   : > { %p7633_p3 = scmp.lt.u32.totalorder %s7631_s17, %s7627_s11  ;;  %p7635_p10 = scmp.lt.u32.totalorder %s7627_s11, %s9838_s23 }
 0x5e2   : > { %p7629_p13 = pnand %p7628_p11, %p9927_p12 }
 0x5e3   : > { %p7634_p8 = por %p7633_p3, %p7632_p4 }
 0x5e4   : > { %p7630_p1 = pneg %p7629_p13 }
 0x5e5   : > { %p7636_p0 = por %p7635_p10, %p7634_p8 }
 0x5e7   : > { %p7637_p2 = pnand %p7636_p0, %p7630_p1 }
 0x5e9   : > { %7640 = shalt.err (!%p7637_p2)
}
 0x5ea   : > { %s7719_s26 = smov 256   ;;  %s7720_s16 = smov 16  }
 0x5eb   : > { %7473 = dma.vmem_to_hbm [thread:$0]  (%p9927_p12), %s9840_s9, 1024, %s9838_s23, %s9846_s15, %s7719_s26, %s7719_s26, %s7720_s16  }
 0x5ec PF: > { %p7485_p5 = scmp.ge.s32.totalorder %s7711_s12, 2  ;;  %s6429_s21 = sand.u32 1, %s7683_s27  }
 0x5ed   : > { %p9928_p6 = scmp.ne.s32.totalorder %s9920_s20, 0  ;;  %s6430_s18 = scalar_lea.sflag [#allocation8], %s6429_s21 }
 0x5ef   : > { %p7480_p7 = pnand %p7485_p5, %p9928_p6 }
 0x5f1   : > { %7678 = dma.done.wait (!%p7480_p7), %s6430_s18, 1024  }
 0x5f2   : > { %7680 = vsyncadd (!%p7480_p7), %s6430_s18, 4294966272  ;;  %s22_s12 = sadd.s32 1, %s7711_s12   ;;  %s9929_s9 = sld [smem:[#allocation12_spill]] }
 0x5f3   : > { %p19_p9 = scmp.ge.s32.totalorder %s22_s12, 18   ;;  %s9930_s19 = sld [smem:[#allocation13_spill]] }
 0x5f4   : > { %s9931_s11 = sld [smem:[#allocation14_spill]]  ;;  %s9932_s27 = smov %s7687_s28 }
 0x5f5   : > { %s9933_s28 = smov %s7691_s29  ;;  %s9934_s29 = smov %s7845_s25 }
 0x5f6   : > { %s9935_s30 = smov %s7703_s10  ;;  %21 = sbr.rel (!%p19_p9) target bundleno = 6 (0x6), region = 137 }
 0x5f9   : > { %s9936_s10 = smov %s9930_s19 }
 0x5fd   :  { %6435 = vsyncpa [#allocation7], 1 }
 0x5fe   :  { %6437 = vsyncpa [#allocation7 + $0x1], 1 }
 0x5ff   :  { %6438 = vsyncpa [#allocation8], 1 }
 0x600   :  { %6440 = vsyncpa [#allocation8 + $0x1], 1 }

// kernel: tpu_custom_call.1
= control target key start
LH: loop header
LB: loop body
LE: loop exit
PB: predicated region body
PF: predicated region fallthrough
CT: control target
= control target key end

     0   :  { %13 = vsyncpa [#allocation7], 0  ;;  %s9898_s0 = inlined_call_operand.vmem [shape: f32[2,16,16,4], index: 0, kind: input, shape index: {}]   ;;  %s9899_s1 = inlined_call_operand.vmem [shape: f32[4,256], index: 1, kind: input, shape index: {}]   ;;  %s9900_s2 = inlined_call_operand.vmem [shape: f32[9,4,256], index: 2, kind: input, shape index: {}]   ;;  %s9901_s3 = inlined_call_operand.vmem [shape: f32[9,4,256], index: 3, kind: input, shape index: {}]   ;;  %s9902_s4 = inlined_call_operand.vmem [shape: f32[9,4,256], index: 4, kind: input, shape index: {}]   ;;  %s9903_s5 = inlined_call_operand.hbm [shape: f32[1024,256], index: 5, kind: input, shape index: {}]   ;;  %s9904_s6 = inlined_call_operand.vmem [shape: f32[2,1,256], index: 6, kind: input, shape index: {}]   ;;  %s9905_s7 = inlined_call_operand.vmem [shape: f32[5,256], index: 7, kind: input, shape index: {}]   ;;  %s9906_s8 = inlined_call_operand.hbm [shape: f32[2,256,256], index: 8, kind: output, shape index: {}]  }
   0x1   :  { %14 = vsyncpa [#allocation8], 0 }
   0x2   :  { %16 = vsyncpa [#allocation8 + $0x1], 0  ;;  %s7766_s27 = smov 0   ;;  %s7768_s28 = smov 0  }
   0x3   :  { %s7770_s29 = smov 0   ;;  %s7772_s30 = smov 0  }
   0x4   :  { %s7774_s9 = smov 0   ;;  %s7776_s10 = smov 0  }
   0x5   :  { %s7778_s11 = smov 0   ;;  %s7780_s12 = smov 0  }
   0x6 LB: > { %9916 = sst [smem:[#allocation12_spill]] %s7707_s11  ;;  %s6528_s13 = sadd.s32 4294967295, %s7711_s12   ;;  %s7711_s12 = sphi %s7780_s12, %s22_s12   ;;  %s7707_s11 = sphi %s7778_s11, %s9931_s11   ;;  %s7703_s10 = sphi %s7776_s10, %s9936_s10   ;;  %s7699_s9 = sphi %s7774_s9, %s9929_s9   ;;  %s7695_s30 = sphi %s7772_s30, %s9935_s30   ;;  %s7691_s29 = sphi %s7770_s29, %s9934_s29   ;;  %s7687_s28 = sphi %s7768_s28, %s9933_s28   ;;  %s7683_s27 = sphi %s7766_s27, %s9932_s27  }
   0x7   : > { %s6529_s14 = sadd.s32 4294967294, %s7711_s12   ;;  %s31_s15 = sadd.s32 1, %s7703_s10 }
   0x8   : > { %s34_s16 = sadd.s32 1, %s7707_s11  ;;  %p32_p0 = scmp.ge.s32.totalorder %s31_s15, 8 }
   0x9   : > { %s221_s17 = sadd.s32 1, %s7691_s29  ;;  %p231_p1 = scmp.ne.s32.totalorder %s7691_s29, %s7687_s28 }
   0xa   : > { %p232_p2 = scmp.eq.s32.totalorder %s6528_s13, 15  ;;  %s9938_s15 = smov (%p32_p0, %s31_s15), 0 }
   0xb   : > { %9917 = sst [smem:[#allocation13_spill]] %s9938_s15  ;;  %s9940_s16 = smov (!%p32_p0, %s34_s16), %s7707_s11 }
   0xc   : > { %s217_s18 = ssub.s32 %s7703_s10, %s9938_s15  ;;  %p7818_p3 = por %p232_p2, %p231_p1 }
   0xd   : > { %p36_p4 = scmp.ge.s32.totalorder %s9940_s16, 2  ;;  %p237_p5 = scmp.ne.s32.totalorder %s7687_s28, %s7683_s27 }
   0xe   : > { %s9918_s19 = scalar_select %p7818_p3, 1, 0 }
   0xf   : > { %p238_p6 = scmp.eq.s32.totalorder %s6529_s14, 15  ;;  %p6530_p7 = scmp.ge.s32.totalorder %s7711_s12, 1 }
  0x10   : > { %s9942_s16 = smov (%p36_p4, %s9940_s16), 0  ;;  %p245_p9 = scmp.lt.s32.totalorder %s7711_s12, 17 }
  0x11   : > { %9919 = sst [smem:[#allocation14_spill]] %s9942_s16  ;;  %p7827_p8 = por %p238_p6, %p237_p5 }
  0x12   : > { %s216_s21 = ssub.s32 %s7707_s11, %s9942_s16  ;;  %p7834_p10 = pnand %p6530_p7, %p245_p9 }
  0x13   : > { %s9920_s20 = scalar_select %p7827_p8, 1, 0 }
  0x14   : > { %s218_s22 = sor.u32 %s217_s18, %s216_s21  ;;  %p7838_p12 = scmp.eq.s32.totalorder %s6528_s13, 0 }
  0x15   : > { %s9921_s23 = scalar_select %p7834_p10, 1, 0 }
  0x16   : > { %p219_p11 = scmp.eq.s32.totalorder %s218_s22, 0  ;;  %p7475_p13 = pneg %p7834_p10 }
  0x17   : > { %s9922_s24 = scalar_select %p7838_p12, 1, 0 }
  0x18   : > { %s7845_s25 = scalar_select %p219_p11, %s7691_s29, %s221_s17  }
  0x19   : > { %s7713_s26 = smov [#allocation6]   ;;  %p7849_p0 = pnand %p7838_p12, %p7475_p13 }
  0x1a   : > { %s269_s14 = sshll.u32 %s7713_s26, 4  ;;  %s7585_s13 = scalar_lea.hbm %s9903_s5, 32768  ;;  %s270_s14 = int_to_ptr.vmem [resolvable:$true] %s269_s14 }
  0x1b   : > { %p7586_p1 = scmp.ne.s32.totalorder %s9903_s5, %s7585_s13  ;;  %p7587_p2 = pneg %p7849_p0 }
  0x1c   : > { %p7592_p6 = scmp.lt.u32.totalorder %s7585_s13, %s9903_s5 }
  0x1d   : > { %p7588_p4 = pnand %p7587_p2, %p7586_p1 }
  0x1f   : > { %p7589_p5 = pneg %p7588_p4 }
  0x21   : > { %p7594_p7 = pnand %p7592_p6, %p7589_p5 }
  0x23   : > { %7597 = shalt.err (!%p7594_p7)
}
  0x24   : > { %s7598_s11 = scalar_lea.vmem %s270_s14, 32768  ;;  %p7606_p8 = scmp.lt.s32.totalorder %s270_s14, %s270_s14 }
  0x25   : > { %p7599_p9 = scmp.ne.s32.totalorder %s270_s14, %s7598_s11  ;;  %p7607_p3 = scmp.lt.s32.totalorder %s7598_s11, %s7598_s11 }
  0x27   : > { %p7601_p11 = pnand %p7599_p9, %p7587_p2  ;;  %p7608_p12 = por %p7607_p3, %p7606_p8 }
  0x29   : > { %p7602_p13 = pneg %p7601_p11 }
  0x2b   : > { %p7609_p10 = pnand %p7608_p12, %p7602_p13 }
  0x2d   : > { %7612 = shalt.err (!%p7609_p10)
}
  0x2e   : > { %s7714_s15 = smov 256   ;;  %s7715_s16 = smov 16  }
  0x2f   : > { %7478 = dma.hbm_to_vmem [thread:$0]  (!%p7849_p0), %s9903_s5, 32768, %s270_s14, [#allocation7], %s7714_s15, %s7714_s15, %s7715_s16  }
  0x30   : > { %p9924_p1 = scmp.ne.s32.totalorder %s9921_s23, 0 }
  0x31   : > { %p9925_p4 = scmp.ne.s32.totalorder (!%p9924_p1), %s9922_s24, 0 }
  0x32   : > { %303 = sbr.rel (%p9924_p1) target bundleno = 1516 (0x5ec), region = 52 }
  0x39   : > { %7674 = dma.done.wait (%p9925_p4), [#allocation7], 32768  }
  0x3a   : > { %7676 = vsyncadd (%p9925_p4), [#allocation7], 4294934528  ;;  %s338_s11 = sand.u32 1, %s7687_s28   ;;  %p341_p3 = scmp.lt.s32.totalorder %s7699_s9, 1 }
  0x3b   : > { %s6535_s18 = sshll.u32 %s338_s11, 6  ;;  %p6539_p8 = scmp.ne.s32.totalorder %s7695_s30, 0 }
  0x3c   : > { %s342_s13 = scalar_select %p341_p3, %s7699_s9, 1 }
  0x3d   : > { %s7890_s22 = scalar_lea.vmem [#allocation9], %s6535_s18  ;;  %354 = sbr.rel (%p6539_p8) target bundleno = 261 (0x105), region = 60  ;;  %vm355_vm0 = vcmask (!%p6539_p8), 31744   ;;  %vm362_vm1 = vcmask (!%p6539_p8), 27648   ;;  %v7716_v3 = vmov (!%p6539_p8), 0.0  }
  0x3e   : > { %s6995_s17 = sshll.u32 %s342_s13, 8  ;;  %s6538_s14 = sshll.u32 %s342_s13, 1  ;;  %485 = vst.msk [vmem:[#allocation2 + $0x400] sm:$0xff] (!%p6539_p8), %vm355_vm0, %v7716_v3  ;;  %356 = vst.msk [vmem:[#allocation2] sm:$0xff] (!%p6539_p8), %vm355_vm0, %v7716_v3 }
  0x3f   : > { %s7883_s15 = scalar_lea.vmem %s9898_s0, %s6995_s17  ;;  %s7888_s24 = scalar_lea.vmem %s9904_s6, %s6538_s14  ;;  %357 = vst.msk [vmem:[#allocation2 + $0x8] sm:$0xff] (!%p6539_p8), %vm355_vm0, %v7716_v3  ;;  %358 = vst.msk [vmem:[#allocation2 + $0x10] sm:$0xff] (!%p6539_p8), %vm355_vm0, %v7716_v3 }
  0x40   : > { %v7894_v0 = vld [vmem:[%s7883_s15] sm:$0xff] (!%p6539_p8)  ;;  %v7897_v1 = vld [vmem:[%s7883_s15 + $0x8] sm:$0xff] (!%p6539_p8)  ;;  %v7900_v2 = vld [vmem:[%s7883_s15 + $0x10] sm:$0xff] (!%p6539_p8)  ;;  %359 = vst.msk [vmem:[#allocation2 + $0x18] sm:$0xff] (!%p6539_p8), %vm355_vm0, %v7716_v3 }
  0x41   : > { %360 = vst.msk [vmem:[#allocation2 + $0x20] sm:$0xff] (!%p6539_p8), %vm355_vm0, %v7716_v3  ;;  %361 = vst.msk [vmem:[#allocation2 + $0x28] sm:$0xff] (!%p6539_p8), %vm355_vm0, %v7716_v3  ;;  %v724_v4 = vld [vmem:[%s7883_s15 + $0x18] sm:$0xff] (!%p6539_p8)  ;;  %v725_v5 = vld [vmem:[%s7883_s15 + $0x20] sm:$0xff] (!%p6539_p8) }
  0x42   : > { %364 = vst.msk [vmem:[#allocation2 + $0x38] sm:$0xff] (!%p6539_p8), %vm355_vm0, %v7716_v3  ;;  %365 = vst.msk [vmem:[#allocation2 + $0x40] sm:$0xff] (!%p6539_p8), %vm355_vm0, %v7716_v3  ;;  %v726_v6 = vld [vmem:[%s7883_s15 + $0x28] sm:$0xff] (!%p6539_p8)  ;;  %v727_v7 = vld [vmem:[%s7883_s15 + $0x30] sm:$0xff] (!%p6539_p8) }
  0x43   : > { %366 = vst.msk [vmem:[#allocation2 + $0x48] sm:$0xff] (!%p6539_p8), %vm355_vm0, %v7716_v3  ;;  %367 = vst.msk [vmem:[#allocation2 + $0x50] sm:$0xff] (!%p6539_p8), %vm355_vm0, %v7716_v3  ;;  %v728_v8 = vld [vmem:[%s7883_s15 + $0x38] sm:$0xff] (!%p6539_p8)  ;;  %v729_v9 = vld [vmem:[%s7883_s15 + $0x40] sm:$0xff] (!%p6539_p8) }
  0x44   : > { %368 = vst.msk [vmem:[#allocation2 + $0x58] sm:$0xff] %vm355_vm0, %v7716_v3  ;;  %369 = vst.msk [vmem:[#allocation2 + $0x60] sm:$0xff] %vm355_vm0, %v7716_v3  ;;  %v730_v10 = vld [vmem:[%s7883_s15 + $0x48] sm:$0xff]  ;;  %v731_v11 = vld [vmem:[%s7883_s15 + $0x50] sm:$0xff] }
  0x45   : > { %371 = vst.msk [vmem:[#allocation2 + $0x70] sm:$0xff] %vm355_vm0, %v7716_v3  ;;  %372 = vst.msk [vmem:[#allocation2 + $0x78] sm:$0xff] %vm355_vm0, %v7716_v3  ;;  %v732_v12 = vld [vmem:[%s7883_s15 + $0x58] sm:$0xff]  ;;  %v733_v13 = vld [vmem:[%s7883_s15 + $0x60] sm:$0xff] }
  0x46   : > { %373 = vst.msk [vmem:[#allocation2 + $0x80] sm:$0xff] %vm355_vm0, %v7716_v3  ;;  %374 = vst.msk [vmem:[#allocation2 + $0x88] sm:$0xff] %vm355_vm0, %v7716_v3  ;;  %v734_v14 = vld [vmem:[%s7883_s15 + $0x68] sm:$0xff]  ;;  %v735_v15 = vld [vmem:[%s7883_s15 + $0x70] sm:$0xff] }
  0x47   : > { %375 = vst.msk [vmem:[#allocation2 + $0x90] sm:$0xff] %vm355_vm0, %v7716_v3  ;;  %376 = vst.msk [vmem:[#allocation2 + $0x98] sm:$0xff] %vm355_vm0, %v7716_v3  ;;  %v736_v16 = vld [vmem:[%s7883_s15 + $0x78] sm:$0xff]  ;;  %v737_v17 = vld [vmem:[%s7883_s15 + $0x80] sm:$0xff] }
  0x48   : > { %378 = vst.msk [vmem:[#allocation2 + $0xa8] sm:$0xff] %vm355_vm0, %v7716_v3  ;;  %379 = vst.msk [vmem:[#allocation2 + $0xb0] sm:$0xff] %vm355_vm0, %v7716_v3  ;;  %v738_v18 = vld [vmem:[%s7883_s15 + $0x88] sm:$0xff]  ;;  %v739_v19 = vld [vmem:[%s7883_s15 + $0x90] sm:$0xff] }
  0x49   : > { %380 = vst.msk [vmem:[#allocation2 + $0xb8] sm:$0xff] %vm355_vm0, %v7716_v3  ;;  %381 = vst.msk [vmem:[#allocation2 + $0xc0] sm:$0xff] %vm355_vm0, %v7716_v3  ;;  %v740_v20 = vld [vmem:[%s7883_s15 + $0x98] sm:$0xff]  ;;  %v741_v21 = vld [vmem:[%s7883_s15 + $0xa0] sm:$0xff] }
  0x4a   : > { %382 = vst.msk [vmem:[#allocation2 + $0xc8] sm:$0xff] %vm355_vm0, %v7716_v3  ;;  %383 = vst.msk [vmem:[#allocation2 + $0xd0] sm:$0xff] %vm355_vm0, %v7716_v3  ;;  %v742_v22 = vld [vmem:[%s7883_s15 + $0xa8] sm:$0xff]  ;;  %v743_v23 = vld [vmem:[%s7883_s15 + $0xb0] sm:$0xff] }
  0x4b   : > { %385 = vst.msk [vmem:[#allocation2 + $0xe0] sm:$0xff] %vm355_vm0, %v7716_v3  ;;  %386 = vst.msk [vmem:[#allocation2 + $0xe8] sm:$0xff] %vm355_vm0, %v7716_v3  ;;  %v744_v24 = vld [vmem:[%s7883_s15 + $0xb8] sm:$0xff]  ;;  %v745_v25 = vld [vmem:[%s7883_s15 + $0xc0] sm:$0xff] }
  0x4c   : > { %387 = vst.msk [vmem:[#allocation2 + $0xf0] sm:$0xff] %vm355_vm0, %v7716_v3  ;;  %388 = vst.msk [vmem:[#allocation2 + $0xf8] sm:$0xff] %vm355_vm0, %v7716_v3  ;;  %v746_v26 = vld [vmem:[%s7883_s15 + $0xc8] sm:$0xff]  ;;  %v747_v27 = vld [vmem:[%s7883_s15 + $0xd0] sm:$0xff] }
  0x4d   : > { %389 = vst.msk [vmem:[#allocation2 + $0x100] sm:$0xff] %vm355_vm0, %v7716_v3  ;;  %390 = vst.msk [vmem:[#allocation2 + $0x108] sm:$0xff] %vm355_vm0, %v7716_v3  ;;  %v748_v28 = vld [vmem:[%s7883_s15 + $0xd8] sm:$0xff]  ;;  %v749_v29 = vld [vmem:[%s7883_s15 + $0xe0] sm:$0xff] }
  0x4e   : > { %392 = vst.msk [vmem:[#allocation2 + $0x118] sm:$0xff] %vm355_vm0, %v7716_v3  ;;  %393 = vst.msk [vmem:[#allocation2 + $0x120] sm:$0xff] %vm355_vm0, %v7716_v3  ;;  %v750_v30 = vld [vmem:[%s7883_s15 + $0xe8] sm:$0xff]  ;;  %v751_v31 = vld [vmem:[%s7883_s15 + $0xf0] sm:$0xff] }
  0x4f   : > { %394 = vst.msk [vmem:[#allocation2 + $0x128] sm:$0xff] %vm355_vm0, %v7716_v3  ;;  %395 = vst.msk [vmem:[#allocation2 + $0x130] sm:$0xff] %vm355_vm0, %v7716_v3  ;;  %v752_v32 = vld [vmem:[%s7883_s15 + $0xf8] sm:$0xff] }
  0x50   : > { %396 = vst.msk [vmem:[#allocation2 + $0x138] sm:$0xff] %vm355_vm0, %v7716_v3  ;;  %397 = vst.msk [vmem:[#allocation2 + $0x140] sm:$0xff] %vm355_vm0, %v7716_v3 }
  0x51   : > { %399 = vst.msk [vmem:[#allocation2 + $0x150] sm:$0xff] %vm355_vm0, %v7716_v3  ;;  %400 = vst.msk [vmem:[#allocation2 + $0x158] sm:$0xff] %vm355_vm0, %v7716_v3 }
  0x52   : > { %401 = vst.msk [vmem:[#allocation2 + $0x160] sm:$0xff] %vm355_vm0, %v7716_v3  ;;  %402 = vst.msk [vmem:[#allocation2 + $0x168] sm:$0xff] %vm355_vm0, %v7716_v3 }
  0x53   : > { %403 = vst.msk [vmem:[#allocation2 + $0x170] sm:$0xff] %vm355_vm0, %v7716_v3  ;;  %404 = vst.msk [vmem:[#allocation2 + $0x178] sm:$0xff] %vm355_vm0, %v7716_v3 }
  0x54   : > { %406 = vst.msk [vmem:[#allocation2 + $0x188] sm:$0xff] %vm355_vm0, %v7716_v3  ;;  %407 = vst.msk [vmem:[#allocation2 + $0x190] sm:$0xff] %vm355_vm0, %v7716_v3 }
  0x55   : > { %408 = vst.msk [vmem:[#allocation2 + $0x198] sm:$0xff] %vm355_vm0, %v7716_v3  ;;  %409 = vst.msk [vmem:[#allocation2 + $0x1a0] sm:$0xff] %vm355_vm0, %v7716_v3 }
  0x56   : > { %410 = vst.msk [vmem:[#allocation2 + $0x1a8] sm:$0xff] %vm355_vm0, %v7716_v3  ;;  %411 = vst.msk [vmem:[#allocation2 + $0x1b0] sm:$0xff] %vm355_vm0, %v7716_v3 }
  0x57   : > { %413 = vst.msk [vmem:[#allocation2 + $0x1c0] sm:$0xff] %vm355_vm0, %v7716_v3  ;;  %414 = vst.msk [vmem:[#allocation2 + $0x1c8] sm:$0xff] %vm355_vm0, %v7716_v3 }
  0x58   : > { %415 = vst.msk [vmem:[#allocation2 + $0x1d0] sm:$0xff] %vm355_vm0, %v7716_v3  ;;  %416 = vst.msk [vmem:[#allocation2 + $0x1d8] sm:$0xff] %vm355_vm0, %v7716_v3 }
  0x59   : > { %417 = vst.msk [vmem:[#allocation2 + $0x1e0] sm:$0xff] %vm355_vm0, %v7716_v3  ;;  %418 = vst.msk [vmem:[#allocation2 + $0x1e8] sm:$0xff] %vm355_vm0, %v7716_v3 }
  0x5a   : > { %420 = vst.msk [vmem:[#allocation2 + $0x1f8] sm:$0xff] %vm355_vm0, %v7716_v3  ;;  %421 = vst.msk [vmem:[#allocation2 + $0x200] sm:$0xff] %vm355_vm0, %v7716_v3 }
  0x5b   : > { %422 = vst.msk [vmem:[#allocation2 + $0x208] sm:$0xff] %vm355_vm0, %v7716_v3  ;;  %423 = vst.msk [vmem:[#allocation2 + $0x210] sm:$0xff] %vm355_vm0, %v7716_v3 }
  0x5c   : > { %424 = vst.msk [vmem:[#allocation2 + $0x218] sm:$0xff] %vm355_vm0, %v7716_v3  ;;  %425 = vst.msk [vmem:[#allocation2 + $0x220] sm:$0xff] %vm355_vm0, %v7716_v3 }
  0x5d   : > { %427 = vst.msk [vmem:[#allocation2 + $0x230] sm:$0xff] %vm355_vm0, %v7716_v3  ;;  %428 = vst.msk [vmem:[#allocation2 + $0x238] sm:$0xff] %vm355_vm0, %v7716_v3 }
  0x5e   : > { %429 = vst.msk [vmem:[#allocation2 + $0x240] sm:$0xff] %vm355_vm0, %v7716_v3  ;;  %430 = vst.msk [vmem:[#allocation2 + $0x248] sm:$0xff] %vm355_vm0, %v7716_v3 }
  0x5f   : > { %431 = vst.msk [vmem:[#allocation2 + $0x250] sm:$0xff] %vm355_vm0, %v7716_v3  ;;  %432 = vst.msk [vmem:[#allocation2 + $0x258] sm:$0xff] %vm355_vm0, %v7716_v3 }
  0x60   : > { %434 = vst.msk [vmem:[#allocation2 + $0x268] sm:$0xff] %vm355_vm0, %v7716_v3  ;;  %435 = vst.msk [vmem:[#allocation2 + $0x270] sm:$0xff] %vm355_vm0, %v7716_v3 }
  0x61   : > { %436 = vst.msk [vmem:[#allocation2 + $0x278] sm:$0xff] %vm355_vm0, %v7716_v3  ;;  %437 = vst.msk [vmem:[#allocation2 + $0x280] sm:$0xff] %vm355_vm0, %v7716_v3 }
  0x62   : > { %438 = vst.msk [vmem:[#allocation2 + $0x288] sm:$0xff] %vm355_vm0, %v7716_v3  ;;  %439 = vst.msk [vmem:[#allocation2 + $0x290] sm:$0xff] %vm355_vm0, %v7716_v3 }
  0x63   : > { %441 = vst.msk [vmem:[#allocation2 + $0x2a0] sm:$0xff] %vm355_vm0, %v7716_v3  ;;  %442 = vst.msk [vmem:[#allocation2 + $0x2a8] sm:$0xff] %vm355_vm0, %v7716_v3 }
  0x64   : > { %443 = vst.msk [vmem:[#allocation2 + $0x2b0] sm:$0xff] %vm355_vm0, %v7716_v3  ;;  %444 = vst.msk [vmem:[#allocation2 + $0x2b8] sm:$0xff] %vm355_vm0, %v7716_v3 }
  0x65   : > { %445 = vst.msk [vmem:[#allocation2 + $0x2c0] sm:$0xff] %vm355_vm0, %v7716_v3  ;;  %446 = vst.msk [vmem:[#allocation2 + $0x2c8] sm:$0xff] %vm355_vm0, %v7716_v3 }
  0x66   : > { %448 = vst.msk [vmem:[#allocation2 + $0x2d8] sm:$0xff] %vm355_vm0, %v7716_v3  ;;  %449 = vst.msk [vmem:[#allocation2 + $0x2e0] sm:$0xff] %vm355_vm0, %v7716_v3 }
  0x67   : > { %450 = vst.msk [vmem:[#allocation2 + $0x2e8] sm:$0xff] %vm355_vm0, %v7716_v3  ;;  %451 = vst.msk [vmem:[#allocation2 + $0x2f0] sm:$0xff] %vm355_vm0, %v7716_v3 }
  0x68   : > { %452 = vst.msk [vmem:[#allocation2 + $0x2f8] sm:$0xff] %vm355_vm0, %v7716_v3  ;;  %453 = vst.msk [vmem:[#allocation2 + $0x300] sm:$0xff] %vm355_vm0, %v7716_v3 }
  0x69   : > { %455 = vst.msk [vmem:[#allocation2 + $0x310] sm:$0xff] %vm355_vm0, %v7716_v3  ;;  %456 = vst.msk [vmem:[#allocation2 + $0x318] sm:$0xff] %vm355_vm0, %v7716_v3 }
  0x6a   : > { %457 = vst.msk [vmem:[#allocation2 + $0x320] sm:$0xff] %vm355_vm0, %v7716_v3  ;;  %458 = vst.msk [vmem:[#allocation2 + $0x328] sm:$0xff] %vm355_vm0, %v7716_v3 }
  0x6b   : > { %459 = vst.msk [vmem:[#allocation2 + $0x330] sm:$0xff] %vm355_vm0, %v7716_v3  ;;  %460 = vst.msk [vmem:[#allocation2 + $0x338] sm:$0xff] %vm355_vm0, %v7716_v3 }
  0x6c   : > { %462 = vst.msk [vmem:[#allocation2 + $0x348] sm:$0xff] %vm355_vm0, %v7716_v3  ;;  %463 = vst.msk [vmem:[#allocation2 + $0x350] sm:$0xff] %vm355_vm0, %v7716_v3 }
  0x6d   : > { %464 = vst.msk [vmem:[#allocation2 + $0x358] sm:$0xff] %vm355_vm0, %v7716_v3  ;;  %465 = vst.msk [vmem:[#allocation2 + $0x360] sm:$0xff] %vm355_vm0, %v7716_v3 }
  0x6e   : > { %466 = vst.msk [vmem:[#allocation2 + $0x368] sm:$0xff] %vm355_vm0, %v7716_v3  ;;  %467 = vst.msk [vmem:[#allocation2 + $0x370] sm:$0xff] %vm355_vm0, %v7716_v3 }
  0x6f   : > { %469 = vst.msk [vmem:[#allocation2 + $0x380] sm:$0xff] %vm355_vm0, %v7716_v3  ;;  %470 = vst.msk [vmem:[#allocation2 + $0x388] sm:$0xff] %vm355_vm0, %v7716_v3 }
  0x70   : > { %471 = vst.msk [vmem:[#allocation2 + $0x390] sm:$0xff] %vm355_vm0, %v7716_v3  ;;  %472 = vst.msk [vmem:[#allocation2 + $0x398] sm:$0xff] %vm355_vm0, %v7716_v3 }
  0x71   : > { %473 = vst.msk [vmem:[#allocation2 + $0x3a0] sm:$0xff] %vm355_vm0, %v7716_v3  ;;  %474 = vst.msk [vmem:[#allocation2 + $0x3a8] sm:$0xff] %vm355_vm0, %v7716_v3 }
  0x72   : > { %476 = vst.msk [vmem:[#allocation2 + $0x3b8] sm:$0xff] %vm355_vm0, %v7716_v3  ;;  %477 = vst.msk [vmem:[#allocation2 + $0x3c0] sm:$0xff] %vm355_vm0, %v7716_v3 }
  0x73   : > { %478 = vst.msk [vmem:[#allocation2 + $0x3c8] sm:$0xff] %vm355_vm0, %v7716_v3  ;;  %479 = vst.msk [vmem:[#allocation2 + $0x3d0] sm:$0xff] %vm355_vm0, %v7716_v3 }
  0x74   : > { %480 = vst.msk [vmem:[#allocation2 + $0x3d8] sm:$0xff] %vm355_vm0, %v7716_v3  ;;  %481 = vst.msk [vmem:[#allocation2 + $0x3e0] sm:$0xff] %vm355_vm0, %v7716_v3 }
  0x75   : > { %483 = vst.msk [vmem:[#allocation2 + $0x3f0] sm:$0xff] %vm355_vm0, %v7716_v3  ;;  %484 = vst.msk [vmem:[#allocation2 + $0x3f8] sm:$0xff] %vm355_vm0, %v7716_v3 }
  0x76   : > { %486 = vst.msk [vmem:[#allocation2 + $0x408] sm:$0xff] %vm355_vm0, %v7716_v3  ;;  %487 = vst.msk [vmem:[#allocation2 + $0x410] sm:$0xff] %vm355_vm0, %v7716_v3 }
  0x77   : > { %488 = vst.msk [vmem:[#allocation2 + $0x418] sm:$0xff] %vm355_vm0, %v7716_v3  ;;  %490 = vst.msk [vmem:[#allocation2 + $0x428] sm:$0xff] %vm355_vm0, %v7716_v3 }
  0x78   : > { %491 = vst.msk [vmem:[#allocation2 + $0x430] sm:$0xff] %vm355_vm0, %v7716_v3  ;;  %492 = vst.msk [vmem:[#allocation2 + $0x438] sm:$0xff] %vm355_vm0, %v7716_v3 }
  0x79   : > { %493 = vst.msk [vmem:[#allocation2 + $0x440] sm:$0xff] %vm355_vm0, %v7716_v3  ;;  %494 = vst.msk [vmem:[#allocation2 + $0x448] sm:$0xff] %vm355_vm0, %v7716_v3 }
  0x7a   : > { %495 = vst.msk [vmem:[#allocation2 + $0x450] sm:$0xff] %vm355_vm0, %v7716_v3  ;;  %497 = vst.msk [vmem:[#allocation2 + $0x460] sm:$0xff] %vm355_vm0, %v7716_v3 }
  0x7b   : > { %498 = vst.msk [vmem:[#allocation2 + $0x468] sm:$0xff] %vm355_vm0, %v7716_v3  ;;  %499 = vst.msk [vmem:[#allocation2 + $0x470] sm:$0xff] %vm355_vm0, %v7716_v3 }
  0x7c   : > { %500 = vst.msk [vmem:[#allocation2 + $0x478] sm:$0xff] %vm355_vm0, %v7716_v3  ;;  %501 = vst.msk [vmem:[#allocation2 + $0x480] sm:$0xff] %vm355_vm0, %v7716_v3 }
  0x7d   : > { %502 = vst.msk [vmem:[#allocation2 + $0x488] sm:$0xff] %vm355_vm0, %v7716_v3  ;;  %504 = vst.msk [vmem:[#allocation2 + $0x498] sm:$0xff] %vm355_vm0, %v7716_v3 }
  0x7e   : > { %505 = vst.msk [vmem:[#allocation2 + $0x4a0] sm:$0xff] %vm355_vm0, %v7716_v3  ;;  %506 = vst.msk [vmem:[#allocation2 + $0x4a8] sm:$0xff] %vm355_vm0, %v7716_v3 }
  0x7f   : > { %507 = vst.msk [vmem:[#allocation2 + $0x4b0] sm:$0xff] %vm355_vm0, %v7716_v3  ;;  %508 = vst.msk [vmem:[#allocation2 + $0x4b8] sm:$0xff] %vm355_vm0, %v7716_v3 }
  0x80   : > { %509 = vst.msk [vmem:[#allocation2 + $0x4c0] sm:$0xff] %vm355_vm0, %v7716_v3  ;;  %511 = vst.msk [vmem:[#allocation2 + $0x4d0] sm:$0xff] %vm355_vm0, %v7716_v3 }
  0x81   : > { %512 = vst.msk [vmem:[#allocation2 + $0x4d8] sm:$0xff] %vm355_vm0, %v7716_v3  ;;  %513 = vst.msk [vmem:[#allocation2 + $0x4e0] sm:$0xff] %vm355_vm0, %v7716_v3 }
  0x82   : > { %514 = vst.msk [vmem:[#allocation2 + $0x4e8] sm:$0xff] %vm355_vm0, %v7716_v3  ;;  %515 = vst.msk [vmem:[#allocation2 + $0x4f0] sm:$0xff] %vm355_vm0, %v7716_v3 }
  0x83   : > { %516 = vst.msk [vmem:[#allocation2 + $0x4f8] sm:$0xff] %vm355_vm0, %v7716_v3  ;;  %518 = vst.msk [vmem:[#allocation2 + $0x508] sm:$0xff] %vm355_vm0, %v7716_v3 }
  0x84   : > { %519 = vst.msk [vmem:[#allocation2 + $0x510] sm:$0xff] %vm355_vm0, %v7716_v3  ;;  %520 = vst.msk [vmem:[#allocation2 + $0x518] sm:$0xff] %vm355_vm0, %v7716_v3 }
  0x85   : > { %521 = vst.msk [vmem:[#allocation2 + $0x520] sm:$0xff] %vm355_vm0, %v7716_v3  ;;  %522 = vst.msk [vmem:[#allocation2 + $0x528] sm:$0xff] %vm355_vm0, %v7716_v3 }
  0x86   : > { %523 = vst.msk [vmem:[#allocation2 + $0x530] sm:$0xff] %vm355_vm0, %v7716_v3  ;;  %525 = vst.msk [vmem:[#allocation2 + $0x540] sm:$0xff] %vm355_vm0, %v7716_v3 }
  0x87   : > { %526 = vst.msk [vmem:[#allocation2 + $0x548] sm:$0xff] %vm355_vm0, %v7716_v3  ;;  %527 = vst.msk [vmem:[#allocation2 + $0x550] sm:$0xff] %vm355_vm0, %v7716_v3 }
  0x88   : > { %528 = vst.msk [vmem:[#allocation2 + $0x558] sm:$0xff] %vm355_vm0, %v7716_v3  ;;  %529 = vst.msk [vmem:[#allocation2 + $0x560] sm:$0xff] %vm355_vm0, %v7716_v3 }
  0x89   : > { %530 = vst.msk [vmem:[#allocation2 + $0x568] sm:$0xff] %vm355_vm0, %v7716_v3  ;;  %532 = vst.msk [vmem:[#allocation2 + $0x578] sm:$0xff] %vm355_vm0, %v7716_v3 }
  0x8a   : > { %533 = vst.msk [vmem:[#allocation2 + $0x580] sm:$0xff] %vm355_vm0, %v7716_v3  ;;  %534 = vst.msk [vmem:[#allocation2 + $0x588] sm:$0xff] %vm355_vm0, %v7716_v3 }
  0x8b   : > { %535 = vst.msk [vmem:[#allocation2 + $0x590] sm:$0xff] %vm355_vm0, %v7716_v3  ;;  %536 = vst.msk [vmem:[#allocation2 + $0x598] sm:$0xff] %vm355_vm0, %v7716_v3 }
  0x8c   : > { %537 = vst.msk [vmem:[#allocation2 + $0x5a0] sm:$0xff] %vm355_vm0, %v7716_v3  ;;  %539 = vst.msk [vmem:[#allocation2 + $0x5b0] sm:$0xff] %vm355_vm0, %v7716_v3 }
  0x8d   : > { %540 = vst.msk [vmem:[#allocation2 + $0x5b8] sm:$0xff] %vm355_vm0, %v7716_v3  ;;  %541 = vst.msk [vmem:[#allocation2 + $0x5c0] sm:$0xff] %vm355_vm0, %v7716_v3 }
  0x8e   : > { %542 = vst.msk [vmem:[#allocation2 + $0x5c8] sm:$0xff] %vm355_vm0, %v7716_v3  ;;  %543 = vst.msk [vmem:[#allocation2 + $0x5d0] sm:$0xff] %vm355_vm0, %v7716_v3 }
  0x8f   : > { %544 = vst.msk [vmem:[#allocation2 + $0x5d8] sm:$0xff] %vm355_vm0, %v7716_v3  ;;  %546 = vst.msk [vmem:[#allocation2 + $0x5e8] sm:$0xff] %vm355_vm0, %v7716_v3 }
  0x90   : > { %547 = vst.msk [vmem:[#allocation2 + $0x5f0] sm:$0xff] %vm355_vm0, %v7716_v3  ;;  %548 = vst.msk [vmem:[#allocation2 + $0x5f8] sm:$0xff] %vm355_vm0, %v7716_v3 }
  0x91   : > { %549 = vst.msk [vmem:[#allocation2 + $0x600] sm:$0xff] %vm355_vm0, %v7716_v3  ;;  %550 = vst.msk [vmem:[#allocation2 + $0x608] sm:$0xff] %vm355_vm0, %v7716_v3 }
  0x92   : > { %551 = vst.msk [vmem:[#allocation2 + $0x610] sm:$0xff] %vm355_vm0, %v7716_v3  ;;  %553 = vst.msk [vmem:[#allocation2 + $0x620] sm:$0xff] %vm355_vm0, %v7716_v3 }
  0x93   : > { %554 = vst.msk [vmem:[#allocation2 + $0x628] sm:$0xff] %vm355_vm0, %v7716_v3  ;;  %555 = vst.msk [vmem:[#allocation2 + $0x630] sm:$0xff] %vm355_vm0, %v7716_v3 }
  0x94   : > { %556 = vst.msk [vmem:[#allocation2 + $0x638] sm:$0xff] %vm355_vm0, %v7716_v3  ;;  %557 = vst.msk [vmem:[#allocation2 + $0x640] sm:$0xff] %vm355_vm0, %v7716_v3 }
  0x95   : > { %558 = vst.msk [vmem:[#allocation2 + $0x648] sm:$0xff] %vm355_vm0, %v7716_v3  ;;  %560 = vst.msk [vmem:[#allocation2 + $0x658] sm:$0xff] %vm355_vm0, %v7716_v3 }
  0x96   : > { %561 = vst.msk [vmem:[#allocation2 + $0x660] sm:$0xff] %vm355_vm0, %v7716_v3  ;;  %562 = vst.msk [vmem:[#allocation2 + $0x668] sm:$0xff] %vm355_vm0, %v7716_v3 }
  0x97   : > { %563 = vst.msk [vmem:[#allocation2 + $0x670] sm:$0xff] %vm355_vm0, %v7716_v3  ;;  %564 = vst.msk [vmem:[#allocation2 + $0x678] sm:$0xff] %vm355_vm0, %v7716_v3 }
  0x98   : > { %565 = vst.msk [vmem:[#allocation2 + $0x680] sm:$0xff] %vm355_vm0, %v7716_v3  ;;  %567 = vst.msk [vmem:[#allocation2 + $0x690] sm:$0xff] %vm355_vm0, %v7716_v3 }
  0x99   : > { %568 = vst.msk [vmem:[#allocation2 + $0x698] sm:$0xff] %vm355_vm0, %v7716_v3  ;;  %569 = vst.msk [vmem:[#allocation2 + $0x6a0] sm:$0xff] %vm355_vm0, %v7716_v3 }
  0x9a   : > { %570 = vst.msk [vmem:[#allocation2 + $0x6a8] sm:$0xff] %vm355_vm0, %v7716_v3  ;;  %571 = vst.msk [vmem:[#allocation2 + $0x6b0] sm:$0xff] %vm355_vm0, %v7716_v3 }
  0x9b   : > { %572 = vst.msk [vmem:[#allocation2 + $0x6b8] sm:$0xff] %vm355_vm0, %v7716_v3  ;;  %574 = vst.msk [vmem:[#allocation2 + $0x6c8] sm:$0xff] %vm355_vm0, %v7716_v3 }
  0x9c   : > { %575 = vst.msk [vmem:[#allocation2 + $0x6d0] sm:$0xff] %vm355_vm0, %v7716_v3  ;;  %576 = vst.msk [vmem:[#allocation2 + $0x6d8] sm:$0xff] %vm355_vm0, %v7716_v3 }
  0x9d   : > { %577 = vst.msk [vmem:[#allocation2 + $0x6e0] sm:$0xff] %vm355_vm0, %v7716_v3  ;;  %578 = vst.msk [vmem:[#allocation2 + $0x6e8] sm:$0xff] %vm355_vm0, %v7716_v3 }
  0x9e   : > { %579 = vst.msk [vmem:[#allocation2 + $0x6f0] sm:$0xff] %vm355_vm0, %v7716_v3  ;;  %581 = vst.msk [vmem:[#allocation2 + $0x700] sm:$0xff] %vm355_vm0, %v7716_v3 }
  0x9f   : > { %582 = vst.msk [vmem:[#allocation2 + $0x708] sm:$0xff] %vm355_vm0, %v7716_v3  ;;  %583 = vst.msk [vmem:[#allocation2 + $0x710] sm:$0xff] %vm355_vm0, %v7716_v3 }
  0xa0   : > { %584 = vst.msk [vmem:[#allocation2 + $0x718] sm:$0xff] %vm355_vm0, %v7716_v3  ;;  %585 = vst.msk [vmem:[#allocation2 + $0x720] sm:$0xff] %vm355_vm0, %v7716_v3 }
  0xa1   : > { %586 = vst.msk [vmem:[#allocation2 + $0x728] sm:$0xff] %vm355_vm0, %v7716_v3  ;;  %588 = vst.msk [vmem:[#allocation2 + $0x738] sm:$0xff] %vm355_vm0, %v7716_v3 }
  0xa2   : > { %589 = vst.msk [vmem:[#allocation2 + $0x740] sm:$0xff] %vm355_vm0, %v7716_v3  ;;  %590 = vst.msk [vmem:[#allocation2 + $0x748] sm:$0xff] %vm355_vm0, %v7716_v3 }
  0xa3   : > { %591 = vst.msk [vmem:[#allocation2 + $0x750] sm:$0xff] %vm355_vm0, %v7716_v3  ;;  %592 = vst.msk [vmem:[#allocation2 + $0x758] sm:$0xff] %vm355_vm0, %v7716_v3 }
  0xa4   : > { %593 = vst.msk [vmem:[#allocation2 + $0x760] sm:$0xff] %vm355_vm0, %v7716_v3  ;;  %595 = vst.msk [vmem:[#allocation2 + $0x770] sm:$0xff] %vm355_vm0, %v7716_v3 }
  0xa5   : > { %596 = vst.msk [vmem:[#allocation2 + $0x778] sm:$0xff] %vm355_vm0, %v7716_v3  ;;  %597 = vst.msk [vmem:[#allocation2 + $0x780] sm:$0xff] %vm355_vm0, %v7716_v3 }
  0xa6   : > { %598 = vst.msk [vmem:[#allocation2 + $0x788] sm:$0xff] %vm355_vm0, %v7716_v3  ;;  %599 = vst.msk [vmem:[#allocation2 + $0x790] sm:$0xff] %vm355_vm0, %v7716_v3 }
  0xa7   : > { %600 = vst.msk [vmem:[#allocation2 + $0x798] sm:$0xff] %vm355_vm0, %v7716_v3  ;;  %602 = vst.msk [vmem:[#allocation2 + $0x7a8] sm:$0xff] %vm355_vm0, %v7716_v3 }
  0xa8   : > { %603 = vst.msk [vmem:[#allocation2 + $0x7b0] sm:$0xff] %vm355_vm0, %v7716_v3  ;;  %604 = vst.msk [vmem:[#allocation2 + $0x7b8] sm:$0xff] %vm355_vm0, %v7716_v3 }
  0xa9   : > { %605 = vst.msk [vmem:[#allocation2 + $0x7c0] sm:$0xff] %vm355_vm0, %v7716_v3  ;;  %606 = vst.msk [vmem:[#allocation2 + $0x7c8] sm:$0xff] %vm355_vm0, %v7716_v3 }
  0xaa   : > { %607 = vst.msk [vmem:[#allocation2 + $0x7d0] sm:$0xff] %vm355_vm0, %v7716_v3  ;;  %609 = vst.msk [vmem:[#allocation2 + $0x7e0] sm:$0xff] %vm355_vm0, %v7716_v3 }
  0xab   : > { %610 = vst.msk [vmem:[#allocation2 + $0x7e8] sm:$0xff] %vm355_vm0, %v7716_v3  ;;  %611 = vst.msk [vmem:[#allocation2 + $0x7f0] sm:$0xff] %vm355_vm0, %v7716_v3 }
  0xac   : > { %612 = vst.msk [vmem:[#allocation2 + $0x7f8] sm:$0xff] %vm355_vm0, %v7716_v3  ;;  %613 = vst.msk [vmem:[#allocation2 + $0x800] sm:$0xff] %vm355_vm0, %v7716_v3 }
  0xad   : > { %614 = vst.msk [vmem:[#allocation2 + $0x808] sm:$0xff] %vm355_vm0, %v7716_v3  ;;  %616 = vst.msk [vmem:[#allocation2 + $0x818] sm:$0xff] %vm355_vm0, %v7716_v3 }
  0xae   : > { %617 = vst.msk [vmem:[#allocation2 + $0x820] sm:$0xff] %vm355_vm0, %v7716_v3  ;;  %618 = vst.msk [vmem:[#allocation2 + $0x828] sm:$0xff] %vm355_vm0, %v7716_v3 }
  0xaf   : > { %619 = vst.msk [vmem:[#allocation2 + $0x830] sm:$0xff] %vm355_vm0, %v7716_v3  ;;  %620 = vst.msk [vmem:[#allocation2 + $0x838] sm:$0xff] %vm355_vm0, %v7716_v3 }
  0xb0   : > { %621 = vst.msk [vmem:[#allocation2 + $0x840] sm:$0xff] %vm355_vm0, %v7716_v3  ;;  %623 = vst.msk [vmem:[#allocation2 + $0x850] sm:$0xff] %vm355_vm0, %v7716_v3 }
  0xb1   : > { %624 = vst.msk [vmem:[#allocation2 + $0x858] sm:$0xff] %vm355_vm0, %v7716_v3  ;;  %625 = vst.msk [vmem:[#allocation2 + $0x860] sm:$0xff] %vm355_vm0, %v7716_v3 }
  0xb2   : > { %626 = vst.msk [vmem:[#allocation2 + $0x868] sm:$0xff] %vm355_vm0, %v7716_v3  ;;  %627 = vst.msk [vmem:[#allocation2 + $0x870] sm:$0xff] %vm355_vm0, %v7716_v3 }
  0xb3   : > { %628 = vst.msk [vmem:[#allocation2 + $0x878] sm:$0xff] %vm355_vm0, %v7716_v3  ;;  %630 = vst.msk [vmem:[#allocation2 + $0x888] sm:$0xff] %vm355_vm0, %v7716_v3 }
  0xb4   : > { %631 = vst.msk [vmem:[#allocation2 + $0x890] sm:$0xff] %vm355_vm0, %v7716_v3  ;;  %632 = vst.msk [vmem:[#allocation2 + $0x898] sm:$0xff] %vm355_vm0, %v7716_v3 }
  0xb5   : > { %633 = vst.msk [vmem:[#allocation2 + $0x8a0] sm:$0xff] %vm355_vm0, %v7716_v3  ;;  %634 = vst.msk [vmem:[#allocation2 + $0x8a8] sm:$0xff] %vm355_vm0, %v7716_v3 }
  0xb6   : > { %635 = vst.msk [vmem:[#allocation2 + $0x8b0] sm:$0xff] %vm355_vm0, %v7716_v3  ;;  %637 = vst.msk [vmem:[#allocation2 + $0x8c0] sm:$0xff] %vm355_vm0, %v7716_v3 }
  0xb7   : > { %638 = vst.msk [vmem:[#allocation2 + $0x8c8] sm:$0xff] %vm355_vm0, %v7716_v3  ;;  %639 = vst.msk [vmem:[#allocation2 + $0x8d0] sm:$0xff] %vm355_vm0, %v7716_v3 }
  0xb8   : > { %640 = vst.msk [vmem:[#allocation2 + $0x8d8] sm:$0xff] %vm355_vm0, %v7716_v3  ;;  %641 = vst.msk [vmem:[#allocation2 + $0x8e0] sm:$0xff] %vm355_vm0, %v7716_v3 }
  0xb9   : > { %642 = vst.msk [vmem:[#allocation2 + $0x8e8] sm:$0xff] %vm355_vm0, %v7716_v3  ;;  %644 = vst.msk [vmem:[#allocation2 + $0x8f8] sm:$0xff] %vm355_vm0, %v7716_v3 }
  0xba   : > { %645 = vst.msk [vmem:[#allocation2 + $0x900] sm:$0xff] %vm355_vm0, %v7716_v3  ;;  %646 = vst.msk [vmem:[#allocation2 + $0x908] sm:$0xff] %vm355_vm0, %v7716_v3 }
  0xbb   : > { %647 = vst.msk [vmem:[#allocation2 + $0x910] sm:$0xff] %vm355_vm0, %v7716_v3  ;;  %648 = vst.msk [vmem:[#allocation2 + $0x918] sm:$0xff] %vm355_vm0, %v7716_v3 }
  0xbc   : > { %649 = vst.msk [vmem:[#allocation2 + $0x920] sm:$0xff] %vm355_vm0, %v7716_v3  ;;  %651 = vst.msk [vmem:[#allocation2 + $0x930] sm:$0xff] %vm355_vm0, %v7716_v3 }
  0xbd   : > { %652 = vst.msk [vmem:[#allocation2 + $0x938] sm:$0xff] %vm355_vm0, %v7716_v3  ;;  %653 = vst.msk [vmem:[#allocation2 + $0x940] sm:$0xff] %vm355_vm0, %v7716_v3 }
  0xbe   : > { %654 = vst.msk [vmem:[#allocation2 + $0x948] sm:$0xff] %vm355_vm0, %v7716_v3  ;;  %655 = vst.msk [vmem:[#allocation2 + $0x950] sm:$0xff] %vm355_vm0, %v7716_v3 }
  0xbf   : > { %656 = vst.msk [vmem:[#allocation2 + $0x958] sm:$0xff] %vm355_vm0, %v7716_v3  ;;  %658 = vst.msk [vmem:[#allocation2 + $0x968] sm:$0xff] %vm355_vm0, %v7716_v3 }
  0xc0   : > { %659 = vst.msk [vmem:[#allocation2 + $0x970] sm:$0xff] %vm355_vm0, %v7716_v3  ;;  %660 = vst.msk [vmem:[#allocation2 + $0x978] sm:$0xff] %vm355_vm0, %v7716_v3 }
  0xc1   : > { %661 = vst.msk [vmem:[#allocation2 + $0x980] sm:$0xff] %vm355_vm0, %v7716_v3  ;;  %662 = vst.msk [vmem:[#allocation2 + $0x988] sm:$0xff] %vm355_vm0, %v7716_v3 }
  0xc2   : > { %663 = vst.msk [vmem:[#allocation2 + $0x990] sm:$0xff] %vm355_vm0, %v7716_v3  ;;  %665 = vst.msk [vmem:[#allocation2 + $0x9a0] sm:$0xff] %vm355_vm0, %v7716_v3 }
  0xc3   : > { %666 = vst.msk [vmem:[#allocation2 + $0x9a8] sm:$0xff] %vm355_vm0, %v7716_v3  ;;  %667 = vst.msk [vmem:[#allocation2 + $0x9b0] sm:$0xff] %vm355_vm0, %v7716_v3 }
  0xc4   : > { %668 = vst.msk [vmem:[#allocation2 + $0x9b8] sm:$0xff] %vm355_vm0, %v7716_v3  ;;  %669 = vst.msk [vmem:[#allocation2 + $0x9c0] sm:$0xff] %vm355_vm0, %v7716_v3 }
  0xc5   : > { %670 = vst.msk [vmem:[#allocation2 + $0x9c8] sm:$0xff] %vm355_vm0, %v7716_v3  ;;  %672 = vst.msk [vmem:[#allocation2 + $0x9d8] sm:$0xff] %vm355_vm0, %v7716_v3 }
  0xc6   : > { %673 = vst.msk [vmem:[#allocation2 + $0x9e0] sm:$0xff] %vm355_vm0, %v7716_v3  ;;  %674 = vst.msk [vmem:[#allocation2 + $0x9e8] sm:$0xff] %vm355_vm0, %v7716_v3 }
  0xc7   : > { %675 = vst.msk [vmem:[#allocation2 + $0x9f0] sm:$0xff] %vm355_vm0, %v7716_v3  ;;  %676 = vst.msk [vmem:[#allocation2 + $0x9f8] sm:$0xff] %vm355_vm0, %v7716_v3 }
  0xc8   : > { %677 = vst.msk [vmem:[#allocation2 + $0xa00] sm:$0xff] %vm355_vm0, %v7716_v3  ;;  %679 = vst.msk [vmem:[#allocation2 + $0xa10] sm:$0xff] %vm355_vm0, %v7716_v3 }
  0xc9   : > { %680 = vst.msk [vmem:[#allocation2 + $0xa18] sm:$0xff] %vm355_vm0, %v7716_v3  ;;  %681 = vst.msk [vmem:[#allocation2 + $0xa20] sm:$0xff] %vm355_vm0, %v7716_v3 }
  0xca   : > { %682 = vst.msk [vmem:[#allocation2 + $0xa28] sm:$0xff] %vm355_vm0, %v7716_v3  ;;  %683 = vst.msk [vmem:[#allocation2 + $0xa30] sm:$0xff] %vm355_vm0, %v7716_v3 }
  0xcb   : > { %684 = vst.msk [vmem:[#allocation2 + $0xa38] sm:$0xff] %vm355_vm0, %v7716_v3  ;;  %686 = vst.msk [vmem:[#allocation2 + $0xa48] sm:$0xff] %vm355_vm0, %v7716_v3 }
  0xcc   : > { %687 = vst.msk [vmem:[#allocation2 + $0xa50] sm:$0xff] %vm355_vm0, %v7716_v3  ;;  %688 = vst.msk [vmem:[#allocation2 + $0xa58] sm:$0xff] %vm355_vm0, %v7716_v3 }
  0xcd   : > { %689 = vst.msk [vmem:[#allocation2 + $0xa60] sm:$0xff] %vm355_vm0, %v7716_v3  ;;  %690 = vst.msk [vmem:[#allocation2 + $0xa68] sm:$0xff] %vm355_vm0, %v7716_v3 }
  0xce   : > { %691 = vst.msk [vmem:[#allocation2 + $0xa70] sm:$0xff] %vm355_vm0, %v7716_v3  ;;  %693 = vst.msk [vmem:[#allocation2 + $0xa80] sm:$0xff] %vm355_vm0, %v7716_v3 }
  0xcf   : > { %694 = vst.msk [vmem:[#allocation2 + $0xa88] sm:$0xff] %vm355_vm0, %v7716_v3  ;;  %695 = vst.msk [vmem:[#allocation2 + $0xa90] sm:$0xff] %vm355_vm0, %v7716_v3 }
  0xd0   : > { %696 = vst.msk [vmem:[#allocation2 + $0xa98] sm:$0xff] %vm355_vm0, %v7716_v3  ;;  %697 = vst.msk [vmem:[#allocation2 + $0xaa0] sm:$0xff] %vm355_vm0, %v7716_v3 }
  0xd1   : > { %698 = vst.msk [vmem:[#allocation2 + $0xaa8] sm:$0xff] %vm355_vm0, %v7716_v3  ;;  %700 = vst.msk [vmem:[#allocation2 + $0xab8] sm:$0xff] %vm355_vm0, %v7716_v3 }
  0xd2   : > { %701 = vst.msk [vmem:[#allocation2 + $0xac0] sm:$0xff] %vm355_vm0, %v7716_v3  ;;  %702 = vst.msk [vmem:[#allocation2 + $0xac8] sm:$0xff] %vm355_vm0, %v7716_v3 }
  0xd3   : > { %703 = vst.msk [vmem:[#allocation2 + $0xad0] sm:$0xff] %vm355_vm0, %v7716_v3  ;;  %704 = vst.msk [vmem:[#allocation2 + $0xad8] sm:$0xff] %vm355_vm0, %v7716_v3 }
  0xd4   : > { %705 = vst.msk [vmem:[#allocation2 + $0xae0] sm:$0xff] %vm355_vm0, %v7716_v3  ;;  %707 = vst.msk [vmem:[#allocation2 + $0xaf0] sm:$0xff] %vm355_vm0, %v7716_v3 }
  0xd5   : > { %708 = vst.msk [vmem:[#allocation2 + $0xaf8] sm:$0xff] %vm355_vm0, %v7716_v3  ;;  %709 = vst.msk [vmem:[#allocation2 + $0xb00] sm:$0xff] %vm355_vm0, %v7716_v3 }
  0xd6   : > { %710 = vst.msk [vmem:[#allocation2 + $0xb08] sm:$0xff] %vm355_vm0, %v7716_v3  ;;  %711 = vst.msk [vmem:[#allocation2 + $0xb10] sm:$0xff] %vm355_vm0, %v7716_v3 }
  0xd7   : > { %712 = vst.msk [vmem:[#allocation2 + $0xb18] sm:$0xff] %vm355_vm0, %v7716_v3  ;;  %714 = vst.msk [vmem:[#allocation2 + $0xb28] sm:$0xff] %vm355_vm0, %v7716_v3 }
  0xd8   : > { %715 = vst.msk [vmem:[#allocation2 + $0xb30] sm:$0xff] %vm355_vm0, %v7716_v3  ;;  %716 = vst.msk [vmem:[#allocation2 + $0xb38] sm:$0xff] %vm355_vm0, %v7716_v3 }
  0xd9   : > { %717 = vst.msk [vmem:[#allocation2 + $0xb40] sm:$0xff] %vm355_vm0, %v7716_v3  ;;  %718 = vst.msk [vmem:[#allocation2 + $0xb48] sm:$0xff] %vm355_vm0, %v7716_v3 }
  0xda   : > { %719 = vst.msk [vmem:[#allocation2 + $0xb50] sm:$0xff] %vm355_vm0, %v7716_v3  ;;  %754 = vst.msk [vmem:[#allocation2 + $0x402] sm:$0xff] %vm355_vm0, %v7894_v0 }
  0xdb   : > { %363 = vst.msk [vmem:[#allocation2 + $0x30] sm:$0xf] %vm362_vm1, %v7716_v3  ;;  %370 = vst.msk [vmem:[#allocation2 + $0x68] sm:$0xf] %vm362_vm1, %v7716_v3 }
  0xdc   : > { %377 = vst.msk [vmem:[#allocation2 + $0xa0] sm:$0xf] %vm362_vm1, %v7716_v3  ;;  %384 = vst.msk [vmem:[#allocation2 + $0xd8] sm:$0xf] %vm362_vm1, %v7716_v3 }
  0xdd   : > { %391 = vst.msk [vmem:[#allocation2 + $0x110] sm:$0xf] %vm362_vm1, %v7716_v3  ;;  %398 = vst.msk [vmem:[#allocation2 + $0x148] sm:$0xf] %vm362_vm1, %v7716_v3 }
  0xde   : > { %405 = vst.msk [vmem:[#allocation2 + $0x180] sm:$0xf] %vm362_vm1, %v7716_v3  ;;  %412 = vst.msk [vmem:[#allocation2 + $0x1b8] sm:$0xf] %vm362_vm1, %v7716_v3 }
  0xdf   : > { %419 = vst.msk [vmem:[#allocation2 + $0x1f0] sm:$0xf] %vm362_vm1, %v7716_v3  ;;  %426 = vst.msk [vmem:[#allocation2 + $0x228] sm:$0xf] %vm362_vm1, %v7716_v3 }
  0xe0   : > { %433 = vst.msk [vmem:[#allocation2 + $0x260] sm:$0xf] %vm362_vm1, %v7716_v3  ;;  %440 = vst.msk [vmem:[#allocation2 + $0x298] sm:$0xf] %vm362_vm1, %v7716_v3 }
  0xe1   : > { %447 = vst.msk [vmem:[#allocation2 + $0x2d0] sm:$0xf] %vm362_vm1, %v7716_v3  ;;  %454 = vst.msk [vmem:[#allocation2 + $0x308] sm:$0xf] %vm362_vm1, %v7716_v3 }
  0xe2   : > { %461 = vst.msk [vmem:[#allocation2 + $0x340] sm:$0xf] %vm362_vm1, %v7716_v3  ;;  %468 = vst.msk [vmem:[#allocation2 + $0x378] sm:$0xf] %vm362_vm1, %v7716_v3 }
  0xe3   : > { %475 = vst.msk [vmem:[#allocation2 + $0x3b0] sm:$0xf] %vm362_vm1, %v7716_v3  ;;  %482 = vst.msk [vmem:[#allocation2 + $0x3e8] sm:$0xf] %vm362_vm1, %v7716_v3 }
  0xe4   : > { %489 = vst.msk [vmem:[#allocation2 + $0x420] sm:$0xf] %vm362_vm1, %v7716_v3  ;;  %496 = vst.msk [vmem:[#allocation2 + $0x458] sm:$0xf] %vm362_vm1, %v7716_v3 }
  0xe5   : > { %503 = vst.msk [vmem:[#allocation2 + $0x490] sm:$0xf] %vm362_vm1, %v7716_v3  ;;  %510 = vst.msk [vmem:[#allocation2 + $0x4c8] sm:$0xf] %vm362_vm1, %v7716_v3 }
  0xe6   : > { %517 = vst.msk [vmem:[#allocation2 + $0x500] sm:$0xf] %vm362_vm1, %v7716_v3  ;;  %524 = vst.msk [vmem:[#allocation2 + $0x538] sm:$0xf] %vm362_vm1, %v7716_v3 }
  0xe7   : > { %531 = vst.msk [vmem:[#allocation2 + $0x570] sm:$0xf] %vm362_vm1, %v7716_v3  ;;  %538 = vst.msk [vmem:[#allocation2 + $0x5a8] sm:$0xf] %vm362_vm1, %v7716_v3 }
  0xe8   : > { %545 = vst.msk [vmem:[#allocation2 + $0x5e0] sm:$0xf] %vm362_vm1, %v7716_v3  ;;  %552 = vst.msk [vmem:[#allocation2 + $0x618] sm:$0xf] %vm362_vm1, %v7716_v3 }
  0xe9   : > { %559 = vst.msk [vmem:[#allocation2 + $0x650] sm:$0xf] %vm362_vm1, %v7716_v3  ;;  %566 = vst.msk [vmem:[#allocation2 + $0x688] sm:$0xf] %vm362_vm1, %v7716_v3 }
  0xea   : > { %573 = vst.msk [vmem:[#allocation2 + $0x6c0] sm:$0xf] %vm362_vm1, %v7716_v3  ;;  %580 = vst.msk [vmem:[#allocation2 + $0x6f8] sm:$0xf] %vm362_vm1, %v7716_v3 }
  0xeb   : > { %587 = vst.msk [vmem:[#allocation2 + $0x730] sm:$0xf] %vm362_vm1, %v7716_v3  ;;  %594 = vst.msk [vmem:[#allocation2 + $0x768] sm:$0xf] %vm362_vm1, %v7716_v3 }
  0xec   : > { %601 = vst.msk [vmem:[#allocation2 + $0x7a0] sm:$0xf] %vm362_vm1, %v7716_v3  ;;  %608 = vst.msk [vmem:[#allocation2 + $0x7d8] sm:$0xf] %vm362_vm1, %v7716_v3 }
  0xed   : > { %615 = vst.msk [vmem:[#allocation2 + $0x810] sm:$0xf] %vm362_vm1, %v7716_v3  ;;  %622 = vst.msk [vmem:[#allocation2 + $0x848] sm:$0xf] %vm362_vm1, %v7716_v3 }
  0xee   : > { %629 = vst.msk [vmem:[#allocation2 + $0x880] sm:$0xf] %vm362_vm1, %v7716_v3  ;;  %636 = vst.msk [vmem:[#allocation2 + $0x8b8] sm:$0xf] %vm362_vm1, %v7716_v3 }
  0xef   : > { %643 = vst.msk [vmem:[#allocation2 + $0x8f0] sm:$0xf] %vm362_vm1, %v7716_v3  ;;  %650 = vst.msk [vmem:[#allocation2 + $0x928] sm:$0xf] %vm362_vm1, %v7716_v3 }
  0xf0   : > { %657 = vst.msk [vmem:[#allocation2 + $0x960] sm:$0xf] %vm362_vm1, %v7716_v3  ;;  %664 = vst.msk [vmem:[#allocation2 + $0x998] sm:$0xf] %vm362_vm1, %v7716_v3 }
  0xf1   : > { %671 = vst.msk [vmem:[#allocation2 + $0x9d0] sm:$0xf] %vm362_vm1, %v7716_v3  ;;  %678 = vst.msk [vmem:[#allocation2 + $0xa08] sm:$0xf] %vm362_vm1, %v7716_v3 }
  0xf2   : > { %685 = vst.msk [vmem:[#allocation2 + $0xa40] sm:$0xf] %vm362_vm1, %v7716_v3  ;;  %692 = vst.msk [vmem:[#allocation2 + $0xa78] sm:$0xf] %vm362_vm1, %v7716_v3 }
  0xf3   : > { %699 = vst.msk [vmem:[#allocation2 + $0xab0] sm:$0xf] %vm362_vm1, %v7716_v3  ;;  %706 = vst.msk [vmem:[#allocation2 + $0xae8] sm:$0xf] %vm362_vm1, %v7716_v3 }
  0xf4   : > { %713 = vst.msk [vmem:[#allocation2 + $0xb20] sm:$0xf] %vm362_vm1, %v7716_v3  ;;  %720 = vst.msk [vmem:[#allocation2 + $0xb58] sm:$0xf] %vm362_vm1, %v7716_v3 }
  0xf5   : > { %755 = vst.msk [vmem:[#allocation2 + $0x40a] sm:$0xff] %vm355_vm0, %v7897_v1  ;;  %756 = vst.msk [vmem:[#allocation2 + $0x43a] sm:$0xff] %vm355_vm0, %v7900_v2 }
  0xf6   : > { %757 = vst.msk [vmem:[#allocation2 + $0x442] sm:$0xff] %vm355_vm0, %v724_v4  ;;  %758 = vst.msk [vmem:[#allocation2 + $0x472] sm:$0xff] %vm355_vm0, %v725_v5 }
  0xf7   : > { %759 = vst.msk [vmem:[#allocation2 + $0x47a] sm:$0xff] %vm355_vm0, %v726_v6  ;;  %760 = vst.msk [vmem:[#allocation2 + $0x4aa] sm:$0xff] %vm355_vm0, %v727_v7 }
  0xf8   : > { %761 = vst.msk [vmem:[#allocation2 + $0x4b2] sm:$0xff] %vm355_vm0, %v728_v8  ;;  %762 = vst.msk [vmem:[#allocation2 + $0x4e2] sm:$0xff] %vm355_vm0, %v729_v9 }
  0xf9   : > { %763 = vst.msk [vmem:[#allocation2 + $0x4ea] sm:$0xff] %vm355_vm0, %v730_v10  ;;  %764 = vst.msk [vmem:[#allocation2 + $0x51a] sm:$0xff] %vm355_vm0, %v731_v11 }
  0xfa   : > { %765 = vst.msk [vmem:[#allocation2 + $0x522] sm:$0xff] %vm355_vm0, %v732_v12  ;;  %766 = vst.msk [vmem:[#allocation2 + $0x552] sm:$0xff] %vm355_vm0, %v733_v13 }
  0xfb   : > { %767 = vst.msk [vmem:[#allocation2 + $0x55a] sm:$0xff] %vm355_vm0, %v734_v14  ;;  %768 = vst.msk [vmem:[#allocation2 + $0x58a] sm:$0xff] %vm355_vm0, %v735_v15 }
  0xfc   : > { %769 = vst.msk [vmem:[#allocation2 + $0x592] sm:$0xff] %vm355_vm0, %v736_v16  ;;  %770 = vst.msk [vmem:[#allocation2 + $0x5c2] sm:$0xff] %vm355_vm0, %v737_v17 }
  0xfd   : > { %771 = vst.msk [vmem:[#allocation2 + $0x5ca] sm:$0xff] %vm355_vm0, %v738_v18  ;;  %772 = vst.msk [vmem:[#allocation2 + $0x5fa] sm:$0xff] %vm355_vm0, %v739_v19 }
  0xfe   : > { %773 = vst.msk [vmem:[#allocation2 + $0x602] sm:$0xff] %vm355_vm0, %v740_v20  ;;  %774 = vst.msk [vmem:[#allocation2 + $0x632] sm:$0xff] %vm355_vm0, %v741_v21 }
  0xff   : > { %775 = vst.msk [vmem:[#allocation2 + $0x63a] sm:$0xff] %vm355_vm0, %v742_v22  ;;  %776 = vst.msk [vmem:[#allocation2 + $0x66a] sm:$0xff] %vm355_vm0, %v743_v23 }
 0x100   : > { %777 = vst.msk [vmem:[#allocation2 + $0x672] sm:$0xff] %vm355_vm0, %v744_v24  ;;  %778 = vst.msk [vmem:[#allocation2 + $0x6a2] sm:$0xff] %vm355_vm0, %v745_v25 }
 0x101   : > { %779 = vst.msk [vmem:[#allocation2 + $0x6aa] sm:$0xff] %vm355_vm0, %v746_v26  ;;  %780 = vst.msk [vmem:[#allocation2 + $0x6da] sm:$0xff] %vm355_vm0, %v747_v27 }
 0x102   : > { %781 = vst.msk [vmem:[#allocation2 + $0x6e2] sm:$0xff] %vm355_vm0, %v748_v28  ;;  %782 = vst.msk [vmem:[#allocation2 + $0x712] sm:$0xff] %vm355_vm0, %v749_v29 }
 0x103   : > { %783 = vst.msk [vmem:[#allocation2 + $0x71a] sm:$0xff] %vm355_vm0, %v750_v30  ;;  %784 = vst.msk [vmem:[#allocation2 + $0x74a] sm:$0xff] %vm355_vm0, %v751_v31 }
 0x104   : > { %785 = vst.msk [vmem:[#allocation2 + $0x752] sm:$0xff] %vm355_vm0, %v752_v32 }
 0x105 PF: > { %v803_v33 = vld [vmem:[%s9899_s1] sm:$0xff]  ;;  %vm830_vm2 = vcmask 1043456   ;;  %s6542_s17 = smul.u32 112, %s7695_s30  ;;  %v933_v34 = vld [vmem:[#allocation6 + $0x8] sm:$0xff]  ;;  %v9914_v36 = vmov 0.0   ;;  %vm794_vm3 = vcmask 31744  }
 0x106   : > { %v817_v35 = vcombine.high %v803_v33, %v803_v33  ;;  %899 = vmatprep.mubr.f32.mxu0 %v9914_v36  ;;  %v935_v37 = vld [vmem:[#allocation6 + $0x18] sm:$0xff]  ;;  %1239 = vmatprep.mubr.f32.mxu1 %v9914_v36  ;;  %v932_v43 = vld [vmem:[#allocation6] sm:$0xff]  ;;  %v934_v44 = vld [vmem:[#allocation6 + $0x10] sm:$0xff]  ;;  %s6991_s13 = sshll.u32 %s7699_s9, 6  ;;  %s6414_s9 = sshll.u32 %s7890_s22, 4  ;;  %s9840_s9 = int_to_ptr.vmem [resolvable:$true] %s6414_s9 }
 0x107   : > { %v6997_v38 = vpack.c.bf16 %v935_v37, %v933_v34  ;;  %s8701_s14 = scalar_lea.vmem [#allocation2], %s6542_s17  ;;  %v937_v45 = vld [vmem:[#allocation6 + $0x28] sm:$0xff]  ;;  %v939_v46 = vld [vmem:[#allocation6 + $0x38] sm:$0xff]  ;;  %v6999_v49 = vpack.c.bf16 %v934_v44, %v932_v43  ;;  %v936_v50 = vld [vmem:[#allocation6 + $0x20] sm:$0xff]  ;;  %s9846_s15 = scalar_lea.sflag [#allocation8], %s338_s11 }
 0x108   : > { %6547 = vmatprep.subr.msk.mxu0 %vm830_vm2, %v817_v35  ;;  %v7001_v53 = vpack.c.bf16 %v939_v46, %v937_v45  ;;  %v938_v54 = vld [vmem:[#allocation6 + $0x30] sm:$0xff]  ;;  %v941_v56 = vld [vmem:[#allocation6 + $0x48] sm:$0xff]  ;;  %v943_v57 = vld [vmem:[#allocation6 + $0x58] sm:$0xff]  ;;  %s7613_s16 = scalar_lea.vmem %s9840_s9, 1024  ;;  %p9927_p12 = scmp.ne.s32.totalorder %s9918_s19, 0 }
 0x109   : > { %6548 = vmatpush1.msk.msra.mxu0 %vm830_vm2, %v803_v33  ;;  %v7003_v61 = vpack.c.bf16 %v938_v54, %v936_v50  ;;  %v7005_v62 = vpack.c.bf16 %v943_v57, %v941_v56  ;;  %v940_v63 = vld [vmem:[#allocation6 + $0x40] sm:$0xff]  ;;  %v942_v0 = vld [vmem:[#allocation6 + $0x50] sm:$0xff]  ;;  %v945_v1 = vld [vmem:[#allocation6 + $0x68] sm:$0xff]  ;;  %p7614_p10 = scmp.ne.s32.totalorder %s9840_s9, %s7613_s16  ;;  %s7718_s21 = smov [#allocation9]  }
 0x10a   : > { %6998 = vmatprep.subr.bf16.mxu0 %v6997_v38  ;;  %v947_v2 = vld [vmem:[#allocation6 + $0x78] sm:$0xff]  ;;  %v7007_v4 = vpack.c.bf16 %v942_v0, %v940_v63  ;;  %v944_v6 = vld [vmem:[#allocation6 + $0x60] sm:$0xff]  ;;  %v946_v7 = vld [vmem:[#allocation6 + $0x70] sm:$0xff]  ;;  %s7617_s18 = sshll.u32 %s7718_s21, 4  ;;  %s7618_s18 = int_to_ptr.vmem [resolvable:$false] %s7617_s18 }
 0x10b   : > { %v8704_v39 = vld [vmem:[%s8701_s14 + $0x402] sm:$0xff]  ;;  %v8710_v40 = vld [vmem:[%s8701_s14 + $0x40a] sm:$0xff]  ;;  %v8713_v41 = vld [vmem:[%s8701_s14 + $0x43a] sm:$0xff]  ;;  %v7009_v5 = vpack.c.bf16 %v947_v2, %v945_v1  ;;  %v7011_v11 = vpack.c.bf16 %v946_v7, %v944_v6  ;;  %p7615_p0 = pnand %p7614_p10, %p9927_p12  ;;  %p7620_p5 = scmp.lt.s32.totalorder %s9840_s9, %s7618_s18 }
 0x10c   : > { %795 = vst.msk [vmem:[#allocation3] sm:$0xff] %vm794_vm3, %v8704_v39  ;;  %796 = vst.msk [vmem:[#allocation3 + $0x8] sm:$0xff] %vm794_vm3, %v8710_v40  ;;  %v8720_v42 = vld [vmem:[%s8701_s14 + $0x442] sm:$0xff]  ;;  %v6555_v47 = vld [vmem:[%s8701_s14 + $0x2ac] sm:$0xff] }
 0x10d   : > { %797 = vst.msk [vmem:[#allocation3 + $0x10] sm:$0xff] %vm794_vm3, %v8713_v41  ;;  %798 = vst.msk [vmem:[#allocation3 + $0x18] sm:$0xff] %vm794_vm3, %v8720_v42  ;;  %v6556_v48 = vld [vmem:[%s8701_s14 + $0x2b4] sm:$0xff]  ;;  %v6557_v51 = vld [vmem:[%s8701_s14 + $0x2e4] sm:$0xff]  ;;  %p7616_p2 = pneg %p7615_p0 }
 0x10e   : > { %v6558_v52 = vld [vmem:[%s8701_s14 + $0x2ec] sm:$0xff]  ;;  %v951_v10 = vld [vmem:[#allocation6 + $0x98] sm:$0xff]  ;;  %v948_v13 = vld [vmem:[#allocation6 + $0x80] sm:$0xff] }
 0x10f   : > { %v8736_v3 = vld [vmem:[%s8701_s14 + $0x2b2] sm:$0xff]  ;;  %v949_v9 = vld [vmem:[#allocation6 + $0x88] sm:$0xff]  ;;  %v952_v19 = vld [vmem:[#allocation6 + $0xa0] sm:$0xff] }
 0x110   : > { %v7013_v12 = vpack.c.bf16 %v951_v10, %v949_v9  ;;  %v950_v14 = vld [vmem:[#allocation6 + $0x90] sm:$0xff]  ;;  %v953_v15 = vld [vmem:[#allocation6 + $0xa8] sm:$0xff]  ;;  %v955_v16 = vld [vmem:[#allocation6 + $0xb8] sm:$0xff] }
 0x111   : > { %v7015_v17 = vpack.c.bf16 %v950_v14, %v948_v13  ;;  %v7017_v18 = vpack.c.bf16 %v955_v16, %v953_v15  ;;  %v954_v20 = vld [vmem:[#allocation6 + $0xb0] sm:$0xff]  ;;  %v957_v21 = vld [vmem:[#allocation6 + $0xc8] sm:$0xff]  ;;  %v959_v22 = vld [vmem:[#allocation6 + $0xd8] sm:$0xff] }
 0x112   : > { %v7019_v23 = vpack.c.bf16 %v954_v20, %v952_v19  ;;  %v7021_v24 = vpack.c.bf16 %v959_v22, %v957_v21  ;;  %v956_v25 = vld [vmem:[#allocation6 + $0xc0] sm:$0xff]  ;;  %v958_v26 = vld [vmem:[#allocation6 + $0xd0] sm:$0xff]  ;;  %v961_v27 = vld [vmem:[#allocation6 + $0xe8] sm:$0xff] }
 0x113   : > { %v799_v55 = vld [vmem:[#allocation3] sm:$0xff]  ;;  %v800_v58 = vld [vmem:[#allocation3 + $0x8] sm:$0xff]  ;;  %v963_v28 = vld [vmem:[#allocation6 + $0xf8] sm:$0xff]  ;;  %v7023_v29 = vpack.c.bf16 %v958_v26, %v956_v25 }
 0x114   : > { %6549 = vmatmul.mubr.msk.f32.vlgmr.msra.gmra.mrb[0].mxu0 %vm794_vm3, %v799_v55  ;;  %1124 = vst.msk [vmem:[#allocation3] sm:$0xff] %vm794_vm3, %v6555_v47  ;;  %v801_v59 = vld [vmem:[#allocation3 + $0x10] sm:$0xff]  ;;  %1125 = vst.msk [vmem:[#allocation3 + $0x8] sm:$0xff] %vm794_vm3, %v6556_v48  ;;  %v802_v60 = vld [vmem:[#allocation3 + $0x18] sm:$0xff]  ;;  %v7025_v30 = vpack.c.bf16 %v963_v28, %v961_v27 }
 0x115   : > { %905 = vmatprep.mubr.f32.mxu0 %v9914_v36  ;;  %1126 = vst.msk [vmem:[#allocation3 + $0x10] sm:$0xff] %vm794_vm3, %v6557_v51  ;;  %7000 = vmatpush1.bf16.msra.mxu0 %v6999_v49  ;;  %1127 = vst.msk [vmem:[#allocation3 + $0x18] sm:$0xff] %vm794_vm3, %v6558_v52  ;;  %v960_v31 = vld [vmem:[#allocation6 + $0xe0] sm:$0xff]  ;;  %v962_v32 = vld [vmem:[#allocation6 + $0xf0] sm:$0xff] }
 0x116   : > { %7002 = vmatprep.subr.bf16.mxu0 %v7001_v53  ;;  %v965_v33 = vld [vmem:[#allocation6 + $0x108] sm:$0xff]  ;;  %v967_v34 = vld [vmem:[#allocation6 + $0x118] sm:$0xff]  ;;  %v7027_v35 = vpack.c.bf16 %v962_v32, %v960_v31  ;;  %v964_v38 = vld [vmem:[#allocation6 + $0x100] sm:$0xff] }
 0x117   : > { %v7029_v37 = vpack.c.bf16 %v967_v34, %v965_v33  ;;  %v966_v43 = vld [vmem:[#allocation6 + $0x110] sm:$0xff]  ;;  %v969_v44 = vld [vmem:[#allocation6 + $0x128] sm:$0xff]  ;;  %v971_v45 = vld [vmem:[#allocation6 + $0x138] sm:$0xff] }
 0x118   : > { %6550 = vmatmul.mubr.msk.f32.gmra.mrb[2].mxu0 %vm794_vm3, %v800_v58  ;;  %v7031_v46 = vpack.c.bf16 %v966_v43, %v964_v38  ;;  %v7033_v47 = vpack.c.bf16 %v971_v45, %v969_v44  ;;  %v968_v48 = vld [vmem:[#allocation6 + $0x120] sm:$0xff]  ;;  %v970_v49 = vld [vmem:[#allocation6 + $0x130] sm:$0xff]  ;;  %v973_v50 = vld [vmem:[#allocation6 + $0x148] sm:$0xff] }
 0x119   : > { %911 = vmatprep.mubr.f32.mxu0 %v9914_v36  ;;  %7004 = vmatpush1.bf16.msra.mxu0 %v7003_v61  ;;  %v975_v51 = vld [vmem:[#allocation6 + $0x158] sm:$0xff]  ;;  %v7035_v52 = vpack.c.bf16 %v970_v49, %v968_v48  ;;  %v972_v54 = vld [vmem:[#allocation6 + $0x140] sm:$0xff]  ;;  %v974_v55 = vld [vmem:[#allocation6 + $0x150] sm:$0xff] }
 0x11a   : > { %7006 = vmatprep.subr.bf16.mxu0 %v7005_v62  ;;  %v7037_v53 = vpack.c.bf16 %v975_v51, %v973_v50  ;;  %v977_v56 = vld [vmem:[#allocation6 + $0x168] sm:$0xff]  ;;  %v979_v57 = vld [vmem:[#allocation6 + $0x178] sm:$0xff]  ;;  %v7039_v58 = vpack.c.bf16 %v974_v55, %v972_v54  ;;  %v978_v61 = vld [vmem:[#allocation6 + $0x170] sm:$0xff] }
 0x11b   : > { %v8739_v8 = vld [vmem:[#allocation3] sm:$0xff]  ;;  %v981_v62 = vld [vmem:[#allocation6 + $0x188] sm:$0xff]  ;;  %v983_v63 = vld [vmem:[#allocation6 + $0x198] sm:$0xff] }
 0x11c   : > { %1576 = vst.msk [vmem:[#allocation3] sm:$0xff] %vm794_vm3, %v8736_v3  ;;  %6551 = vmatmul.mubr.msk.f32.gmra.mrb[4].mxu0 %vm794_vm3, %v801_v59  ;;  %v7041_v59 = vpack.c.bf16 %v979_v57, %v977_v56  ;;  %v7045_v1 = vpack.c.bf16 %v983_v63, %v981_v62  ;;  %v980_v2 = vld [vmem:[#allocation6 + $0x180] sm:$0xff]  ;;  %v987_v6 = vld [vmem:[#allocation6 + $0x1b8] sm:$0xff]  ;;  %v993_v19 = vld [vmem:[#allocation6 + $0x1e8] sm:$0xff] }
 0x11d   : > { %917 = vmatprep.mubr.f32.mxu0 %v9914_v36  ;;  %7008 = vmatpush1.bf16.msra.mxu0 %v7007_v4  ;;  %v982_v4 = vld [vmem:[#allocation6 + $0x190] sm:$0xff]  ;;  %v984_v10 = vld [vmem:[#allocation6 + $0x1a0] sm:$0xff]  ;;  %v991_v13 = vld [vmem:[#allocation6 + $0x1d8] sm:$0xff] }
 0x11e   : > { %7010 = vmatprep.subr.bf16.mxu0 %v7009_v5  ;;  %v985_v5 = vld [vmem:[#allocation6 + $0x1a8] sm:$0xff]  ;;  %v7047_v7 = vpack.c.bf16 %v982_v4, %v980_v2  ;;  %v988_v16 = vld [vmem:[#allocation6 + $0x1c0] sm:$0xff]  ;;  %v995_v20 = vld [vmem:[#allocation6 + $0x1f8] sm:$0xff] }
 0x11f   : > { %v7049_v9 = vpack.c.bf16 %v987_v6, %v985_v5  ;;  %v7057_v21 = vpack.c.bf16 %v995_v20, %v993_v19  ;;  %v992_v22 = vld [vmem:[#allocation6 + $0x1e0] sm:$0xff]  ;;  %v8749_v25 = vld [vmem:[%s9900_s2 + $0x18] sm:$0xff]  ;;  %v6579_v34 = vld [vmem:[%s8701_s14 + $0x54c] sm:$0xff] }
 0x120   : > { %6552 = vmatmul.mubr.msk.f32.gmra.mrb[6].mxu0 %vm794_vm3, %v802_v60  ;;  %v976_v60 = vld [vmem:[#allocation6 + $0x160] sm:$0xff]  ;;  %v1280_v26 = vcombine.high %v8749_v25, %v8749_v25  ;;  %1148 = vst.msk [vmem:[#allocation3 + $0xc0] sm:$0xff] %vm794_vm3, %v6579_v34  ;;  %v6582_v44 = vld [vmem:[%s8701_s14 + $0x58c] sm:$0xff]  ;;  %v8820_v54 = vld [vmem:[#allocation3 + $0x18] sm:$0xff] }
 0x121   : > { %7012 = vmatpush1.bf16.msra.mxu0 %v7011_v11  ;;  %v7043_v0 = vpack.c.bf16 %v978_v61, %v976_v60  ;;  %v986_v11 = vld [vmem:[#allocation6 + $0x1b0] sm:$0xff]  ;;  %v6567_v27 = vld [vmem:[%s8701_s14 + $0x3fc] sm:$0xff]  ;;  %v6568_v28 = vld [vmem:[%s8701_s14 + $0x404] sm:$0xff]  ;;  %1151 = vst.msk [vmem:[#allocation3 + $0xd8] sm:$0xff] %vm794_vm3, %v6582_v44 }
 0x122   : > { %7014 = vmatprep.subr.bf16.mxu0 %v7013_v12  ;;  %v989_v12 = vld [vmem:[#allocation6 + $0x1c8] sm:$0xff]  ;;  %v7051_v14 = vpack.c.bf16 %v986_v11, %v984_v10  ;;  %1136 = vst.msk [vmem:[#allocation3 + $0x60] sm:$0xff] %vm794_vm3, %v6567_v27  ;;  %1137 = vst.msk [vmem:[#allocation3 + $0x68] sm:$0xff] %vm794_vm3, %v6568_v28  ;;  %v6570_v32 = vld [vmem:[%s8701_s14 + $0x43c] sm:$0xff] }
 0x123   : > { %v7053_v15 = vpack.c.bf16 %v991_v13, %v989_v12  ;;  %1139 = vst.msk [vmem:[#allocation3 + $0x78] sm:$0xff] %vm794_vm3, %v6570_v32  ;;  %v6581_v38 = vld [vmem:[%s8701_s14 + $0x584] sm:$0xff]  ;;  %v6628_v43 = vld [vmem:[%s8701_s14 + $0x55a] sm:$0xff]  ;;  %v6630_v49 = vld [vmem:[%s8701_s14 + $0x592] sm:$0xff] }
 0x124   : > { %1150 = vst.msk [vmem:[#allocation3 + $0xd0] sm:$0xff] %vm794_vm3, %v6581_v38  ;;  %v8809_v50 = vld [vmem:[#allocation3 + $0x10] sm:$0xff]  ;;  %v6653_v57 = vld [vmem:[%s8701_s14 + $0x2c0] sm:$0xff]  ;;  %v6655_v61 = vld [vmem:[%s8701_s14 + $0x2f8] sm:$0xff] }
 0x125   : > { %7016 = vmatpush1.bf16.msra.mxu0 %v7015_v17  ;;  %v990_v17 = vld [vmem:[#allocation6 + $0x1d0] sm:$0xff]  ;;  %v6664_v63 = vld [vmem:[%s8701_s14 + $0x408] sm:$0xff]  ;;  %v6666_v4 = vld [vmem:[%s8701_s14 + $0x440] sm:$0xff] }
 0x126   : > { %7018 = vmatprep.subr.bf16.mxu0 %v7017_v18  ;;  %v7055_v18 = vpack.c.bf16 %v990_v17, %v988_v16  ;;  %v8812_v51 = vld [vmem:[%s8701_s14 + $0x2ea] sm:$0xff]  ;;  %v8823_v55 = vld [vmem:[%s8701_s14 + $0x2f2] sm:$0xff]  ;;  %v6677_v11 = vld [vmem:[%s8701_s14 + $0x560] sm:$0xff] }
 0x127   : > { %1578 = vst.msk [vmem:[#allocation3 + $0x10] sm:$0xff] %vm794_vm3, %v8812_v51  ;;  %1579 = vst.msk [vmem:[#allocation3 + $0x18] sm:$0xff] %vm794_vm3, %v8823_v55  ;;  %v6667_v6 = vld [vmem:[%s8701_s14 + $0x448] sm:$0xff]  ;;  %v6678_v13 = vld [vmem:[%s8701_s14 + $0x590] sm:$0xff] }
 0x128   : > { %v8803_v48 = vld [vmem:[#allocation3 + $0xd8] sm:$0xff]  ;;  %v6776_v20 = vld [vmem:[%s8701_s14 + $0x162] sm:$0xff]  ;;  %v4456_v44 = vld [vmem:[%s8701_s14 + $0x150] sm:$0xff] }
 0x129   : > { %7020 = vmatpush1.bf16.msra.mxu0 %v7019_v23  ;;  %v994_v23 = vld [vmem:[#allocation6 + $0x1f0] sm:$0xff]  ;;  %v8764_v31 = vld [vmem:[#allocation3 + $0x68] sm:$0xff]  ;;  %1603 = vst.msk [vmem:[#allocation3 + $0xd8] sm:$0xff] %vm794_vm3, %v6630_v49  ;;  %v6705_v19 = vld [vmem:[%s8701_s14 + $0x15e] sm:$0xff] }
 0x12a   : > { %7022 = vmatprep.subr.bf16.mxu0 %v7021_v24  ;;  %v7059_v24 = vpack.c.bf16 %v994_v23, %v992_v22  ;;  %1589 = vst.msk [vmem:[#allocation3 + $0x68] sm:$0xff] %vm794_vm3, %v8710_v40  ;;  %v8782_v40 = vld [vmem:[#allocation3 + $0xc0] sm:$0xff]  ;;  %v6704_v17 = vld [vmem:[%s8701_s14 + $0x156] sm:$0xff]  ;;  %v6706_v23 = vld [vmem:[%s8701_s14 + $0x18e] sm:$0xff] }
 0x12b   : > { %v8795_v45 = vld [vmem:[#allocation3 + $0xd0] sm:$0xff]  ;;  %v6778_v34 = vld [vmem:[%s8701_s14 + $0x19a] sm:$0xff]  ;;  %v6716_v38 = vld [vmem:[%s8701_s14 + $0x2a6] sm:$0xff] }
 0x12c   : > { %v8908_v49 = vld [vmem:[%s8701_s14 + $0x1a2] sm:$0xff] }
 0x12d   : > { %7024 = vmatpush1.bf16.msra.mxu0 %v7023_v29  ;;  %v8758_v29 = vld [vmem:[#allocation3 + $0x60] sm:$0xff] }
 0x12e   : > { %7026 = vmatprep.subr.bf16.mxu0 %v7025_v30  ;;  %v6569_v30 = vld [vmem:[%s8701_s14 + $0x434] sm:$0xff]  ;;  %1588 = vst.msk [vmem:[#allocation3 + $0x60] sm:$0xff] %vm794_vm3, %v8704_v39 }
 0x12f   : > { %1138 = vst.msk [vmem:[#allocation3 + $0x70] sm:$0xff] %vm794_vm3, %v6569_v30  ;;  %v8776_v39 = vld [vmem:[#allocation3 + $0x78] sm:$0xff] }
 0x130   : > { %1591 = vst.msk [vmem:[#allocation3 + $0x78] sm:$0xff] %vm794_vm3, %v8720_v42  ;;  %v6629_v42 = vld [vmem:[%s8701_s14 + $0x58a] sm:$0xff]  ;;  %v8835_v60 = vld [vmem:[#allocation3 + $0x18] sm:$0xff] }
 0x131   : > { %7028 = vmatpush1.bf16.msra.mxu0 %v7027_v35  ;;  %v6580_v35 = vld [vmem:[%s8701_s14 + $0x554] sm:$0xff]  ;;  %1602 = vst.msk [vmem:[#allocation3 + $0xd0] sm:$0xff] %vm794_vm3, %v6629_v42  ;;  %2046 = vst.msk [vmem:[#allocation3 + $0x18] sm:$0xff] %vm794_vm3, %v6655_v61 }
 0x132   : > { %7030 = vmatprep.subr.bf16.mxu0 %v7029_v37  ;;  %1149 = vst.msk [vmem:[#allocation3 + $0xc8] sm:$0xff] %vm794_vm3, %v6580_v35  ;;  %v6627_v37 = vld [vmem:[%s8701_s14 + $0x552] sm:$0xff] }
 0x133   : > { %1600 = vst.msk [vmem:[#allocation3 + $0xc0] sm:$0xff] %vm794_vm3, %v6627_v37  ;;  %v6707_v30 = vld [vmem:[%s8701_s14 + $0x196] sm:$0xff] }
 0x135   : > { %7032 = vmatpush1.bf16.msra.mxu0 %v7031_v46  ;;  %v8797_v46 = vld [vmem:[#allocation3 + $0x8] sm:$0xff]  ;;  %v8839_v62 = vld [vmem:[#allocation3 + $0x60] sm:$0xff] }
 0x136   : > { %7034 = vmatprep.subr.bf16.mxu0 %v7033_v47  ;;  %v8770_v33 = vld [vmem:[#allocation3 + $0x70] sm:$0xff]  ;;  %v8800_v47 = vld [vmem:[%s8701_s14 + $0x2ba] sm:$0xff]  ;;  %2055 = vst.msk [vmem:[#allocation3 + $0x60] sm:$0xff] %vm794_vm3, %v6664_v63 }
 0x137   : > { %1590 = vst.msk [vmem:[#allocation3 + $0x70] sm:$0xff] %vm794_vm3, %v8713_v41  ;;  %1577 = vst.msk [vmem:[#allocation3 + $0x8] sm:$0xff] %vm794_vm3, %v8800_v47  ;;  %v8851_v5 = vld [vmem:[#allocation3 + $0x78] sm:$0xff] }
 0x138   : > { %2058 = vst.msk [vmem:[#allocation3 + $0x78] sm:$0xff] %vm794_vm3, %v6667_v6  ;;  %v8863_v12 = vld [vmem:[#allocation3 + $0xd0] sm:$0xff]  ;;  %v8890_v28 = vld [vmem:[#allocation3 + $0x18] sm:$0xff] }
 0x139   : > { %7036 = vmatpush1.bf16.msra.mxu0 %v7035_v52  ;;  %v8787_v41 = vld [vmem:[#allocation3 + $0xc8] sm:$0xff]  ;;  %v8814_v52 = vld [vmem:[#allocation3] sm:$0xff]  ;;  %2069 = vst.msk [vmem:[#allocation3 + $0xd0] sm:$0xff] %vm794_vm3, %v6678_v13  ;;  %2754 = vst.msk [vmem:[#allocation3 + $0x18] sm:$0xff] %vm794_vm3, %v6707_v30 }
 0x13a   : > { %7038 = vmatprep.subr.bf16.mxu0 %v7037_v53  ;;  %1601 = vst.msk [vmem:[#allocation3 + $0xc8] sm:$0xff] %vm794_vm3, %v6628_v43  ;;  %v6652_v53 = vld [vmem:[%s8701_s14 + $0x2b8] sm:$0xff]  ;;  %v1156_v30 = vld [vmem:[%s9900_s2] sm:$0xff] }
 0x13b   : > { %2043 = vst.msk [vmem:[#allocation3] sm:$0xff] %vm794_vm3, %v6652_v53  ;;  %v6861_v43 = vld [vmem:[%s8701_s14 + $0x2be] sm:$0xff] }
 0x13c   : > { %v804_v53 = vld [vmem:[%s9905_s7] ss:$8 sm:$0x3] }
 0x13d   : > { %7040 = vmatpush1.bf16.msra.mxu0 %v7039_v58  ;;  %v8831_v58 = vld [vmem:[#allocation3 + $0x10] sm:$0xff]  ;;  %v8896_v35 = vld [vmem:[#allocation3 + $0x60] sm:$0xff] }
 0x13e   : > { %7042 = vmatprep.subr.bf16.mxu0 %v7041_v59  ;;  %v8825_v56 = vld [vmem:[#allocation3 + $0x8] sm:$0xff]  ;;  %v6654_v59 = vld [vmem:[%s8701_s14 + $0x2f0] sm:$0xff]  ;;  %2763 = vst.msk [vmem:[#allocation3 + $0x60] sm:$0xff] %vm794_vm3, %v6716_v38 }
 0x13f   : > { %2044 = vst.msk [vmem:[#allocation3 + $0x8] sm:$0xff] %vm794_vm3, %v6653_v57  ;;  %2045 = vst.msk [vmem:[#allocation3 + $0x10] sm:$0xff] %vm794_vm3, %v6654_v59  ;;  %v8847_v2 = vld [vmem:[#allocation3 + $0x70] sm:$0xff]  ;;  %v8965_v38 = vld [vmem:[#allocation3 + $0x78] sm:$0xff] }
 0x140   : > { %2057 = vst.msk [vmem:[#allocation3 + $0x70] sm:$0xff] %vm794_vm3, %v6666_v4  ;;  %3262 = vst.msk [vmem:[#allocation3 + $0x60] sm:$0xff] %vm794_vm3, %v8736_v3  ;;  %v5567_v59 = vld [vmem:[%s8701_s14 + $0x174] sm:$0xff]  ;;  %v6862_v3 = vld [vmem:[%s8701_s14 + $0x2c6] sm:$0xff] }
 0x141   : > { %7044 = vmatpush1.bf16.msra.mxu0 %v7043_v0  ;;  %v8843_v0 = vld [vmem:[#allocation3 + $0x68] sm:$0xff]  ;;  %3777 = vst.msk [vmem:[#allocation3 + $0x60] sm:$0xff] %vm794_vm3, %v6861_v43  ;;  %v8921_v63 = vld [vmem:[#allocation3 + $0x18] sm:$0xff]  ;;  %v1158_v43 = vcombine.high %v1156_v30, %v1156_v30 }
 0x142   : > { %7046 = vmatprep.subr.bf16.mxu0 %v7045_v1  ;;  %v6665_v1 = vld [vmem:[%s8701_s14 + $0x410] sm:$0xff]  ;;  %v8859_v10 = vld [vmem:[#allocation3 + $0xc8] sm:$0xff]  ;;  %v8871_v16 = vld [vmem:[#allocation3] sm:$0xff]  ;;  %4532 = vst.msk [vmem:[#allocation3 + $0x60] sm:$0xff] %vm794_vm3, %v4456_v44 }
 0x143   : > { %2056 = vst.msk [vmem:[#allocation3 + $0x68] sm:$0xff] %vm794_vm3, %v6665_v1  ;;  %2068 = vst.msk [vmem:[#allocation3 + $0xc8] sm:$0xff] %vm794_vm3, %v6677_v11  ;;  %v6717_v1 = vld [vmem:[%s8701_s14 + $0x2ae] sm:$0xff]  ;;  %v4457_v4 = vld [vmem:[%s8701_s14 + $0x158] sm:$0xff]  ;;  %6583 = vmatprep.subr.msk.mxu1 %vm830_vm2, %v1158_v43 }
 0x144   : > { %2751 = vst.msk [vmem:[#allocation3] sm:$0xff] %vm794_vm3, %v6704_v17  ;;  %3253 = vst.msk [vmem:[#allocation3 + $0x18] sm:$0xff] %vm794_vm3, %v8908_v49  ;;  %v5568_v11 = vld [vmem:[%s8701_s14 + $0x17c] sm:$0xff]  ;;  %v6719_v44 = vld [vmem:[%s8701_s14 + $0x2e6] sm:$0xff]  ;;  %6584 = vmatpush1.msk.msra.mxu1 %vm830_vm2, %v1156_v30 }
 0x145   : > { %7048 = vmatpush1.bf16.msra.mxu0 %v7047_v7  ;;  %v8855_v7 = vld [vmem:[#allocation3 + $0xc0] sm:$0xff]  ;;  %5080 = vst.msk [vmem:[#allocation3 + $0x60] sm:$0xff] %vm794_vm3, %v6776_v20  ;;  %v6863_v17 = vld [vmem:[%s8701_s14 + $0x2f6] sm:$0xff]  ;;  %2766 = vst.msk [vmem:[#allocation3 + $0x78] sm:$0xff] %vm794_vm3, %v6719_v44  ;;  %6585 = vmatmul.mubr.msk.f32.vlgmr.msra.gmra.mrb[0].mxu1 %vm794_vm3, %v8739_v8 }
 0x146   : > { %7050 = vmatprep.subr.bf16.mxu0 %v7049_v9  ;;  %v6676_v9 = vld [vmem:[%s8701_s14 + $0x558] sm:$0xff]  ;;  %v8882_v22 = vld [vmem:[#allocation3 + $0x10] sm:$0xff]  ;;  %5643 = vst.msk [vmem:[#allocation3 + $0x60] sm:$0xff] %vm794_vm3, %v5567_v59  ;;  %3265 = vst.msk [vmem:[#allocation3 + $0x78] sm:$0xff] %vm794_vm3, %v8823_v55  ;;  %1245 = vmatprep.mubr.f32.mxu1 %v9914_v36 }
 0x147   : > { %2067 = vst.msk [vmem:[#allocation3 + $0xc0] sm:$0xff] %vm794_vm3, %v6676_v9  ;;  %2753 = vst.msk [vmem:[#allocation3 + $0x10] sm:$0xff] %vm794_vm3, %v6706_v23  ;;  %v8943_v13 = vld [vmem:[#allocation3 + $0x70] sm:$0xff] }
 0x148   : > { %v4459_v59 = vld [vmem:[%s8701_s14 + $0x190] sm:$0xff] }
 0x149   : > { %7052 = vmatpush1.bf16.msra.mxu0 %v7051_v14  ;;  %v8867_v14 = vld [vmem:[#allocation3 + $0xd8] sm:$0xff]  ;;  %6586 = vmatmul.mubr.msk.f32.gmra.mrb[2].mxu1 %vm794_vm3, %v8797_v46 }
 0x14a   : > { %7054 = vmatprep.subr.bf16.mxu0 %v7053_v15  ;;  %v6679_v15 = vld [vmem:[%s8701_s14 + $0x598] sm:$0xff]  ;;  %v8919_v61 = vld [vmem:[#allocation3 + $0x68] sm:$0xff]  ;;  %1251 = vmatprep.mubr.f32.mxu1 %v9914_v36 }
 0x14b   : > { %2070 = vst.msk [vmem:[#allocation3 + $0xd8] sm:$0xff] %vm794_vm3, %v6679_v15  ;;  %2764 = vst.msk [vmem:[#allocation3 + $0x68] sm:$0xff] %vm794_vm3, %v6717_v1  ;;  %v6718_v15 = vld [vmem:[%s8701_s14 + $0x2de] sm:$0xff] }
 0x14c   : > { %3263 = vst.msk [vmem:[#allocation3 + $0x68] sm:$0xff] %vm794_vm3, %v8800_v47  ;;  %2765 = vst.msk [vmem:[#allocation3 + $0x70] sm:$0xff] %vm794_vm3, %v6718_v15  ;;  %v4458_v47 = vld [vmem:[%s8701_s14 + $0x188] sm:$0xff] }
 0x14d   : > { %7056 = vmatpush1.bf16.msra.mxu0 %v7055_v18  ;;  %v8875_v18 = vld [vmem:[#allocation3 + $0x8] sm:$0xff]  ;;  %3778 = vst.msk [vmem:[#allocation3 + $0x68] sm:$0xff] %vm794_vm3, %v6862_v3  ;;  %3264 = vst.msk [vmem:[#allocation3 + $0x70] sm:$0xff] %vm794_vm3, %v8812_v51  ;;  %v5570_v51 = vld [vmem:[%s8701_s14 + $0x1b4] sm:$0xff]  ;;  %6587 = vmatmul.mubr.msk.f32.gmra.mrb[4].mxu1 %vm794_vm3, %v8809_v50 }
 0x14e   : > { %7058 = vmatprep.subr.bf16.mxu0 %v7057_v21  ;;  %2752 = vst.msk [vmem:[#allocation3 + $0x8] sm:$0xff] %vm794_vm3, %v6705_v19  ;;  %v8880_v21 = vld [vmem:[#allocation3] sm:$0xff]  ;;  %v8898_v37 = vld [vmem:[#allocation3 + $0x10] sm:$0xff]  ;;  %4533 = vst.msk [vmem:[#allocation3 + $0x68] sm:$0xff] %vm794_vm3, %v4457_v4  ;;  %1257 = vmatprep.mubr.f32.mxu1 %v9914_v36 }
 0x14f   : > { %3250 = vst.msk [vmem:[#allocation3] sm:$0xff] %vm794_vm3, %v6776_v20  ;;  %3252 = vst.msk [vmem:[#allocation3 + $0x10] sm:$0xff] %vm794_vm3, %v6778_v34  ;;  %v8950_v20 = vld [vmem:[%s9900_s2 + $0x30] sm:$0xff]  ;;  %v8996_v30 = vld [vmem:[#allocation3 + $0xc0] sm:$0xff] }
 0x150   : > { %3779 = vst.msk [vmem:[#allocation3 + $0x70] sm:$0xff] %vm794_vm3, %v6863_v17  ;;  %v1418_v17 = vcombine.high %v8950_v20, %v8950_v20 }
 0x151   : > { %7060 = vmatpush1.bf16.msra.mxu0 %v7059_v24  ;;  %v806_v24 = vlaneseq  ;;  %4534 = vst.msk [vmem:[#allocation3 + $0x70] sm:$0xff] %vm794_vm3, %v4458_v47  ;;  %6588 = vmatmul.mubr.msk.f32.gmra.mrb[6].mxu1 %vm794_vm3, %v8820_v54 }
 0x152   : > { %6590 = vmatprep.subr.msk.mxu0 %vm830_vm2, %v1280_v26  ;;  %v6777_v26 = vld [vmem:[%s8701_s14 + $0x16a] sm:$0xff]  ;;  %5082 = vst.msk [vmem:[#allocation3 + $0x70] sm:$0xff] %vm794_vm3, %v6778_v34  ;;  %v9021_v50 = vld [vmem:[#allocation3 + $0xd8] sm:$0xff] }
 0x153   : > { %v807_v32 = vshrl.u32 %v806_v24, 7  ;;  %5081 = vst.msk [vmem:[#allocation3 + $0x68] sm:$0xff] %vm794_vm3, %v6777_v26 }
 0x154   : > { %5644 = vst.msk [vmem:[#allocation3 + $0x68] sm:$0xff] %vm794_vm3, %v5568_v11 }
 0x155   : > { %v8888_v27 = vld [vmem:[#allocation3 + $0x8] sm:$0xff]  ;;  %v8905_v42 = vsub.s32 0, %v807_v32  ;;  %v8915_v57 = vsub.s32 1, %v807_v32 }
 0x156   : > { %3251 = vst.msk [vmem:[#allocation3 + $0x8] sm:$0xff] %vm794_vm3, %v6777_v26  ;;  %v5569_v26 = vld [vmem:[%s8701_s14 + $0x1ac] sm:$0xff] }
 0x157   : > { %v8932_v6 = vrot.slane %v804_v53, %v8905_v42  ;;  %v8938_v9 = vrot.slane %v804_v53, %v8915_v57  ;;  %v6864_v53 = vld [vmem:[%s8701_s14 + $0x2fe] sm:$0xff]  ;;  %5645 = vst.msk [vmem:[#allocation3 + $0x70] sm:$0xff] %vm794_vm3, %v5569_v26 }
 0x158   : > { %3780 = vst.msk [vmem:[#allocation3 + $0x78] sm:$0xff] %vm794_vm3, %v6864_v53 }
 0x159   : > { %4535 = vst.msk [vmem:[#allocation3 + $0x78] sm:$0xff] %vm794_vm3, %v4459_v59 }
 0x15a   : > { %5083 = vst.msk [vmem:[#allocation3 + $0x78] sm:$0xff] %vm794_vm3, %v8908_v49  ;;  %v6729_v49 = vld [vmem:[%s8701_s14 + $0x3fe] sm:$0xff] }
 0x15b   : > { %5646 = vst.msk [vmem:[#allocation3 + $0x78] sm:$0xff] %vm794_vm3, %v5570_v51 }
 0x1e7   : > { %v901_v19 = vpop.f32.mrb[0].mxu0 }
 0x1e8   : > { %v902_v23 = vadd.f32 %v901_v19, %v8932_v6  ;;  %v903_v24 = vpop.f32.mrb[1].mxu0 }
 0x1e9   : > { %v904_v32 = vadd.f32 %v903_v24, %v8938_v9 }
 0x1ea   : > { %v924_v4 = vmax.f32 %v902_v23, 0.0 }
 0x1eb   : > { %v925_v1 = vmax.f32 %v904_v32, 0.0  ;;  %v907_v3 = vpop.f32.mrb[2].mxu0  ;;  %v6728_v32 = vld [vmem:[%s8701_s14 + $0x3f6] sm:$0xff] }
 0x1ec   : > { %v908_v11 = vadd.f32 %v907_v3, %v8932_v6  ;;  %v909_v15 = vpop.f32.mrb[3].mxu0  ;;  %2775 = vst.msk [vmem:[#allocation3 + $0xc0] sm:$0xff] %vm794_vm3, %v6728_v32  ;;  %v6730_v3 = vld [vmem:[%s8701_s14 + $0x42e] sm:$0xff] }
 0x1ed   : > { %v910_v34 = vadd.f32 %v909_v15, %v8938_v9  ;;  %1060 = vmatprep.mubr.f32.mxu0 %v925_v1  ;;  %v9011_v1 = vld [vmem:[#allocation3 + $0xd0] sm:$0xff] }
 0x1ee   : > { %1061 = vmatmul.mubr.f32.vlgmr.msra.gmra.mrb[8].mxu0 %v924_v4  ;;  %v926_v47 = vmax.f32 %v908_v11, 0.0  ;;  %2777 = vst.msk [vmem:[#allocation3 + $0xd0] sm:$0xff] %vm794_vm3, %v6730_v3  ;;  %v6850_v3 = vld [vmem:[%s8701_s14 + $0x176] sm:$0xff] }
 0x1ef   : > { %v927_v19 = vmax.f32 %v910_v34, 0.0  ;;  %6591 = vmatpush1.msk.msra.mxu0 %vm830_vm2, %v8749_v25  ;;  %v913_v55 = vpop.f32.mrb[4].mxu0  ;;  %v9002_v25 = vld [vmem:[#allocation3 + $0xc8] sm:$0xff]  ;;  %v2535_v34 = vld [vmem:[#allocation6 + $0x240] sm:$0xff] }
 0x1f0   : > { %v914_v23 = vadd.f32 %v913_v55, %v8932_v6  ;;  %v915_v24 = vpop.f32.mrb[5].mxu0  ;;  %6597 = vmatprep.subr.msk.mxu0 %vm830_vm2, %v1418_v17  ;;  %2776 = vst.msk [vmem:[#allocation3 + $0xc8] sm:$0xff] %vm794_vm3, %v6729_v49  ;;  %v2540_v55 = vld [vmem:[#allocation6 + $0x268] sm:$0xff]  ;;  %v9136_v49 = vld [vmem:[#allocation3] sm:$0xff] }
 0x1f1   : > { %v916_v8 = vadd.f32 %v915_v24, %v8938_v9  ;;  %1066 = vmatprep.mubr.f32.mxu0 %v927_v19  ;;  %v2537_v19 = vld [vmem:[#allocation6 + $0x250] sm:$0xff] }
 0x1f2   : > { %1067 = vmatmul.mubr.f32.gmra.mrb[10].mxu0 %v926_v47  ;;  %v928_v44 = vmax.f32 %v914_v23, 0.0  ;;  %v2542_v47 = vld [vmem:[#allocation6 + $0x278] sm:$0xff]  ;;  %v7071_v23 = vpack.c.bf16 %v2537_v19, %v2535_v34  ;;  %v4447_v19 = vld [vmem:[%s8701_s14 + $0x40] sm:$0xff] }
 0x1f3   : > { %v929_v26 = vmax.f32 %v916_v8, 0.0  ;;  %v919_v43 = vpop.f32.mrb[6].mxu0  ;;  %v7073_v24 = vpack.c.bf16 %v2542_v47, %v2540_v55  ;;  %v2541_v8 = vld [vmem:[#allocation6 + $0x270] sm:$0xff]  ;;  %v2560_v47 = vld [vmem:[#allocation6 + $0x308] sm:$0xff] }
 0x1f4   : > { %v920_v53 = vadd.f32 %v919_v43, %v8932_v6  ;;  %v921_v59 = vpop.f32.mrb[7].mxu0  ;;  %v6631_v6 = vld [vmem:[%s9900_s2 + $0x8] sm:$0xff]  ;;  %v2546_v43 = vld [vmem:[#allocation6 + $0x298] sm:$0xff] }
 0x1f5   : > { %v922_v46 = vadd.f32 %v921_v59, %v8938_v9  ;;  %1072 = vmatprep.mubr.f32.mxu0 %v929_v26  ;;  %v6731_v9 = vld [vmem:[%s8701_s14 + $0x436] sm:$0xff]  ;;  %v1611_v11 = vcombine.high %v6631_v6, %v6631_v6  ;;  %v6849_v26 = vld [vmem:[%s8701_s14 + $0x16e] sm:$0xff] }
 0x1f6   : > { %1073 = vmatmul.mubr.f32.gmra.mrb[12].mxu0 %v928_v44  ;;  %v930_v4 = vmax.f32 %v920_v53, 0.0  ;;  %2778 = vst.msk [vmem:[#allocation3 + $0xd8] sm:$0xff] %vm794_vm3, %v6731_v9  ;;  %3765 = vst.msk [vmem:[#allocation3] sm:$0xff] %vm794_vm3, %v6849_v26  ;;  %v2543_v44 = vld [vmem:[#allocation6 + $0x280] sm:$0xff]  ;;  %v2545_v53 = vld [vmem:[#allocation6 + $0x290] sm:$0xff] }
 0x1f7   : > { %v931_v51 = vmax.f32 %v922_v46, 0.0  ;;  %v9144_v59 = vld [vmem:[#allocation3 + $0x8] sm:$0xff]  ;;  %v7079_v46 = vpack.c.bf16 %v2545_v53, %v2543_v44  ;;  %v2549_v9 = vld [vmem:[#allocation6 + $0x2b0] sm:$0xff] }
 0x1f8   : > { %3766 = vst.msk [vmem:[#allocation3 + $0x8] sm:$0xff] %vm794_vm3, %v6850_v3  ;;  %v2564_v53 = vld [vmem:[#allocation6 + $0x328] sm:$0xff]  ;;  %v2563_v3 = vld [vmem:[#allocation6 + $0x320] sm:$0xff] }
 0x1f9   : > { %1078 = vmatprep.mubr.f32.mxu0 %v931_v51  ;;  %v2550_v51 = vld [vmem:[#allocation6 + $0x2b8] sm:$0xff] }
 0x1fa   : > { %1079 = vmatmul.mubr.f32.gmra.mrb[14].mxu0 %v930_v4  ;;  %v2547_v4 = vld [vmem:[#allocation6 + $0x2a0] sm:$0xff] }
 0x1fb   : > { %1361 = vmatprep.mubr.f32.mxu0 %v9914_v36 }
 0x1fe   : > { %6592 = vmatmul.mubr.msk.f32.vlgmr.msra.gmra.mrb[16].mxu0 %vm794_vm3, %v8758_v29  ;;  %v6638_v29 = vld [vmem:[%s9900_s2 + $0x20] sm:$0xff] }
 0x1ff   : > { %6598 = vmatpush1.msk.msra.mxu0 %vm830_vm2, %v8950_v20  ;;  %1367 = vmatprep.mubr.f32.mxu0 %v9914_v36  ;;  %v1748_v54 = vcombine.high %v6638_v29, %v6638_v29  ;;  %v2536_v20 = vld [vmem:[#allocation6 + $0x248] sm:$0xff] }
 0x200   : > { %6632 = vmatprep.subr.msk.mxu0 %vm830_vm2, %v1611_v11  ;;  %v9150_v11 = vld [vmem:[#allocation3 + $0x10] sm:$0xff] }
 0x202   : > { %6593 = vmatmul.mubr.msk.f32.gmra.mrb[18].mxu0 %vm794_vm3, %v8764_v31  ;;  %v6645_v31 = vld [vmem:[%s9900_s2 + $0x38] sm:$0xff] }
 0x203   : > { %1373 = vmatprep.mubr.f32.mxu0 %v9914_v36 }
 0x206   : > { %6594 = vmatmul.mubr.msk.f32.gmra.mrb[20].mxu0 %vm794_vm3, %v8770_v33  ;;  %v1885_v33 = vcombine.high %v6645_v31, %v6645_v31 }
 0x207   : > { %1379 = vmatprep.mubr.f32.mxu0 %v9914_v36 }
 0x20a   : > { %6595 = vmatmul.mubr.msk.f32.gmra.mrb[22].mxu0 %vm794_vm3, %v8776_v39  ;;  %v6680_v39 = vld [vmem:[%s9900_s2 + $0x10] sm:$0xff] }
 0x20b   : > { %1499 = vmatprep.mubr.f32.mxu0 %v9914_v36 }
 0x20e   : > { %6599 = vmatmul.mubr.msk.f32.vlgmr.msra.gmra.mrb[16].mxu0 %vm794_vm3, %v8782_v40  ;;  %v2078_v40 = vcombine.high %v6680_v39, %v6680_v39 }
 0x20f   : > { %6633 = vmatpush1.msk.msra.mxu0 %vm830_vm2, %v6631_v6  ;;  %1505 = vmatprep.mubr.f32.mxu0 %v9914_v36 }
 0x210   : > { %6639 = vmatprep.subr.msk.mxu0 %vm830_vm2, %v1748_v54  ;;  %v4444_v54 = vld [vmem:[%s8701_s14] sm:$0xff] }
 0x212   : > { %6600 = vmatmul.mubr.msk.f32.gmra.mrb[18].mxu0 %vm794_vm3, %v8787_v41  ;;  %v6687_v41 = vld [vmem:[%s9900_s2 + $0x28] sm:$0xff] }
 0x213   : > { %1511 = vmatprep.mubr.f32.mxu0 %v9914_v36 }
 0x216   : > { %6601 = vmatmul.mubr.msk.f32.gmra.mrb[20].mxu0 %vm794_vm3, %v8795_v45  ;;  %v2215_v45 = vcombine.high %v6687_v41, %v6687_v41 }
 0x217   : > { %1517 = vmatprep.mubr.f32.mxu0 %v9914_v36 }
 0x21a   : > { %6602 = vmatmul.mubr.msk.f32.gmra.mrb[22].mxu0 %vm794_vm3, %v8803_v48  ;;  %v6694_v48 = vld [vmem:[%s9900_s2 + $0x40] sm:$0xff] }
 0x21b   : > { %1692 = vmatprep.mubr.f32.mxu0 %v9914_v36 }
 0x21e   : > { %6634 = vmatmul.mubr.msk.f32.vlgmr.msra.gmra.mrb[16].mxu0 %vm794_vm3, %v8814_v52  ;;  %v2352_v52 = vcombine.high %v6694_v48, %v6694_v48 }
 0x21f   : > { %6640 = vmatpush1.msk.msra.mxu0 %vm830_vm2, %v6638_v29  ;;  %1698 = vmatprep.mubr.f32.mxu0 %v9914_v36  ;;  %v6851_v29 = vld [vmem:[%s8701_s14 + $0x1a6] sm:$0xff] }
 0x220   : > { %6646 = vmatprep.subr.msk.mxu0 %vm830_vm2, %v1885_v33  ;;  %3767 = vst.msk [vmem:[#allocation3 + $0x10] sm:$0xff] %vm794_vm3, %v6851_v29  ;;  %v2552_v33 = vld [vmem:[#allocation6 + $0x2c8] sm:$0xff]  ;;  %v4995_v29 = vld [vmem:[%s8701_s14 + $0x52] sm:$0xff] }
 0x222   : > { %6635 = vmatmul.mubr.msk.f32.gmra.mrb[18].mxu0 %vm794_vm3, %v8825_v56  ;;  %v2528_v56 = vld [vmem:[#allocation6 + $0x208] sm:$0xff] }
 0x223   : > { %1704 = vmatprep.mubr.f32.mxu0 %v9914_v36 }
 0x226   : > { %6636 = vmatmul.mubr.msk.f32.gmra.mrb[20].mxu0 %vm794_vm3, %v8831_v58  ;;  %v2530_v58 = vld [vmem:[#allocation6 + $0x218] sm:$0xff] }
 0x227   : > { %1710 = vmatprep.mubr.f32.mxu0 %v9914_v36  ;;  %v9187_v34 = vld [vmem:[#allocation3 + $0x10] sm:$0xff] }
 0x22a   : > { %6637 = vmatmul.mubr.msk.f32.gmra.mrb[22].mxu0 %vm794_vm3, %v8835_v60  ;;  %v2527_v60 = vld [vmem:[#allocation6 + $0x200] sm:$0xff] }
 0x22b   : > { %1829 = vmatprep.mubr.f32.mxu0 %v9914_v36 }
 0x22e   : > { %6641 = vmatmul.mubr.msk.f32.vlgmr.msra.gmra.mrb[16].mxu0 %vm794_vm3, %v8839_v62  ;;  %v7061_v62 = vpack.c.bf16 %v2530_v58, %v2528_v56  ;;  %v4445_v56 = vld [vmem:[%s8701_s14 + $0x8] sm:$0xff]  ;;  %v4446_v58 = vld [vmem:[%s8701_s14 + $0x38] sm:$0xff] }
 0x22f   : > { %6647 = vmatpush1.msk.msra.mxu0 %vm830_vm2, %v6645_v31  ;;  %1835 = vmatprep.mubr.f32.mxu0 %v9914_v36  ;;  %v7083_v31 = vpack.c.bf16 %v2549_v9, %v2547_v4  ;;  %4522 = vst.msk [vmem:[#allocation3 + $0x10] sm:$0xff] %vm794_vm3, %v4446_v58  ;;  %v6887_v9 = vld [vmem:[%s8701_s14 + $0x596] sm:$0xff] }
 0x230   : > { %6681 = vmatprep.subr.msk.mxu0 %vm830_vm2, %v2078_v40  ;;  %7062 = vmatprep.subr.bf16.mxu1 %v7061_v62  ;;  %v2551_v40 = vld [vmem:[#allocation6 + $0x2c0] sm:$0xff]  ;;  %v2556_v62 = vld [vmem:[#allocation6 + $0x2e8] sm:$0xff] }
 0x232   : > { %6642 = vmatmul.mubr.msk.f32.gmra.mrb[18].mxu0 %vm794_vm3, %v8843_v0  ;;  %v2529_v0 = vld [vmem:[#allocation6 + $0x210] sm:$0xff] }
 0x233   : > { %1841 = vmatprep.mubr.f32.mxu0 %v9914_v36 }
 0x236   : > { %6643 = vmatmul.mubr.msk.f32.gmra.mrb[20].mxu0 %vm794_vm3, %v8847_v2  ;;  %v2532_v2 = vld [vmem:[#allocation6 + $0x228] sm:$0xff] }
 0x237   : > { %1847 = vmatprep.mubr.f32.mxu0 %v9914_v36 }
 0x23a   : > { %6644 = vmatmul.mubr.msk.f32.gmra.mrb[22].mxu0 %vm794_vm3, %v8851_v5  ;;  %v2534_v5 = vld [vmem:[#allocation6 + $0x238] sm:$0xff] }
 0x23b   : > { %1966 = vmatprep.mubr.f32.mxu0 %v9914_v36 }
 0x23e   : > { %6648 = vmatmul.mubr.msk.f32.vlgmr.msra.gmra.mrb[16].mxu0 %vm794_vm3, %v8855_v7  ;;  %v7063_v7 = vpack.c.bf16 %v2529_v0, %v2527_v60  ;;  %v2558_v0 = vld [vmem:[#allocation6 + $0x2f8] sm:$0xff] }
 0x23f   : > { %6682 = vmatpush1.msk.msra.mxu0 %vm830_vm2, %v6680_v39  ;;  %1972 = vmatprep.mubr.f32.mxu0 %v9914_v36  ;;  %v2554_v39 = vld [vmem:[#allocation6 + $0x2d8] sm:$0xff] }
 0x240   : > { %6688 = vmatprep.subr.msk.mxu0 %vm830_vm2, %v2215_v45  ;;  %7064 = vmatpush1.bf16.msra.mxu1 %v7063_v7  ;;  %v7085_v45 = vpack.c.bf16 %v2554_v39, %v2552_v33  ;;  %v7089_v7 = vpack.c.bf16 %v2558_v0, %v2556_v62  ;;  %v2568_v33 = vld [vmem:[#allocation6 + $0x348] sm:$0xff]  ;;  %v9226_v39 = vld [vmem:[#allocation3 + $0x10] sm:$0xff]  ;;  %v6888_v62 = vld [vmem:[%s8701_s14 + $0x59e] sm:$0xff] }
 0x241   : > { %v4483_v0 = vld [vmem:[%s8701_s14 + $0x430] sm:$0xff] }
 0x242   : > { %6649 = vmatmul.mubr.msk.f32.gmra.mrb[18].mxu0 %vm794_vm3, %v8859_v10  ;;  %v7065_v10 = vpack.c.bf16 %v2534_v5, %v2532_v2  ;;  %v2557_v2 = vld [vmem:[#allocation6 + $0x2f0] sm:$0xff]  ;;  %v9169_v5 = vld [vmem:[#allocation3 + $0x8] sm:$0xff] }
 0x243   : > { %1978 = vmatprep.mubr.f32.mxu0 %v9914_v36  ;;  %4521 = vst.msk [vmem:[#allocation3 + $0x8] sm:$0xff] %vm794_vm3, %v4445_v56  ;;  %v6743_v56 = vld [vmem:[%s8701_s14 + $0x586] sm:$0xff] }
 0x244   : > { %7066 = vmatprep.subr.bf16.mxu1 %v7065_v10  ;;  %v9174_v10 = vld [vmem:[%s9902_s4 + $0x18] sm:$0xff]  ;;  %2790 = vst.msk [vmem:[#allocation3 + $0x138] sm:$0xff] %vm794_vm3, %v6743_v56  ;;  %v2585_v56 = vld [vmem:[#allocation6 + $0x3d0] sm:$0xff] }
 0x246   : > { %6650 = vmatmul.mubr.msk.f32.gmra.mrb[20].mxu0 %vm794_vm3, %v8863_v12  ;;  %v2531_v12 = vld [vmem:[#allocation6 + $0x220] sm:$0xff] }
 0x247   : > { %1984 = vmatprep.mubr.f32.mxu0 %v9914_v36 }
 0x24a   : > { %6651 = vmatmul.mubr.msk.f32.gmra.mrb[22].mxu0 %vm794_vm3, %v8867_v14  ;;  %v2533_v14 = vld [vmem:[#allocation6 + $0x230] sm:$0xff]  ;;  %v4597_v4 = vld [vmem:[#allocation3 + $0x8] sm:$0xff] }
 0x24b   : > { %2159 = vmatprep.mubr.f32.mxu0 %v9914_v36  ;;  %v7067_v15 = vpack.c.bf16 %v2533_v14, %v2531_v12  ;;  %v6740_v12 = vld [vmem:[%s8701_s14 + $0x546] sm:$0xff]  ;;  %v4992_v14 = vld [vmem:[%s8701_s14 + $0x12] sm:$0xff] }
 0x24c   : > { %2787 = vst.msk [vmem:[#allocation3 + $0x120] sm:$0xff] %vm794_vm3, %v6740_v12 }
 0x24d   : > { %7068 = vmatpush1.bf16.msra.mxu1 %v7067_v15  ;;  %v6885_v15 = vld [vmem:[%s8701_s14 + $0x55e] sm:$0xff] }
 0x24e   : > { %6683 = vmatmul.mubr.msk.f32.vlgmr.msra.gmra.mrb[16].mxu0 %vm794_vm3, %v8871_v16  ;;  %v2538_v16 = vld [vmem:[#allocation6 + $0x258] sm:$0xff] }
 0x24f   : > { %6689 = vmatpush1.msk.msra.mxu0 %vm830_vm2, %v6687_v41  ;;  %2165 = vmatprep.mubr.f32.mxu0 %v9914_v36  ;;  %v7069_v17 = vpack.c.bf16 %v2538_v16, %v2536_v20  ;;  %v9156_v41 = vld [vmem:[#allocation3] sm:$0xff]  ;;  %v4724_v20 = vcombine.high %v9174_v10, %v9174_v10  ;;  %v6812_v16 = vld [vmem:[%s8701_s14 + $0x552] sm:$0xff] }
 0x250   : > { %6695 = vmatprep.subr.msk.mxu0 %vm830_vm2, %v2352_v52  ;;  %v6852_v52 = vld [vmem:[%s8701_s14 + $0x1ae] sm:$0xff]  ;;  %4520 = vst.msk [vmem:[#allocation3] sm:$0xff] %vm794_vm3, %v4444_v54  ;;  %3286 = vst.msk [vmem:[#allocation3 + $0x120] sm:$0xff] %vm794_vm3, %v6812_v16  ;;  %v9220_v54 = vld [vmem:[%s8701_s14 + $0x402] sm:$0xff] }
 0x251   : > { %7070 = vmatprep.subr.bf16.mxu1 %v7069_v17  ;;  %v4480_v17 = vld [vmem:[%s8701_s14 + $0x3f0] sm:$0xff]  ;;  %3801 = vst.msk [vmem:[#allocation3 + $0x120] sm:$0xff] %vm794_vm3, %v6885_v15 }
 0x252   : > { %6684 = vmatmul.mubr.msk.f32.gmra.mrb[18].mxu0 %vm794_vm3, %v8875_v18  ;;  %v2539_v18 = vld [vmem:[#allocation6 + $0x260] sm:$0xff]  ;;  %7072 = vmatpush1.bf16.msra.mxu1 %v7071_v23  ;;  %4556 = vst.msk [vmem:[#allocation3 + $0x120] sm:$0xff] %vm794_vm3, %v4480_v17  ;;  %v2573_v16 = vld [vmem:[#allocation6 + $0x370] sm:$0xff] }
 0x253   : > { %2171 = vmatprep.mubr.f32.mxu0 %v9914_v36  ;;  %v7075_v32 = vpack.c.bf16 %v2541_v8, %v2539_v18  ;;  %7074 = vmatprep.subr.bf16.mxu1 %v7073_v24  ;;  %v2559_v23 = vld [vmem:[#allocation6 + $0x300] sm:$0xff]  ;;  %v2561_v24 = vld [vmem:[#allocation6 + $0x310] sm:$0xff] }
 0x254   : > { %v4993_v18 = vld [vmem:[%s8701_s14 + $0x1a] sm:$0xff]  ;;  %v7095_v44 = vpack.c.bf16 %v2561_v24, %v2559_v23  ;;  %v4517_v24 = vld [vmem:[%s8701_s14 + $0x7e8] sm:$0xff] }
 0x255   : > { %5069 = vst.msk [vmem:[#allocation3 + $0x8] sm:$0xff] %vm794_vm3, %v4993_v18  ;;  %v2578_v23 = vld [vmem:[#allocation6 + $0x398] sm:$0xff]  ;;  %4593 = vst.msk [vmem:[#allocation3 + $0x248] sm:$0xff] %vm794_vm3, %v4517_v24 }
 0x256   : > { %6685 = vmatmul.mubr.msk.f32.gmra.mrb[20].mxu0 %vm794_vm3, %v8882_v22  ;;  %7076 = vmatpush1.bf16.msra.mxu1 %v7075_v32  ;;  %v4600_v22 = vld [vmem:[%s9902_s4] sm:$0xff]  ;;  %v6741_v32 = vld [vmem:[%s8701_s14 + $0x54e] sm:$0xff] }
 0x257   : > { %2177 = vmatprep.mubr.f32.mxu0 %v9914_v36  ;;  %v4596_v26 = vld [vmem:[#allocation3] sm:$0xff]  ;;  %2788 = vst.msk [vmem:[#allocation3 + $0x128] sm:$0xff] %vm794_vm3, %v6741_v32  ;;  %v5067_v24 = vld [vmem:[%s8701_s14 + $0x832] sm:$0xff] }
 0x258   : > { %5068 = vst.msk [vmem:[#allocation3] sm:$0xff] %vm794_vm3, %v4992_v14  ;;  %v2574_v14 = vld [vmem:[#allocation6 + $0x378] sm:$0xff]  ;;  %v9269_v32 = vld [vmem:[%s8701_s14 + $0x442] sm:$0xff] }
 0x25a   : > { %6686 = vmatmul.mubr.msk.f32.gmra.mrb[22].mxu0 %vm794_vm3, %v8890_v28  ;;  %v4602_v28 = vcombine.high %v4600_v22, %v4600_v22 }
 0x25b   : > { %2296 = vmatprep.mubr.f32.mxu0 %v9914_v36 }
 0x25e   : > { %6690 = vmatmul.mubr.msk.f32.vlgmr.msra.gmra.mrb[16].mxu0 %vm794_vm3, %v8896_v35  ;;  %v2544_v35 = vld [vmem:[#allocation6 + $0x288] sm:$0xff] }
 0x25f   : > { %6696 = vmatpush1.msk.msra.mxu0 %vm830_vm2, %v6694_v48  ;;  %2302 = vmatprep.mubr.f32.mxu0 %v9914_v36  ;;  %v9158_v48 = vld [vmem:[#allocation3 + $0x18] sm:$0xff] }
 0x260   : > { %6924 = vmatprep.subr.msk.mxu0 %vm830_vm2, %v4602_v28  ;;  %3768 = vst.msk [vmem:[#allocation3 + $0x18] sm:$0xff] %vm794_vm3, %v6852_v52  ;;  %v6886_v28 = vld [vmem:[%s8701_s14 + $0x566] sm:$0xff] }
 0x261   : > { %v9231_v52 = vld [vmem:[#allocation3 + $0x120] sm:$0xff] }
 0x262   : > { %6691 = vmatmul.mubr.msk.f32.gmra.mrb[18].mxu0 %vm794_vm3, %v8919_v61  ;;  %v7077_v61 = vpack.c.bf16 %v2546_v43, %v2544_v35  ;;  %v4481_v43 = vld [vmem:[%s8701_s14 + $0x3f8] sm:$0xff]  ;;  %5104 = vst.msk [vmem:[#allocation3 + $0x120] sm:$0xff] %vm794_vm3, %v9220_v54 }
 0x263   : > { %2308 = vmatprep.mubr.f32.mxu0 %v9914_v36 }
 0x264   : > { %7078 = vmatprep.subr.bf16.mxu1 %v7077_v61  ;;  %v4994_v61 = vld [vmem:[%s8701_s14 + $0x4a] sm:$0xff] }
 0x265   : > { %7080 = vmatpush1.bf16.msra.mxu1 %v7079_v46  ;;  %v2566_v46 = vld [vmem:[#allocation6 + $0x338] sm:$0xff]  ;;  %5070 = vst.msk [vmem:[#allocation3 + $0x10] sm:$0xff] %vm794_vm3, %v4994_v61 }
 0x266   : > { %6692 = vmatmul.mubr.msk.f32.gmra.mrb[20].mxu0 %vm794_vm3, %v8943_v13  ;;  %v2548_v13 = vld [vmem:[#allocation6 + $0x2a8] sm:$0xff]  ;;  %v2582_v61 = vld [vmem:[#allocation6 + $0x3b8] sm:$0xff] }
 0x267   : > { %2314 = vmatprep.mubr.f32.mxu0 %v9914_v36  ;;  %v7081_v6 = vpack.c.bf16 %v2550_v51, %v2548_v13  ;;  %v9200_v35 = vld [vmem:[#allocation3 + $0x18] sm:$0xff]  ;;  %v2565_v13 = vld [vmem:[#allocation6 + $0x330] sm:$0xff] }
 0x268   : > { %4523 = vst.msk [vmem:[#allocation3 + $0x18] sm:$0xff] %vm794_vm3, %v4447_v19  ;;  %v6742_v51 = vld [vmem:[%s8701_s14 + $0x57e] sm:$0xff]  ;;  %v6937_v19 = vld [vmem:[%s9902_s4 + $0x30] sm:$0xff] }
 0x269   : > { %7082 = vmatprep.subr.bf16.mxu1 %v7081_v6  ;;  %2789 = vst.msk [vmem:[#allocation3 + $0x130] sm:$0xff] %vm794_vm3, %v6742_v51  ;;  %v6814_v6 = vld [vmem:[%s8701_s14 + $0x58a] sm:$0xff] }
 0x26a   : > { %6693 = vmatmul.mubr.msk.f32.gmra.mrb[22].mxu0 %vm794_vm3, %v8965_v38  ;;  %v2553_v38 = vld [vmem:[#allocation6 + $0x2d0] sm:$0xff]  ;;  %7084 = vmatpush1.bf16.msra.mxu1 %v7083_v31  ;;  %3288 = vst.msk [vmem:[#allocation3 + $0x130] sm:$0xff] %vm794_vm3, %v6814_v6  ;;  %v4482_v31 = vld [vmem:[%s8701_s14 + $0x428] sm:$0xff] }
 0x26b   : > { %2433 = vmatprep.mubr.f32.mxu0 %v9914_v36  ;;  %v7087_v60 = vpack.c.bf16 %v2553_v38, %v2551_v40  ;;  %7086 = vmatprep.subr.bf16.mxu1 %v7085_v45  ;;  %v7099_v40 = vpack.c.bf16 %v2565_v13, %v2563_v3  ;;  %3803 = vst.msk [vmem:[#allocation3 + $0x130] sm:$0xff] %vm794_vm3, %v6887_v9  ;;  %v2570_v38 = vld [vmem:[#allocation6 + $0x358] sm:$0xff]  ;;  %v2567_v45 = vld [vmem:[#allocation6 + $0x340] sm:$0xff]  ;;  %v2581_v6 = vld [vmem:[#allocation6 + $0x3b0] sm:$0xff] }
 0x26c   : > { %4558 = vst.msk [vmem:[#allocation3 + $0x130] sm:$0xff] %vm794_vm3, %v4482_v31  ;;  %v7101_v58 = vpack.c.bf16 %v2570_v38, %v2568_v33  ;;  %v5065_v3 = vld [vmem:[%s8701_s14 + $0x7fa] sm:$0xff]  ;;  %v4856_v9 = vld [vmem:[#allocation3 + $0x248] sm:$0xff] }
 0x26d   : > { %5141 = vst.msk [vmem:[#allocation3 + $0x248] sm:$0xff] %vm794_vm3, %v5065_v3  ;;  %v5066_v31 = vld [vmem:[%s8701_s14 + $0x82a] sm:$0xff]  ;;  %v2586_v38 = vld [vmem:[#allocation6 + $0x3d8] sm:$0xff] }
 0x26e   : > { %6697 = vmatmul.mubr.msk.f32.vlgmr.msra.gmra.mrb[16].mxu0 %vm794_vm3, %v8996_v30  ;;  %v2555_v30 = vld [vmem:[#allocation6 + $0x2e0] sm:$0xff]  ;;  %7088 = vmatpush1.bf16.msra.mxu1 %v7087_v60  ;;  %v6815_v60 = vld [vmem:[%s8701_s14 + $0x592] sm:$0xff] }
 0x26f   : > { %2439 = vmatprep.mubr.f32.mxu0 %v9914_v36  ;;  %6925 = vmatpush1.msk.msra.mxu0 %vm830_vm2, %v4600_v22  ;;  %v7091_v55 = vpack.c.bf16 %v2557_v2, %v2555_v30  ;;  %v6813_v22 = vld [vmem:[%s8701_s14 + $0x55a] sm:$0xff]  ;;  %v9242_v2 = vld [vmem:[%s8701_s14 + $0x40a] sm:$0xff]  ;;  %3289 = vst.msk [vmem:[#allocation3 + $0x138] sm:$0xff] %vm794_vm3, %v6815_v60 }
 0x270   : > { %7090 = vmatprep.subr.bf16.mxu1 %v7089_v7  ;;  %6931 = vmatprep.subr.msk.mxu0 %vm830_vm2, %v4724_v20  ;;  %3287 = vst.msk [vmem:[#allocation3 + $0x128] sm:$0xff] %vm794_vm3, %v6813_v22  ;;  %v4599_v30 = vld [vmem:[#allocation3 + $0x18] sm:$0xff]  ;;  %v2572_v7 = vld [vmem:[#allocation6 + $0x368] sm:$0xff]  ;;  %3804 = vst.msk [vmem:[#allocation3 + $0x138] sm:$0xff] %vm794_vm3, %v6888_v62 }
 0x271   : > { %3802 = vst.msk [vmem:[#allocation3 + $0x128] sm:$0xff] %vm794_vm3, %v6886_v28  ;;  %5071 = vst.msk [vmem:[#allocation3 + $0x18] sm:$0xff] %vm794_vm3, %v4995_v29  ;;  %v2571_v20 = vld [vmem:[#allocation6 + $0x360] sm:$0xff]  ;;  %v7105_v17 = vpack.c.bf16 %v2574_v14, %v2572_v7  ;;  %v2588_v7 = vld [vmem:[#allocation6 + $0x3e8] sm:$0xff] }
 0x272   : > { %6698 = vmatmul.mubr.msk.f32.gmra.mrb[18].mxu0 %vm794_vm3, %v9002_v25  ;;  %v2562_v25 = vld [vmem:[#allocation6 + $0x318] sm:$0xff]  ;;  %7092 = vmatpush1.bf16.msra.mxu1 %v7091_v55  ;;  %4557 = vst.msk [vmem:[#allocation3 + $0x128] sm:$0xff] %vm794_vm3, %v4481_v43  ;;  %4559 = vst.msk [vmem:[#allocation3 + $0x138] sm:$0xff] %vm794_vm3, %v4483_v0  ;;  %v4516_v55 = vld [vmem:[%s8701_s14 + $0x7e0] sm:$0xff] }
 0x273   : > { %2445 = vmatprep.mubr.f32.mxu0 %v9914_v36  ;;  %v7093_v8 = vpack.c.bf16 %v2562_v25, %v2560_v47  ;;  %v9259_v47 = vld [vmem:[%s8701_s14 + $0x43a] sm:$0xff]  ;;  %v4862_v25 = vcombine.high %v6937_v19, %v6937_v19  ;;  %4592 = vst.msk [vmem:[#allocation3 + $0x240] sm:$0xff] %vm794_vm3, %v4516_v55  ;;  %v4719_v18 = vld [vmem:[#allocation3 + $0x130] sm:$0xff]  ;;  %v2580_v43 = vld [vmem:[#allocation6 + $0x3a8] sm:$0xff] }
 0x274   : > { %5106 = vst.msk [vmem:[#allocation3 + $0x130] sm:$0xff] %vm794_vm3, %v9259_v47  ;;  %v2575_v28 = vld [vmem:[#allocation6 + $0x380] sm:$0xff]  ;;  %v7113_v51 = vpack.c.bf16 %v2582_v61, %v2580_v43 }
 0x275   : > { %7094 = vmatprep.subr.bf16.mxu1 %v7093_v8  ;;  %v7107_v8 = vpack.c.bf16 %v2573_v16, %v2571_v20  ;;  %v2587_v16 = vld [vmem:[#allocation6 + $0x3e0] sm:$0xff] }
 0x276   : > { %6699 = vmatmul.mubr.msk.f32.gmra.mrb[20].mxu0 %vm794_vm3, %v9011_v1  ;;  %v7097_v1 = vpack.c.bf16 %v2566_v46, %v2564_v53  ;;  %7096 = vmatpush1.bf16.msra.mxu1 %v7095_v44  ;;  %v4518_v44 = vld [vmem:[%s8701_s14 + $0x818] sm:$0xff] }
 0x277   : > { %2451 = vmatprep.mubr.f32.mxu0 %v9914_v36  ;;  %v5064_v53 = vld [vmem:[%s8701_s14 + $0x7f2] sm:$0xff]  ;;  %4594 = vst.msk [vmem:[#allocation3 + $0x250] sm:$0xff] %vm794_vm3, %v4518_v44  ;;  %v9355_v3 = vld [vmem:[%s8701_s14 + $0x6da] sm:$0xff] }
 0x278   : > { %7098 = vmatprep.subr.bf16.mxu1 %v7097_v1 }
 0x279   : > { %v4718_v15 = vld [vmem:[#allocation3 + $0x128] sm:$0xff]  ;;  %v4720_v46 = vld [vmem:[#allocation3 + $0x138] sm:$0xff] }
 0x27a   : > { %6700 = vmatmul.mubr.msk.f32.gmra.mrb[22].mxu0 %vm794_vm3, %v9021_v50  ;;  %v2569_v50 = vld [vmem:[#allocation6 + $0x350] sm:$0xff]  ;;  %7100 = vmatpush1.bf16.msra.mxu1 %v7099_v40  ;;  %5105 = vst.msk [vmem:[#allocation3 + $0x128] sm:$0xff] %vm794_vm3, %v9242_v2  ;;  %5107 = vst.msk [vmem:[#allocation3 + $0x138] sm:$0xff] %vm794_vm3, %v9269_v32  ;;  %v4855_v13 = vld [vmem:[#allocation3 + $0x240] sm:$0xff] }
 0x27b   : > { %4683 = vmatprep.mubr.f32.mxu0 %v9914_v36  ;;  %v7103_v12 = vpack.c.bf16 %v2569_v50, %v2567_v45  ;;  %7102 = vmatprep.subr.bf16.mxu1 %v7101_v58  ;;  %5140 = vst.msk [vmem:[#allocation3 + $0x240] sm:$0xff] %vm794_vm3, %v5064_v53  ;;  %v2584_v40 = vld [vmem:[#allocation6 + $0x3c8] sm:$0xff]  ;;  %v9305_v45 = vpop.f32.mrb[0].mxu1  ;;  %v2583_v50 = vld [vmem:[#allocation6 + $0x3c0] sm:$0xff] }
 0x27c   : > { %v9309_v60 = vpop.f32.mrb[1].mxu1  ;;  %v7119_v62 = vpack.c.bf16 %v2585_v56, %v2583_v50  ;;  %v5281_v50 = vld [vmem:[#allocation3 + $0x120] sm:$0xff]  ;;  %v5591_v56 = vld [vmem:[%s8701_s14 + $0x414] sm:$0xff] }
 0x27d   : > { %v9313_v14 = vpop.f32.mrb[2].mxu1  ;;  %5667 = vst.msk [vmem:[#allocation3 + $0x120] sm:$0xff] %vm794_vm3, %v5591_v56  ;;  %v6755_v56 = vld [vmem:[%s8701_s14 + $0x6d6] sm:$0xff] }
 0x27e   : > { %6926 = vmatmul.mubr.msk.f32.vlgmr.msra.gmra.mrb[24].mxu0 %vm794_vm3, %v4596_v26  ;;  %7104 = vmatpush1.bf16.msra.mxu1 %v7103_v12  ;;  %v2577_v26 = vld [vmem:[#allocation6 + $0x390] sm:$0xff]  ;;  %v2590_v12 = vld [vmem:[#allocation6 + $0x3f8] sm:$0xff]  ;;  %v9321_v55 = vpop.f32.mrb[3].mxu1  ;;  %2802 = vst.msk [vmem:[#allocation3 + $0x198] sm:$0xff] %vm794_vm3, %v6755_v56 }
 0x27f   : > { %4689 = vmatprep.mubr.f32.mxu0 %v9914_v36  ;;  %6932 = vmatpush1.msk.msra.mxu0 %vm830_vm2, %v9174_v10  ;;  %v2576_v10 = vld [vmem:[#allocation6 + $0x388] sm:$0xff]  ;;  %v7111_v1 = vpack.c.bf16 %v2577_v26, %v2575_v28  ;;  %v4857_v33 = vld [vmem:[#allocation3 + $0x250] sm:$0xff]  ;;  %v7121_v20 = vpack.c.bf16 %v2590_v12, %v2588_v7 }
 0x280   : > { %7106 = vmatprep.subr.bf16.mxu1 %v7105_v17  ;;  %v7109_v22 = vpack.c.bf16 %v2578_v23, %v2576_v10  ;;  %6938 = vmatprep.subr.msk.mxu0 %vm830_vm2, %v4862_v25  ;;  %5142 = vst.msk [vmem:[#allocation3 + $0x250] sm:$0xff] %vm794_vm3, %v5066_v31  ;;  %v6944_v17 = vld [vmem:[%s9902_s4 + $0x8] sm:$0xff]  ;;  %v5146_v31 = vld [vmem:[#allocation3 + $0x10] sm:$0xff] }
 0x281   : > { %v5151_v10 = vcombine.high %v6944_v17, %v6944_v17  ;;  %v5283_v7 = vld [vmem:[#allocation3 + $0x130] sm:$0xff] }
 0x282   : > { %6927 = vmatmul.mubr.msk.f32.gmra.mrb[26].mxu0 %vm794_vm3, %v4597_v4  ;;  %7108 = vmatpush1.bf16.msra.mxu1 %v7107_v8  ;;  %v2579_v4 = vld [vmem:[#allocation6 + $0x3a0] sm:$0xff]  ;;  %v9330_v8 = vpop.f32.mrb[4].mxu1  ;;  %v5593_v12 = vld [vmem:[%s8701_s14 + $0x44c] sm:$0xff] }
 0x283   : > { %4695 = vmatprep.mubr.f32.mxu0 %v9914_v36  ;;  %7110 = vmatprep.subr.bf16.mxu1 %v7109_v22  ;;  %v7115_v29 = vpack.c.bf16 %v2581_v6, %v2579_v4  ;;  %v9335_v28 = vpop.f32.mrb[5].mxu1  ;;  %v9365_v4 = vld [vmem:[%s9901_s3] sm:$0xff]  ;;  %v5145_v6 = vld [vmem:[#allocation3 + $0x8] sm:$0xff]  ;;  %5669 = vst.msk [vmem:[#allocation3 + $0x130] sm:$0xff] %vm794_vm3, %v5593_v12 }
 0x284   : > { %v9340_v43 = vpop.f32.mrb[6].mxu1  ;;  %v6979_v12 = vld [vmem:[%s9902_s4 + $0x40] sm:$0xff] }
 0x285   : > { %v9344_v44 = vpop.f32.mrb[7].mxu1 }
 0x286   : > { %6928 = vmatmul.mubr.msk.f32.gmra.mrb[28].mxu0 %vm794_vm3, %v9226_v39  ;;  %7112 = vmatpush1.bf16.msra.mxu1 %v7111_v1  ;;  %v4519_v39 = vld [vmem:[%s8701_s14 + $0x820] sm:$0xff]  ;;  %v9352_v1 = vld [vmem:[%s8701_s14 + $0x6aa] sm:$0xff] }
 0x287   : > { %4701 = vmatprep.mubr.f32.mxu0 %v9914_v36  ;;  %7114 = vmatprep.subr.bf16.mxu1 %v7113_v51  ;;  %4595 = vst.msk [vmem:[#allocation3 + $0x258] sm:$0xff] %vm794_vm3, %v4519_v39  ;;  %v5555_v51 = vld [vmem:[%s8701_s14 + $0x24] sm:$0xff]  ;;  %v5147_v39 = vld [vmem:[#allocation3 + $0x18] sm:$0xff] }
 0x28a   : > { %6929 = vmatmul.mubr.msk.f32.gmra.mrb[30].mxu0 %vm794_vm3, %v4599_v30  ;;  %7116 = vmatpush1.bf16.msra.mxu1 %v7115_v29  ;;  %v5556_v29 = vld [vmem:[%s8701_s14 + $0x2c] sm:$0xff] }
 0x28b   : > { %4805 = vmatprep.mubr.f32.mxu0 %v9914_v36  ;;  %5632 = vst.msk [vmem:[#allocation3 + $0x8] sm:$0xff] %vm794_vm3, %v5556_v29  ;;  %v5629_v29 = vld [vmem:[%s8701_s14 + $0x83c] sm:$0xff] }
 0x28e   : > { %6933 = vmatmul.mubr.msk.f32.vlgmr.msra.gmra.mrb[24].mxu0 %vm794_vm3, %v9231_v52  ;;  %v7117_v52 = vpack.c.bf16 %v2586_v38, %v2584_v40  ;;  %v4858_v30 = vld [vmem:[#allocation3 + $0x258] sm:$0xff]  ;;  %v5558_v40 = vld [vmem:[%s8701_s14 + $0x64] sm:$0xff] }
 0x28f   : > { %4811 = vmatprep.mubr.f32.mxu0 %v9914_v36  ;;  %6939 = vmatpush1.msk.msra.mxu0 %vm830_vm2, %v6937_v19  ;;  %5143 = vst.msk [vmem:[#allocation3 + $0x258] sm:$0xff] %vm794_vm3, %v5067_v24  ;;  %v6951_v38 = vld [vmem:[%s9902_s4 + $0x20] sm:$0xff]  ;;  %5634 = vst.msk [vmem:[#allocation3 + $0x18] sm:$0xff] %vm794_vm3, %v5558_v40  ;;  %v6965_v40 = vld [vmem:[%s9902_s4 + $0x10] sm:$0xff] }
 0x290   : > { %7118 = vmatprep.subr.bf16.mxu1 %v7117_v52  ;;  %6945 = vmatprep.subr.msk.mxu0 %vm830_vm2, %v5151_v10  ;;  %v5288_v52 = vcombine.high %v6951_v38, %v6951_v38  ;;  %v9398_v24 = vld [vmem:[#allocation3 + $0xc0] sm:$0xff] }
 0x291   : > { %7120 = vmatpush1.bf16.msra.mxu1 %v7119_v62  ;;  %v5282_v62 = vld [vmem:[#allocation3 + $0x128] sm:$0xff]  ;;  %3274 = vst.msk [vmem:[#allocation3 + $0xc0] sm:$0xff] %vm794_vm3, %v9220_v54  ;;  %v6752_v54 = vld [vmem:[%s8701_s14 + $0x696] sm:$0xff] }
 0x292   : > { %6934 = vmatmul.mubr.msk.f32.gmra.mrb[26].mxu0 %vm794_vm3, %v4718_v15  ;;  %v2589_v15 = vld [vmem:[#allocation6 + $0x3f0] sm:$0xff]  ;;  %7122 = vmatprep.subr.bf16.mxu1 %v7121_v20  ;;  %v5284_v20 = vld [vmem:[#allocation3 + $0x138] sm:$0xff]  ;;  %2799 = vst.msk [vmem:[#allocation3 + $0x180] sm:$0xff] %vm794_vm3, %v6752_v54 }
 0x293   : > { %4817 = vmatprep.mubr.f32.mxu0 %v9914_v36  ;;  %v7123_v25 = vpack.c.bf16 %v2589_v15, %v2587_v16  ;;  %v5594_v16 = vld [vmem:[%s8701_s14 + $0x454] sm:$0xff] }
 0x294   : > { %5670 = vst.msk [vmem:[#allocation3 + $0x138] sm:$0xff] %vm794_vm3, %v5594_v16  ;;  %v6958_v15 = vld [vmem:[%s9902_s4 + $0x38] sm:$0xff]  ;;  %v5708_v16 = vld [vmem:[#allocation3 + $0x8] sm:$0xff] }
 0x295   : > { %7124 = vmatpush1.bf16.msra.mxu1 %v7123_v25  ;;  %v5627_v25 = vld [vmem:[%s8701_s14 + $0x804] sm:$0xff]  ;;  %v5425_v10 = vcombine.high %v6958_v15, %v6958_v15 }
 0x296   : > { %6935 = vmatmul.mubr.msk.f32.gmra.mrb[28].mxu0 %vm794_vm3, %v4719_v18  ;;  %v5144_v18 = vld [vmem:[#allocation3] sm:$0xff] }
 0x297   : > { %4823 = vmatprep.mubr.f32.mxu0 %v9914_v36  ;;  %5631 = vst.msk [vmem:[#allocation3] sm:$0xff] %vm794_vm3, %v5555_v51  ;;  %v5628_v51 = vld [vmem:[%s8701_s14 + $0x80c] sm:$0xff] }
 0x29a   : > { %6936 = vmatmul.mubr.msk.f32.gmra.mrb[30].mxu0 %vm794_vm3, %v4720_v46  ;;  %v9349_v46 = vld [vmem:[%s8701_s14 + $0x6a2] sm:$0xff] }
 0x29b   : > { %4943 = vmatprep.mubr.f32.mxu0 %v9914_v36 }
 0x29e   : > { %6940 = vmatmul.mubr.msk.f32.vlgmr.msra.gmra.mrb[24].mxu0 %vm794_vm3, %v4855_v13  ;;  %v9358_v13 = vld [vmem:[%s8701_s14 + $0x6e2] sm:$0xff] }
 0x29f   : > { %4949 = vmatprep.mubr.f32.mxu0 %v9914_v36  ;;  %6946 = vmatpush1.msk.msra.mxu0 %vm830_vm2, %v6944_v17  ;;  %v5418_v17 = vld [vmem:[#allocation3 + $0x240] sm:$0xff] }
 0x2a0   : > { %6952 = vmatprep.subr.msk.mxu0 %vm830_vm2, %v5288_v52  ;;  %5703 = vst.msk [vmem:[#allocation3 + $0x240] sm:$0xff] %vm794_vm3, %v5627_v25 }
 0x2a2   : > { %6941 = vmatmul.mubr.msk.f32.gmra.mrb[26].mxu0 %vm794_vm3, %v4856_v9  ;;  %v2809_v9 = vcombine.high %v9365_v4, %v9365_v4 }
 0x2a3   : > { %4955 = vmatprep.mubr.f32.mxu0 %v9914_v36 }
 0x2a4   : > { %6756 = vmatprep.subr.msk.mxu1 %vm830_vm2, %v2809_v9  ;;  %v5420_v9 = vld [vmem:[#allocation3 + $0x250] sm:$0xff] }
 0x2a5   : > { %5705 = vst.msk [vmem:[#allocation3 + $0x250] sm:$0xff] %vm794_vm3, %v5629_v29 }
 0x2a6   : > { %6942 = vmatmul.mubr.msk.f32.gmra.mrb[28].mxu0 %vm794_vm3, %v4857_v33  ;;  %v5557_v33 = vld [vmem:[%s8701_s14 + $0x5c] sm:$0xff] }
 0x2a7   : > { %4961 = vmatprep.mubr.f32.mxu0 %v9914_v36  ;;  %5633 = vst.msk [vmem:[#allocation3 + $0x10] sm:$0xff] %vm794_vm3, %v5557_v33  ;;  %v5421_v33 = vld [vmem:[#allocation3 + $0x258] sm:$0xff] }
 0x2aa   : > { %6943 = vmatmul.mubr.msk.f32.gmra.mrb[30].mxu0 %vm794_vm3, %v4858_v30  ;;  %v5592_v30 = vld [vmem:[%s8701_s14 + $0x41c] sm:$0xff] }
 0x2ab   : > { %5232 = vmatprep.mubr.f32.mxu0 %v9914_v36  ;;  %5668 = vst.msk [vmem:[#allocation3 + $0x128] sm:$0xff] %vm794_vm3, %v5592_v30 }
 0x2ae   : > { %6947 = vmatmul.mubr.msk.f32.vlgmr.msra.gmra.mrb[24].mxu0 %vm794_vm3, %v5144_v18  ;;  %v5419_v18 = vld [vmem:[#allocation3 + $0x248] sm:$0xff] }
 0x2af   : > { %5238 = vmatprep.mubr.f32.mxu0 %v9914_v36  ;;  %6953 = vmatpush1.msk.msra.mxu0 %vm830_vm2, %v6951_v38  ;;  %5704 = vst.msk [vmem:[#allocation3 + $0x248] sm:$0xff] %vm794_vm3, %v5628_v51  ;;  %v5714_v38 = vcombine.high %v6965_v40, %v6965_v40 }
 0x2b0   : > { %6959 = vmatprep.subr.msk.mxu0 %vm830_vm2, %v5425_v10  ;;  %v6874_v10 = vld [vmem:[%s8701_s14 + $0x416] sm:$0xff] }
 0x2b2   : > { %6948 = vmatmul.mubr.msk.f32.gmra.mrb[26].mxu0 %vm794_vm3, %v5145_v6  ;;  %v9403_v6 = vld [vmem:[#allocation3 + $0xc8] sm:$0xff] }
 0x2b3   : > { %5244 = vmatprep.mubr.f32.mxu0 %v9914_v36  ;;  %3275 = vst.msk [vmem:[#allocation3 + $0xc8] sm:$0xff] %vm794_vm3, %v9242_v2  ;;  %v9421_v2 = vld [vmem:[#allocation3 + $0xd8] sm:$0xff]  ;;  %v5845_v29 = vld [vmem:[#allocation3 + $0x128] sm:$0xff] }
 0x2b4   : > { %3277 = vst.msk [vmem:[#allocation3 + $0xd8] sm:$0xff] %vm794_vm3, %v9269_v32  ;;  %v9444_v32 = vld [vmem:[#allocation3 + $0x180] sm:$0xff] }
 0x2b5   : > { %3298 = vst.msk [vmem:[#allocation3 + $0x180] sm:$0xff] %vm794_vm3, %v9349_v46  ;;  %v5707_v46 = vld [vmem:[#allocation3] sm:$0xff] }
 0x2b6   : > { %6949 = vmatmul.mubr.msk.f32.gmra.mrb[28].mxu0 %vm794_vm3, %v5146_v31  ;;  %v9411_v31 = vld [vmem:[#allocation3 + $0xd0] sm:$0xff] }
 0x2b7   : > { %5250 = vmatprep.mubr.f32.mxu0 %v9914_v36  ;;  %3276 = vst.msk [vmem:[#allocation3 + $0xd0] sm:$0xff] %vm794_vm3, %v9259_v47  ;;  %v6753_v47 = vld [vmem:[%s8701_s14 + $0x69e] sm:$0xff] }
 0x2b8   : > { %2800 = vst.msk [vmem:[#allocation3 + $0x188] sm:$0xff] %vm794_vm3, %v6753_v47 }
 0x2ba   : > { %6950 = vmatmul.mubr.msk.f32.gmra.mrb[30].mxu0 %vm794_vm3, %v5147_v39  ;;  %v5630_v39 = vld [vmem:[%s8701_s14 + $0x844] sm:$0xff] }
 0x2bb   : > { %5369 = vmatprep.mubr.f32.mxu0 %v9914_v36  ;;  %5706 = vst.msk [vmem:[#allocation3 + $0x258] sm:$0xff] %vm794_vm3, %v5630_v39  ;;  %v9488_v25 = vld [vmem:[#allocation3 + $0xc8] sm:$0xff]  ;;  %v9501_v54 = vld [vmem:[#allocation3 + $0xd8] sm:$0xff]  ;;  %v5846_v39 = vld [vmem:[#allocation3 + $0x130] sm:$0xff] }
 0x2bc   : > { %3790 = vst.msk [vmem:[#allocation3 + $0xc8] sm:$0xff] %vm794_vm3, %v6874_v10  ;;  %v9511_v47 = vld [vmem:[#allocation3 + $0x180] sm:$0xff] }
 0x2be   : > { %6954 = vmatmul.mubr.msk.f32.vlgmr.msra.gmra.mrb[24].mxu0 %vm794_vm3, %v5281_v50  ;;  %v6754_v50 = vld [vmem:[%s8701_s14 + $0x6ce] sm:$0xff] }
 0x2bf   : > { %5375 = vmatprep.mubr.f32.mxu0 %v9914_v36  ;;  %6960 = vmatpush1.msk.msra.mxu0 %vm830_vm2, %v6958_v15  ;;  %v9446_v52 = vld [vmem:[#allocation3 + $0x188] sm:$0xff]  ;;  %2801 = vst.msk [vmem:[#allocation3 + $0x190] sm:$0xff] %vm794_vm3, %v6754_v50  ;;  %v9494_v51 = vld [vmem:[#allocation3 + $0xd0] sm:$0xff] }
 0x2c0   : > { %6966 = vmatprep.subr.msk.mxu0 %vm830_vm2, %v5714_v38  ;;  %3299 = vst.msk [vmem:[#allocation3 + $0x188] sm:$0xff] %vm794_vm3, %v9352_v1  ;;  %v6873_v15 = vld [vmem:[%s8701_s14 + $0x40e] sm:$0xff]  ;;  %v5981_v38 = vld [vmem:[#allocation3 + $0x240] sm:$0xff] }
 0x2c1   : > { %v9307_v58 = vpop.f32.mrb[8].mxu0  ;;  %v6897_v50 = vld [vmem:[%s8701_s14 + $0x6ae] sm:$0xff] }
 0x2c2   : > { %v9311_v0 = vpop.f32.mrb[9].mxu0  ;;  %6955 = vmatmul.mubr.msk.f32.gmra.mrb[26].mxu0 %vm794_vm3, %v5282_v62  ;;  %v6972_v62 = vld [vmem:[%s9902_s4 + $0x28] sm:$0xff]  ;;  %3813 = vst.msk [vmem:[#allocation3 + $0x180] sm:$0xff] %vm794_vm3, %v6897_v50 }
 0x2c3   : > { %5381 = vmatprep.mubr.f32.mxu0 %v9914_v36  ;;  %v5851_v30 = vcombine.high %v6972_v62, %v6972_v62 }
 0x2c5   : > { %v9319_v19 = vpop.f32.mrb[10].mxu0 }
 0x2c6   : > { %v9324_v23 = vpop.f32.mrb[11].mxu0  ;;  %6956 = vmatmul.mubr.msk.f32.gmra.mrb[28].mxu0 %vm794_vm3, %v5283_v7  ;;  %v9465_v1 = vld [vmem:[#allocation3 + $0x190] sm:$0xff]  ;;  %v9469_v7 = vld [vmem:[#allocation3 + $0x198] sm:$0xff] }
 0x2c7   : > { %5387 = vmatprep.mubr.f32.mxu0 %v9914_v36  ;;  %3300 = vst.msk [vmem:[#allocation3 + $0x190] sm:$0xff] %vm794_vm3, %v9355_v3  ;;  %3301 = vst.msk [vmem:[#allocation3 + $0x198] sm:$0xff] %vm794_vm3, %v9358_v13  ;;  %v5709_v3 = vld [vmem:[#allocation3 + $0x10] sm:$0xff]  ;;  %v9482_v13 = vld [vmem:[#allocation3 + $0xc0] sm:$0xff] }
 0x2c8   : > { %3789 = vst.msk [vmem:[#allocation3 + $0xc0] sm:$0xff] %vm794_vm3, %v6873_v15  ;;  %v9514_v56 = vld [vmem:[#allocation3 + $0x188] sm:$0xff] }
 0x2c9   : > { %v9332_v22 = vpop.f32.mrb[12].mxu0  ;;  %v6701_v15 = vld [vmem:[%s9905_s7 + $0x1] ss:$8 sm:$0x3] }
 0x2ca   : > { %v9337_v26 = vpop.f32.mrb[13].mxu0  ;;  %6957 = vmatmul.mubr.msk.f32.gmra.mrb[30].mxu0 %vm794_vm3, %v5284_v20  ;;  %v5988_v20 = vcombine.high %v6979_v12, %v6979_v12  ;;  %v2496_v10 = vrot.slane %v6701_v15, %v8905_v42 }
 0x2cb   : > { %5506 = vmatprep.mubr.f32.mxu0 %v9914_v36 }
 0x2cd   : > { %v9342_v61 = vpop.f32.mrb[14].mxu0 }
 0x2ce   : > { %v9346_v53 = vpop.f32.mrb[15].mxu0  ;;  %6961 = vmatmul.mubr.msk.f32.vlgmr.msra.gmra.mrb[24].mxu0 %vm794_vm3, %v5418_v17  ;;  %v5710_v17 = vld [vmem:[#allocation3 + $0x18] sm:$0xff] }
 0x2cf   : > { %5512 = vmatprep.mubr.f32.mxu0 %v9914_v36  ;;  %6967 = vmatpush1.msk.msra.mxu0 %vm830_vm2, %v6965_v40  ;;  %v5847_v40 = vld [vmem:[#allocation3 + $0x138] sm:$0xff] }
 0x2d0   : > { %6973 = vmatprep.subr.msk.mxu0 %vm830_vm2, %v5851_v30  ;;  %v9518_v30 = vld [vmem:[#allocation3 + $0x190] sm:$0xff] }
 0x2d2   : > { %6962 = vmatmul.mubr.msk.f32.gmra.mrb[26].mxu0 %vm794_vm3, %v5419_v18  ;;  %v5844_v18 = vld [vmem:[#allocation3 + $0x120] sm:$0xff] }
 0x2d3   : > { %5518 = vmatprep.mubr.f32.mxu0 %v9914_v36 }
 0x2d6   : > { %6963 = vmatmul.mubr.msk.f32.gmra.mrb[28].mxu0 %vm794_vm3, %v5420_v9  ;;  %v6875_v9 = vld [vmem:[%s8701_s14 + $0x446] sm:$0xff] }
 0x2d7   : > { %5524 = vmatprep.mubr.f32.mxu0 %v9914_v36  ;;  %3791 = vst.msk [vmem:[#allocation3 + $0xd0] sm:$0xff] %vm794_vm3, %v6875_v9  ;;  %v2500_v9 = vrot.slane %v6701_v15, %v8915_v57 }
 0x2da   : > { %6964 = vmatmul.mubr.msk.f32.gmra.mrb[30].mxu0 %vm794_vm3, %v5421_v33  ;;  %v6876_v33 = vld [vmem:[%s8701_s14 + $0x44e] sm:$0xff] }
 0x2db   : > { %5795 = vmatprep.mubr.f32.mxu0 %v9914_v36  ;;  %3792 = vst.msk [vmem:[#allocation3 + $0xd8] sm:$0xff] %vm794_vm3, %v6876_v33 }
 0x2de   : > { %6968 = vmatmul.mubr.msk.f32.vlgmr.msra.gmra.mrb[24].mxu0 %vm794_vm3, %v5707_v46  ;;  %v6899_v46 = vld [vmem:[%s8701_s14 + $0x6e6] sm:$0xff] }
 0x2df   : > { %5801 = vmatprep.mubr.f32.mxu0 %v9914_v36  ;;  %6974 = vmatpush1.msk.msra.mxu0 %vm830_vm2, %v6972_v62  ;;  %v6898_v62 = vld [vmem:[%s8701_s14 + $0x6b6] sm:$0xff]  ;;  %3815 = vst.msk [vmem:[#allocation3 + $0x190] sm:$0xff] %vm794_vm3, %v6899_v46 }
 0x2e0   : > { %6980 = vmatprep.subr.msk.mxu0 %vm830_vm2, %v5988_v20  ;;  %3814 = vst.msk [vmem:[#allocation3 + $0x188] sm:$0xff] %vm794_vm3, %v6898_v62  ;;  %v9525_v20 = vld [vmem:[#allocation3 + $0x198] sm:$0xff] }
 0x2e1   : > { %v9544_v62 = vld [vmem:[%s9901_s3 + $0x18] sm:$0xff] }
 0x2e2   : > { %6969 = vmatmul.mubr.msk.f32.gmra.mrb[26].mxu0 %vm794_vm3, %v5708_v16  ;;  %v6900_v16 = vld [vmem:[%s8701_s14 + $0x6ee] sm:$0xff] }
 0x2e3   : > { %5807 = vmatprep.mubr.f32.mxu0 %v9914_v36  ;;  %3816 = vst.msk [vmem:[#allocation3 + $0x198] sm:$0xff] %vm794_vm3, %v6900_v16 }
 0x2e6   : > { %6970 = vmatmul.mubr.msk.f32.gmra.mrb[28].mxu0 %vm794_vm3, %v5709_v3  ;;  %v5983_v3 = vld [vmem:[#allocation3 + $0x250] sm:$0xff] }
 0x2e7   : > { %5813 = vmatprep.mubr.f32.mxu0 %v9914_v36 }
 0x2ea   : > { %6971 = vmatmul.mubr.msk.f32.gmra.mrb[30].mxu0 %vm794_vm3, %v5710_v17  ;;  %v5984_v17 = vld [vmem:[#allocation3 + $0x258] sm:$0xff] }
 0x2eb   : > { %5932 = vmatprep.mubr.f32.mxu0 %v9914_v36 }
 0x2ee   : > { %6975 = vmatmul.mubr.msk.f32.vlgmr.msra.gmra.mrb[24].mxu0 %vm794_vm3, %v5844_v18 }
 0x2ef   : > { %5938 = vmatprep.mubr.f32.mxu0 %v9914_v36  ;;  %6981 = vmatpush1.msk.msra.mxu0 %vm830_vm2, %v6979_v12  ;;  %v5982_v12 = vld [vmem:[#allocation3 + $0x248] sm:$0xff] }
 0x2f2   : > { %6976 = vmatmul.mubr.msk.f32.gmra.mrb[26].mxu0 %vm794_vm3, %v5845_v29 }
 0x2f3   : > { %5944 = vmatprep.mubr.f32.mxu0 %v9914_v36 }
 0x2f6   : > { %6977 = vmatmul.mubr.msk.f32.gmra.mrb[28].mxu0 %vm794_vm3, %v5846_v39 }
 0x2f7   : > { %5950 = vmatprep.mubr.f32.mxu0 %v9914_v36 }
 0x2fa   : > { %6978 = vmatmul.mubr.msk.f32.gmra.mrb[30].mxu0 %vm794_vm3, %v5847_v40 }
 0x2fb   : > { %6069 = vmatprep.mubr.f32.mxu0 %v9914_v36 }
 0x2fe   : > { %6982 = vmatmul.mubr.msk.f32.vlgmr.msra.gmra.mrb[24].mxu0 %vm794_vm3, %v5981_v38 }
 0x2ff   : > { %6075 = vmatprep.mubr.f32.mxu0 %v9914_v36 }
 0x302   : > { %6983 = vmatmul.mubr.msk.f32.gmra.mrb[26].mxu0 %vm794_vm3, %v5982_v12 }
 0x303   : > { %6081 = vmatprep.mubr.f32.mxu0 %v9914_v36 }
 0x306   : > { %6984 = vmatmul.mubr.msk.f32.gmra.mrb[28].mxu0 %vm794_vm3, %v5983_v3 }
 0x307   : > { %6087 = vmatprep.mubr.f32.mxu0 %v9914_v36  ;;  %v5579_v36 = vld [vmem:[%s8701_s14 + $0x2c4] sm:$0xff] }
 0x30a   : > { %6985 = vmatmul.mubr.msk.f32.gmra.mrb[30].mxu0 %vm794_vm3, %v5984_v17 }
 0x341   : > { %v2435_v18 = vpop.f32.mrb[16].mxu0 }
 0x342   : > { %v7261_v29 = vadd.f32 %v2435_v18, %v9305_v45  ;;  %v2437_v33 = vpop.f32.mrb[17].mxu0 }
 0x343   : > { %v7262_v39 = vadd.f32 %v2437_v33, %v9309_v60  ;;  %v2930_v60 = vcombine.high %v9544_v62, %v9544_v62 }
 0x344   : > { %v2503_v40 = vadd.f32 %v7261_v29, %v2496_v10  ;;  %v9550_v29 = vld [vmem:[#allocation3 + $0xc0] sm:$0xff] }
 0x345   : > { %v2504_v38 = vadd.f32 %v7262_v39, %v2500_v9  ;;  %v2441_v50 = vpop.f32.mrb[18].mxu0 }
 0x346   : > { %v7263_v46 = vadd.f32 %v2441_v50, %v9313_v14  ;;  %v2443_v12 = vpop.f32.mrb[19].mxu0  ;;  %v2511_v3 = vmax.f32 %v2503_v40, 0.0  ;;  %v4468_v14 = vld [vmem:[%s8701_s14 + $0x2a0] sm:$0xff]  ;;  %v5016_v50 = vld [vmem:[%s8701_s14 + $0x2b2] sm:$0xff] }
 0x347   : > { %v2512_v16 = vmax.f32 %v2504_v38, 0.0  ;;  %v7264_v45 = vadd.f32 %v2443_v12, %v9321_v55  ;;  %4544 = vst.msk [vmem:[#allocation3 + $0xc0] sm:$0xff] %vm794_vm3, %v4468_v14  ;;  %v5018_v14 = vld [vmem:[%s8701_s14 + $0x2ea] sm:$0xff] }
 0x348   : > { %v2505_v15 = vadd.f32 %v7263_v46, %v2496_v10  ;;  %5092 = vst.msk [vmem:[#allocation3 + $0xc0] sm:$0xff] %vm794_vm3, %v5016_v50  ;;  %v5581_v50 = vld [vmem:[%s8701_s14 + $0x2fc] sm:$0xff] }
 0x349   : > { %v2506_v17 = vadd.f32 %v7264_v45, %v2500_v9  ;;  %v2447_v18 = vpop.f32.mrb[20].mxu0  ;;  %2655 = vmatprep.mubr.f32.mxu1 %v2512_v16  ;;  %5655 = vst.msk [vmem:[#allocation3 + $0xc0] sm:$0xff] %vm794_vm3, %v5579_v36  ;;  %v9563_v16 = vld [vmem:[#allocation3 + $0xc8] sm:$0xff] }
 0x34a   : > { %v7265_v33 = vadd.f32 %v2447_v18, %v9330_v8  ;;  %v2449_v39 = vpop.f32.mrb[21].mxu0  ;;  %2656 = vmatmul.mubr.f32.vlgmr.msra.gmra.mrb[8].mxu1 %v2511_v3  ;;  %v2513_v40 = vmax.f32 %v2505_v15, 0.0  ;;  %v5017_v3 = vld [vmem:[%s8701_s14 + $0x2ba] sm:$0xff]  ;;  %v5580_v15 = vld [vmem:[%s8701_s14 + $0x2cc] sm:$0xff] }
 0x34b   : > { %v2514_v38 = vmax.f32 %v2506_v17, 0.0  ;;  %v7266_v55 = vadd.f32 %v2449_v39, %v9335_v28  ;;  %6757 = vmatpush1.msk.msra.mxu1 %vm830_vm2, %v9365_v4  ;;  %v4469_v4 = vld [vmem:[%s8701_s14 + $0x2a8] sm:$0xff]  ;;  %v4470_v39 = vld [vmem:[%s8701_s14 + $0x2d8] sm:$0xff] }
 0x34c   : > { %v2507_v46 = vadd.f32 %v7265_v33, %v2496_v10  ;;  %6763 = vmatprep.subr.msk.mxu1 %vm830_vm2, %v2930_v60  ;;  %4545 = vst.msk [vmem:[#allocation3 + $0xc8] sm:$0xff] %vm794_vm3, %v4469_v4  ;;  %v5040_v4 = vld [vmem:[%s8701_s14 + $0x552] sm:$0xff] }
 0x34d   : > { %v2508_v8 = vadd.f32 %v7266_v55, %v2500_v9  ;;  %v2453_v12 = vpop.f32.mrb[22].mxu0  ;;  %2661 = vmatprep.mubr.f32.mxu1 %v2514_v38  ;;  %5093 = vst.msk [vmem:[#allocation3 + $0xc8] sm:$0xff] %vm794_vm3, %v5017_v3  ;;  %v4471_v55 = vld [vmem:[%s8701_s14 + $0x2e0] sm:$0xff] }
 0x34e   : > { %v7267_v28 = vadd.f32 %v2453_v12, %v9340_v43  ;;  %v2455_v45 = vpop.f32.mrb[23].mxu0  ;;  %2662 = vmatmul.mubr.f32.gmra.mrb[10].mxu1 %v2513_v40  ;;  %v2515_v18 = vmax.f32 %v2507_v46, 0.0  ;;  %5656 = vst.msk [vmem:[#allocation3 + $0xc8] sm:$0xff] %vm794_vm3, %v5580_v15  ;;  %v9573_v43 = vld [vmem:[#allocation3 + $0xd0] sm:$0xff]  ;;  %v5582_v46 = vld [vmem:[%s8701_s14 + $0x304] sm:$0xff] }
 0x34f   : > { %v2516_v60 = vmax.f32 %v2508_v8, 0.0  ;;  %v7268_v17 = vadd.f32 %v2455_v45, %v9344_v44  ;;  %4546 = vst.msk [vmem:[#allocation3 + $0xd0] sm:$0xff] %vm794_vm3, %v4470_v39  ;;  %v5019_v40 = vld [vmem:[%s8701_s14 + $0x2f2] sm:$0xff]  ;;  %v9926_v8 = vmov 0.0   ;;  %v4492_v45 = vld [vmem:[%s8701_s14 + $0x540] sm:$0xff]  ;;  %v4493_v15 = vld [vmem:[%s8701_s14 + $0x548] sm:$0xff] }
 0x350   : > { %v2509_v33 = vadd.f32 %v7267_v28, %v2496_v10  ;;  %5094 = vst.msk [vmem:[#allocation3 + $0xd0] sm:$0xff] %vm794_vm3, %v5018_v14  ;;  %v6769_v10 = vld [vmem:[%s9901_s3 + $0x30] sm:$0xff]  ;;  %v9593_v28 = vld [vmem:[#allocation3 + $0x180] sm:$0xff]  ;;  %v9632_v39 = vld [vmem:[#allocation3 + $0x198] sm:$0xff] }
 0x351   : > { %v2510_v36 = vadd.f32 %v7268_v17, %v2500_v9  ;;  %2667 = vmatprep.mubr.f32.mxu1 %v2516_v60  ;;  %5657 = vst.msk [vmem:[#allocation3 + $0xd0] sm:$0xff] %vm794_vm3, %v5581_v50  ;;  %v9584_v9 = vld [vmem:[#allocation3 + $0xd8] sm:$0xff]  ;;  %v3068_v12 = vcombine.high %v6769_v10, %v6769_v10  ;;  %v5603_v3 = vld [vmem:[%s8701_s14 + $0x564] sm:$0xff]  ;;  %4568 = vst.msk [vmem:[#allocation3 + $0x180] sm:$0xff] %vm794_vm3, %v4492_v45 }
 0x352   : > { %2668 = vmatmul.mubr.f32.gmra.mrb[12].mxu1 %v2515_v18  ;;  %v2517_v38 = vmax.f32 %v2509_v33, 0.0  ;;  %4547 = vst.msk [vmem:[#allocation3 + $0xd8] sm:$0xff] %vm794_vm3, %v4471_v55  ;;  %5116 = vst.msk [vmem:[#allocation3 + $0x180] sm:$0xff] %vm794_vm3, %v5040_v4  ;;  %v5604_v60 = vld [vmem:[%s8701_s14 + $0x56c] sm:$0xff]  ;;  %v5605_v33 = vld [vmem:[%s8701_s14 + $0x59c] sm:$0xff] }
 0x353   : > { %v2518_v44 = vmax.f32 %v2510_v36, 0.0  ;;  %5095 = vst.msk [vmem:[#allocation3 + $0xd8] sm:$0xff] %vm794_vm3, %v5019_v40  ;;  %5679 = vst.msk [vmem:[#allocation3 + $0x180] sm:$0xff] %vm794_vm3, %v5603_v3  ;;  %v9618_v17 = vld [vmem:[#allocation3 + $0x190] sm:$0xff]  ;;  %v6828_v36 = vld [vmem:[%s9901_s3 + $0x8] sm:$0xff] }
 0x354   : > { %5658 = vst.msk [vmem:[#allocation3 + $0xd8] sm:$0xff] %vm794_vm3, %v5582_v46  ;;  %v5042_v18 = vld [vmem:[%s8701_s14 + $0x58a] sm:$0xff]  ;;  %v5043_v14 = vld [vmem:[%s8701_s14 + $0x592] sm:$0xff]  ;;  %v4285_v55 = vld [vmem:[#allocation6 + $0x460] sm:$0xff] }
 0x355   : > { %2673 = vmatprep.mubr.f32.mxu1 %v2518_v44  ;;  %v5606_v50 = vld [vmem:[%s8701_s14 + $0x5a4] sm:$0xff]  ;;  %v3309_v44 = vcombine.high %v6828_v36, %v6828_v36  ;;  %v4287_v40 = vld [vmem:[#allocation6 + $0x470] sm:$0xff] }
 0x356   : > { %2674 = vmatmul.mubr.f32.gmra.mrb[14].mxu1 %v2517_v38  ;;  %v4288_v38 = vld [vmem:[#allocation6 + $0x478] sm:$0xff]  ;;  %v4290_v46 = vld [vmem:[#allocation6 + $0x488] sm:$0xff]  ;;  %v4289_v4 = vld [vmem:[#allocation6 + $0x480] sm:$0xff] }
 0x357   : > { %2890 = vmatprep.mubr.f32.mxu1 %v9926_v8  ;;  %v4291_v3 = vld [vmem:[#allocation6 + $0x490] sm:$0xff] }
 0x35a   : > { %6758 = vmatmul.mubr.msk.f32.vlgmr.msra.gmra.mrb[16].mxu1 %vm794_vm3, %v8880_v21  ;;  %v9607_v21 = vld [vmem:[#allocation3 + $0x188] sm:$0xff] }
 0x35b   : > { %6764 = vmatpush1.msk.msra.mxu1 %vm830_vm2, %v9544_v62  ;;  %2896 = vmatprep.mubr.f32.mxu1 %v9926_v8  ;;  %v5041_v62 = vld [vmem:[%s8701_s14 + $0x55a] sm:$0xff]  ;;  %4569 = vst.msk [vmem:[#allocation3 + $0x188] sm:$0xff] %vm794_vm3, %v4493_v15 }
 0x35c   : > { %6770 = vmatprep.subr.msk.mxu1 %vm830_vm2, %v3068_v12  ;;  %5117 = vst.msk [vmem:[#allocation3 + $0x188] sm:$0xff] %vm794_vm3, %v5041_v62  ;;  %v4292_v12 = vld [vmem:[#allocation6 + $0x498] sm:$0xff]  ;;  %v7143_v62 = vpack.c.bf16 %v4291_v3, %v4289_v4 }
 0x35d   : > { %5680 = vst.msk [vmem:[#allocation3 + $0x188] sm:$0xff] %vm794_vm3, %v5604_v60  ;;  %v7141_v45 = vpack.c.bf16 %v4292_v12, %v4290_v46  ;;  %v4296_v15 = vld [vmem:[#allocation6 + $0x4b8] sm:$0xff]  ;;  %v4326_v46 = vld [vmem:[#allocation6 + $0x5a8] sm:$0xff] }
 0x35e   : > { %6759 = vmatmul.mubr.msk.f32.gmra.mrb[18].mxu1 %vm794_vm3, %v8888_v27  ;;  %v4494_v27 = vld [vmem:[%s8701_s14 + $0x578] sm:$0xff] }
 0x35f   : > { %2902 = vmatprep.mubr.f32.mxu1 %v9926_v8  ;;  %4570 = vst.msk [vmem:[#allocation3 + $0x190] sm:$0xff] %vm794_vm3, %v4494_v27  ;;  %v4293_v27 = vld [vmem:[#allocation6 + $0x4a0] sm:$0xff]  ;;  %v4328_v12 = vld [vmem:[#allocation6 + $0x5b8] sm:$0xff] }
 0x360   : > { %5118 = vst.msk [vmem:[#allocation3 + $0x190] sm:$0xff] %vm794_vm3, %v5042_v18  ;;  %v4295_v18 = vld [vmem:[#allocation6 + $0x4b0] sm:$0xff]  ;;  %v7177_v3 = vpack.c.bf16 %v4328_v12, %v4326_v46 }
 0x361   : > { %5681 = vst.msk [vmem:[#allocation3 + $0x190] sm:$0xff] %vm794_vm3, %v5605_v33  ;;  %v4300_v33 = vld [vmem:[#allocation6 + $0x4d8] sm:$0xff] }
 0x362   : > { %6760 = vmatmul.mubr.msk.f32.gmra.mrb[20].mxu1 %vm794_vm3, %v8898_v37  ;;  %v4495_v37 = vld [vmem:[%s8701_s14 + $0x580] sm:$0xff] }
 0x363   : > { %2908 = vmatprep.mubr.f32.mxu1 %v9926_v8  ;;  %4571 = vst.msk [vmem:[#allocation3 + $0x198] sm:$0xff] %vm794_vm3, %v4495_v37  ;;  %v4297_v37 = vld [vmem:[#allocation6 + $0x4c0] sm:$0xff] }
 0x364   : > { %5119 = vst.msk [vmem:[#allocation3 + $0x198] sm:$0xff] %vm794_vm3, %v5043_v14  ;;  %v4299_v14 = vld [vmem:[#allocation6 + $0x4d0] sm:$0xff] }
 0x365   : > { %5682 = vst.msk [vmem:[#allocation3 + $0x198] sm:$0xff] %vm794_vm3, %v5606_v50  ;;  %v4302_v50 = vld [vmem:[#allocation6 + $0x4e8] sm:$0xff] }
 0x366   : > { %6761 = vmatmul.mubr.msk.f32.gmra.mrb[22].mxu1 %vm794_vm3, %v8921_v63  ;;  %v6835_v63 = vld [vmem:[%s9901_s3 + $0x20] sm:$0xff] }
 0x367   : > { %3011 = vmatprep.mubr.f32.mxu1 %v9926_v8 }
 0x36a   : > { %6765 = vmatmul.mubr.msk.f32.vlgmr.msra.gmra.mrb[16].mxu1 %vm794_vm3, %v9398_v24  ;;  %v3446_v24 = vcombine.high %v6835_v63, %v6835_v63 }
 0x36b   : > { %6771 = vmatpush1.msk.msra.mxu1 %vm830_vm2, %v6769_v10  ;;  %3017 = vmatprep.mubr.f32.mxu1 %v9926_v8 }
 0x36c   : > { %6829 = vmatprep.subr.msk.mxu1 %vm830_vm2, %v3309_v44  ;;  %v4304_v44 = vld [vmem:[#allocation6 + $0x4f8] sm:$0xff] }
 0x36e   : > { %6766 = vmatmul.mubr.msk.f32.gmra.mrb[18].mxu1 %vm794_vm3, %v9403_v6  ;;  %v6842_v6 = vld [vmem:[%s9901_s3 + $0x38] sm:$0xff] }
 0x36f   : > { %3023 = vmatprep.mubr.f32.mxu1 %v9926_v8 }
 0x372   : > { %6767 = vmatmul.mubr.msk.f32.gmra.mrb[20].mxu1 %vm794_vm3, %v9411_v31  ;;  %v3583_v31 = vcombine.high %v6842_v6, %v6842_v6 }
 0x373   : > { %3029 = vmatprep.mubr.f32.mxu1 %v9926_v8 }
 0x376   : > { %6768 = vmatmul.mubr.msk.f32.gmra.mrb[22].mxu1 %vm794_vm3, %v9421_v2 }
 0x377   : > { %3149 = vmatprep.mubr.f32.mxu1 %v9926_v8 }
 0x37a   : > { %6772 = vmatmul.mubr.msk.f32.vlgmr.msra.gmra.mrb[16].mxu1 %vm794_vm3, %v9444_v32 }
 0x37b   : > { %6830 = vmatpush1.msk.msra.mxu1 %vm830_vm2, %v6828_v36  ;;  %3155 = vmatprep.mubr.f32.mxu1 %v9926_v8 }
 0x37c   : > { %6836 = vmatprep.subr.msk.mxu1 %vm830_vm2, %v3446_v24  ;;  %v4301_v24 = vld [vmem:[#allocation6 + $0x4e0] sm:$0xff] }
 0x37e   : > { %6773 = vmatmul.mubr.msk.f32.gmra.mrb[18].mxu1 %vm794_vm3, %v9446_v52  ;;  %v4274_v52 = vld [vmem:[#allocation6 + $0x408] sm:$0xff] }
 0x37f   : > { %3161 = vmatprep.mubr.f32.mxu1 %v9926_v8 }
 0x382   : > { %6774 = vmatmul.mubr.msk.f32.gmra.mrb[20].mxu1 %vm794_vm3, %v9465_v1  ;;  %v4276_v1 = vld [vmem:[#allocation6 + $0x418] sm:$0xff] }
 0x383   : > { %3167 = vmatprep.mubr.f32.mxu1 %v9926_v8 }
 0x386   : > { %6775 = vmatmul.mubr.msk.f32.gmra.mrb[22].mxu1 %vm794_vm3, %v9469_v7  ;;  %v4280_v7 = vld [vmem:[#allocation6 + $0x438] sm:$0xff] }
 0x387   : > { %3390 = vmatprep.mubr.f32.mxu1 %v9926_v8 }
 0x38a   : > { %6831 = vmatmul.mubr.msk.f32.vlgmr.msra.gmra.mrb[16].mxu1 %vm794_vm3, %v9136_v49  ;;  %v6901_v49 = vld [vmem:[%s9901_s3 + $0x10] sm:$0xff] }
 0x38b   : > { %6837 = vmatpush1.msk.msra.mxu1 %vm830_vm2, %v6835_v63  ;;  %3396 = vmatprep.mubr.f32.mxu1 %v9926_v8  ;;  %v3824_v2 = vcombine.high %v6901_v49, %v6901_v49  ;;  %v7151_v63 = vpack.c.bf16 %v4299_v14, %v4297_v37 }
 0x38c   : > { %6843 = vmatprep.subr.msk.mxu1 %vm830_vm2, %v3583_v31  ;;  %v4306_v31 = vld [vmem:[#allocation6 + $0x508] sm:$0xff] }
 0x38e   : > { %6832 = vmatmul.mubr.msk.f32.gmra.mrb[18].mxu1 %vm794_vm3, %v9144_v59  ;;  %v6908_v59 = vld [vmem:[%s9901_s3 + $0x28] sm:$0xff] }
 0x38f   : > { %3402 = vmatprep.mubr.f32.mxu1 %v9926_v8 }
 0x392   : > { %6833 = vmatmul.mubr.msk.f32.gmra.mrb[20].mxu1 %vm794_vm3, %v9150_v11  ;;  %v3961_v11 = vcombine.high %v6908_v59, %v6908_v59 }
 0x393   : > { %3408 = vmatprep.mubr.f32.mxu1 %v9926_v8 }
 0x396   : > { %6834 = vmatmul.mubr.msk.f32.gmra.mrb[22].mxu1 %vm794_vm3, %v9158_v48  ;;  %v6915_v48 = vld [vmem:[%s9901_s3 + $0x40] sm:$0xff] }
 0x397   : > { %3527 = vmatprep.mubr.f32.mxu1 %v9926_v8  ;;  %v4098_v32 = vcombine.high %v6915_v48, %v6915_v48 }
 0x39a   : > { %6838 = vmatmul.mubr.msk.f32.vlgmr.msra.gmra.mrb[16].mxu1 %vm794_vm3, %v9482_v13 }
 0x39b   : > { %6844 = vmatpush1.msk.msra.mxu1 %vm830_vm2, %v6842_v6  ;;  %3533 = vmatprep.mubr.f32.mxu1 %v9926_v8  ;;  %v4303_v6 = vld [vmem:[#allocation6 + $0x4f0] sm:$0xff] }
 0x39c   : > { %6902 = vmatprep.subr.msk.mxu1 %vm830_vm2, %v3824_v2  ;;  %v7155_v2 = vpack.c.bf16 %v4303_v6, %v4301_v24  ;;  %v4336_v24 = vld [vmem:[#allocation6 + $0x5f8] sm:$0xff] }
 0x39e   : > { %6839 = vmatmul.mubr.msk.f32.gmra.mrb[18].mxu1 %vm794_vm3, %v9488_v25 }
 0x39f   : > { %3539 = vmatprep.mubr.f32.mxu1 %v9926_v8 }
 0x3a2   : > { %6840 = vmatmul.mubr.msk.f32.gmra.mrb[20].mxu1 %vm794_vm3, %v9494_v51  ;;  %v4277_v51 = vld [vmem:[#allocation6 + $0x420] sm:$0xff] }
 0x3a3   : > { %3545 = vmatprep.mubr.f32.mxu1 %v9926_v8 }
 0x3a6   : > { %6841 = vmatmul.mubr.msk.f32.gmra.mrb[22].mxu1 %vm794_vm3, %v9501_v54  ;;  %v4279_v54 = vld [vmem:[#allocation6 + $0x430] sm:$0xff] }
 0x3a7   : > { %3664 = vmatprep.mubr.f32.mxu1 %v9926_v8 }
 0x3aa   : > { %6845 = vmatmul.mubr.msk.f32.vlgmr.msra.gmra.mrb[16].mxu1 %vm794_vm3, %v9511_v47  ;;  %v4282_v47 = vld [vmem:[#allocation6 + $0x448] sm:$0xff] }
 0x3ab   : > { %6903 = vmatpush1.msk.msra.mxu1 %vm830_vm2, %v6901_v49  ;;  %3670 = vmatprep.mubr.f32.mxu1 %v9926_v8  ;;  %v4308_v49 = vld [vmem:[#allocation6 + $0x518] sm:$0xff] }
 0x3ac   : > { %6909 = vmatprep.subr.msk.mxu1 %vm830_vm2, %v3961_v11  ;;  %v4305_v11 = vld [vmem:[#allocation6 + $0x500] sm:$0xff] }
 0x3ae   : > { %6846 = vmatmul.mubr.msk.f32.gmra.mrb[18].mxu1 %vm794_vm3, %v9514_v56  ;;  %v4284_v56 = vld [vmem:[#allocation6 + $0x458] sm:$0xff] }
 0x3af   : > { %3676 = vmatprep.mubr.f32.mxu1 %v9926_v8 }
 0x3b2   : > { %6847 = vmatmul.mubr.msk.f32.gmra.mrb[20].mxu1 %vm794_vm3, %v9518_v30  ;;  %v7131_v30 = vpack.c.bf16 %v4279_v54, %v4277_v51  ;;  %v4313_v51 = vld [vmem:[#allocation6 + $0x540] sm:$0xff]  ;;  %v4315_v54 = vld [vmem:[#allocation6 + $0x550] sm:$0xff] }
 0x3b3   : > { %3682 = vmatprep.mubr.f32.mxu1 %v9926_v8 }
 0x3b6   : > { %6848 = vmatmul.mubr.msk.f32.gmra.mrb[22].mxu1 %vm794_vm3, %v9525_v20  ;;  %v7133_v20 = vpack.c.bf16 %v4284_v56, %v4282_v47  ;;  %v4318_v47 = vld [vmem:[#allocation6 + $0x568] sm:$0xff]  ;;  %v4320_v56 = vld [vmem:[#allocation6 + $0x578] sm:$0xff] }
 0x3b7   : > { %3905 = vmatprep.mubr.f32.mxu1 %v9926_v8 }
 0x3ba   : > { %6904 = vmatmul.mubr.msk.f32.vlgmr.msra.gmra.mrb[16].mxu1 %vm794_vm3, %v9156_v41  ;;  %v7125_v41 = vpack.c.bf16 %v4276_v1, %v4274_v52  ;;  %v4312_v52 = vld [vmem:[#allocation6 + $0x538] sm:$0xff] }
 0x3bb   : > { %6910 = vmatpush1.msk.msra.mxu1 %vm830_vm2, %v6908_v59  ;;  %3911 = vmatprep.mubr.f32.mxu1 %v9926_v8  ;;  %v7157_v59 = vpack.c.bf16 %v4308_v49, %v4306_v31  ;;  %v4333_v31 = vld [vmem:[#allocation6 + $0x5e0] sm:$0xff]  ;;  %v4335_v49 = vld [vmem:[#allocation6 + $0x5f0] sm:$0xff] }
 0x3bc   : > { %6916 = vmatprep.subr.msk.mxu1 %vm830_vm2, %v4098_v32  ;;  %v4310_v32 = vld [vmem:[#allocation6 + $0x528] sm:$0xff] }
 0x3be   : > { %6905 = vmatmul.mubr.msk.f32.gmra.mrb[18].mxu1 %vm794_vm3, %v9169_v5  ;;  %v4273_v5 = vld [vmem:[#allocation6 + $0x400] sm:$0xff] }
 0x3bf   : > { %3917 = vmatprep.mubr.f32.mxu1 %v9926_v8 }
 0x3c2   : > { %6906 = vmatmul.mubr.msk.f32.gmra.mrb[20].mxu1 %vm794_vm3, %v9187_v34  ;;  %v4275_v34 = vld [vmem:[#allocation6 + $0x410] sm:$0xff] }
 0x3c3   : > { %3923 = vmatprep.mubr.f32.mxu1 %v9926_v8  ;;  %v7127_v13 = vpack.c.bf16 %v4275_v34, %v4273_v5  ;;  %v4309_v5 = vld [vmem:[#allocation6 + $0x520] sm:$0xff]  ;;  %v4311_v34 = vld [vmem:[#allocation6 + $0x530] sm:$0xff] }
 0x3c6   : > { %6907 = vmatmul.mubr.msk.f32.gmra.mrb[22].mxu1 %vm794_vm3, %v9200_v35  ;;  %v4278_v35 = vld [vmem:[#allocation6 + $0x428] sm:$0xff] }
 0x3c7   : > { %4042 = vmatprep.mubr.f32.mxu1 %v9926_v8  ;;  %v7129_v25 = vpack.c.bf16 %v4280_v7, %v4278_v35  ;;  %v4314_v35 = vld [vmem:[#allocation6 + $0x548] sm:$0xff]  ;;  %v4316_v7 = vld [vmem:[#allocation6 + $0x558] sm:$0xff] }
 0x3ca   : > { %6911 = vmatmul.mubr.msk.f32.vlgmr.msra.gmra.mrb[16].mxu1 %vm794_vm3, %v9550_v29  ;;  %v4281_v29 = vld [vmem:[#allocation6 + $0x440] sm:$0xff] }
 0x3cb   : > { %6917 = vmatpush1.msk.msra.mxu1 %vm830_vm2, %v6915_v48  ;;  %4048 = vmatprep.mubr.f32.mxu1 %v9926_v8  ;;  %v4307_v48 = vld [vmem:[#allocation6 + $0x510] sm:$0xff] }
 0x3cc   : > { %7126 = vmatprep.subr.bf16.mxu1 %v7125_v41  ;;  %v7159_v1 = vpack.c.bf16 %v4307_v48, %v4305_v11  ;;  %v7161_v41 = vpack.c.bf16 %v4312_v52, %v4310_v32  ;;  %v6166_v11 = vld [vmem:[#allocation6 + $0x618] sm:$0xff]  ;;  %v6922_v32 = vld [vmem:[%s9905_s7 + $0x2] ss:$8 sm:$0x3] }
 0x3cd   : > { %v4242_v52 = vrot.slane %v6922_v32, %v8905_v42 }
 0x3ce   : > { %6912 = vmatmul.mubr.msk.f32.gmra.mrb[18].mxu1 %vm794_vm3, %v9563_v16  ;;  %v4283_v16 = vld [vmem:[#allocation6 + $0x450] sm:$0xff] }
 0x3cf   : > { %4054 = vmatprep.mubr.f32.mxu1 %v9926_v8  ;;  %v7135_v10 = vpack.c.bf16 %v4283_v16, %v4281_v29  ;;  %v4317_v29 = vld [vmem:[#allocation6 + $0x560] sm:$0xff]  ;;  %v4319_v16 = vld [vmem:[#allocation6 + $0x570] sm:$0xff] }
 0x3d2   : > { %6913 = vmatmul.mubr.msk.f32.gmra.mrb[20].mxu1 %vm794_vm3, %v9573_v43  ;;  %v4286_v43 = vld [vmem:[#allocation6 + $0x468] sm:$0xff] }
 0x3d3   : > { %4060 = vmatprep.mubr.f32.mxu1 %v9926_v8 }
 0x3d6   : > { %6914 = vmatmul.mubr.msk.f32.gmra.mrb[22].mxu1 %vm794_vm3, %v9584_v9  ;;  %v7137_v9 = vpack.c.bf16 %v4288_v38, %v4286_v43  ;;  %v4322_v43 = vld [vmem:[#allocation6 + $0x588] sm:$0xff]  ;;  %v4324_v38 = vld [vmem:[#allocation6 + $0x598] sm:$0xff] }
 0x3d7   : > { %4179 = vmatprep.mubr.f32.mxu1 %v9926_v8 }
 0x3da   : > { %6918 = vmatmul.mubr.msk.f32.vlgmr.msra.gmra.mrb[16].mxu1 %vm794_vm3, %v9593_v28  ;;  %v7139_v28 = vpack.c.bf16 %v4287_v40, %v4285_v55  ;;  %v4321_v55 = vld [vmem:[#allocation6 + $0x580] sm:$0xff]  ;;  %v4323_v40 = vld [vmem:[#allocation6 + $0x590] sm:$0xff] }
 0x3db   : > { %4185 = vmatprep.mubr.f32.mxu1 %v9926_v8  ;;  %7128 = vmatpush1.bf16.msra.mxu1 %v7127_v13  ;;  %v7163_v13 = vpack.c.bf16 %v4311_v34, %v4309_v5 }
 0x3dc   : > { %7130 = vmatprep.subr.bf16.mxu1 %v7129_v25  ;;  %v7165_v25 = vpack.c.bf16 %v4316_v7, %v4314_v35  ;;  %v6163_v35 = vld [vmem:[#allocation6 + $0x600] sm:$0xff]  ;;  %v6165_v7 = vld [vmem:[#allocation6 + $0x610] sm:$0xff] }
 0x3de   : > { %6919 = vmatmul.mubr.msk.f32.gmra.mrb[18].mxu1 %vm794_vm3, %v9607_v21  ;;  %v4294_v21 = vld [vmem:[#allocation6 + $0x4a8] sm:$0xff] }
 0x3df   : > { %4191 = vmatprep.mubr.f32.mxu1 %v9926_v8  ;;  %7132 = vmatpush1.bf16.msra.mxu1 %v7131_v30  ;;  %v7145_v60 = vpack.c.bf16 %v4296_v15, %v4294_v21  ;;  %v7167_v30 = vpack.c.bf16 %v4315_v54, %v4313_v51  ;;  %v4325_v21 = vld [vmem:[#allocation6 + $0x5a0] sm:$0xff]  ;;  %v4327_v15 = vld [vmem:[#allocation6 + $0x5b0] sm:$0xff]  ;;  %v6170_v51 = vld [vmem:[#allocation6 + $0x638] sm:$0xff] }
 0x3e0   : > { %7134 = vmatprep.subr.bf16.mxu1 %v7133_v20  ;;  %v7169_v20 = vpack.c.bf16 %v4320_v56, %v4318_v47  ;;  %v7191_v56 = vpack.c.bf16 %v6165_v7, %v6163_v35 }
 0x3e2   : > { %6920 = vmatmul.mubr.msk.f32.gmra.mrb[20].mxu1 %vm794_vm3, %v9618_v17  ;;  %v4298_v17 = vld [vmem:[#allocation6 + $0x4c8] sm:$0xff] }
 0x3e3   : > { %4197 = vmatprep.mubr.f32.mxu1 %v9926_v8  ;;  %7136 = vmatpush1.bf16.msra.mxu1 %v7135_v10  ;;  %v7147_v8 = vpack.c.bf16 %v4295_v18, %v4293_v27  ;;  %v7149_v36 = vpack.c.bf16 %v4300_v33, %v4298_v17  ;;  %v7171_v10 = vpack.c.bf16 %v4319_v16, %v4317_v29 }
 0x3e4   : > { %7138 = vmatprep.subr.bf16.mxu1 %v7137_v9  ;;  %v7173_v9 = vpack.c.bf16 %v4324_v38, %v4322_v43  ;;  %v7179_v18 = vpack.c.bf16 %v4327_v15, %v4325_v21  ;;  %v6167_v43 = vld [vmem:[#allocation6 + $0x620] sm:$0xff]  ;;  %v6169_v38 = vld [vmem:[#allocation6 + $0x630] sm:$0xff] }
 0x3e6   : > { %6921 = vmatmul.mubr.msk.f32.gmra.mrb[22].mxu1 %vm794_vm3, %v9632_v39  ;;  %v7153_v39 = vpack.c.bf16 %v4304_v44, %v4302_v50 }
 0x3e7   : > { %7140 = vmatpush1.bf16.msra.mxu1 %v7139_v28  ;;  %v9766_v28 = vpop.f32.mrb[24].mxu0 }
 0x3e8   : > { %7142 = vmatprep.subr.bf16.mxu1 %v7141_v45  ;;  %v7175_v45 = vpack.c.bf16 %v4323_v40, %v4321_v55  ;;  %v9768_v4 = vpop.f32.mrb[25].mxu0  ;;  %v6174_v55 = vld [vmem:[#allocation6 + $0x658] sm:$0xff]  ;;  %v9790_v40 = vld [vmem:[%s9905_s7 + $0x3] ss:$8 sm:$0x3] }
 0x3e9   : > { %v9770_v27 = vpop.f32.mrb[26].mxu0 }
 0x3ea   : > { %v9772_v17 = vpop.f32.mrb[27].mxu0 }
 0x3eb   : > { %7144 = vmatpush1.bf16.msra.mxu1 %v7143_v62  ;;  %v4330_v62 = vld [vmem:[#allocation6 + $0x5c8] sm:$0xff]  ;;  %v9774_v37 = vpop.f32.mrb[28].mxu0 }
 0x3ec   : > { %7146 = vmatprep.subr.bf16.mxu1 %v7145_v60  ;;  %v4332_v60 = vld [vmem:[#allocation6 + $0x5d8] sm:$0xff]  ;;  %v9776_v50 = vpop.f32.mrb[29].mxu0 }
 0x3ed   : > { %v7181_v33 = vpack.c.bf16 %v4332_v60, %v4330_v62  ;;  %v9778_v44 = vpop.f32.mrb[30].mxu0  ;;  %v6171_v60 = vld [vmem:[#allocation6 + $0x640] sm:$0xff] }
 0x3ef   : > { %7148 = vmatpush1.bf16.msra.mxu1 %v7147_v8  ;;  %v4329_v8 = vld [vmem:[#allocation6 + $0x5c0] sm:$0xff] }
 0x3f0   : > { %7150 = vmatprep.subr.bf16.mxu1 %v7149_v36  ;;  %v4331_v36 = vld [vmem:[#allocation6 + $0x5d0] sm:$0xff] }
 0x3f1   : > { %v7183_v14 = vpack.c.bf16 %v4331_v36, %v4329_v8  ;;  %v6176_v36 = vld [vmem:[#allocation6 + $0x668] sm:$0xff] }
 0x3f3   : > { %7152 = vmatpush1.bf16.msra.mxu1 %v7151_v63  ;;  %v9780_v63 = vpop.f32.mrb[31].mxu0 }
 0x3f4   : > { %7154 = vmatprep.subr.bf16.mxu1 %v7153_v39  ;;  %v4334_v39 = vld [vmem:[#allocation6 + $0x5e8] sm:$0xff] }
 0x3f5   : > { %v7185_v6 = vpack.c.bf16 %v4336_v24, %v4334_v39 }
 0x3f7   : > { %7156 = vmatpush1.bf16.msra.mxu1 %v7155_v2  ;;  %v7187_v2 = vpack.c.bf16 %v4335_v49, %v4333_v31 }
 0x3f8   : > { %7158 = vmatprep.subr.bf16.mxu1 %v7157_v59  ;;  %v6164_v59 = vld [vmem:[#allocation6 + $0x608] sm:$0xff] }
 0x3f9   : > { %v7189_v48 = vpack.c.bf16 %v6166_v11, %v6164_v59  ;;  %v6175_v11 = vld [vmem:[#allocation6 + $0x660] sm:$0xff] }
 0x3fb   : > { %7160 = vmatpush1.bf16.msra.mxu1 %v7159_v1  ;;  %v4246_v1 = vrot.slane %v6922_v32, %v8915_v57 }
 0x3fc   : > { %7162 = vmatprep.subr.bf16.mxu1 %v7161_v41 }
 0x3ff   : > { %7164 = vmatpush1.bf16.msra.mxu1 %v7163_v13 }
 0x400   : > { %7166 = vmatprep.subr.bf16.mxu1 %v7165_v25  ;;  %v6168_v25 = vld [vmem:[#allocation6 + $0x628] sm:$0xff] }
 0x401   : > { %v7193_v16 = vpack.c.bf16 %v6170_v51, %v6168_v25  ;;  %v6181_v51 = vld [vmem:[#allocation6 + $0x690] sm:$0xff] }
 0x403   : > { %7168 = vmatpush1.bf16.msra.mxu1 %v7167_v30 }
 0x404   : > { %7170 = vmatprep.subr.bf16.mxu1 %v7169_v20 }
 0x407   : > { %7172 = vmatpush1.bf16.msra.mxu1 %v7171_v10 }
 0x408   : > { %7174 = vmatprep.subr.bf16.mxu1 %v7173_v9  ;;  %v6172_v9 = vld [vmem:[#allocation6 + $0x648] sm:$0xff] }
 0x409   : > { %v7197_v62 = vpack.c.bf16 %v6174_v55, %v6172_v9  ;;  %v6189_v9 = vld [vmem:[#allocation6 + $0x6d0] sm:$0xff]  ;;  %v6192_v55 = vld [vmem:[#allocation6 + $0x6e8] sm:$0xff] }
 0x40b   : > { %7176 = vmatpush1.bf16.msra.mxu1 %v7175_v45  ;;  %v7195_v45 = vpack.c.bf16 %v6169_v38, %v6167_v43 }
 0x40c   : > { %7178 = vmatprep.subr.bf16.mxu1 %v7177_v3 }
 0x40f   : > { %7180 = vmatpush1.bf16.msra.mxu1 %v7179_v18  ;;  %v6173_v18 = vld [vmem:[#allocation6 + $0x650] sm:$0xff] }
 0x410   : > { %7182 = vmatprep.subr.bf16.mxu1 %v7181_v33  ;;  %v9794_v33 = vrot.slane %v9790_v40, %v8915_v57 }
 0x412   : > { %v6140_v32 = vadd.f32 %v9794_v33, %v9768_v4 }
 0x413   : > { %7184 = vmatpush1.bf16.msra.mxu1 %v7183_v14  ;;  %v6178_v14 = vld [vmem:[#allocation6 + $0x678] sm:$0xff] }
 0x414   : > { %7186 = vmatprep.subr.bf16.mxu1 %v7185_v6  ;;  %v7199_v6 = vpack.c.bf16 %v6173_v18, %v6171_v60  ;;  %v7201_v59 = vpack.c.bf16 %v6178_v14, %v6176_v36  ;;  %v6197_v36 = vld [vmem:[#allocation6 + $0x710] sm:$0xff]  ;;  %v6200_v14 = vld [vmem:[#allocation6 + $0x728] sm:$0xff] }
 0x417   : > { %7188 = vmatpush1.bf16.msra.mxu1 %v7187_v2 }
 0x418   : > { %7190 = vmatprep.subr.bf16.mxu1 %v7189_v48  ;;  %v6177_v48 = vld [vmem:[#allocation6 + $0x670] sm:$0xff] }
 0x419   : > { %v7203_v7 = vpack.c.bf16 %v6177_v48, %v6175_v11 }
 0x4ad   : > { %v4181_v41 = vpop.f32.mrb[16].mxu1 }
 0x4ae   : > { %v4249_v5 = vadd.f32 %v4242_v52, %v4181_v41  ;;  %v4183_v34 = vpop.f32.mrb[17].mxu1 }
 0x4af   : > { %v4250_v13 = vadd.f32 %v4246_v1, %v4183_v34  ;;  %v6182_v34 = vld [vmem:[#allocation6 + $0x698] sm:$0xff] }
 0x4b0   : > { %v4257_v30 = vmax.f32 %v4249_v5, 0.0  ;;  %v6180_v5 = vld [vmem:[#allocation6 + $0x688] sm:$0xff] }
 0x4b1   : > { %v4258_v54 = vmax.f32 %v4250_v13, 0.0  ;;  %v4187_v47 = vpop.f32.mrb[18].mxu1  ;;  %v7205_v25 = vpack.c.bf16 %v6182_v34, %v6180_v5  ;;  %v6208_v5 = vld [vmem:[#allocation6 + $0x768] sm:$0xff]  ;;  %v6210_v34 = vld [vmem:[#allocation6 + $0x778] sm:$0xff] }
 0x4b2   : > { %v4251_v20 = vadd.f32 %v4242_v52, %v4187_v47  ;;  %v4189_v29 = vpop.f32.mrb[19].mxu1  ;;  %v6184_v47 = vld [vmem:[#allocation6 + $0x6a8] sm:$0xff] }
 0x4b3   : > { %v4252_v10 = vadd.f32 %v4246_v1, %v4189_v29  ;;  %4401 = vmatprep.mubr.f32.mxu1 %v4258_v54  ;;  %v6148_v54 = vmax.f32 %v6140_v32, 0.0  ;;  %v6188_v29 = vld [vmem:[#allocation6 + $0x6c8] sm:$0xff]  ;;  %v6203_v32 = vld [vmem:[#allocation6 + $0x740] sm:$0xff] }
 0x4b4   : > { %4402 = vmatmul.mubr.f32.vlgmr.msra.gmra.mrb[8].mxu1 %v4257_v30  ;;  %v4259_v3 = vmax.f32 %v4251_v20, 0.0  ;;  %v6183_v30 = vld [vmem:[#allocation6 + $0x6a0] sm:$0xff]  ;;  %v6185_v20 = vld [vmem:[#allocation6 + $0x6b0] sm:$0xff] }
 0x4b5   : > { %v4260_v46 = vmax.f32 %v4252_v10, 0.0  ;;  %7192 = vmatpush1.bf16.msra.mxu1 %v7191_v56  ;;  %v4193_v12 = vpop.f32.mrb[20].mxu1  ;;  %v6186_v56 = vld [vmem:[#allocation6 + $0x6b8] sm:$0xff]  ;;  %v7211_v43 = vpack.c.bf16 %v6185_v20, %v6183_v30  ;;  %v6187_v10 = vld [vmem:[#allocation6 + $0x6c0] sm:$0xff] }
 0x4b6   : > { %v4253_v21 = vadd.f32 %v4242_v52, %v4193_v12  ;;  %v4195_v15 = vpop.f32.mrb[21].mxu1  ;;  %7194 = vmatprep.subr.bf16.mxu1 %v7193_v16  ;;  %v6190_v16 = vld [vmem:[#allocation6 + $0x6d8] sm:$0xff]  ;;  %v7215_v12 = vpack.c.bf16 %v6189_v9, %v6187_v10 }
 0x4b7   : > { %v4254_v8 = vadd.f32 %v4246_v1, %v4195_v15  ;;  %4407 = vmatprep.mubr.f32.mxu1 %v4260_v46  ;;  %v7213_v38 = vpack.c.bf16 %v6190_v16, %v6188_v29  ;;  %v6194_v46 = vld [vmem:[#allocation6 + $0x6f8] sm:$0xff]  ;;  %v6196_v15 = vld [vmem:[#allocation6 + $0x708] sm:$0xff]  ;;  %v6215_v16 = vld [vmem:[#allocation6 + $0x7a0] sm:$0xff] }
 0x4b8   : > { %4408 = vmatmul.mubr.f32.gmra.mrb[10].mxu1 %v4259_v3  ;;  %v4261_v31 = vmax.f32 %v4253_v21, 0.0  ;;  %v6191_v3 = vld [vmem:[#allocation6 + $0x6e0] sm:$0xff]  ;;  %v6193_v21 = vld [vmem:[#allocation6 + $0x6f0] sm:$0xff]  ;;  %v6218_v30 = vld [vmem:[#allocation6 + $0x7b8] sm:$0xff] }
 0x4b9   : > { %v4262_v39 = vmax.f32 %v4254_v8, 0.0  ;;  %7196 = vmatpush1.bf16.msra.mxu1 %v7195_v45  ;;  %v4199_v24 = vpop.f32.mrb[22].mxu1  ;;  %v7217_v45 = vpack.c.bf16 %v6194_v46, %v6192_v55  ;;  %v7219_v60 = vpack.c.bf16 %v6193_v21, %v6191_v3  ;;  %v6195_v8 = vld [vmem:[#allocation6 + $0x700] sm:$0xff]  ;;  %v6222_v10 = vld [vmem:[#allocation6 + $0x7d8] sm:$0xff] }
 0x4ba   : > { %v4255_v49 = vadd.f32 %v4242_v52, %v4199_v24  ;;  %v4201_v2 = vpop.f32.mrb[23].mxu1  ;;  %7198 = vmatprep.subr.bf16.mxu1 %v7197_v62  ;;  %v6179_v52 = vld [vmem:[#allocation6 + $0x680] sm:$0xff]  ;;  %v6198_v62 = vld [vmem:[#allocation6 + $0x718] sm:$0xff]  ;;  %v7223_v24 = vpack.c.bf16 %v6197_v36, %v6195_v8 }
 0x4bb   : > { %v4256_v41 = vadd.f32 %v4246_v1, %v4201_v2  ;;  %4413 = vmatprep.mubr.f32.mxu1 %v4262_v39  ;;  %v7207_v4 = vpack.c.bf16 %v6181_v51, %v6179_v52  ;;  %v7209_v1 = vpack.c.bf16 %v6186_v56, %v6184_v47  ;;  %v7221_v18 = vpack.c.bf16 %v6198_v62, %v6196_v15  ;;  %v6202_v39 = vld [vmem:[#allocation6 + $0x738] sm:$0xff]  ;;  %v6204_v2 = vld [vmem:[#allocation6 + $0x748] sm:$0xff]  ;;  %v6211_v56 = vld [vmem:[#allocation6 + $0x780] sm:$0xff] }
 0x4bc   : > { %4414 = vmatmul.mubr.f32.gmra.mrb[12].mxu1 %v4261_v31  ;;  %v4263_v13 = vmax.f32 %v4255_v49, 0.0  ;;  %v6199_v31 = vld [vmem:[#allocation6 + $0x720] sm:$0xff]  ;;  %v6201_v49 = vld [vmem:[#allocation6 + $0x730] sm:$0xff]  ;;  %v6212_v52 = vld [vmem:[#allocation6 + $0x788] sm:$0xff]  ;;  %v6132_v15 = vrot.slane %v9790_v40, %v8905_v42  ;;  %v6144_v40 = vadd.f32 %v9794_v33, %v9776_v50 }
 0x4bd   : > { %v4264_v35 = vmax.f32 %v4256_v41, 0.0  ;;  %7200 = vmatpush1.bf16.msra.mxu1 %v7199_v6  ;;  %v7225_v6 = vpack.c.bf16 %v6202_v39, %v6200_v14  ;;  %v7227_v11 = vpack.c.bf16 %v6201_v49, %v6199_v31  ;;  %v6205_v41 = vld [vmem:[#allocation6 + $0x750] sm:$0xff]  ;;  %v6214_v51 = vld [vmem:[#allocation6 + $0x798] sm:$0xff]  ;;  %v6219_v46 = vld [vmem:[#allocation6 + $0x7c0] sm:$0xff]  ;;  %v6142_v14 = vadd.f32 %v9794_v33, %v9772_v17 }
 0x4be   : > { %7202 = vmatprep.subr.bf16.mxu1 %v7201_v59  ;;  %v6206_v59 = vld [vmem:[#allocation6 + $0x758] sm:$0xff]  ;;  %v7237_v47 = vpack.c.bf16 %v6214_v51, %v6212_v52  ;;  %v6139_v36 = vadd.f32 %v6132_v15, %v9766_v28  ;;  %v6143_v49 = vadd.f32 %v6132_v15, %v9774_v37  ;;  %v6146_v28 = vadd.f32 %v9794_v33, %v9780_v63  ;;  %v6340_v50 = vld [vmem:[%s7888_s24] sm:$0x3]  ;;  %s6996_s24 = sshll.u32 %s7695_s30, 3 }
 0x4bf   : > { %4419 = vmatprep.mubr.f32.mxu1 %v4264_v35  ;;  %v7229_v48 = vpack.c.bf16 %v6206_v59, %v6204_v2  ;;  %v7231_v35 = vpack.c.bf16 %v6205_v41, %v6203_v32  ;;  %v6226_v3 = vld [vmem:[#allocation6 + $0x7f8] sm:$0xff]  ;;  %v6152_v2 = vmax.f32 %v6144_v40, 0.0  ;;  %v6145_v59 = vadd.f32 %v6132_v15, %v9778_v44  ;;  %s6411_s17 = sadd.s32 %s6996_s24, %s6991_s13  ;;  %s7619_s24 = scalar_lea.vmem %s7618_s18, 2048 }
 0x4c0   : > { %4420 = vmatmul.mubr.f32.gmra.mrb[14].mxu1 %v4263_v13  ;;  %v6207_v13 = vld [vmem:[#allocation6 + $0x760] sm:$0xff]  ;;  %v6147_v39 = vmax.f32 %v6139_v36, 0.0  ;;  %v6151_v17 = vmax.f32 %v6143_v49, 0.0  ;;  %v6345_v37 = vrot.slane %v6340_v50, %v8905_v42  ;;  %v6349_v63 = vrot.slane %v6340_v50, %v8915_v57  ;;  %s6992_s30 = sshll.u32 %s6411_s17, 7  ;;  %p7621_p6 = scmp.lt.s32.totalorder %s7619_s24, %s7613_s16 }
 0x4c1   : > { %7204 = vmatpush1.bf16.msra.mxu1 %v7203_v7  ;;  %6291 = vmatprep.mubr.f32.mxu1 %v6148_v54  ;;  %v7233_v7 = vpack.c.bf16 %v6210_v34, %v6208_v5  ;;  %s9838_s23 = scalar_lea.hbm %s9906_s8, %s6992_s30 }
 0x4c2   : > { %7206 = vmatprep.subr.bf16.mxu1 %v7205_v25  ;;  %v6209_v25 = vld [vmem:[#allocation6 + $0x770] sm:$0xff]  ;;  %p7622_p7 = por %p7621_p6, %p7620_p5 }
 0x4c3   : > { %v7235_v54 = vpack.c.bf16 %v6209_v25, %v6207_v13 }
 0x4c4   : > { %p7623_p9 = pnand %p7622_p7, %p7616_p2 }
 0x4c5   : > { %7208 = vmatpush1.bf16.msra.mxu1 %v7207_v4  ;;  %v6213_v4 = vld [vmem:[#allocation6 + $0x790] sm:$0xff] }
 0x4c6   : > { %7210 = vmatprep.subr.bf16.mxu1 %v7209_v1  ;;  %v6216_v1 = vld [vmem:[#allocation6 + $0x7a8] sm:$0xff]  ;;  %v7239_v20 = vpack.c.bf16 %v6213_v4, %v6211_v56 }
 0x4c7   : > { %v7241_v29 = vpack.c.bf16 %v6218_v30, %v6216_v1 }
 0x4c9   : > { %7212 = vmatpush1.bf16.msra.mxu1 %v7211_v43  ;;  %v6217_v43 = vld [vmem:[#allocation6 + $0x7b0] sm:$0xff] }
 0x4ca   : > { %7214 = vmatprep.subr.bf16.mxu1 %v7213_v38  ;;  %v6220_v38 = vld [vmem:[#allocation6 + $0x7c8] sm:$0xff]  ;;  %v7243_v9 = vpack.c.bf16 %v6217_v43, %v6215_v16 }
 0x4cb   : > { %v7245_v55 = vpack.c.bf16 %v6222_v10, %v6220_v38 }
 0x4cd   : > { %7216 = vmatpush1.bf16.msra.mxu1 %v7215_v12  ;;  %v6221_v12 = vld [vmem:[#allocation6 + $0x7d0] sm:$0xff] }
 0x4ce   : > { %7218 = vmatprep.subr.bf16.mxu1 %v7217_v45  ;;  %v6224_v45 = vld [vmem:[#allocation6 + $0x7e8] sm:$0xff]  ;;  %v7247_v21 = vpack.c.bf16 %v6221_v12, %v6219_v46 }
 0x4cf   : > { %v7249_v62 = vpack.c.bf16 %v6226_v3, %v6224_v45 }
 0x4d1   : > { %7220 = vmatpush1.bf16.msra.mxu1 %v7219_v60  ;;  %v6223_v60 = vld [vmem:[#allocation6 + $0x7e0] sm:$0xff] }
 0x4d2   : > { %7222 = vmatprep.subr.bf16.mxu1 %v7221_v18  ;;  %v6225_v18 = vld [vmem:[#allocation6 + $0x7f0] sm:$0xff] }
 0x4d3   : > { %v7251_v8 = vpack.c.bf16 %v6225_v18, %v6223_v60 }
 0x4d5   : > { %7224 = vmatpush1.bf16.msra.mxu1 %v7223_v24  ;;  %v6141_v24 = vadd.f32 %v6132_v15, %v9770_v27  ;;  %v6154_v27 = vmax.f32 %v6146_v28, 0.0 }
 0x4d6   : > { %7226 = vmatprep.subr.bf16.mxu1 %v7225_v6  ;;  %v6150_v6 = vmax.f32 %v6142_v14, 0.0 }
 0x4d7   : > { %v6149_v31 = vmax.f32 %v6141_v24, 0.0 }
 0x4d9   : > { %7228 = vmatpush1.bf16.msra.mxu1 %v7227_v11  ;;  %v6153_v11 = vmax.f32 %v6145_v59, 0.0 }
 0x4da   : > { %7230 = vmatprep.subr.bf16.mxu1 %v7229_v48  ;;  %v6987_v48 = vld [vmem:[%s9905_s7 + $0x4] ss:$8 sm:$0x3] }
 0x4db   : > { %v6366_v41 = vrot.slane %v6987_v48, %v8905_v42  ;;  %v6370_v34 = vrot.slane %v6987_v48, %v8915_v57 }
 0x4dd   : > { %7232 = vmatpush1.bf16.msra.mxu1 %v7231_v35 }
 0x4de   : > { %7234 = vmatprep.subr.bf16.mxu1 %v7233_v7 }
 0x4e1   : > { %7236 = vmatpush1.bf16.msra.mxu1 %v7235_v54 }
 0x4e2   : > { %7238 = vmatprep.subr.bf16.mxu1 %v7237_v47 }
 0x4e5   : > { %7240 = vmatpush1.bf16.msra.mxu1 %v7239_v20 }
 0x4e6   : > { %7242 = vmatprep.subr.bf16.mxu1 %v7241_v29 }
 0x4e9   : > { %7244 = vmatpush1.bf16.msra.mxu1 %v7243_v9 }
 0x4ea   : > { %7246 = vmatprep.subr.bf16.mxu1 %v7245_v55 }
 0x4ed   : > { %7248 = vmatpush1.bf16.msra.mxu1 %v7247_v21 }
 0x4ee   : > { %7250 = vmatprep.subr.bf16.mxu1 %v7249_v62 }
 0x4f1   : > { %7252 = vmatpush1.bf16.msra.mxu1 %v7251_v8 }
 0x4f4   : > { %6292 = vmatmul.mubr.f32.vlgmr.msra.gmra.mrb[8].mxu1 %v6147_v39 }
 0x4f5   : > { %6297 = vmatprep.mubr.f32.mxu1 %v6150_v6 }
 0x4f8   : > { %6298 = vmatmul.mubr.f32.gmra.mrb[10].mxu1 %v6149_v31 }
 0x4f9   : > { %6303 = vmatprep.mubr.f32.mxu1 %v6152_v2 }
 0x4fc   : > { %6304 = vmatmul.mubr.f32.gmra.mrb[12].mxu1 %v6151_v17 }
 0x4fd   : > { %6309 = vmatprep.mubr.f32.mxu1 %v6154_v27 }
 0x500   : > { %6310 = vmatmul.mubr.f32.gmra.mrb[14].mxu1 %v6153_v11 }
 0x5c7   : > { %v6293_v32 = vpop.f32.mrb[8].mxu1 }
 0x5c8   : > { %v7253_v33 = vadd.f32 %v6293_v32, %v9307_v58  ;;  %v6295_v44 = vpop.f32.mrb[9].mxu1 }
 0x5c9   : > { %v7254_v5 = vadd.f32 %v6295_v44, %v9311_v0 }
 0x5ca   : > { %v6352_v35 = vadd.f32 %v7253_v33, %v6345_v37 }
 0x5cb   : > { %v6353_v7 = vadd.f32 %v7254_v5, %v6349_v63  ;;  %v6299_v13 = vpop.f32.mrb[10].mxu1 }
 0x5cc   : > { %v6373_v25 = vadd.f32 %v6366_v41, %v6352_v35  ;;  %v7255_v52 = vadd.f32 %v6299_v13, %v9319_v19  ;;  %v6301_v51 = vpop.f32.mrb[11].mxu1 }
 0x5cd   : > { %v6374_v54 = vadd.f32 %v6370_v34, %v6353_v7  ;;  %v7256_v58 = vadd.f32 %v6301_v51, %v9324_v23 }
 0x5ce   : > { %v6381_v42 = vmax.f32 %v6373_v25, 0.0  ;;  %v6354_v47 = vadd.f32 %v7255_v52, %v6345_v37 }
 0x5cf   : > { %v6382_v56 = vmax.f32 %v6374_v54, 0.0  ;;  %v6355_v4 = vadd.f32 %v7256_v58, %v6349_v63  ;;  %v6305_v0 = vpop.f32.mrb[12].mxu1 }
 0x5d0   : > { %6389 = vst [vmem:[%s7890_s22] sm:$0xff] %v6381_v42  ;;  %v6375_v57 = vadd.f32 %v6366_v41, %v6354_v47  ;;  %v7257_v1 = vadd.f32 %v6305_v0, %v9332_v22  ;;  %v6307_v30 = vpop.f32.mrb[13].mxu1 }
 0x5d1   : > { %6390 = vst [vmem:[%s7890_s22 + $0x8] sm:$0xff] %v6382_v56  ;;  %v6376_v19 = vadd.f32 %v6370_v34, %v6355_v4  ;;  %v7258_v20 = vadd.f32 %v6307_v30, %v9337_v26 }
 0x5d2   : > { %v6383_v29 = vmax.f32 %v6375_v57, 0.0  ;;  %v6356_v23 = vadd.f32 %v7257_v1, %v6345_v37 }
 0x5d3   : > { %v6384_v16 = vmax.f32 %v6376_v19, 0.0  ;;  %v6357_v43 = vadd.f32 %v7258_v20, %v6349_v63  ;;  %v6311_v38 = vpop.f32.mrb[14].mxu1 }
 0x5d4   : > { %6391 = vst [vmem:[%s7890_s22 + $0x10] sm:$0xff] %v6383_v29  ;;  %v6377_v10 = vadd.f32 %v6366_v41, %v6356_v23  ;;  %v7259_v22 = vadd.f32 %v6311_v38, %v9342_v61  ;;  %v6313_v9 = vpop.f32.mrb[15].mxu1 }
 0x5d5   : > { %6392 = vst [vmem:[%s7890_s22 + $0x18] sm:$0xff] %v6384_v16  ;;  %v6378_v55 = vadd.f32 %v6370_v34, %v6357_v43  ;;  %v7260_v26 = vadd.f32 %v6313_v9, %v9346_v53 }
 0x5d6   : > { %v6385_v46 = vmax.f32 %v6377_v10, 0.0  ;;  %v6358_v12 = vadd.f32 %v7259_v22, %v6345_v37 }
 0x5d7   : > { %v6386_v45 = vmax.f32 %v6378_v55, 0.0  ;;  %v6359_v3 = vadd.f32 %v7260_v26, %v6349_v63 }
 0x5d8   : > { %6393 = vst [vmem:[%s7890_s22 + $0x20] sm:$0xff] %v6385_v46  ;;  %v6379_v21 = vadd.f32 %v6366_v41, %v6358_v12 }
 0x5d9   : > { %6394 = vst [vmem:[%s7890_s22 + $0x28] sm:$0xff] %v6386_v45  ;;  %v6380_v61 = vadd.f32 %v6370_v34, %v6359_v3 }
 0x5da   : > { %v6387_v15 = vmax.f32 %v6379_v21, 0.0 }
 0x5db   : > { %v6388_v53 = vmax.f32 %v6380_v61, 0.0 }
 0x5dc   : > { %6395 = vst [vmem:[%s7890_s22 + $0x30] sm:$0xff] %v6387_v15 }
 0x5dd   : > { %6396 = vst [vmem:[%s7890_s22 + $0x38] sm:$0xff] %v6388_v53 }
 0x5de   : > { %7626 = shalt.err (!%p7623_p9)
}
 0x5df   : > { %s7627_s11 = scalar_lea.hbm %s9838_s23, 1024  ;;  %s7631_s17 = scalar_lea.hbm %s9906_s8, 16384 }
 0x5e0   : > { %p7628_p11 = scmp.ne.s32.totalorder %s9838_s23, %s7627_s11  ;;  %p7632_p4 = scmp.lt.u32.totalorder %s9838_s23, %s9906_s8 }
 0x5e1   : > { %p7633_p3 = scmp.lt.u32.totalorder %s7631_s17, %s7627_s11  ;;  %p7635_p10 = scmp.lt.u32.totalorder %s7627_s11, %s9838_s23 }
 0x5e2   : > { %p7629_p13 = pnand %p7628_p11, %p9927_p12 }
 0x5e3   : > { %p7634_p8 = por %p7633_p3, %p7632_p4 }
 0x5e4   : > { %p7630_p1 = pneg %p7629_p13 }
 0x5e5   : > { %p7636_p0 = por %p7635_p10, %p7634_p8 }
 0x5e7   : > { %p7637_p2 = pnand %p7636_p0, %p7630_p1 }
 0x5e9   : > { %7640 = shalt.err (!%p7637_p2)
}
 0x5ea   : > { %s7719_s26 = smov 256   ;;  %s7720_s16 = smov 16  }
 0x5eb   : > { %7473 = dma.vmem_to_hbm [thread:$0]  (%p9927_p12), %s9840_s9, 1024, %s9838_s23, %s9846_s15, %s7719_s26, %s7719_s26, %s7720_s16  }
 0x5ec PF: > { %p7485_p5 = scmp.ge.s32.totalorder %s7711_s12, 2  ;;  %s6429_s21 = sand.u32 1, %s7683_s27  }
 0x5ed   : > { %p9928_p6 = scmp.ne.s32.totalorder %s9920_s20, 0  ;;  %s6430_s18 = scalar_lea.sflag [#allocation8], %s6429_s21 }
 0x5ef   : > { %p7480_p7 = pnand %p7485_p5, %p9928_p6 }
 0x5f1   : > { %7678 = dma.done.wait (!%p7480_p7), %s6430_s18, 1024  }
 0x5f2   : > { %7680 = vsyncadd (!%p7480_p7), %s6430_s18, 4294966272  ;;  %s22_s12 = sadd.s32 1, %s7711_s12   ;;  %s9929_s9 = sld [smem:[#allocation12_spill]] }
 0x5f3   : > { %p19_p9 = scmp.ge.s32.totalorder %s22_s12, 18   ;;  %s9930_s19 = sld [smem:[#allocation13_spill]] }
 0x5f4   : > { %s9931_s11 = sld [smem:[#allocation14_spill]]  ;;  %s9932_s27 = smov %s7687_s28 }
 0x5f5   : > { %s9933_s28 = smov %s7691_s29  ;;  %s9934_s29 = smov %s7845_s25 }
 0x5f6   : > { %s9935_s30 = smov %s7703_s10  ;;  %21 = sbr.rel (!%p19_p9) target bundleno = 6 (0x6), region = 137 }
 0x5f9   : > { %s9936_s10 = smov %s9930_s19 }
 0x5fd   :  { %6435 = vsyncpa [#allocation7], 1 }
 0x5fe   :  { %6437 = vsyncpa [#allocation7 + $0x1], 1 }
 0x5ff   :  { %6438 = vsyncpa [#allocation8], 1 }
 0x600   :  { %6440 = vsyncpa [#allocation8 + $0x1], 1 }

</bundles_post_ra>
